<compile_context>
chip_gen: v5e
topology: v5e:2x2
jax: 0.10.0
libtpu: 0.0.40
codegen_flags: <defaults>
</compile_context>

<pallas_src>
import functools
import math

import jax
import jax.numpy as jnp
from jax.experimental import pallas as pl
from jax.experimental.pallas import tpu as pltpu


# ---------------------------------------------------------------------------
# Kernel 1: fused bidirectional GRU over a padded batch tile.
#   x_ref    : (T, Bt, E)  time-major input block (f32)
#   len_ref  : (Bt, 1)     int32 valid lengths
#   wih_ref  : (E, 6H)     bf16, [fwd r|z|n | bwd r|z|n]
#   whhf/whhb: (H, 3H)     bf16
#   bih_ref  : (1, 6H), bhhf/bhhb: (1, 3H)   f32
#   out_ref  : (T, Bt, 2H) f32, [fwd | bwd], zeros at padded positions
# ---------------------------------------------------------------------------
def bigru_kernel(x_ref, len_ref, wih_ref, whhf_ref, whhb_ref,
                 bih_ref, bhhf_ref, bhhb_ref, out_ref,
                 gi_ref, outf_ref, outb_ref):
    T, Bt, E = x_ref.shape
    H = whhf_ref.shape[0]

    # ---- hoisted input projection for BOTH directions (one big MXU matmul) ----
    x2 = x_ref[...].astype(jnp.bfloat16).reshape(T * Bt, E)
    gi = jnp.dot(x2, wih_ref[...], preferred_element_type=jnp.float32) + bih_ref[...]
    gi_ref[...] = gi.reshape(T, Bt, 6 * H)

    # ---- loads hoisted above the recurrence ----
    lens = len_ref[...]                       # (Bt, 1) int32
    whh_f = whhf_ref[...]                     # (H, 3H) bf16
    whh_b = whhb_ref[...]
    bhh_f = bhhf_ref[...]                     # (1, 3H) f32
    bhh_b = bhhb_ref[...]

    def cell(gi_t, h, whh, bhh):
        gh = jnp.dot(h.astype(jnp.bfloat16), whh,
                     preferred_element_type=jnp.float32) + bhh
        r = jax.nn.sigmoid(gi_t[:, 0:H] + gh[:, 0:H])
        z = jax.nn.sigmoid(gi_t[:, H:2 * H] + gh[:, H:2 * H])
        n = jnp.tanh(gi_t[:, 2 * H:3 * H] + r * gh[:, 2 * H:3 * H])
        return (1.0 - z) * n + z * h

    def step(s, carry):
        h_f, h_b = carry
        tf = s
        tb = T - 1 - s
        gif = gi_ref[tf]                      # (Bt, 6H)
        gib = gi_ref[tb]
        hf_new = cell(gif[:, 0:3 * H], h_f, whh_f, bhh_f)
        hb_new = cell(gib[:, 3 * H:6 * H], h_b, whh_b, bhh_b)
        vf = tf < lens                        # (Bt, 1) bool
        vb = tb < lens
        h_f = jnp.where(vf, hf_new, h_f)      # freeze hidden past length
        h_b = jnp.where(vb, hb_new, h_b)
        outf_ref[tf] = jnp.where(vf, h_f, 0.0)   # pad_packed: zeros past length
        outb_ref[tb] = jnp.where(vb, h_b, 0.0)
        return h_f, h_b

    h0 = jnp.zeros((Bt, H), jnp.float32)
    unroll = True if T <= 32 else 4
    jax.lax.fori_loop(0, T, step, (h0, h0), unroll=unroll)

    # single lane-dense store of the concatenated fwd|bwd outputs
    out_ref[...] = jnp.concatenate([outf_ref[...], outb_ref[...]], axis=-1)


# ---------------------------------------------------------------------------
# Kernel 2: masked self-attention + sum over query positions, one sequence
# per grid step (lengths arrive via scalar prefetch -> SMEM).
#   h_ref : (1, T, 2H) f32 GRU outputs   out_ref : (1, 1, 2H) f32
# ---------------------------------------------------------------------------
def self_attn_kernel(len_ref, h_ref, wq_ref, bq_ref, wk_ref, bk_ref, out_ref,
                     *, scale):
    b = pl.program_id(0)
    T = h_ref.shape[1]

    h = h_ref[0]                                           # (T, 2H) f32
    h_bf = h.astype(jnp.bfloat16)
    q = jnp.tanh(jnp.dot(h_bf, wq_ref[...],
                         preferred_element_type=jnp.float32) + bq_ref[...])
    k = jnp.tanh(jnp.dot(h_bf, wk_ref[...],
                         preferred_element_type=jnp.float32) + bk_ref[...])

    p = jnp.einsum("td,sd->ts", q.astype(jnp.bfloat16), k.astype(jnp.bfloat16),
                   preferred_element_type=jnp.float32) * scale     # (T, T)

    L = len_ref[b]
    row = jax.lax.broadcasted_iota(jnp.int32, (T, T), 0)
    col = jax.lax.broadcasted_iota(jnp.int32, (T, T), 1)
    p = jnp.where((row < L) & (col < L), p, jnp.float32(-1.0e10))

    # softmax over keys (fully-masked padded rows -> uniform 1/T, as in torch)
    p = p - jnp.max(p, axis=1, keepdims=True)
    e = jnp.exp(p)
    probs = e * pl.reciprocal(jnp.sum(e, axis=1, keepdims=True), approx=True)

    final = jnp.dot(probs.astype(jnp.bfloat16), h_bf,
                    preferred_element_type=jnp.float32)            # (T, 2H)
    out_ref[0] = jnp.sum(final, axis=0, keepdims=True)             # (1, 2H)


# ---------------------------------------------------------------------------
# Forward wrapper
# ---------------------------------------------------------------------------
def word_self_attention_forward(params, inp, inp_len):
    """inp: (B, T, E) f32 padded embeddings; inp_len: (B,) int32. -> (B, 2H)."""
    B, T, E = inp.shape
    g = params["gru"]
    H = g["whh_f"].shape[0]
    A = params["wq"].shape[1]
    Bt = 8 if B % 8 == 0 else B                      # batch tile (sublane-friendly)
    cp = pltpu.CompilerParams(dimension_semantics=("parallel",),
                              vmem_limit_bytes=32 * 1024 * 1024)

    # ---- bidirectional GRU (time-major for contiguous per-step slices) ----
    x_tbe = jnp.transpose(inp, (1, 0, 2))            # (T, B, E)
    lens_v = inp_len.astype(jnp.int32).reshape(B, 1)
    gru_out = pl.pallas_call(
        bigru_kernel,
        out_shape=jax.ShapeDtypeStruct((T, B, 2 * H), jnp.float32),
        grid=(B // Bt,),
        in_specs=[
            pl.BlockSpec((T, Bt, E), lambda i: (0, i, 0)),
            pl.BlockSpec((Bt, 1), lambda i: (i, 0)),
            pl.BlockSpec((E, 6 * H), lambda i: (0, 0)),
            pl.BlockSpec((H, 3 * H), lambda i: (0, 0)),
            pl.BlockSpec((H, 3 * H), lambda i: (0, 0)),
            pl.BlockSpec((1, 6 * H), lambda i: (0, 0)),
            pl.BlockSpec((1, 3 * H), lambda i: (0, 0)),
            pl.BlockSpec((1, 3 * H), lambda i: (0, 0)),
        ],
        out_specs=pl.BlockSpec((T, Bt, 2 * H), lambda i: (0, i, 0)),
        scratch_shapes=[
            pltpu.VMEM((T, Bt, 6 * H), jnp.float32),   # hoisted input projection
            pltpu.VMEM((T, Bt, H), jnp.float32),       # forward outputs
            pltpu.VMEM((T, Bt, H), jnp.float32),       # backward outputs
        ],
        compiler_params=cp,
    )(x_tbe, lens_v, g["wih6"], g["whh_f"], g["whh_b"],
      g["bih6"], g["bhh_f"], g["bhh_b"])

    # one cheap layout change so the attention kernel gets clean (1,T,2H) blocks
    h_btd = jnp.transpose(gru_out, (1, 0, 2))        # (B, T, 2H)

    # ---- masked self-attention + sum over query positions ----
    scale = 1.0 / math.sqrt(E)                       # reference uses embed_dim
    lens_s = inp_len.astype(jnp.int32)
    attn_grid = pltpu.PrefetchScalarGridSpec(
        num_scalar_prefetch=1,
        grid=(B,),
        in_specs=[
            pl.BlockSpec((1, T, 2 * H), lambda b, lens: (b, 0, 0)),
            pl.BlockSpec((2 * H, A), lambda b, lens: (0, 0)),
            pl.BlockSpec((1, A), lambda b, lens: (0, 0)),
            pl.BlockSpec((2 * H, A), lambda b, lens: (0, 0)),
            pl.BlockSpec((1, A), lambda b, lens: (0, 0)),
        ],
        out_specs=pl.BlockSpec((1, 1, 2 * H), lambda b, lens: (b, 0, 0)),
    )
    out = pl.pallas_call(
        functools.partial(self_attn_kernel, scale=scale),
        out_shape=jax.ShapeDtypeStruct((B, 1, 2 * H), jnp.float32),
        grid_spec=attn_grid,
        compiler_params=cp,
    )(lens_s, h_btd, params["wq"], params["bq"], params["wk"], params["bk"])
    return out.reshape(B, 2 * H)


# ---------------------------------------------------------------------------
# Deterministic parameter construction (PyTorch-style uniform init)
# ---------------------------------------------------------------------------
def init_gru_params(key, e, h):
    ks = jax.random.split(key, 8)
    bound = 1.0 / math.sqrt(h)

    def u(k, shape):
        return jax.random.uniform(k, shape, jnp.float32, -bound, bound)

    wih_f, whh_f = u(ks[0], (3 * h, e)), u(ks[1], (3 * h, h))
    bih_f, bhh_f = u(ks[2], (3 * h,)), u(ks[3], (3 * h,))
    wih_b, whh_b = u(ks[4], (3 * h, e)), u(ks[5], (3 * h, h))
    bih_b, bhh_b = u(ks[6], (3 * h,)), u(ks[7], (3 * h,))
    return {
        "wih6": jnp.concatenate([wih_f.T, wih_b.T], axis=1).astype(jnp.bfloat16),
        "whh_f": whh_f.T.astype(jnp.bfloat16),
        "whh_b": whh_b.T.astype(jnp.bfloat16),
        "bih6": jnp.concatenate([bih_f, bih_b]).reshape(1, 6 * h),
        "bhh_f": bhh_f.reshape(1, 3 * h),
        "bhh_b": bhh_b.reshape(1, 3 * h),
    }


def init_linear(key, fan_in, fan_out):
    k1, k2 = jax.random.split(key)
    bound = 1.0 / math.sqrt(fan_in)
    w = jax.random.uniform(k1, (fan_out, fan_in), jnp.float32, -bound, bound)
    b = jax.random.uniform(k2, (fan_out,), jnp.float32, -bound, bound)
    return w.T.astype(jnp.bfloat16), b.reshape(1, -1)   # (in, out), (1, out)


if __name__ == "__main__":
    # Small shapes consistent with the module (embed/hidden/attention scaled down).
    B, T, E, H, A = 16, 16, 32, 64, 64

    key = jax.random.PRNGKey(0)
    k_gru, k_q, k_k, k_x = jax.random.split(key, 4)
    wq, bq = init_linear(k_q, 2 * H, A)
    wk, bk = init_linear(k_k, 2 * H, A)
    params = {
        "gru": init_gru_params(k_gru, E, H),
        "wq": wq, "bq": bq, "wk": wk, "bk": bk,
    }

    inp = jax.random.normal(k_x, (B, T, E), jnp.float32)
    # valid lengths per sequence (max == T, matching pad_packed_sequence output)
    inp_len = jnp.array([16, 12, 9, 16, 5, 7, 14, 3, 16, 10, 8, 11, 2, 6, 13, 4],
                        dtype=jnp.int32)

    out = jax.jit(word_self_attention_forward)(params, inp, inp_len)
    out = jax.block_until_ready(out)
    assert out.shape == (B, 2 * H) and out.dtype == jnp.float32
    assert bool(jnp.all(jnp.isfinite(out)))
    print("KERNEL_OK")
</pallas_src>

<mosaic_0001>
module attributes {stable_mosaic.version = 11 : i64} {
  func.func @bigru_kernel(%arg0: i32, %arg1: memref<16x8x32xf32, #tpu.memory_space<vmem>>, %arg2: memref<8x1xi32, #tpu.memory_space<vmem>>, %arg3: memref<32x384xbf16, #tpu.memory_space<vmem>>, %arg4: memref<64x192xbf16, #tpu.memory_space<vmem>>, %arg5: memref<64x192xbf16, #tpu.memory_space<vmem>>, %arg6: memref<1x384xf32, #tpu.memory_space<vmem>>, %arg7: memref<1x192xf32, #tpu.memory_space<vmem>>, %arg8: memref<1x192xf32, #tpu.memory_space<vmem>>, %arg9: memref<16x8x128xf32, #tpu.memory_space<vmem>>, %arg10: memref<16x8x384xf32, #tpu.memory_space<vmem>>, %arg11: memref<16x8x64xf32, #tpu.memory_space<vmem>>, %arg12: memref<16x8x64xf32, #tpu.memory_space<vmem>>) attributes {dimension_semantics = [#tpu.dimension_semantics<parallel>], iteration_bounds = array<i64: 2>, scalar_prefetch = 0 : i64, scratch_operands = 3 : i64, tpu.core_type = #tpu.core_type<tc>, window_params = [{transform_indices = @transform_0, window_bounds = array<i64: 16, 8, 32>}, {transform_indices = @transform_1, window_bounds = array<i64: 8, 1>}, {pipeline_mode = #tpu.pipeline_mode<synchronous>, transform_indices = @transform_2, window_bounds = array<i64: 32, 384>}, {pipeline_mode = #tpu.pipeline_mode<synchronous>, transform_indices = @transform_3, window_bounds = array<i64: 64, 192>}, {pipeline_mode = #tpu.pipeline_mode<synchronous>, transform_indices = @transform_4, window_bounds = array<i64: 64, 192>}, {pipeline_mode = #tpu.pipeline_mode<synchronous>, transform_indices = @transform_5, window_bounds = array<i64: 1, 384>}, {pipeline_mode = #tpu.pipeline_mode<synchronous>, transform_indices = @transform_6, window_bounds = array<i64: 1, 192>}, {pipeline_mode = #tpu.pipeline_mode<synchronous>, transform_indices = @transform_7, window_bounds = array<i64: 1, 192>}, {transform_indices = @transform_8, window_bounds = array<i64: 16, 8, 128>}]} {
    %c0 = arith.constant 0 : index
    %c0_0 = arith.constant 0 : index
    %c0_1 = arith.constant 0 : index
    %0 = vector.load %arg1[%c0, %c0_0, %c0_1] : memref<16x8x32xf32, #tpu.memory_space<vmem>>, vector<16x8x32xf32>
    %1 = arith.truncf %0 : vector<16x8x32xf32> to vector<16x8x32xbf16>
    %2 = vector.shape_cast %1 : vector<16x8x32xbf16> to vector<128x32xbf16>
    %c0_2 = arith.constant 0 : index
    %c0_3 = arith.constant 0 : index
    %3 = vector.load %arg3[%c0_2, %c0_3] : memref<32x384xbf16, #tpu.memory_space<vmem>>, vector<32x384xbf16>
    %cst = arith.constant dense<0.000000e+00> : vector<128x384xf32>
    %4 = tpu.matmul %2, %3, %cst {dimension_numbers = #tpu.dot_dimension_numbers<[1], [0], [0], [1], [0, 0, 1, 1], [], []>} : vector<128x32xbf16>, vector<32x384xbf16>, vector<128x384xf32> -> vector<128x384xf32>
    %c0_4 = arith.constant 0 : index
    %c0_5 = arith.constant 0 : index
    %5 = vector.load %arg6[%c0_4, %c0_5] : memref<1x384xf32, #tpu.memory_space<vmem>>, vector<1x384xf32>
    %6 = vector.broadcast %5 : vector<1x384xf32> to vector<128x384xf32>
    %7 = arith.addf %4, %6 : vector<128x384xf32>
    %8 = vector.shape_cast %7 : vector<128x384xf32> to vector<16x8x384xf32>
    %c0_6 = arith.constant 0 : index
    %c0_7 = arith.constant 0 : index
    %c0_8 = arith.constant 0 : index
    %9 = vector.load %arg10[%c0_6, %c0_7, %c0_8] : memref<16x8x384xf32, #tpu.memory_space<vmem>>, vector<16x8x384xf32>
    tpu.vector_store %arg10[%c0_6, %c0_7, %c0_8], %8 {strides = array<i32>} : memref<16x8x384xf32, #tpu.memory_space<vmem>>, vector<16x8x384xf32>,
    %c0_9 = arith.constant 0 : index
    %c0_10 = arith.constant 0 : index
    %10 = vector.load %arg2[%c0_9, %c0_10] : memref<8x1xi32, #tpu.memory_space<vmem>>, vector<8x1xi32>
    %c0_11 = arith.constant 0 : index
    %c0_12 = arith.constant 0 : index
    %11 = vector.load %arg4[%c0_11, %c0_12] : memref<64x192xbf16, #tpu.memory_space<vmem>>, vector<64x192xbf16>
    %c0_13 = arith.constant 0 : index
    %c0_14 = arith.constant 0 : index
    %12 = vector.load %arg5[%c0_13, %c0_14] : memref<64x192xbf16, #tpu.memory_space<vmem>>, vector<64x192xbf16>
    %c0_15 = arith.constant 0 : index
    %c0_16 = arith.constant 0 : index
    %13 = vector.load %arg7[%c0_15, %c0_16] : memref<1x192xf32, #tpu.memory_space<vmem>>, vector<1x192xf32>
    %c0_17 = arith.constant 0 : index
    %c0_18 = arith.constant 0 : index
    %14 = vector.load %arg8[%c0_17, %c0_18] : memref<1x192xf32, #tpu.memory_space<vmem>>, vector<1x192xf32>
    %cst_19 = arith.constant 0.000000e+00 : f32
    %15 = vector.broadcast %cst_19 : f32 to vector<8x64xf32>
    %c0_i32 = arith.constant 0 : i32
    %c15_i32 = arith.constant 15 : i32
    %16 = arith.subi %c15_i32, %c0_i32 : i32
    %17 = arith.index_cast %c0_i32 : i32 to index
    %c0_20 = arith.constant 0 : index
    %c0_21 = arith.constant 0 : index
    %18 = vector.load %arg10[%17, %c0_20, %c0_21] : memref<16x8x384xf32, #tpu.memory_space<vmem>>, vector<1x8x384xf32>
    %19 = vector.shape_cast %18 : vector<1x8x384xf32> to vector<8x384xf32>
    %20 = arith.index_cast %16 : i32 to index
    %c0_22 = arith.constant 0 : index
    %c0_23 = arith.constant 0 : index
    %21 = vector.load %arg10[%20, %c0_22, %c0_23] : memref<16x8x384xf32, #tpu.memory_space<vmem>>, vector<1x8x384xf32>
    %22 = vector.shape_cast %21 : vector<1x8x384xf32> to vector<8x384xf32>
    %23 = vector.extract_strided_slice %19 {offsets = [0, 0], sizes = [8, 192], strides = [1, 1]} : vector<8x384xf32> to vector<8x192xf32>
    %24 = arith.truncf %15 : vector<8x64xf32> to vector<8x64xbf16>
    %cst_24 = arith.constant dense<0.000000e+00> : vector<8x192xf32>
    %25 = tpu.matmul %24, %11, %cst_24 {dimension_numbers = #tpu.dot_dimension_numbers<[1], [0], [0], [1], [0, 0, 1, 1], [], []>} : vector<8x64xbf16>, vector<64x192xbf16>, vector<8x192xf32> -> vector<8x192xf32>
    %26 = vector.broadcast %13 : vector<1x192xf32> to vector<8x192xf32>
    %27 = arith.addf %25, %26 : vector<8x192xf32>
    %28 = vector.extract_strided_slice %23 {offsets = [0, 0], sizes = [8, 64], strides = [1, 1]} : vector<8x192xf32> to vector<8x64xf32>
    %29 = vector.extract_strided_slice %27 {offsets = [0, 0], sizes = [8, 64], strides = [1, 1]} : vector<8x192xf32> to vector<8x64xf32>
    %30 = arith.addf %28, %29 : vector<8x64xf32>
    %31 = arith.negf %30 : vector<8x64xf32>
    %32 = math.exp %31 : vector<8x64xf32>
    %cst_25 = arith.constant 1.000000e+00 : f32
    %33 = vector.broadcast %cst_25 : f32 to vector<8x64xf32>
    %34 = arith.addf %33, %32 : vector<8x64xf32>
    %35 = arith.divf %33, %34 : vector<8x64xf32>
    %36 = vector.extract_strided_slice %23 {offsets = [0, 64], sizes = [8, 64], strides = [1, 1]} : vector<8x192xf32> to vector<8x64xf32>
    %37 = vector.extract_strided_slice %27 {offsets = [0, 64], sizes = [8, 64], strides = [1, 1]} : vector<8x192xf32> to vector<8x64xf32>
    %38 = arith.addf %36, %37 : vector<8x64xf32>
    %39 = arith.negf %38 : vector<8x64xf32>
    %40 = math.exp %39 : vector<8x64xf32>
    %cst_26 = arith.constant 1.000000e+00 : f32
    %41 = vector.broadcast %cst_26 : f32 to vector<8x64xf32>
    %42 = arith.addf %41, %40 : vector<8x64xf32>
    %43 = arith.divf %41, %42 : vector<8x64xf32>
    %44 = vector.extract_strided_slice %23 {offsets = [0, 128], sizes = [8, 64], strides = [1, 1]} : vector<8x192xf32> to vector<8x64xf32>
    %45 = vector.extract_strided_slice %27 {offsets = [0, 128], sizes = [8, 64], strides = [1, 1]} : vector<8x192xf32> to vector<8x64xf32>
    %46 = arith.mulf %35, %45 : vector<8x64xf32>
    %47 = arith.addf %44, %46 : vector<8x64xf32>
    %48 = math.tanh %47 : vector<8x64xf32>
    %cst_27 = arith.constant 1.000000e+00 : f32
    %49 = vector.broadcast %cst_27 : f32 to vector<8x64xf32>
    %50 = arith.subf %49, %43 : vector<8x64xf32>
    %51 = arith.mulf %50, %48 : vector<8x64xf32>
    %52 = arith.mulf %43, %15 : vector<8x64xf32>
    %53 = arith.addf %51, %52 : vector<8x64xf32>
    %54 = vector.extract_strided_slice %22 {offsets = [0, 192], sizes = [8, 192], strides = [1, 1]} : vector<8x384xf32> to vector<8x192xf32>
    %55 = arith.truncf %15 : vector<8x64xf32> to vector<8x64xbf16>
    %cst_28 = arith.constant dense<0.000000e+00> : vector<8x192xf32>
    %56 = tpu.matmul %55, %12, %cst_28 {dimension_numbers = #tpu.dot_dimension_numbers<[1], [0], [0], [1], [0, 0, 1, 1], [], []>} : vector<8x64xbf16>, vector<64x192xbf16>, vector<8x192xf32> -> vector<8x192xf32>
    %57 = vector.broadcast %14 : vector<1x192xf32> to vector<8x192xf32>
    %58 = arith.addf %56, %57 : vector<8x192xf32>
    %59 = vector.extract_strided_slice %54 {offsets = [0, 0], sizes = [8, 64], strides = [1, 1]} : vector<8x192xf32> to vector<8x64xf32>
    %60 = vector.extract_strided_slice %58 {offsets = [0, 0], sizes = [8, 64], strides = [1, 1]} : vector<8x192xf32> to vector<8x64xf32>
    %61 = arith.addf %59, %60 : vector<8x64xf32>
    %62 = arith.negf %61 : vector<8x64xf32>
    %63 = math.exp %62 : vector<8x64xf32>
    %cst_29 = arith.constant 1.000000e+00 : f32
    %64 = vector.broadcast %cst_29 : f32 to vector<8x64xf32>
    %65 = arith.addf %64, %63 : vector<8x64xf32>
    %66 = arith.divf %64, %65 : vector<8x64xf32>
    %67 = vector.extract_strided_slice %54 {offsets = [0, 64], sizes = [8, 64], strides = [1, 1]} : vector<8x192xf32> to vector<8x64xf32>
    %68 = vector.extract_strided_slice %58 {offsets = [0, 64], sizes = [8, 64], strides = [1, 1]} : vector<8x192xf32> to vector<8x64xf32>
    %69 = arith.addf %67, %68 : vector<8x64xf32>
    %70 = arith.negf %69 : vector<8x64xf32>
    %71 = math.exp %70 : vector<8x64xf32>
    %cst_30 = arith.constant 1.000000e+00 : f32
    %72 = vector.broadcast %cst_30 : f32 to vector<8x64xf32>
    %73 = arith.addf %72, %71 : vector<8x64xf32>
    %74 = arith.divf %72, %73 : vector<8x64xf32>
    %75 = vector.extract_strided_slice %54 {offsets = [0, 128], sizes = [8, 64], strides = [1, 1]} : vector<8x192xf32> to vector<8x64xf32>
    %76 = vector.extract_strided_slice %58 {offsets = [0, 128], sizes = [8, 64], strides = [1, 1]} : vector<8x192xf32> to vector<8x64xf32>
    %77 = arith.mulf %66, %76 : vector<8x64xf32>
    %78 = arith.addf %75, %77 : vector<8x64xf32>
    %79 = math.tanh %78 : vector<8x64xf32>
    %cst_31 = arith.constant 1.000000e+00 : f32
    %80 = vector.broadcast %cst_31 : f32 to vector<8x64xf32>
    %81 = arith.subf %80, %74 : vector<8x64xf32>
    %82 = arith.mulf %81, %79 : vector<8x64xf32>
    %83 = arith.mulf %74, %15 : vector<8x64xf32>
    %84 = arith.addf %82, %83 : vector<8x64xf32>
    %85 = vector.broadcast %c0_i32 : i32 to vector<8x1xi32>
    %86 = arith.cmpi slt, %85, %10 : vector<8x1xi32>
    %87 = vector.broadcast %16 : i32 to vector<8x1xi32>
    %88 = arith.cmpi slt, %87, %10 : vector<8x1xi32>
    %89 = vector.shape_cast %86 : vector<8x1xi1> to vector<8x1xi1>
    %90 = vector.broadcast %89 : vector<8x1xi1> to vector<8x64xi1>
    %91 = arith.select %90, %53, %15 : vector<8x64xi1>, vector<8x64xf32>
    %92 = vector.shape_cast %88 : vector<8x1xi1> to vector<8x1xi1>
    %93 = vector.broadcast %92 : vector<8x1xi1> to vector<8x64xi1>
    %94 = arith.select %93, %84, %15 : vector<8x64xi1>, vector<8x64xf32>
    %cst_32 = arith.constant 0.000000e+00 : f32
    %95 = vector.shape_cast %86 : vector<8x1xi1> to vector<8x1xi1>
    %96 = vector.broadcast %95 : vector<8x1xi1> to vector<8x64xi1>
    %97 = vector.broadcast %cst_32 : f32 to vector<8x64xf32>
    %98 = arith.select %96, %91, %97 : vector<8x64xi1>, vector<8x64xf32>
    %99 = arith.index_cast %c0_i32 : i32 to index
    %c0_33 = arith.constant 0 : index
    %c0_34 = arith.constant 0 : index
    %100 = vector.load %arg11[%99, %c0_33, %c0_34] : memref<16x8x64xf32, #tpu.memory_space<vmem>>, vector<1x8x64xf32>
    %101 = vector.shape_cast %100 : vector<1x8x64xf32> to vector<8x64xf32>
    %102 = vector.shape_cast %98 : vector<8x64xf32> to vector<1x8x64xf32>
    tpu.vector_store %arg11[%99, %c0_33, %c0_34], %102 {strides = array<i32>} : memref<16x8x64xf32, #tpu.memory_space<vmem>>, vector<1x8x64xf32>,
    %cst_35 = arith.constant 0.000000e+00 : f32
    %103 = vector.shape_cast %88 : vector<8x1xi1> to vector<8x1xi1>
    %104 = vector.broadcast %103 : vector<8x1xi1> to vector<8x64xi1>
    %105 = vector.broadcast %cst_35 : f32 to vector<8x64xf32>
    %106 = arith.select %104, %94, %105 : vector<8x64xi1>, vector<8x64xf32>
    %107 = arith.index_cast %16 : i32 to index
    %c0_36 = arith.constant 0 : index
    %c0_37 = arith.constant 0 : index
    %108 = vector.load %arg12[%107, %c0_36, %c0_37] : memref<16x8x64xf32, #tpu.memory_space<vmem>>, vector<1x8x64xf32>
    %109 = vector.shape_cast %108 : vector<1x8x64xf32> to vector<8x64xf32>
    %110 = vector.shape_cast %106 : vector<8x64xf32> to vector<1x8x64xf32>
    tpu.vector_store %arg12[%107, %c0_36, %c0_37], %110 {strides = array<i32>} : memref<16x8x64xf32, #tpu.memory_space<vmem>>, vector<1x8x64xf32>,
    %c1_i32 = arith.constant 1 : i32
    %c15_i32_38 = arith.constant 15 : i32
    %111 = arith.subi %c15_i32_38, %c1_i32 : i32
    %112 = arith.index_cast %c1_i32 : i32 to index
    %c0_39 = arith.constant 0 : index
    %c0_40 = arith.constant 0 : index
    %113 = vector.load %arg10[%112, %c0_39, %c0_40] : memref<16x8x384xf32, #tpu.memory_space<vmem>>, vector<1x8x384xf32>
    %114 = vector.shape_cast %113 : vector<1x8x384xf32> to vector<8x384xf32>
    %115 = arith.index_cast %111 : i32 to index
    %c0_41 = arith.constant 0 : index
    %c0_42 = arith.constant 0 : index
    %116 = vector.load %arg10[%115, %c0_41, %c0_42] : memref<16x8x384xf32, #tpu.memory_space<vmem>>, vector<1x8x384xf32>
    %117 = vector.shape_cast %116 : vector<1x8x384xf32> to vector<8x384xf32>
    %118 = vector.extract_strided_slice %114 {offsets = [0, 0], sizes = [8, 192], strides = [1, 1]} : vector<8x384xf32> to vector<8x192xf32>
    %119 = arith.truncf %91 : vector<8x64xf32> to vector<8x64xbf16>
    %cst_43 = arith.constant dense<0.000000e+00> : vector<8x192xf32>
    %120 = tpu.matmul %119, %11, %cst_43 {dimension_numbers = #tpu.dot_dimension_numbers<[1], [0], [0], [1], [0, 0, 1, 1], [], []>} : vector<8x64xbf16>, vector<64x192xbf16>, vector<8x192xf32> -> vector<8x192xf32>
    %121 = vector.broadcast %13 : vector<1x192xf32> to vector<8x192xf32>
    %122 = arith.addf %120, %121 : vector<8x192xf32>
    %123 = vector.extract_strided_slice %118 {offsets = [0, 0], sizes = [8, 64], strides = [1, 1]} : vector<8x192xf32> to vector<8x64xf32>
    %124 = vector.extract_strided_slice %122 {offsets = [0, 0], sizes = [8, 64], strides = [1, 1]} : vector<8x192xf32> to vector<8x64xf32>
    %125 = arith.addf %123, %124 : vector<8x64xf32>
    %126 = arith.negf %125 : vector<8x64xf32>
    %127 = math.exp %126 : vector<8x64xf32>
    %cst_44 = arith.constant 1.000000e+00 : f32
    %128 = vector.broadcast %cst_44 : f32 to vector<8x64xf32>
    %129 = arith.addf %128, %127 : vector<8x64xf32>
    %130 = arith.divf %128, %129 : vector<8x64xf32>
    %131 = vector.extract_strided_slice %118 {offsets = [0, 64], sizes = [8, 64], strides = [1, 1]} : vector<8x192xf32> to vector<8x64xf32>
    %132 = vector.extract_strided_slice %122 {offsets = [0, 64], sizes = [8, 64], strides = [1, 1]} : vector<8x192xf32> to vector<8x64xf32>
    %133 = arith.addf %131, %132 : vector<8x64xf32>
    %134 = arith.negf %133 : vector<8x64xf32>
    %135 = math.exp %134 : vector<8x64xf32>
    %cst_45 = arith.constant 1.000000e+00 : f32
    %136 = vector.broadcast %cst_45 : f32 to vector<8x64xf32>
    %137 = arith.addf %136, %135 : vector<8x64xf32>
    %138 = arith.divf %136, %137 : vector<8x64xf32>
    %139 = vector.extract_strided_slice %118 {offsets = [0, 128], sizes = [8, 64], strides = [1, 1]} : vector<8x192xf32> to vector<8x64xf32>
    %140 = vector.extract_strided_slice %122 {offsets = [0, 128], sizes = [8, 64], strides = [1, 1]} : vector<8x192xf32> to vector<8x64xf32>
    %141 = arith.mulf %130, %140 : vector<8x64xf32>
    %142 = arith.addf %139, %141 : vector<8x64xf32>
    %143 = math.tanh %142 : vector<8x64xf32>
    %cst_46 = arith.constant 1.000000e+00 : f32
    %144 = vector.broadcast %cst_46 : f32 to vector<8x64xf32>
    %145 = arith.subf %144, %138 : vector<8x64xf32>
    %146 = arith.mulf %145, %143 : vector<8x64xf32>
    %147 = arith.mulf %138, %91 : vector<8x64xf32>
    %148 = arith.addf %146, %147 : vector<8x64xf32>
    %149 = vector.extract_strided_slice %117 {offsets = [0, 192], sizes = [8, 192], strides = [1, 1]} : vector<8x384xf32> to vector<8x192xf32>
    %150 = arith.truncf %94 : vector<8x64xf32> to vector<8x64xbf16>
    %cst_47 = arith.constant dense<0.000000e+00> : vector<8x192xf32>
    %151 = tpu.matmul %150, %12, %cst_47 {dimension_numbers = #tpu.dot_dimension_numbers<[1], [0], [0], [1], [0, 0, 1, 1], [], []>} : vector<8x64xbf16>, vector<64x192xbf16>, vector<8x192xf32> -> vector<8x192xf32>
    %152 = vector.broadcast %14 : vector<1x192xf32> to vector<8x192xf32>
    %153 = arith.addf %151, %152 : vector<8x192xf32>
    %154 = vector.extract_strided_slice %149 {offsets = [0, 0], sizes = [8, 64], strides = [1, 1]} : vector<8x192xf32> to vector<8x64xf32>
    %155 = vector.extract_strided_slice %153 {offsets = [0, 0], sizes = [8, 64], strides = [1, 1]} : vector<8x192xf32> to vector<8x64xf32>
    %156 = arith.addf %154, %155 : vector<8x64xf32>
    %157 = arith.negf %156 : vector<8x64xf32>
    %158 = math.exp %157 : vector<8x64xf32>
    %cst_48 = arith.constant 1.000000e+00 : f32
    %159 = vector.broadcast %cst_48 : f32 to vector<8x64xf32>
    %160 = arith.addf %159, %158 : vector<8x64xf32>
    %161 = arith.divf %159, %160 : vector<8x64xf32>
    %162 = vector.extract_strided_slice %149 {offsets = [0, 64], sizes = [8, 64], strides = [1, 1]} : vector<8x192xf32> to vector<8x64xf32>
    %163 = vector.extract_strided_slice %153 {offsets = [0, 64], sizes = [8, 64], strides = [1, 1]} : vector<8x192xf32> to vector<8x64xf32>
    %164 = arith.addf %162, %163 : vector<8x64xf32>
    %165 = arith.negf %164 : vector<8x64xf32>
    %166 = math.exp %165 : vector<8x64xf32>
    %cst_49 = arith.constant 1.000000e+00 : f32
    %167 = vector.broadcast %cst_49 : f32 to vector<8x64xf32>
    %168 = arith.addf %167, %166 : vector<8x64xf32>
    %169 = arith.divf %167, %168 : vector<8x64xf32>
    %170 = vector.extract_strided_slice %149 {offsets = [0, 128], sizes = [8, 64], strides = [1, 1]} : vector<8x192xf32> to vector<8x64xf32>
    %171 = vector.extract_strided_slice %153 {offsets = [0, 128], sizes = [8, 64], strides = [1, 1]} : vector<8x192xf32> to vector<8x64xf32>
    %172 = arith.mulf %161, %171 : vector<8x64xf32>
    %173 = arith.addf %170, %172 : vector<8x64xf32>
    %174 = math.tanh %173 : vector<8x64xf32>
    %cst_50 = arith.constant 1.000000e+00 : f32
    %175 = vector.broadcast %cst_50 : f32 to vector<8x64xf32>
    %176 = arith.subf %175, %169 : vector<8x64xf32>
    %177 = arith.mulf %176, %174 : vector<8x64xf32>
    %178 = arith.mulf %169, %94 : vector<8x64xf32>
    %179 = arith.addf %177, %178 : vector<8x64xf32>
    %180 = vector.broadcast %c1_i32 : i32 to vector<8x1xi32>
    %181 = arith.cmpi slt, %180, %10 : vector<8x1xi32>
    %182 = vector.broadcast %111 : i32 to vector<8x1xi32>
    %183 = arith.cmpi slt, %182, %10 : vector<8x1xi32>
    %184 = vector.shape_cast %181 : vector<8x1xi1> to vector<8x1xi1>
    %185 = vector.broadcast %184 : vector<8x1xi1> to vector<8x64xi1>
    %186 = arith.select %185, %148, %91 : vector<8x64xi1>, vector<8x64xf32>
    %187 = vector.shape_cast %183 : vector<8x1xi1> to vector<8x1xi1>
    %188 = vector.broadcast %187 : vector<8x1xi1> to vector<8x64xi1>
    %189 = arith.select %188, %179, %94 : vector<8x64xi1>, vector<8x64xf32>
    %cst_51 = arith.constant 0.000000e+00 : f32
    %190 = vector.shape_cast %181 : vector<8x1xi1> to vector<8x1xi1>
    %191 = vector.broadcast %190 : vector<8x1xi1> to vector<8x64xi1>
    %192 = vector.broadcast %cst_51 : f32 to vector<8x64xf32>
    %193 = arith.select %191, %186, %192 : vector<8x64xi1>, vector<8x64xf32>
    %194 = arith.index_cast %c1_i32 : i32 to index
    %c0_52 = arith.constant 0 : index
    %c0_53 = arith.constant 0 : index
    %195 = vector.load %arg11[%194, %c0_52, %c0_53] : memref<16x8x64xf32, #tpu.memory_space<vmem>>, vector<1x8x64xf32>
    %196 = vector.shape_cast %195 : vector<1x8x64xf32> to vector<8x64xf32>
    %197 = vector.shape_cast %193 : vector<8x64xf32> to vector<1x8x64xf32>
    tpu.vector_store %arg11[%194, %c0_52, %c0_53], %197 {strides = array<i32>} : memref<16x8x64xf32, #tpu.memory_space<vmem>>, vector<1x8x64xf32>,
    %cst_54 = arith.constant 0.000000e+00 : f32
    %198 = vector.shape_cast %183 : vector<8x1xi1> to vector<8x1xi1>
    %199 = vector.broadcast %198 : vector<8x1xi1> to vector<8x64xi1>
    %200 = vector.broadcast %cst_54 : f32 to vector<8x64xf32>
    %201 = arith.select %199, %189, %200 : vector<8x64xi1>, vector<8x64xf32>
    %202 = arith.index_cast %111 : i32 to index
    %c0_55 = arith.constant 0 : index
    %c0_56 = arith.constant 0 : index
    %203 = vector.load %arg12[%202, %c0_55, %c0_56] : memref<16x8x64xf32, #tpu.memory_space<vmem>>, vector<1x8x64xf32>
    %204 = vector.shape_cast %203 : vector<1x8x64xf32> to vector<8x64xf32>
    %205 = vector.shape_cast %201 : vector<8x64xf32> to vector<1x8x64xf32>
    tpu.vector_store %arg12[%202, %c0_55, %c0_56], %205 {strides = array<i32>} : memref<16x8x64xf32, #tpu.memory_space<vmem>>, vector<1x8x64xf32>,
    %c2_i32 = arith.constant 2 : i32
    %c15_i32_57 = arith.constant 15 : i32
    %206 = arith.subi %c15_i32_57, %c2_i32 : i32
    %207 = arith.index_cast %c2_i32 : i32 to index
    %c0_58 = arith.constant 0 : index
    %c0_59 = arith.constant 0 : index
    %208 = vector.load %arg10[%207, %c0_58, %c0_59] : memref<16x8x384xf32, #tpu.memory_space<vmem>>, vector<1x8x384xf32>
    %209 = vector.shape_cast %208 : vector<1x8x384xf32> to vector<8x384xf32>
    %210 = arith.index_cast %206 : i32 to index
    %c0_60 = arith.constant 0 : index
    %c0_61 = arith.constant 0 : index
    %211 = vector.load %arg10[%210, %c0_60, %c0_61] : memref<16x8x384xf32, #tpu.memory_space<vmem>>, vector<1x8x384xf32>
    %212 = vector.shape_cast %211 : vector<1x8x384xf32> to vector<8x384xf32>
    %213 = vector.extract_strided_slice %209 {offsets = [0, 0], sizes = [8, 192], strides = [1, 1]} : vector<8x384xf32> to vector<8x192xf32>
    %214 = arith.truncf %186 : vector<8x64xf32> to vector<8x64xbf16>
    %cst_62 = arith.constant dense<0.000000e+00> : vector<8x192xf32>
    %215 = tpu.matmul %214, %11, %cst_62 {dimension_numbers = #tpu.dot_dimension_numbers<[1], [0], [0], [1], [0, 0, 1, 1], [], []>} : vector<8x64xbf16>, vector<64x192xbf16>, vector<8x192xf32> -> vector<8x192xf32>
    %216 = vector.broadcast %13 : vector<1x192xf32> to vector<8x192xf32>
    %217 = arith.addf %215, %216 : vector<8x192xf32>
    %218 = vector.extract_strided_slice %213 {offsets = [0, 0], sizes = [8, 64], strides = [1, 1]} : vector<8x192xf32> to vector<8x64xf32>
    %219 = vector.extract_strided_slice %217 {offsets = [0, 0], sizes = [8, 64], strides = [1, 1]} : vector<8x192xf32> to vector<8x64xf32>
    %220 = arith.addf %218, %219 : vector<8x64xf32>
    %221 = arith.negf %220 : vector<8x64xf32>
    %222 = math.exp %221 : vector<8x64xf32>
    %cst_63 = arith.constant 1.000000e+00 : f32
    %223 = vector.broadcast %cst_63 : f32 to vector<8x64xf32>
    %224 = arith.addf %223, %222 : vector<8x64xf32>
    %225 = arith.divf %223, %224 : vector<8x64xf32>
    %226 = vector.extract_strided_slice %213 {offsets = [0, 64], sizes = [8, 64], strides = [1, 1]} : vector<8x192xf32> to vector<8x64xf32>
    %227 = vector.extract_strided_slice %217 {offsets = [0, 64], sizes = [8, 64], strides = [1, 1]} : vector<8x192xf32> to vector<8x64xf32>
    %228 = arith.addf %226, %227 : vector<8x64xf32>
    %229 = arith.negf %228 : vector<8x64xf32>
    %230 = math.exp %229 : vector<8x64xf32>
    %cst_64 = arith.constant 1.000000e+00 : f32
    %231 = vector.broadcast %cst_64 : f32 to vector<8x64xf32>
    %232 = arith.addf %231, %230 : vector<8x64xf32>
    %233 = arith.divf %231, %232 : vector<8x64xf32>
    %234 = vector.extract_strided_slice %213 {offsets = [0, 128], sizes = [8, 64], strides = [1, 1]} : vector<8x192xf32> to vector<8x64xf32>
    %235 = vector.extract_strided_slice %217 {offsets = [0, 128], sizes = [8, 64], strides = [1, 1]} : vector<8x192xf32> to vector<8x64xf32>
    %236 = arith.mulf %225, %235 : vector<8x64xf32>
    %237 = arith.addf %234, %236 : vector<8x64xf32>
    %238 = math.tanh %237 : vector<8x64xf32>
    %cst_65 = arith.constant 1.000000e+00 : f32
    %239 = vector.broadcast %cst_65 : f32 to vector<8x64xf32>
    %240 = arith.subf %239, %233 : vector<8x64xf32>
    %241 = arith.mulf %240, %238 : vector<8x64xf32>
    %242 = arith.mulf %233, %186 : vector<8x64xf32>
    %243 = arith.addf %241, %242 : vector<8x64xf32>
    %244 = vector.extract_strided_slice %212 {offsets = [0, 192], sizes = [8, 192], strides = [1, 1]} : vector<8x384xf32> to vector<8x192xf32>
    %245 = arith.truncf %189 : vector<8x64xf32> to vector<8x64xbf16>
    %cst_66 = arith.constant dense<0.000000e+00> : vector<8x192xf32>
    %246 = tpu.matmul %245, %12, %cst_66 {dimension_numbers = #tpu.dot_dimension_numbers<[1], [0], [0], [1], [0, 0, 1, 1], [], []>} : vector<8x64xbf16>, vector<64x192xbf16>, vector<8x192xf32> -> vector<8x192xf32>
    %247 = vector.broadcast %14 : vector<1x192xf32> to vector<8x192xf32>
    %248 = arith.addf %246, %247 : vector<8x192xf32>
    %249 = vector.extract_strided_slice %244 {offsets = [0, 0], sizes = [8, 64], strides = [1, 1]} : vector<8x192xf32> to vector<8x64xf32>
    %250 = vector.extract_strided_slice %248 {offsets = [0, 0], sizes = [8, 64], strides = [1, 1]} : vector<8x192xf32> to vector<8x64xf32>
    %251 = arith.addf %249, %250 : vector<8x64xf32>
    %252 = arith.negf %251 : vector<8x64xf32>
    %253 = math.exp %252 : vector<8x64xf32>
    %cst_67 = arith.constant 1.000000e+00 : f32
    %254 = vector.broadcast %cst_67 : f32 to vector<8x64xf32>
    %255 = arith.addf %254, %253 : vector<8x64xf32>
    %256 = arith.divf %254, %255 : vector<8x64xf32>
    %257 = vector.extract_strided_slice %244 {offsets = [0, 64], sizes = [8, 64], strides = [1, 1]} : vector<8x192xf32> to vector<8x64xf32>
    %258 = vector.extract_strided_slice %248 {offsets = [0, 64], sizes = [8, 64], strides = [1, 1]} : vector<8x192xf32> to vector<8x64xf32>
    %259 = arith.addf %257, %258 : vector<8x64xf32>
    %260 = arith.negf %259 : vector<8x64xf32>
    %261 = math.exp %260 : vector<8x64xf32>
    %cst_68 = arith.constant 1.000000e+00 : f32
    %262 = vector.broadcast %cst_68 : f32 to vector<8x64xf32>
    %263 = arith.addf %262, %261 : vector<8x64xf32>
    %264 = arith.divf %262, %263 : vector<8x64xf32>
    %265 = vector.extract_strided_slice %244 {offsets = [0, 128], sizes = [8, 64], strides = [1, 1]} : vector<8x192xf32> to vector<8x64xf32>
    %266 = vector.extract_strided_slice %248 {offsets = [0, 128], sizes = [8, 64], strides = [1, 1]} : vector<8x192xf32> to vector<8x64xf32>
    %267 = arith.mulf %256, %266 : vector<8x64xf32>
    %268 = arith.addf %265, %267 : vector<8x64xf32>
    %269 = math.tanh %268 : vector<8x64xf32>
    %cst_69 = arith.constant 1.000000e+00 : f32
    %270 = vector.broadcast %cst_69 : f32 to vector<8x64xf32>
    %271 = arith.subf %270, %264 : vector<8x64xf32>
    %272 = arith.mulf %271, %269 : vector<8x64xf32>
    %273 = arith.mulf %264, %189 : vector<8x64xf32>
    %274 = arith.addf %272, %273 : vector<8x64xf32>
    %275 = vector.broadcast %c2_i32 : i32 to vector<8x1xi32>
    %276 = arith.cmpi slt, %275, %10 : vector<8x1xi32>
    %277 = vector.broadcast %206 : i32 to vector<8x1xi32>
    %278 = arith.cmpi slt, %277, %10 : vector<8x1xi32>
    %279 = vector.shape_cast %276 : vector<8x1xi1> to vector<8x1xi1>
    %280 = vector.broadcast %279 : vector<8x1xi1> to vector<8x64xi1>
    %281 = arith.select %280, %243, %186 : vector<8x64xi1>, vector<8x64xf32>
    %282 = vector.shape_cast %278 : vector<8x1xi1> to vector<8x1xi1>
    %283 = vector.broadcast %282 : vector<8x1xi1> to vector<8x64xi1>
    %284 = arith.select %283, %274, %189 : vector<8x64xi1>, vector<8x64xf32>
    %cst_70 = arith.constant 0.000000e+00 : f32
    %285 = vector.shape_cast %276 : vector<8x1xi1> to vector<8x1xi1>
    %286 = vector.broadcast %285 : vector<8x1xi1> to vector<8x64xi1>
    %287 = vector.broadcast %cst_70 : f32 to vector<8x64xf32>
    %288 = arith.select %286, %281, %287 : vector<8x64xi1>, vector<8x64xf32>
    %289 = arith.index_cast %c2_i32 : i32 to index
    %c0_71 = arith.constant 0 : index
    %c0_72 = arith.constant 0 : index
    %290 = vector.load %arg11[%289, %c0_71, %c0_72] : memref<16x8x64xf32, #tpu.memory_space<vmem>>, vector<1x8x64xf32>
    %291 = vector.shape_cast %290 : vector<1x8x64xf32> to vector<8x64xf32>
    %292 = vector.shape_cast %288 : vector<8x64xf32> to vector<1x8x64xf32>
    tpu.vector_store %arg11[%289, %c0_71, %c0_72], %292 {strides = array<i32>} : memref<16x8x64xf32, #tpu.memory_space<vmem>>, vector<1x8x64xf32>,
    %cst_73 = arith.constant 0.000000e+00 : f32
    %293 = vector.shape_cast %278 : vector<8x1xi1> to vector<8x1xi1>
    %294 = vector.broadcast %293 : vector<8x1xi1> to vector<8x64xi1>
    %295 = vector.broadcast %cst_73 : f32 to vector<8x64xf32>
    %296 = arith.select %294, %284, %295 : vector<8x64xi1>, vector<8x64xf32>
    %297 = arith.index_cast %206 : i32 to index
    %c0_74 = arith.constant 0 : index
    %c0_75 = arith.constant 0 : index
    %298 = vector.load %arg12[%297, %c0_74, %c0_75] : memref<16x8x64xf32, #tpu.memory_space<vmem>>, vector<1x8x64xf32>
    %299 = vector.shape_cast %298 : vector<1x8x64xf32> to vector<8x64xf32>
    %300 = vector.shape_cast %296 : vector<8x64xf32> to vector<1x8x64xf32>
    tpu.vector_store %arg12[%297, %c0_74, %c0_75], %300 {strides = array<i32>} : memref<16x8x64xf32, #tpu.memory_space<vmem>>, vector<1x8x64xf32>,
    %c3_i32 = arith.constant 3 : i32
    %c15_i32_76 = arith.constant 15 : i32
    %301 = arith.subi %c15_i32_76, %c3_i32 : i32
    %302 = arith.index_cast %c3_i32 : i32 to index
    %c0_77 = arith.constant 0 : index
    %c0_78 = arith.constant 0 : index
    %303 = vector.load %arg10[%302, %c0_77, %c0_78] : memref<16x8x384xf32, #tpu.memory_space<vmem>>, vector<1x8x384xf32>
    %304 = vector.shape_cast %303 : vector<1x8x384xf32> to vector<8x384xf32>
    %305 = arith.index_cast %301 : i32 to index
    %c0_79 = arith.constant 0 : index
    %c0_80 = arith.constant 0 : index
    %306 = vector.load %arg10[%305, %c0_79, %c0_80] : memref<16x8x384xf32, #tpu.memory_space<vmem>>, vector<1x8x384xf32>
    %307 = vector.shape_cast %306 : vector<1x8x384xf32> to vector<8x384xf32>
    %308 = vector.extract_strided_slice %304 {offsets = [0, 0], sizes = [8, 192], strides = [1, 1]} : vector<8x384xf32> to vector<8x192xf32>
    %309 = arith.truncf %281 : vector<8x64xf32> to vector<8x64xbf16>
    %cst_81 = arith.constant dense<0.000000e+00> : vector<8x192xf32>
    %310 = tpu.matmul %309, %11, %cst_81 {dimension_numbers = #tpu.dot_dimension_numbers<[1], [0], [0], [1], [0, 0, 1, 1], [], []>} : vector<8x64xbf16>, vector<64x192xbf16>, vector<8x192xf32> -> vector<8x192xf32>
    %311 = vector.broadcast %13 : vector<1x192xf32> to vector<8x192xf32>
    %312 = arith.addf %310, %311 : vector<8x192xf32>
    %313 = vector.extract_strided_slice %308 {offsets = [0, 0], sizes = [8, 64], strides = [1, 1]} : vector<8x192xf32> to vector<8x64xf32>
    %314 = vector.extract_strided_slice %312 {offsets = [0, 0], sizes = [8, 64], strides = [1, 1]} : vector<8x192xf32> to vector<8x64xf32>
    %315 = arith.addf %313, %314 : vector<8x64xf32>
    %316 = arith.negf %315 : vector<8x64xf32>
    %317 = math.exp %316 : vector<8x64xf32>
    %cst_82 = arith.constant 1.000000e+00 : f32
    %318 = vector.broadcast %cst_82 : f32 to vector<8x64xf32>
    %319 = arith.addf %318, %317 : vector<8x64xf32>
    %320 = arith.divf %318, %319 : vector<8x64xf32>
    %321 = vector.extract_strided_slice %308 {offsets = [0, 64], sizes = [8, 64], strides = [1, 1]} : vector<8x192xf32> to vector<8x64xf32>
    %322 = vector.extract_strided_slice %312 {offsets = [0, 64], sizes = [8, 64], strides = [1, 1]} : vector<8x192xf32> to vector<8x64xf32>
    %323 = arith.addf %321, %322 : vector<8x64xf32>
    %324 = arith.negf %323 : vector<8x64xf32>
    %325 = math.exp %324 : vector<8x64xf32>
    %cst_83 = arith.constant 1.000000e+00 : f32
    %326 = vector.broadcast %cst_83 : f32 to vector<8x64xf32>
    %327 = arith.addf %326, %325 : vector<8x64xf32>
    %328 = arith.divf %326, %327 : vector<8x64xf32>
    %329 = vector.extract_strided_slice %308 {offsets = [0, 128], sizes = [8, 64], strides = [1, 1]} : vector<8x192xf32> to vector<8x64xf32>
    %330 = vector.extract_strided_slice %312 {offsets = [0, 128], sizes = [8, 64], strides = [1, 1]} : vector<8x192xf32> to vector<8x64xf32>
    %331 = arith.mulf %320, %330 : vector<8x64xf32>
    %332 = arith.addf %329, %331 : vector<8x64xf32>
    %333 = math.tanh %332 : vector<8x64xf32>
    %cst_84 = arith.constant 1.000000e+00 : f32
    %334 = vector.broadcast %cst_84 : f32 to vector<8x64xf32>
    %335 = arith.subf %334, %328 : vector<8x64xf32>
    %336 = arith.mulf %335, %333 : vector<8x64xf32>
    %337 = arith.mulf %328, %281 : vector<8x64xf32>
    %338 = arith.addf %336, %337 : vector<8x64xf32>
    %339 = vector.extract_strided_slice %307 {offsets = [0, 192], sizes = [8, 192], strides = [1, 1]} : vector<8x384xf32> to vector<8x192xf32>
    %340 = arith.truncf %284 : vector<8x64xf32> to vector<8x64xbf16>
    %cst_85 = arith.constant dense<0.000000e+00> : vector<8x192xf32>
    %341 = tpu.matmul %340, %12, %cst_85 {dimension_numbers = #tpu.dot_dimension_numbers<[1], [0], [0], [1], [0, 0, 1, 1], [], []>} : vector<8x64xbf16>, vector<64x192xbf16>, vector<8x192xf32> -> vector<8x192xf32>
    %342 = vector.broadcast %14 : vector<1x192xf32> to vector<8x192xf32>
    %343 = arith.addf %341, %342 : vector<8x192xf32>
    %344 = vector.extract_strided_slice %339 {offsets = [0, 0], sizes = [8, 64], strides = [1, 1]} : vector<8x192xf32> to vector<8x64xf32>
    %345 = vector.extract_strided_slice %343 {offsets = [0, 0], sizes = [8, 64], strides = [1, 1]} : vector<8x192xf32> to vector<8x64xf32>
    %346 = arith.addf %344, %345 : vector<8x64xf32>
    %347 = arith.negf %346 : vector<8x64xf32>
    %348 = math.exp %347 : vector<8x64xf32>
    %cst_86 = arith.constant 1.000000e+00 : f32
    %349 = vector.broadcast %cst_86 : f32 to vector<8x64xf32>
    %350 = arith.addf %349, %348 : vector<8x64xf32>
    %351 = arith.divf %349, %350 : vector<8x64xf32>
    %352 = vector.extract_strided_slice %339 {offsets = [0, 64], sizes = [8, 64], strides = [1, 1]} : vector<8x192xf32> to vector<8x64xf32>
    %353 = vector.extract_strided_slice %343 {offsets = [0, 64], sizes = [8, 64], strides = [1, 1]} : vector<8x192xf32> to vector<8x64xf32>
    %354 = arith.addf %352, %353 : vector<8x64xf32>
    %355 = arith.negf %354 : vector<8x64xf32>
    %356 = math.exp %355 : vector<8x64xf32>
    %cst_87 = arith.constant 1.000000e+00 : f32
    %357 = vector.broadcast %cst_87 : f32 to vector<8x64xf32>
    %358 = arith.addf %357, %356 : vector<8x64xf32>
    %359 = arith.divf %357, %358 : vector<8x64xf32>
    %360 = vector.extract_strided_slice %339 {offsets = [0, 128], sizes = [8, 64], strides = [1, 1]} : vector<8x192xf32> to vector<8x64xf32>
    %361 = vector.extract_strided_slice %343 {offsets = [0, 128], sizes = [8, 64], strides = [1, 1]} : vector<8x192xf32> to vector<8x64xf32>
    %362 = arith.mulf %351, %361 : vector<8x64xf32>
    %363 = arith.addf %360, %362 : vector<8x64xf32>
    %364 = math.tanh %363 : vector<8x64xf32>
    %cst_88 = arith.constant 1.000000e+00 : f32
    %365 = vector.broadcast %cst_88 : f32 to vector<8x64xf32>
    %366 = arith.subf %365, %359 : vector<8x64xf32>
    %367 = arith.mulf %366, %364 : vector<8x64xf32>
    %368 = arith.mulf %359, %284 : vector<8x64xf32>
    %369 = arith.addf %367, %368 : vector<8x64xf32>
    %370 = vector.broadcast %c3_i32 : i32 to vector<8x1xi32>
    %371 = arith.cmpi slt, %370, %10 : vector<8x1xi32>
    %372 = vector.broadcast %301 : i32 to vector<8x1xi32>
    %373 = arith.cmpi slt, %372, %10 : vector<8x1xi32>
    %374 = vector.shape_cast %371 : vector<8x1xi1> to vector<8x1xi1>
    %375 = vector.broadcast %374 : vector<8x1xi1> to vector<8x64xi1>
    %376 = arith.select %375, %338, %281 : vector<8x64xi1>, vector<8x64xf32>
    %377 = vector.shape_cast %373 : vector<8x1xi1> to vector<8x1xi1>
    %378 = vector.broadcast %377 : vector<8x1xi1> to vector<8x64xi1>
    %379 = arith.select %378, %369, %284 : vector<8x64xi1>, vector<8x64xf32>
    %cst_89 = arith.constant 0.000000e+00 : f32
    %380 = vector.shape_cast %371 : vector<8x1xi1> to vector<8x1xi1>
    %381 = vector.broadcast %380 : vector<8x1xi1> to vector<8x64xi1>
    %382 = vector.broadcast %cst_89 : f32 to vector<8x64xf32>
    %383 = arith.select %381, %376, %382 : vector<8x64xi1>, vector<8x64xf32>
    %384 = arith.index_cast %c3_i32 : i32 to index
    %c0_90 = arith.constant 0 : index
    %c0_91 = arith.constant 0 : index
    %385 = vector.load %arg11[%384, %c0_90, %c0_91] : memref<16x8x64xf32, #tpu.memory_space<vmem>>, vector<1x8x64xf32>
    %386 = vector.shape_cast %385 : vector<1x8x64xf32> to vector<8x64xf32>
    %387 = vector.shape_cast %383 : vector<8x64xf32> to vector<1x8x64xf32>
    tpu.vector_store %arg11[%384, %c0_90, %c0_91], %387 {strides = array<i32>} : memref<16x8x64xf32, #tpu.memory_space<vmem>>, vector<1x8x64xf32>,
    %cst_92 = arith.constant 0.000000e+00 : f32
    %388 = vector.shape_cast %373 : vector<8x1xi1> to vector<8x1xi1>
    %389 = vector.broadcast %388 : vector<8x1xi1> to vector<8x64xi1>
    %390 = vector.broadcast %cst_92 : f32 to vector<8x64xf32>
    %391 = arith.select %389, %379, %390 : vector<8x64xi1>, vector<8x64xf32>
    %392 = arith.index_cast %301 : i32 to index
    %c0_93 = arith.constant 0 : index
    %c0_94 = arith.constant 0 : index
    %393 = vector.load %arg12[%392, %c0_93, %c0_94] : memref<16x8x64xf32, #tpu.memory_space<vmem>>, vector<1x8x64xf32>
    %394 = vector.shape_cast %393 : vector<1x8x64xf32> to vector<8x64xf32>
    %395 = vector.shape_cast %391 : vector<8x64xf32> to vector<1x8x64xf32>
    tpu.vector_store %arg12[%392, %c0_93, %c0_94], %395 {strides = array<i32>} : memref<16x8x64xf32, #tpu.memory_space<vmem>>, vector<1x8x64xf32>,
    %c4_i32 = arith.constant 4 : i32
    %c15_i32_95 = arith.constant 15 : i32
    %396 = arith.subi %c15_i32_95, %c4_i32 : i32
    %397 = arith.index_cast %c4_i32 : i32 to index
    %c0_96 = arith.constant 0 : index
    %c0_97 = arith.constant 0 : index
    %398 = vector.load %arg10[%397, %c0_96, %c0_97] : memref<16x8x384xf32, #tpu.memory_space<vmem>>, vector<1x8x384xf32>
    %399 = vector.shape_cast %398 : vector<1x8x384xf32> to vector<8x384xf32>
    %400 = arith.index_cast %396 : i32 to index
    %c0_98 = arith.constant 0 : index
    %c0_99 = arith.constant 0 : index
    %401 = vector.load %arg10[%400, %c0_98, %c0_99] : memref<16x8x384xf32, #tpu.memory_space<vmem>>, vector<1x8x384xf32>
    %402 = vector.shape_cast %401 : vector<1x8x384xf32> to vector<8x384xf32>
    %403 = vector.extract_strided_slice %399 {offsets = [0, 0], sizes = [8, 192], strides = [1, 1]} : vector<8x384xf32> to vector<8x192xf32>
    %404 = arith.truncf %376 : vector<8x64xf32> to vector<8x64xbf16>
    %cst_100 = arith.constant dense<0.000000e+00> : vector<8x192xf32>
    %405 = tpu.matmul %404, %11, %cst_100 {dimension_numbers = #tpu.dot_dimension_numbers<[1], [0], [0], [1], [0, 0, 1, 1], [], []>} : vector<8x64xbf16>, vector<64x192xbf16>, vector<8x192xf32> -> vector<8x192xf32>
    %406 = vector.broadcast %13 : vector<1x192xf32> to vector<8x192xf32>
    %407 = arith.addf %405, %406 : vector<8x192xf32>
    %408 = vector.extract_strided_slice %403 {offsets = [0, 0], sizes = [8, 64], strides = [1, 1]} : vector<8x192xf32> to vector<8x64xf32>
    %409 = vector.extract_strided_slice %407 {offsets = [0, 0], sizes = [8, 64], strides = [1, 1]} : vector<8x192xf32> to vector<8x64xf32>
    %410 = arith.addf %408, %409 : vector<8x64xf32>
    %411 = arith.negf %410 : vector<8x64xf32>
    %412 = math.exp %411 : vector<8x64xf32>
    %cst_101 = arith.constant 1.000000e+00 : f32
    %413 = vector.broadcast %cst_101 : f32 to vector<8x64xf32>
    %414 = arith.addf %413, %412 : vector<8x64xf32>
    %415 = arith.divf %413, %414 : vector<8x64xf32>
    %416 = vector.extract_strided_slice %403 {offsets = [0, 64], sizes = [8, 64], strides = [1, 1]} : vector<8x192xf32> to vector<8x64xf32>
    %417 = vector.extract_strided_slice %407 {offsets = [0, 64], sizes = [8, 64], strides = [1, 1]} : vector<8x192xf32> to vector<8x64xf32>
    %418 = arith.addf %416, %417 : vector<8x64xf32>
    %419 = arith.negf %418 : vector<8x64xf32>
    %420 = math.exp %419 : vector<8x64xf32>
    %cst_102 = arith.constant 1.000000e+00 : f32
    %421 = vector.broadcast %cst_102 : f32 to vector<8x64xf32>
    %422 = arith.addf %421, %420 : vector<8x64xf32>
    %423 = arith.divf %421, %422 : vector<8x64xf32>
    %424 = vector.extract_strided_slice %403 {offsets = [0, 128], sizes = [8, 64], strides = [1, 1]} : vector<8x192xf32> to vector<8x64xf32>
    %425 = vector.extract_strided_slice %407 {offsets = [0, 128], sizes = [8, 64], strides = [1, 1]} : vector<8x192xf32> to vector<8x64xf32>
    %426 = arith.mulf %415, %425 : vector<8x64xf32>
    %427 = arith.addf %424, %426 : vector<8x64xf32>
    %428 = math.tanh %427 : vector<8x64xf32>
    %cst_103 = arith.constant 1.000000e+00 : f32
    %429 = vector.broadcast %cst_103 : f32 to vector<8x64xf32>
    %430 = arith.subf %429, %423 : vector<8x64xf32>
    %431 = arith.mulf %430, %428 : vector<8x64xf32>
    %432 = arith.mulf %423, %376 : vector<8x64xf32>
    %433 = arith.addf %431, %432 : vector<8x64xf32>
    %434 = vector.extract_strided_slice %402 {offsets = [0, 192], sizes = [8, 192], strides = [1, 1]} : vector<8x384xf32> to vector<8x192xf32>
    %435 = arith.truncf %379 : vector<8x64xf32> to vector<8x64xbf16>
    %cst_104 = arith.constant dense<0.000000e+00> : vector<8x192xf32>
    %436 = tpu.matmul %435, %12, %cst_104 {dimension_numbers = #tpu.dot_dimension_numbers<[1], [0], [0], [1], [0, 0, 1, 1], [], []>} : vector<8x64xbf16>, vector<64x192xbf16>, vector<8x192xf32> -> vector<8x192xf32>
    %437 = vector.broadcast %14 : vector<1x192xf32> to vector<8x192xf32>
    %438 = arith.addf %436, %437 : vector<8x192xf32>
    %439 = vector.extract_strided_slice %434 {offsets = [0, 0], sizes = [8, 64], strides = [1, 1]} : vector<8x192xf32> to vector<8x64xf32>
    %440 = vector.extract_strided_slice %438 {offsets = [0, 0], sizes = [8, 64], strides = [1, 1]} : vector<8x192xf32> to vector<8x64xf32>
    %441 = arith.addf %439, %440 : vector<8x64xf32>
    %442 = arith.negf %441 : vector<8x64xf32>
    %443 = math.exp %442 : vector<8x64xf32>
    %cst_105 = arith.constant 1.000000e+00 : f32
    %444 = vector.broadcast %cst_105 : f32 to vector<8x64xf32>
    %445 = arith.addf %444, %443 : vector<8x64xf32>
    %446 = arith.divf %444, %445 : vector<8x64xf32>
    %447 = vector.extract_strided_slice %434 {offsets = [0, 64], sizes = [8, 64], strides = [1, 1]} : vector<8x192xf32> to vector<8x64xf32>
    %448 = vector.extract_strided_slice %438 {offsets = [0, 64], sizes = [8, 64], strides = [1, 1]} : vector<8x192xf32> to vector<8x64xf32>
    %449 = arith.addf %447, %448 : vector<8x64xf32>
    %450 = arith.negf %449 : vector<8x64xf32>
    %451 = math.exp %450 : vector<8x64xf32>
    %cst_106 = arith.constant 1.000000e+00 : f32
    %452 = vector.broadcast %cst_106 : f32 to vector<8x64xf32>
    %453 = arith.addf %452, %451 : vector<8x64xf32>
    %454 = arith.divf %452, %453 : vector<8x64xf32>
    %455 = vector.extract_strided_slice %434 {offsets = [0, 128], sizes = [8, 64], strides = [1, 1]} : vector<8x192xf32> to vector<8x64xf32>
    %456 = vector.extract_strided_slice %438 {offsets = [0, 128], sizes = [8, 64], strides = [1, 1]} : vector<8x192xf32> to vector<8x64xf32>
    %457 = arith.mulf %446, %456 : vector<8x64xf32>
    %458 = arith.addf %455, %457 : vector<8x64xf32>
    %459 = math.tanh %458 : vector<8x64xf32>
    %cst_107 = arith.constant 1.000000e+00 : f32
    %460 = vector.broadcast %cst_107 : f32 to vector<8x64xf32>
    %461 = arith.subf %460, %454 : vector<8x64xf32>
    %462 = arith.mulf %461, %459 : vector<8x64xf32>
    %463 = arith.mulf %454, %379 : vector<8x64xf32>
    %464 = arith.addf %462, %463 : vector<8x64xf32>
    %465 = vector.broadcast %c4_i32 : i32 to vector<8x1xi32>
    %466 = arith.cmpi slt, %465, %10 : vector<8x1xi32>
    %467 = vector.broadcast %396 : i32 to vector<8x1xi32>
    %468 = arith.cmpi slt, %467, %10 : vector<8x1xi32>
    %469 = vector.shape_cast %466 : vector<8x1xi1> to vector<8x1xi1>
    %470 = vector.broadcast %469 : vector<8x1xi1> to vector<8x64xi1>
    %471 = arith.select %470, %433, %376 : vector<8x64xi1>, vector<8x64xf32>
    %472 = vector.shape_cast %468 : vector<8x1xi1> to vector<8x1xi1>
    %473 = vector.broadcast %472 : vector<8x1xi1> to vector<8x64xi1>
    %474 = arith.select %473, %464, %379 : vector<8x64xi1>, vector<8x64xf32>
    %cst_108 = arith.constant 0.000000e+00 : f32
    %475 = vector.shape_cast %466 : vector<8x1xi1> to vector<8x1xi1>
    %476 = vector.broadcast %475 : vector<8x1xi1> to vector<8x64xi1>
    %477 = vector.broadcast %cst_108 : f32 to vector<8x64xf32>
    %478 = arith.select %476, %471, %477 : vector<8x64xi1>, vector<8x64xf32>
    %479 = arith.index_cast %c4_i32 : i32 to index
    %c0_109 = arith.constant 0 : index
    %c0_110 = arith.constant 0 : index
    %480 = vector.load %arg11[%479, %c0_109, %c0_110] : memref<16x8x64xf32, #tpu.memory_space<vmem>>, vector<1x8x64xf32>
    %481 = vector.shape_cast %480 : vector<1x8x64xf32> to vector<8x64xf32>
    %482 = vector.shape_cast %478 : vector<8x64xf32> to vector<1x8x64xf32>
    tpu.vector_store %arg11[%479, %c0_109, %c0_110], %482 {strides = array<i32>} : memref<16x8x64xf32, #tpu.memory_space<vmem>>, vector<1x8x64xf32>,
    %cst_111 = arith.constant 0.000000e+00 : f32
    %483 = vector.shape_cast %468 : vector<8x1xi1> to vector<8x1xi1>
    %484 = vector.broadcast %483 : vector<8x1xi1> to vector<8x64xi1>
    %485 = vector.broadcast %cst_111 : f32 to vector<8x64xf32>
    %486 = arith.select %484, %474, %485 : vector<8x64xi1>, vector<8x64xf32>
    %487 = arith.index_cast %396 : i32 to index
    %c0_112 = arith.constant 0 : index
    %c0_113 = arith.constant 0 : index
    %488 = vector.load %arg12[%487, %c0_112, %c0_113] : memref<16x8x64xf32, #tpu.memory_space<vmem>>, vector<1x8x64xf32>
    %489 = vector.shape_cast %488 : vector<1x8x64xf32> to vector<8x64xf32>
    %490 = vector.shape_cast %486 : vector<8x64xf32> to vector<1x8x64xf32>
    tpu.vector_store %arg12[%487, %c0_112, %c0_113], %490 {strides = array<i32>} : memref<16x8x64xf32, #tpu.memory_space<vmem>>, vector<1x8x64xf32>,
    %c5_i32 = arith.constant 5 : i32
    %c15_i32_114 = arith.constant 15 : i32
    %491 = arith.subi %c15_i32_114, %c5_i32 : i32
    %492 = arith.index_cast %c5_i32 : i32 to index
    %c0_115 = arith.constant 0 : index
    %c0_116 = arith.constant 0 : index
    %493 = vector.load %arg10[%492, %c0_115, %c0_116] : memref<16x8x384xf32, #tpu.memory_space<vmem>>, vector<1x8x384xf32>
    %494 = vector.shape_cast %493 : vector<1x8x384xf32> to vector<8x384xf32>
    %495 = arith.index_cast %491 : i32 to index
    %c0_117 = arith.constant 0 : index
    %c0_118 = arith.constant 0 : index
    %496 = vector.load %arg10[%495, %c0_117, %c0_118] : memref<16x8x384xf32, #tpu.memory_space<vmem>>, vector<1x8x384xf32>
    %497 = vector.shape_cast %496 : vector<1x8x384xf32> to vector<8x384xf32>
    %498 = vector.extract_strided_slice %494 {offsets = [0, 0], sizes = [8, 192], strides = [1, 1]} : vector<8x384xf32> to vector<8x192xf32>
    %499 = arith.truncf %471 : vector<8x64xf32> to vector<8x64xbf16>
    %cst_119 = arith.constant dense<0.000000e+00> : vector<8x192xf32>
    %500 = tpu.matmul %499, %11, %cst_119 {dimension_numbers = #tpu.dot_dimension_numbers<[1], [0], [0], [1], [0, 0, 1, 1], [], []>} : vector<8x64xbf16>, vector<64x192xbf16>, vector<8x192xf32> -> vector<8x192xf32>
    %501 = vector.broadcast %13 : vector<1x192xf32> to vector<8x192xf32>
    %502 = arith.addf %500, %501 : vector<8x192xf32>
    %503 = vector.extract_strided_slice %498 {offsets = [0, 0], sizes = [8, 64], strides = [1, 1]} : vector<8x192xf32> to vector<8x64xf32>
    %504 = vector.extract_strided_slice %502 {offsets = [0, 0], sizes = [8, 64], strides = [1, 1]} : vector<8x192xf32> to vector<8x64xf32>
    %505 = arith.addf %503, %504 : vector<8x64xf32>
    %506 = arith.negf %505 : vector<8x64xf32>
    %507 = math.exp %506 : vector<8x64xf32>
    %cst_120 = arith.constant 1.000000e+00 : f32
    %508 = vector.broadcast %cst_120 : f32 to vector<8x64xf32>
    %509 = arith.addf %508, %507 : vector<8x64xf32>
    %510 = arith.divf %508, %509 : vector<8x64xf32>
    %511 = vector.extract_strided_slice %498 {offsets = [0, 64], sizes = [8, 64], strides = [1, 1]} : vector<8x192xf32> to vector<8x64xf32>
    %512 = vector.extract_strided_slice %502 {offsets = [0, 64], sizes = [8, 64], strides = [1, 1]} : vector<8x192xf32> to vector<8x64xf32>
    %513 = arith.addf %511, %512 : vector<8x64xf32>
    %514 = arith.negf %513 : vector<8x64xf32>
    %515 = math.exp %514 : vector<8x64xf32>
    %cst_121 = arith.constant 1.000000e+00 : f32
    %516 = vector.broadcast %cst_121 : f32 to vector<8x64xf32>
    %517 = arith.addf %516, %515 : vector<8x64xf32>
    %518 = arith.divf %516, %517 : vector<8x64xf32>
    %519 = vector.extract_strided_slice %498 {offsets = [0, 128], sizes = [8, 64], strides = [1, 1]} : vector<8x192xf32> to vector<8x64xf32>
    %520 = vector.extract_strided_slice %502 {offsets = [0, 128], sizes = [8, 64], strides = [1, 1]} : vector<8x192xf32> to vector<8x64xf32>
    %521 = arith.mulf %510, %520 : vector<8x64xf32>
    %522 = arith.addf %519, %521 : vector<8x64xf32>
    %523 = math.tanh %522 : vector<8x64xf32>
    %cst_122 = arith.constant 1.000000e+00 : f32
    %524 = vector.broadcast %cst_122 : f32 to vector<8x64xf32>
    %525 = arith.subf %524, %518 : vector<8x64xf32>
    %526 = arith.mulf %525, %523 : vector<8x64xf32>
    %527 = arith.mulf %518, %471 : vector<8x64xf32>
    %528 = arith.addf %526, %527 : vector<8x64xf32>
    %529 = vector.extract_strided_slice %497 {offsets = [0, 192], sizes = [8, 192], strides = [1, 1]} : vector<8x384xf32> to vector<8x192xf32>
    %530 = arith.truncf %474 : vector<8x64xf32> to vector<8x64xbf16>
    %cst_123 = arith.constant dense<0.000000e+00> : vector<8x192xf32>
    %531 = tpu.matmul %530, %12, %cst_123 {dimension_numbers = #tpu.dot_dimension_numbers<[1], [0], [0], [1], [0, 0, 1, 1], [], []>} : vector<8x64xbf16>, vector<64x192xbf16>, vector<8x192xf32> -> vector<8x192xf32>
    %532 = vector.broadcast %14 : vector<1x192xf32> to vector<8x192xf32>
    %533 = arith.addf %531, %532 : vector<8x192xf32>
    %534 = vector.extract_strided_slice %529 {offsets = [0, 0], sizes = [8, 64], strides = [1, 1]} : vector<8x192xf32> to vector<8x64xf32>
    %535 = vector.extract_strided_slice %533 {offsets = [0, 0], sizes = [8, 64], strides = [1, 1]} : vector<8x192xf32> to vector<8x64xf32>
    %536 = arith.addf %534, %535 : vector<8x64xf32>
    %537 = arith.negf %536 : vector<8x64xf32>
    %538 = math.exp %537 : vector<8x64xf32>
    %cst_124 = arith.constant 1.000000e+00 : f32
    %539 = vector.broadcast %cst_124 : f32 to vector<8x64xf32>
    %540 = arith.addf %539, %538 : vector<8x64xf32>
    %541 = arith.divf %539, %540 : vector<8x64xf32>
    %542 = vector.extract_strided_slice %529 {offsets = [0, 64], sizes = [8, 64], strides = [1, 1]} : vector<8x192xf32> to vector<8x64xf32>
    %543 = vector.extract_strided_slice %533 {offsets = [0, 64], sizes = [8, 64], strides = [1, 1]} : vector<8x192xf32> to vector<8x64xf32>
    %544 = arith.addf %542, %543 : vector<8x64xf32>
    %545 = arith.negf %544 : vector<8x64xf32>
    %546 = math.exp %545 : vector<8x64xf32>
    %cst_125 = arith.constant 1.000000e+00 : f32
    %547 = vector.broadcast %cst_125 : f32 to vector<8x64xf32>
    %548 = arith.addf %547, %546 : vector<8x64xf32>
    %549 = arith.divf %547, %548 : vector<8x64xf32>
    %550 = vector.extract_strided_slice %529 {offsets = [0, 128], sizes = [8, 64], strides = [1, 1]} : vector<8x192xf32> to vector<8x64xf32>
    %551 = vector.extract_strided_slice %533 {offsets = [0, 128], sizes = [8, 64], strides = [1, 1]} : vector<8x192xf32> to vector<8x64xf32>
    %552 = arith.mulf %541, %551 : vector<8x64xf32>
    %553 = arith.addf %550, %552 : vector<8x64xf32>
    %554 = math.tanh %553 : vector<8x64xf32>
    %cst_126 = arith.constant 1.000000e+00 : f32
    %555 = vector.broadcast %cst_126 : f32 to vector<8x64xf32>
    %556 = arith.subf %555, %549 : vector<8x64xf32>
    %557 = arith.mulf %556, %554 : vector<8x64xf32>
    %558 = arith.mulf %549, %474 : vector<8x64xf32>
    %559 = arith.addf %557, %558 : vector<8x64xf32>
    %560 = vector.broadcast %c5_i32 : i32 to vector<8x1xi32>
    %561 = arith.cmpi slt, %560, %10 : vector<8x1xi32>
    %562 = vector.broadcast %491 : i32 to vector<8x1xi32>
    %563 = arith.cmpi slt, %562, %10 : vector<8x1xi32>
    %564 = vector.shape_cast %561 : vector<8x1xi1> to vector<8x1xi1>
    %565 = vector.broadcast %564 : vector<8x1xi1> to vector<8x64xi1>
    %566 = arith.select %565, %528, %471 : vector<8x64xi1>, vector<8x64xf32>
    %567 = vector.shape_cast %563 : vector<8x1xi1> to vector<8x1xi1>
    %568 = vector.broadcast %567 : vector<8x1xi1> to vector<8x64xi1>
    %569 = arith.select %568, %559, %474 : vector<8x64xi1>, vector<8x64xf32>
    %cst_127 = arith.constant 0.000000e+00 : f32
    %570 = vector.shape_cast %561 : vector<8x1xi1> to vector<8x1xi1>
    %571 = vector.broadcast %570 : vector<8x1xi1> to vector<8x64xi1>
    %572 = vector.broadcast %cst_127 : f32 to vector<8x64xf32>
    %573 = arith.select %571, %566, %572 : vector<8x64xi1>, vector<8x64xf32>
    %574 = arith.index_cast %c5_i32 : i32 to index
    %c0_128 = arith.constant 0 : index
    %c0_129 = arith.constant 0 : index
    %575 = vector.load %arg11[%574, %c0_128, %c0_129] : memref<16x8x64xf32, #tpu.memory_space<vmem>>, vector<1x8x64xf32>
    %576 = vector.shape_cast %575 : vector<1x8x64xf32> to vector<8x64xf32>
    %577 = vector.shape_cast %573 : vector<8x64xf32> to vector<1x8x64xf32>
    tpu.vector_store %arg11[%574, %c0_128, %c0_129], %577 {strides = array<i32>} : memref<16x8x64xf32, #tpu.memory_space<vmem>>, vector<1x8x64xf32>,
    %cst_130 = arith.constant 0.000000e+00 : f32
    %578 = vector.shape_cast %563 : vector<8x1xi1> to vector<8x1xi1>
    %579 = vector.broadcast %578 : vector<8x1xi1> to vector<8x64xi1>
    %580 = vector.broadcast %cst_130 : f32 to vector<8x64xf32>
    %581 = arith.select %579, %569, %580 : vector<8x64xi1>, vector<8x64xf32>
    %582 = arith.index_cast %491 : i32 to index
    %c0_131 = arith.constant 0 : index
    %c0_132 = arith.constant 0 : index
    %583 = vector.load %arg12[%582, %c0_131, %c0_132] : memref<16x8x64xf32, #tpu.memory_space<vmem>>, vector<1x8x64xf32>
    %584 = vector.shape_cast %583 : vector<1x8x64xf32> to vector<8x64xf32>
    %585 = vector.shape_cast %581 : vector<8x64xf32> to vector<1x8x64xf32>
    tpu.vector_store %arg12[%582, %c0_131, %c0_132], %585 {strides = array<i32>} : memref<16x8x64xf32, #tpu.memory_space<vmem>>, vector<1x8x64xf32>,
    %c6_i32 = arith.constant 6 : i32
    %c15_i32_133 = arith.constant 15 : i32
    %586 = arith.subi %c15_i32_133, %c6_i32 : i32
    %587 = arith.index_cast %c6_i32 : i32 to index
    %c0_134 = arith.constant 0 : index
    %c0_135 = arith.constant 0 : index
    %588 = vector.load %arg10[%587, %c0_134, %c0_135] : memref<16x8x384xf32, #tpu.memory_space<vmem>>, vector<1x8x384xf32>
    %589 = vector.shape_cast %588 : vector<1x8x384xf32> to vector<8x384xf32>
    %590 = arith.index_cast %586 : i32 to index
    %c0_136 = arith.constant 0 : index
    %c0_137 = arith.constant 0 : index
    %591 = vector.load %arg10[%590, %c0_136, %c0_137] : memref<16x8x384xf32, #tpu.memory_space<vmem>>, vector<1x8x384xf32>
    %592 = vector.shape_cast %591 : vector<1x8x384xf32> to vector<8x384xf32>
    %593 = vector.extract_strided_slice %589 {offsets = [0, 0], sizes = [8, 192], strides = [1, 1]} : vector<8x384xf32> to vector<8x192xf32>
    %594 = arith.truncf %566 : vector<8x64xf32> to vector<8x64xbf16>
    %cst_138 = arith.constant dense<0.000000e+00> : vector<8x192xf32>
    %595 = tpu.matmul %594, %11, %cst_138 {dimension_numbers = #tpu.dot_dimension_numbers<[1], [0], [0], [1], [0, 0, 1, 1], [], []>} : vector<8x64xbf16>, vector<64x192xbf16>, vector<8x192xf32> -> vector<8x192xf32>
    %596 = vector.broadcast %13 : vector<1x192xf32> to vector<8x192xf32>
    %597 = arith.addf %595, %596 : vector<8x192xf32>
    %598 = vector.extract_strided_slice %593 {offsets = [0, 0], sizes = [8, 64], strides = [1, 1]} : vector<8x192xf32> to vector<8x64xf32>
    %599 = vector.extract_strided_slice %597 {offsets = [0, 0], sizes = [8, 64], strides = [1, 1]} : vector<8x192xf32> to vector<8x64xf32>
    %600 = arith.addf %598, %599 : vector<8x64xf32>
    %601 = arith.negf %600 : vector<8x64xf32>
    %602 = math.exp %601 : vector<8x64xf32>
    %cst_139 = arith.constant 1.000000e+00 : f32
    %603 = vector.broadcast %cst_139 : f32 to vector<8x64xf32>
    %604 = arith.addf %603, %602 : vector<8x64xf32>
    %605 = arith.divf %603, %604 : vector<8x64xf32>
    %606 = vector.extract_strided_slice %593 {offsets = [0, 64], sizes = [8, 64], strides = [1, 1]} : vector<8x192xf32> to vector<8x64xf32>
    %607 = vector.extract_strided_slice %597 {offsets = [0, 64], sizes = [8, 64], strides = [1, 1]} : vector<8x192xf32> to vector<8x64xf32>
    %608 = arith.addf %606, %607 : vector<8x64xf32>
    %609 = arith.negf %608 : vector<8x64xf32>
    %610 = math.exp %609 : vector<8x64xf32>
    %cst_140 = arith.constant 1.000000e+00 : f32
    %611 = vector.broadcast %cst_140 : f32 to vector<8x64xf32>
    %612 = arith.addf %611, %610 : vector<8x64xf32>
    %613 = arith.divf %611, %612 : vector<8x64xf32>
    %614 = vector.extract_strided_slice %593 {offsets = [0, 128], sizes = [8, 64], strides = [1, 1]} : vector<8x192xf32> to vector<8x64xf32>
    %615 = vector.extract_strided_slice %597 {offsets = [0, 128], sizes = [8, 64], strides = [1, 1]} : vector<8x192xf32> to vector<8x64xf32>
    %616 = arith.mulf %605, %615 : vector<8x64xf32>
    %617 = arith.addf %614, %616 : vector<8x64xf32>
    %618 = math.tanh %617 : vector<8x64xf32>
    %cst_141 = arith.constant 1.000000e+00 : f32
    %619 = vector.broadcast %cst_141 : f32 to vector<8x64xf32>
    %620 = arith.subf %619, %613 : vector<8x64xf32>
    %621 = arith.mulf %620, %618 : vector<8x64xf32>
    %622 = arith.mulf %613, %566 : vector<8x64xf32>
    %623 = arith.addf %621, %622 : vector<8x64xf32>
    %624 = vector.extract_strided_slice %592 {offsets = [0, 192], sizes = [8, 192], strides = [1, 1]} : vector<8x384xf32> to vector<8x192xf32>
    %625 = arith.truncf %569 : vector<8x64xf32> to vector<8x64xbf16>
    %cst_142 = arith.constant dense<0.000000e+00> : vector<8x192xf32>
    %626 = tpu.matmul %625, %12, %cst_142 {dimension_numbers = #tpu.dot_dimension_numbers<[1], [0], [0], [1], [0, 0, 1, 1], [], []>} : vector<8x64xbf16>, vector<64x192xbf16>, vector<8x192xf32> -> vector<8x192xf32>
    %627 = vector.broadcast %14 : vector<1x192xf32> to vector<8x192xf32>
    %628 = arith.addf %626, %627 : vector<8x192xf32>
    %629 = vector.extract_strided_slice %624 {offsets = [0, 0], sizes = [8, 64], strides = [1, 1]} : vector<8x192xf32> to vector<8x64xf32>
    %630 = vector.extract_strided_slice %628 {offsets = [0, 0], sizes = [8, 64], strides = [1, 1]} : vector<8x192xf32> to vector<8x64xf32>
    %631 = arith.addf %629, %630 : vector<8x64xf32>
    %632 = arith.negf %631 : vector<8x64xf32>
    %633 = math.exp %632 : vector<8x64xf32>
    %cst_143 = arith.constant 1.000000e+00 : f32
    %634 = vector.broadcast %cst_143 : f32 to vector<8x64xf32>
    %635 = arith.addf %634, %633 : vector<8x64xf32>
    %636 = arith.divf %634, %635 : vector<8x64xf32>
    %637 = vector.extract_strided_slice %624 {offsets = [0, 64], sizes = [8, 64], strides = [1, 1]} : vector<8x192xf32> to vector<8x64xf32>
    %638 = vector.extract_strided_slice %628 {offsets = [0, 64], sizes = [8, 64], strides = [1, 1]} : vector<8x192xf32> to vector<8x64xf32>
    %639 = arith.addf %637, %638 : vector<8x64xf32>
    %640 = arith.negf %639 : vector<8x64xf32>
    %641 = math.exp %640 : vector<8x64xf32>
    %cst_144 = arith.constant 1.000000e+00 : f32
    %642 = vector.broadcast %cst_144 : f32 to vector<8x64xf32>
    %643 = arith.addf %642, %641 : vector<8x64xf32>
    %644 = arith.divf %642, %643 : vector<8x64xf32>
    %645 = vector.extract_strided_slice %624 {offsets = [0, 128], sizes = [8, 64], strides = [1, 1]} : vector<8x192xf32> to vector<8x64xf32>
    %646 = vector.extract_strided_slice %628 {offsets = [0, 128], sizes = [8, 64], strides = [1, 1]} : vector<8x192xf32> to vector<8x64xf32>
    %647 = arith.mulf %636, %646 : vector<8x64xf32>
    %648 = arith.addf %645, %647 : vector<8x64xf32>
    %649 = math.tanh %648 : vector<8x64xf32>
    %cst_145 = arith.constant 1.000000e+00 : f32
    %650 = vector.broadcast %cst_145 : f32 to vector<8x64xf32>
    %651 = arith.subf %650, %644 : vector<8x64xf32>
    %652 = arith.mulf %651, %649 : vector<8x64xf32>
    %653 = arith.mulf %644, %569 : vector<8x64xf32>
    %654 = arith.addf %652, %653 : vector<8x64xf32>
    %655 = vector.broadcast %c6_i32 : i32 to vector<8x1xi32>
    %656 = arith.cmpi slt, %655, %10 : vector<8x1xi32>
    %657 = vector.broadcast %586 : i32 to vector<8x1xi32>
    %658 = arith.cmpi slt, %657, %10 : vector<8x1xi32>
    %659 = vector.shape_cast %656 : vector<8x1xi1> to vector<8x1xi1>
    %660 = vector.broadcast %659 : vector<8x1xi1> to vector<8x64xi1>
    %661 = arith.select %660, %623, %566 : vector<8x64xi1>, vector<8x64xf32>
    %662 = vector.shape_cast %658 : vector<8x1xi1> to vector<8x1xi1>
    %663 = vector.broadcast %662 : vector<8x1xi1> to vector<8x64xi1>
    %664 = arith.select %663, %654, %569 : vector<8x64xi1>, vector<8x64xf32>
    %cst_146 = arith.constant 0.000000e+00 : f32
    %665 = vector.shape_cast %656 : vector<8x1xi1> to vector<8x1xi1>
    %666 = vector.broadcast %665 : vector<8x1xi1> to vector<8x64xi1>
    %667 = vector.broadcast %cst_146 : f32 to vector<8x64xf32>
    %668 = arith.select %666, %661, %667 : vector<8x64xi1>, vector<8x64xf32>
    %669 = arith.index_cast %c6_i32 : i32 to index
    %c0_147 = arith.constant 0 : index
    %c0_148 = arith.constant 0 : index
    %670 = vector.load %arg11[%669, %c0_147, %c0_148] : memref<16x8x64xf32, #tpu.memory_space<vmem>>, vector<1x8x64xf32>
    %671 = vector.shape_cast %670 : vector<1x8x64xf32> to vector<8x64xf32>
    %672 = vector.shape_cast %668 : vector<8x64xf32> to vector<1x8x64xf32>
    tpu.vector_store %arg11[%669, %c0_147, %c0_148], %672 {strides = array<i32>} : memref<16x8x64xf32, #tpu.memory_space<vmem>>, vector<1x8x64xf32>,
    %cst_149 = arith.constant 0.000000e+00 : f32
    %673 = vector.shape_cast %658 : vector<8x1xi1> to vector<8x1xi1>
    %674 = vector.broadcast %673 : vector<8x1xi1> to vector<8x64xi1>
    %675 = vector.broadcast %cst_149 : f32 to vector<8x64xf32>
    %676 = arith.select %674, %664, %675 : vector<8x64xi1>, vector<8x64xf32>
    %677 = arith.index_cast %586 : i32 to index
    %c0_150 = arith.constant 0 : index
    %c0_151 = arith.constant 0 : index
    %678 = vector.load %arg12[%677, %c0_150, %c0_151] : memref<16x8x64xf32, #tpu.memory_space<vmem>>, vector<1x8x64xf32>
    %679 = vector.shape_cast %678 : vector<1x8x64xf32> to vector<8x64xf32>
    %680 = vector.shape_cast %676 : vector<8x64xf32> to vector<1x8x64xf32>
    tpu.vector_store %arg12[%677, %c0_150, %c0_151], %680 {strides = array<i32>} : memref<16x8x64xf32, #tpu.memory_space<vmem>>, vector<1x8x64xf32>,
    %c7_i32 = arith.constant 7 : i32
    %c15_i32_152 = arith.constant 15 : i32
    %681 = arith.subi %c15_i32_152, %c7_i32 : i32
    %682 = arith.index_cast %c7_i32 : i32 to index
    %c0_153 = arith.constant 0 : index
    %c0_154 = arith.constant 0 : index
    %683 = vector.load %arg10[%682, %c0_153, %c0_154] : memref<16x8x384xf32, #tpu.memory_space<vmem>>, vector<1x8x384xf32>
    %684 = vector.shape_cast %683 : vector<1x8x384xf32> to vector<8x384xf32>
    %685 = arith.index_cast %681 : i32 to index
    %c0_155 = arith.constant 0 : index
    %c0_156 = arith.constant 0 : index
    %686 = vector.load %arg10[%685, %c0_155, %c0_156] : memref<16x8x384xf32, #tpu.memory_space<vmem>>, vector<1x8x384xf32>
    %687 = vector.shape_cast %686 : vector<1x8x384xf32> to vector<8x384xf32>
    %688 = vector.extract_strided_slice %684 {offsets = [0, 0], sizes = [8, 192], strides = [1, 1]} : vector<8x384xf32> to vector<8x192xf32>
    %689 = arith.truncf %661 : vector<8x64xf32> to vector<8x64xbf16>
    %cst_157 = arith.constant dense<0.000000e+00> : vector<8x192xf32>
    %690 = tpu.matmul %689, %11, %cst_157 {dimension_numbers = #tpu.dot_dimension_numbers<[1], [0], [0], [1], [0, 0, 1, 1], [], []>} : vector<8x64xbf16>, vector<64x192xbf16>, vector<8x192xf32> -> vector<8x192xf32>
    %691 = vector.broadcast %13 : vector<1x192xf32> to vector<8x192xf32>
    %692 = arith.addf %690, %691 : vector<8x192xf32>
    %693 = vector.extract_strided_slice %688 {offsets = [0, 0], sizes = [8, 64], strides = [1, 1]} : vector<8x192xf32> to vector<8x64xf32>
    %694 = vector.extract_strided_slice %692 {offsets = [0, 0], sizes = [8, 64], strides = [1, 1]} : vector<8x192xf32> to vector<8x64xf32>
    %695 = arith.addf %693, %694 : vector<8x64xf32>
    %696 = arith.negf %695 : vector<8x64xf32>
    %697 = math.exp %696 : vector<8x64xf32>
    %cst_158 = arith.constant 1.000000e+00 : f32
    %698 = vector.broadcast %cst_158 : f32 to vector<8x64xf32>
    %699 = arith.addf %698, %697 : vector<8x64xf32>
    %700 = arith.divf %698, %699 : vector<8x64xf32>
    %701 = vector.extract_strided_slice %688 {offsets = [0, 64], sizes = [8, 64], strides = [1, 1]} : vector<8x192xf32> to vector<8x64xf32>
    %702 = vector.extract_strided_slice %692 {offsets = [0, 64], sizes = [8, 64], strides = [1, 1]} : vector<8x192xf32> to vector<8x64xf32>
    %703 = arith.addf %701, %702 : vector<8x64xf32>
    %704 = arith.negf %703 : vector<8x64xf32>
    %705 = math.exp %704 : vector<8x64xf32>
    %cst_159 = arith.constant 1.000000e+00 : f32
    %706 = vector.broadcast %cst_159 : f32 to vector<8x64xf32>
    %707 = arith.addf %706, %705 : vector<8x64xf32>
    %708 = arith.divf %706, %707 : vector<8x64xf32>
    %709 = vector.extract_strided_slice %688 {offsets = [0, 128], sizes = [8, 64], strides = [1, 1]} : vector<8x192xf32> to vector<8x64xf32>
    %710 = vector.extract_strided_slice %692 {offsets = [0, 128], sizes = [8, 64], strides = [1, 1]} : vector<8x192xf32> to vector<8x64xf32>
    %711 = arith.mulf %700, %710 : vector<8x64xf32>
    %712 = arith.addf %709, %711 : vector<8x64xf32>
    %713 = math.tanh %712 : vector<8x64xf32>
    %cst_160 = arith.constant 1.000000e+00 : f32
    %714 = vector.broadcast %cst_160 : f32 to vector<8x64xf32>
    %715 = arith.subf %714, %708 : vector<8x64xf32>
    %716 = arith.mulf %715, %713 : vector<8x64xf32>
    %717 = arith.mulf %708, %661 : vector<8x64xf32>
    %718 = arith.addf %716, %717 : vector<8x64xf32>
    %719 = vector.extract_strided_slice %687 {offsets = [0, 192], sizes = [8, 192], strides = [1, 1]} : vector<8x384xf32> to vector<8x192xf32>
    %720 = arith.truncf %664 : vector<8x64xf32> to vector<8x64xbf16>
    %cst_161 = arith.constant dense<0.000000e+00> : vector<8x192xf32>
    %721 = tpu.matmul %720, %12, %cst_161 {dimension_numbers = #tpu.dot_dimension_numbers<[1], [0], [0], [1], [0, 0, 1, 1], [], []>} : vector<8x64xbf16>, vector<64x192xbf16>, vector<8x192xf32> -> vector<8x192xf32>
    %722 = vector.broadcast %14 : vector<1x192xf32> to vector<8x192xf32>
    %723 = arith.addf %721, %722 : vector<8x192xf32>
    %724 = vector.extract_strided_slice %719 {offsets = [0, 0], sizes = [8, 64], strides = [1, 1]} : vector<8x192xf32> to vector<8x64xf32>
    %725 = vector.extract_strided_slice %723 {offsets = [0, 0], sizes = [8, 64], strides = [1, 1]} : vector<8x192xf32> to vector<8x64xf32>
    %726 = arith.addf %724, %725 : vector<8x64xf32>
    %727 = arith.negf %726 : vector<8x64xf32>
    %728 = math.exp %727 : vector<8x64xf32>
    %cst_162 = arith.constant 1.000000e+00 : f32
    %729 = vector.broadcast %cst_162 : f32 to vector<8x64xf32>
    %730 = arith.addf %729, %728 : vector<8x64xf32>
    %731 = arith.divf %729, %730 : vector<8x64xf32>
    %732 = vector.extract_strided_slice %719 {offsets = [0, 64], sizes = [8, 64], strides = [1, 1]} : vector<8x192xf32> to vector<8x64xf32>
    %733 = vector.extract_strided_slice %723 {offsets = [0, 64], sizes = [8, 64], strides = [1, 1]} : vector<8x192xf32> to vector<8x64xf32>
    %734 = arith.addf %732, %733 : vector<8x64xf32>
    %735 = arith.negf %734 : vector<8x64xf32>
    %736 = math.exp %735 : vector<8x64xf32>
    %cst_163 = arith.constant 1.000000e+00 : f32
    %737 = vector.broadcast %cst_163 : f32 to vector<8x64xf32>
    %738 = arith.addf %737, %736 : vector<8x64xf32>
    %739 = arith.divf %737, %738 : vector<8x64xf32>
    %740 = vector.extract_strided_slice %719 {offsets = [0, 128], sizes = [8, 64], strides = [1, 1]} : vector<8x192xf32> to vector<8x64xf32>
    %741 = vector.extract_strided_slice %723 {offsets = [0, 128], sizes = [8, 64], strides = [1, 1]} : vector<8x192xf32> to vector<8x64xf32>
    %742 = arith.mulf %731, %741 : vector<8x64xf32>
    %743 = arith.addf %740, %742 : vector<8x64xf32>
    %744 = math.tanh %743 : vector<8x64xf32>
    %cst_164 = arith.constant 1.000000e+00 : f32
    %745 = vector.broadcast %cst_164 : f32 to vector<8x64xf32>
    %746 = arith.subf %745, %739 : vector<8x64xf32>
    %747 = arith.mulf %746, %744 : vector<8x64xf32>
    %748 = arith.mulf %739, %664 : vector<8x64xf32>
    %749 = arith.addf %747, %748 : vector<8x64xf32>
    %750 = vector.broadcast %c7_i32 : i32 to vector<8x1xi32>
    %751 = arith.cmpi slt, %750, %10 : vector<8x1xi32>
    %752 = vector.broadcast %681 : i32 to vector<8x1xi32>
    %753 = arith.cmpi slt, %752, %10 : vector<8x1xi32>
    %754 = vector.shape_cast %751 : vector<8x1xi1> to vector<8x1xi1>
    %755 = vector.broadcast %754 : vector<8x1xi1> to vector<8x64xi1>
    %756 = arith.select %755, %718, %661 : vector<8x64xi1>, vector<8x64xf32>
    %757 = vector.shape_cast %753 : vector<8x1xi1> to vector<8x1xi1>
    %758 = vector.broadcast %757 : vector<8x1xi1> to vector<8x64xi1>
    %759 = arith.select %758, %749, %664 : vector<8x64xi1>, vector<8x64xf32>
    %cst_165 = arith.constant 0.000000e+00 : f32
    %760 = vector.shape_cast %751 : vector<8x1xi1> to vector<8x1xi1>
    %761 = vector.broadcast %760 : vector<8x1xi1> to vector<8x64xi1>
    %762 = vector.broadcast %cst_165 : f32 to vector<8x64xf32>
    %763 = arith.select %761, %756, %762 : vector<8x64xi1>, vector<8x64xf32>
    %764 = arith.index_cast %c7_i32 : i32 to index
    %c0_166 = arith.constant 0 : index
    %c0_167 = arith.constant 0 : index
    %765 = vector.load %arg11[%764, %c0_166, %c0_167] : memref<16x8x64xf32, #tpu.memory_space<vmem>>, vector<1x8x64xf32>
    %766 = vector.shape_cast %765 : vector<1x8x64xf32> to vector<8x64xf32>
    %767 = vector.shape_cast %763 : vector<8x64xf32> to vector<1x8x64xf32>
    tpu.vector_store %arg11[%764, %c0_166, %c0_167], %767 {strides = array<i32>} : memref<16x8x64xf32, #tpu.memory_space<vmem>>, vector<1x8x64xf32>,
    %cst_168 = arith.constant 0.000000e+00 : f32
    %768 = vector.shape_cast %753 : vector<8x1xi1> to vector<8x1xi1>
    %769 = vector.broadcast %768 : vector<8x1xi1> to vector<8x64xi1>
    %770 = vector.broadcast %cst_168 : f32 to vector<8x64xf32>
    %771 = arith.select %769, %759, %770 : vector<8x64xi1>, vector<8x64xf32>
    %772 = arith.index_cast %681 : i32 to index
    %c0_169 = arith.constant 0 : index
    %c0_170 = arith.constant 0 : index
    %773 = vector.load %arg12[%772, %c0_169, %c0_170] : memref<16x8x64xf32, #tpu.memory_space<vmem>>, vector<1x8x64xf32>
    %774 = vector.shape_cast %773 : vector<1x8x64xf32> to vector<8x64xf32>
    %775 = vector.shape_cast %771 : vector<8x64xf32> to vector<1x8x64xf32>
    tpu.vector_store %arg12[%772, %c0_169, %c0_170], %775 {strides = array<i32>} : memref<16x8x64xf32, #tpu.memory_space<vmem>>, vector<1x8x64xf32>,
    %c8_i32 = arith.constant 8 : i32
    %c15_i32_171 = arith.constant 15 : i32
    %776 = arith.subi %c15_i32_171, %c8_i32 : i32
    %777 = arith.index_cast %c8_i32 : i32 to index
    %c0_172 = arith.constant 0 : index
    %c0_173 = arith.constant 0 : index
    %778 = vector.load %arg10[%777, %c0_172, %c0_173] : memref<16x8x384xf32, #tpu.memory_space<vmem>>, vector<1x8x384xf32>
    %779 = vector.shape_cast %778 : vector<1x8x384xf32> to vector<8x384xf32>
    %780 = arith.index_cast %776 : i32 to index
    %c0_174 = arith.constant 0 : index
    %c0_175 = arith.constant 0 : index
    %781 = vector.load %arg10[%780, %c0_174, %c0_175] : memref<16x8x384xf32, #tpu.memory_space<vmem>>, vector<1x8x384xf32>
    %782 = vector.shape_cast %781 : vector<1x8x384xf32> to vector<8x384xf32>
    %783 = vector.extract_strided_slice %779 {offsets = [0, 0], sizes = [8, 192], strides = [1, 1]} : vector<8x384xf32> to vector<8x192xf32>
    %784 = arith.truncf %756 : vector<8x64xf32> to vector<8x64xbf16>
    %cst_176 = arith.constant dense<0.000000e+00> : vector<8x192xf32>
    %785 = tpu.matmul %784, %11, %cst_176 {dimension_numbers = #tpu.dot_dimension_numbers<[1], [0], [0], [1], [0, 0, 1, 1], [], []>} : vector<8x64xbf16>, vector<64x192xbf16>, vector<8x192xf32> -> vector<8x192xf32>
    %786 = vector.broadcast %13 : vector<1x192xf32> to vector<8x192xf32>
    %787 = arith.addf %785, %786 : vector<8x192xf32>
    %788 = vector.extract_strided_slice %783 {offsets = [0, 0], sizes = [8, 64], strides = [1, 1]} : vector<8x192xf32> to vector<8x64xf32>
    %789 = vector.extract_strided_slice %787 {offsets = [0, 0], sizes = [8, 64], strides = [1, 1]} : vector<8x192xf32> to vector<8x64xf32>
    %790 = arith.addf %788, %789 : vector<8x64xf32>
    %791 = arith.negf %790 : vector<8x64xf32>
    %792 = math.exp %791 : vector<8x64xf32>
    %cst_177 = arith.constant 1.000000e+00 : f32
    %793 = vector.broadcast %cst_177 : f32 to vector<8x64xf32>
    %794 = arith.addf %793, %792 : vector<8x64xf32>
    %795 = arith.divf %793, %794 : vector<8x64xf32>
    %796 = vector.extract_strided_slice %783 {offsets = [0, 64], sizes = [8, 64], strides = [1, 1]} : vector<8x192xf32> to vector<8x64xf32>
    %797 = vector.extract_strided_slice %787 {offsets = [0, 64], sizes = [8, 64], strides = [1, 1]} : vector<8x192xf32> to vector<8x64xf32>
    %798 = arith.addf %796, %797 : vector<8x64xf32>
    %799 = arith.negf %798 : vector<8x64xf32>
    %800 = math.exp %799 : vector<8x64xf32>
    %cst_178 = arith.constant 1.000000e+00 : f32
    %801 = vector.broadcast %cst_178 : f32 to vector<8x64xf32>
    %802 = arith.addf %801, %800 : vector<8x64xf32>
    %803 = arith.divf %801, %802 : vector<8x64xf32>
    %804 = vector.extract_strided_slice %783 {offsets = [0, 128], sizes = [8, 64], strides = [1, 1]} : vector<8x192xf32> to vector<8x64xf32>
    %805 = vector.extract_strided_slice %787 {offsets = [0, 128], sizes = [8, 64], strides = [1, 1]} : vector<8x192xf32> to vector<8x64xf32>
    %806 = arith.mulf %795, %805 : vector<8x64xf32>
    %807 = arith.addf %804, %806 : vector<8x64xf32>
    %808 = math.tanh %807 : vector<8x64xf32>
    %cst_179 = arith.constant 1.000000e+00 : f32
    %809 = vector.broadcast %cst_179 : f32 to vector<8x64xf32>
    %810 = arith.subf %809, %803 : vector<8x64xf32>
    %811 = arith.mulf %810, %808 : vector<8x64xf32>
    %812 = arith.mulf %803, %756 : vector<8x64xf32>
    %813 = arith.addf %811, %812 : vector<8x64xf32>
    %814 = vector.extract_strided_slice %782 {offsets = [0, 192], sizes = [8, 192], strides = [1, 1]} : vector<8x384xf32> to vector<8x192xf32>
    %815 = arith.truncf %759 : vector<8x64xf32> to vector<8x64xbf16>
    %cst_180 = arith.constant dense<0.000000e+00> : vector<8x192xf32>
    %816 = tpu.matmul %815, %12, %cst_180 {dimension_numbers = #tpu.dot_dimension_numbers<[1], [0], [0], [1], [0, 0, 1, 1], [], []>} : vector<8x64xbf16>, vector<64x192xbf16>, vector<8x192xf32> -> vector<8x192xf32>
    %817 = vector.broadcast %14 : vector<1x192xf32> to vector<8x192xf32>
    %818 = arith.addf %816, %817 : vector<8x192xf32>
    %819 = vector.extract_strided_slice %814 {offsets = [0, 0], sizes = [8, 64], strides = [1, 1]} : vector<8x192xf32> to vector<8x64xf32>
    %820 = vector.extract_strided_slice %818 {offsets = [0, 0], sizes = [8, 64], strides = [1, 1]} : vector<8x192xf32> to vector<8x64xf32>
    %821 = arith.addf %819, %820 : vector<8x64xf32>
    %822 = arith.negf %821 : vector<8x64xf32>
    %823 = math.exp %822 : vector<8x64xf32>
    %cst_181 = arith.constant 1.000000e+00 : f32
    %824 = vector.broadcast %cst_181 : f32 to vector<8x64xf32>
    %825 = arith.addf %824, %823 : vector<8x64xf32>
    %826 = arith.divf %824, %825 : vector<8x64xf32>
    %827 = vector.extract_strided_slice %814 {offsets = [0, 64], sizes = [8, 64], strides = [1, 1]} : vector<8x192xf32> to vector<8x64xf32>
    %828 = vector.extract_strided_slice %818 {offsets = [0, 64], sizes = [8, 64], strides = [1, 1]} : vector<8x192xf32> to vector<8x64xf32>
    %829 = arith.addf %827, %828 : vector<8x64xf32>
    %830 = arith.negf %829 : vector<8x64xf32>
    %831 = math.exp %830 : vector<8x64xf32>
    %cst_182 = arith.constant 1.000000e+00 : f32
    %832 = vector.broadcast %cst_182 : f32 to vector<8x64xf32>
    %833 = arith.addf %832, %831 : vector<8x64xf32>
    %834 = arith.divf %832, %833 : vector<8x64xf32>
    %835 = vector.extract_strided_slice %814 {offsets = [0, 128], sizes = [8, 64], strides = [1, 1]} : vector<8x192xf32> to vector<8x64xf32>
    %836 = vector.extract_strided_slice %818 {offsets = [0, 128], sizes = [8, 64], strides = [1, 1]} : vector<8x192xf32> to vector<8x64xf32>
    %837 = arith.mulf %826, %836 : vector<8x64xf32>
    %838 = arith.addf %835, %837 : vector<8x64xf32>
    %839 = math.tanh %838 : vector<8x64xf32>
    %cst_183 = arith.constant 1.000000e+00 : f32
    %840 = vector.broadcast %cst_183 : f32 to vector<8x64xf32>
    %841 = arith.subf %840, %834 : vector<8x64xf32>
    %842 = arith.mulf %841, %839 : vector<8x64xf32>
    %843 = arith.mulf %834, %759 : vector<8x64xf32>
    %844 = arith.addf %842, %843 : vector<8x64xf32>
    %845 = vector.broadcast %c8_i32 : i32 to vector<8x1xi32>
    %846 = arith.cmpi slt, %845, %10 : vector<8x1xi32>
    %847 = vector.broadcast %776 : i32 to vector<8x1xi32>
    %848 = arith.cmpi slt, %847, %10 : vector<8x1xi32>
    %849 = vector.shape_cast %846 : vector<8x1xi1> to vector<8x1xi1>
    %850 = vector.broadcast %849 : vector<8x1xi1> to vector<8x64xi1>
    %851 = arith.select %850, %813, %756 : vector<8x64xi1>, vector<8x64xf32>
    %852 = vector.shape_cast %848 : vector<8x1xi1> to vector<8x1xi1>
    %853 = vector.broadcast %852 : vector<8x1xi1> to vector<8x64xi1>
    %854 = arith.select %853, %844, %759 : vector<8x64xi1>, vector<8x64xf32>
    %cst_184 = arith.constant 0.000000e+00 : f32
    %855 = vector.shape_cast %846 : vector<8x1xi1> to vector<8x1xi1>
    %856 = vector.broadcast %855 : vector<8x1xi1> to vector<8x64xi1>
    %857 = vector.broadcast %cst_184 : f32 to vector<8x64xf32>
    %858 = arith.select %856, %851, %857 : vector<8x64xi1>, vector<8x64xf32>
    %859 = arith.index_cast %c8_i32 : i32 to index
    %c0_185 = arith.constant 0 : index
    %c0_186 = arith.constant 0 : index
    %860 = vector.load %arg11[%859, %c0_185, %c0_186] : memref<16x8x64xf32, #tpu.memory_space<vmem>>, vector<1x8x64xf32>
    %861 = vector.shape_cast %860 : vector<1x8x64xf32> to vector<8x64xf32>
    %862 = vector.shape_cast %858 : vector<8x64xf32> to vector<1x8x64xf32>
    tpu.vector_store %arg11[%859, %c0_185, %c0_186], %862 {strides = array<i32>} : memref<16x8x64xf32, #tpu.memory_space<vmem>>, vector<1x8x64xf32>,
    %cst_187 = arith.constant 0.000000e+00 : f32
    %863 = vector.shape_cast %848 : vector<8x1xi1> to vector<8x1xi1>
    %864 = vector.broadcast %863 : vector<8x1xi1> to vector<8x64xi1>
    %865 = vector.broadcast %cst_187 : f32 to vector<8x64xf32>
    %866 = arith.select %864, %854, %865 : vector<8x64xi1>, vector<8x64xf32>
    %867 = arith.index_cast %776 : i32 to index
    %c0_188 = arith.constant 0 : index
    %c0_189 = arith.constant 0 : index
    %868 = vector.load %arg12[%867, %c0_188, %c0_189] : memref<16x8x64xf32, #tpu.memory_space<vmem>>, vector<1x8x64xf32>
    %869 = vector.shape_cast %868 : vector<1x8x64xf32> to vector<8x64xf32>
    %870 = vector.shape_cast %866 : vector<8x64xf32> to vector<1x8x64xf32>
    tpu.vector_store %arg12[%867, %c0_188, %c0_189], %870 {strides = array<i32>} : memref<16x8x64xf32, #tpu.memory_space<vmem>>, vector<1x8x64xf32>,
    %c9_i32 = arith.constant 9 : i32
    %c15_i32_190 = arith.constant 15 : i32
    %871 = arith.subi %c15_i32_190, %c9_i32 : i32
    %872 = arith.index_cast %c9_i32 : i32 to index
    %c0_191 = arith.constant 0 : index
    %c0_192 = arith.constant 0 : index
    %873 = vector.load %arg10[%872, %c0_191, %c0_192] : memref<16x8x384xf32, #tpu.memory_space<vmem>>, vector<1x8x384xf32>
    %874 = vector.shape_cast %873 : vector<1x8x384xf32> to vector<8x384xf32>
    %875 = arith.index_cast %871 : i32 to index
    %c0_193 = arith.constant 0 : index
    %c0_194 = arith.constant 0 : index
    %876 = vector.load %arg10[%875, %c0_193, %c0_194] : memref<16x8x384xf32, #tpu.memory_space<vmem>>, vector<1x8x384xf32>
    %877 = vector.shape_cast %876 : vector<1x8x384xf32> to vector<8x384xf32>
    %878 = vector.extract_strided_slice %874 {offsets = [0, 0], sizes = [8, 192], strides = [1, 1]} : vector<8x384xf32> to vector<8x192xf32>
    %879 = arith.truncf %851 : vector<8x64xf32> to vector<8x64xbf16>
    %cst_195 = arith.constant dense<0.000000e+00> : vector<8x192xf32>
    %880 = tpu.matmul %879, %11, %cst_195 {dimension_numbers = #tpu.dot_dimension_numbers<[1], [0], [0], [1], [0, 0, 1, 1], [], []>} : vector<8x64xbf16>, vector<64x192xbf16>, vector<8x192xf32> -> vector<8x192xf32>
    %881 = vector.broadcast %13 : vector<1x192xf32> to vector<8x192xf32>
    %882 = arith.addf %880, %881 : vector<8x192xf32>
    %883 = vector.extract_strided_slice %878 {offsets = [0, 0], sizes = [8, 64], strides = [1, 1]} : vector<8x192xf32> to vector<8x64xf32>
    %884 = vector.extract_strided_slice %882 {offsets = [0, 0], sizes = [8, 64], strides = [1, 1]} : vector<8x192xf32> to vector<8x64xf32>
    %885 = arith.addf %883, %884 : vector<8x64xf32>
    %886 = arith.negf %885 : vector<8x64xf32>
    %887 = math.exp %886 : vector<8x64xf32>
    %cst_196 = arith.constant 1.000000e+00 : f32
    %888 = vector.broadcast %cst_196 : f32 to vector<8x64xf32>
    %889 = arith.addf %888, %887 : vector<8x64xf32>
    %890 = arith.divf %888, %889 : vector<8x64xf32>
    %891 = vector.extract_strided_slice %878 {offsets = [0, 64], sizes = [8, 64], strides = [1, 1]} : vector<8x192xf32> to vector<8x64xf32>
    %892 = vector.extract_strided_slice %882 {offsets = [0, 64], sizes = [8, 64], strides = [1, 1]} : vector<8x192xf32> to vector<8x64xf32>
    %893 = arith.addf %891, %892 : vector<8x64xf32>
    %894 = arith.negf %893 : vector<8x64xf32>
    %895 = math.exp %894 : vector<8x64xf32>
    %cst_197 = arith.constant 1.000000e+00 : f32
    %896 = vector.broadcast %cst_197 : f32 to vector<8x64xf32>
    %897 = arith.addf %896, %895 : vector<8x64xf32>
    %898 = arith.divf %896, %897 : vector<8x64xf32>
    %899 = vector.extract_strided_slice %878 {offsets = [0, 128], sizes = [8, 64], strides = [1, 1]} : vector<8x192xf32> to vector<8x64xf32>
    %900 = vector.extract_strided_slice %882 {offsets = [0, 128], sizes = [8, 64], strides = [1, 1]} : vector<8x192xf32> to vector<8x64xf32>
    %901 = arith.mulf %890, %900 : vector<8x64xf32>
    %902 = arith.addf %899, %901 : vector<8x64xf32>
    %903 = math.tanh %902 : vector<8x64xf32>
    %cst_198 = arith.constant 1.000000e+00 : f32
    %904 = vector.broadcast %cst_198 : f32 to vector<8x64xf32>
    %905 = arith.subf %904, %898 : vector<8x64xf32>
    %906 = arith.mulf %905, %903 : vector<8x64xf32>
    %907 = arith.mulf %898, %851 : vector<8x64xf32>
    %908 = arith.addf %906, %907 : vector<8x64xf32>
    %909 = vector.extract_strided_slice %877 {offsets = [0, 192], sizes = [8, 192], strides = [1, 1]} : vector<8x384xf32> to vector<8x192xf32>
    %910 = arith.truncf %854 : vector<8x64xf32> to vector<8x64xbf16>
    %cst_199 = arith.constant dense<0.000000e+00> : vector<8x192xf32>
    %911 = tpu.matmul %910, %12, %cst_199 {dimension_numbers = #tpu.dot_dimension_numbers<[1], [0], [0], [1], [0, 0, 1, 1], [], []>} : vector<8x64xbf16>, vector<64x192xbf16>, vector<8x192xf32> -> vector<8x192xf32>
    %912 = vector.broadcast %14 : vector<1x192xf32> to vector<8x192xf32>
    %913 = arith.addf %911, %912 : vector<8x192xf32>
    %914 = vector.extract_strided_slice %909 {offsets = [0, 0], sizes = [8, 64], strides = [1, 1]} : vector<8x192xf32> to vector<8x64xf32>
    %915 = vector.extract_strided_slice %913 {offsets = [0, 0], sizes = [8, 64], strides = [1, 1]} : vector<8x192xf32> to vector<8x64xf32>
    %916 = arith.addf %914, %915 : vector<8x64xf32>
    %917 = arith.negf %916 : vector<8x64xf32>
    %918 = math.exp %917 : vector<8x64xf32>
    %cst_200 = arith.constant 1.000000e+00 : f32
    %919 = vector.broadcast %cst_200 : f32 to vector<8x64xf32>
    %920 = arith.addf %919, %918 : vector<8x64xf32>
    %921 = arith.divf %919, %920 : vector<8x64xf32>
    %922 = vector.extract_strided_slice %909 {offsets = [0, 64], sizes = [8, 64], strides = [1, 1]} : vector<8x192xf32> to vector<8x64xf32>
    %923 = vector.extract_strided_slice %913 {offsets = [0, 64], sizes = [8, 64], strides = [1, 1]} : vector<8x192xf32> to vector<8x64xf32>
    %924 = arith.addf %922, %923 : vector<8x64xf32>
    %925 = arith.negf %924 : vector<8x64xf32>
    %926 = math.exp %925 : vector<8x64xf32>
    %cst_201 = arith.constant 1.000000e+00 : f32
    %927 = vector.broadcast %cst_201 : f32 to vector<8x64xf32>
    %928 = arith.addf %927, %926 : vector<8x64xf32>
    %929 = arith.divf %927, %928 : vector<8x64xf32>
    %930 = vector.extract_strided_slice %909 {offsets = [0, 128], sizes = [8, 64], strides = [1, 1]} : vector<8x192xf32> to vector<8x64xf32>
    %931 = vector.extract_strided_slice %913 {offsets = [0, 128], sizes = [8, 64], strides = [1, 1]} : vector<8x192xf32> to vector<8x64xf32>
    %932 = arith.mulf %921, %931 : vector<8x64xf32>
    %933 = arith.addf %930, %932 : vector<8x64xf32>
    %934 = math.tanh %933 : vector<8x64xf32>
    %cst_202 = arith.constant 1.000000e+00 : f32
    %935 = vector.broadcast %cst_202 : f32 to vector<8x64xf32>
    %936 = arith.subf %935, %929 : vector<8x64xf32>
    %937 = arith.mulf %936, %934 : vector<8x64xf32>
    %938 = arith.mulf %929, %854 : vector<8x64xf32>
    %939 = arith.addf %937, %938 : vector<8x64xf32>
    %940 = vector.broadcast %c9_i32 : i32 to vector<8x1xi32>
    %941 = arith.cmpi slt, %940, %10 : vector<8x1xi32>
    %942 = vector.broadcast %871 : i32 to vector<8x1xi32>
    %943 = arith.cmpi slt, %942, %10 : vector<8x1xi32>
    %944 = vector.shape_cast %941 : vector<8x1xi1> to vector<8x1xi1>
    %945 = vector.broadcast %944 : vector<8x1xi1> to vector<8x64xi1>
    %946 = arith.select %945, %908, %851 : vector<8x64xi1>, vector<8x64xf32>
    %947 = vector.shape_cast %943 : vector<8x1xi1> to vector<8x1xi1>
    %948 = vector.broadcast %947 : vector<8x1xi1> to vector<8x64xi1>
    %949 = arith.select %948, %939, %854 : vector<8x64xi1>, vector<8x64xf32>
    %cst_203 = arith.constant 0.000000e+00 : f32
    %950 = vector.shape_cast %941 : vector<8x1xi1> to vector<8x1xi1>
    %951 = vector.broadcast %950 : vector<8x1xi1> to vector<8x64xi1>
    %952 = vector.broadcast %cst_203 : f32 to vector<8x64xf32>
    %953 = arith.select %951, %946, %952 : vector<8x64xi1>, vector<8x64xf32>
    %954 = arith.index_cast %c9_i32 : i32 to index
    %c0_204 = arith.constant 0 : index
    %c0_205 = arith.constant 0 : index
    %955 = vector.load %arg11[%954, %c0_204, %c0_205] : memref<16x8x64xf32, #tpu.memory_space<vmem>>, vector<1x8x64xf32>
    %956 = vector.shape_cast %955 : vector<1x8x64xf32> to vector<8x64xf32>
    %957 = vector.shape_cast %953 : vector<8x64xf32> to vector<1x8x64xf32>
    tpu.vector_store %arg11[%954, %c0_204, %c0_205], %957 {strides = array<i32>} : memref<16x8x64xf32, #tpu.memory_space<vmem>>, vector<1x8x64xf32>,
    %cst_206 = arith.constant 0.000000e+00 : f32
    %958 = vector.shape_cast %943 : vector<8x1xi1> to vector<8x1xi1>
    %959 = vector.broadcast %958 : vector<8x1xi1> to vector<8x64xi1>
    %960 = vector.broadcast %cst_206 : f32 to vector<8x64xf32>
    %961 = arith.select %959, %949, %960 : vector<8x64xi1>, vector<8x64xf32>
    %962 = arith.index_cast %871 : i32 to index
    %c0_207 = arith.constant 0 : index
    %c0_208 = arith.constant 0 : index
    %963 = vector.load %arg12[%962, %c0_207, %c0_208] : memref<16x8x64xf32, #tpu.memory_space<vmem>>, vector<1x8x64xf32>
    %964 = vector.shape_cast %963 : vector<1x8x64xf32> to vector<8x64xf32>
    %965 = vector.shape_cast %961 : vector<8x64xf32> to vector<1x8x64xf32>
    tpu.vector_store %arg12[%962, %c0_207, %c0_208], %965 {strides = array<i32>} : memref<16x8x64xf32, #tpu.memory_space<vmem>>, vector<1x8x64xf32>,
    %c10_i32 = arith.constant 10 : i32
    %c15_i32_209 = arith.constant 15 : i32
    %966 = arith.subi %c15_i32_209, %c10_i32 : i32
    %967 = arith.index_cast %c10_i32 : i32 to index
    %c0_210 = arith.constant 0 : index
    %c0_211 = arith.constant 0 : index
    %968 = vector.load %arg10[%967, %c0_210, %c0_211] : memref<16x8x384xf32, #tpu.memory_space<vmem>>, vector<1x8x384xf32>
    %969 = vector.shape_cast %968 : vector<1x8x384xf32> to vector<8x384xf32>
    %970 = arith.index_cast %966 : i32 to index
    %c0_212 = arith.constant 0 : index
    %c0_213 = arith.constant 0 : index
    %971 = vector.load %arg10[%970, %c0_212, %c0_213] : memref<16x8x384xf32, #tpu.memory_space<vmem>>, vector<1x8x384xf32>
    %972 = vector.shape_cast %971 : vector<1x8x384xf32> to vector<8x384xf32>
    %973 = vector.extract_strided_slice %969 {offsets = [0, 0], sizes = [8, 192], strides = [1, 1]} : vector<8x384xf32> to vector<8x192xf32>
    %974 = arith.truncf %946 : vector<8x64xf32> to vector<8x64xbf16>
    %cst_214 = arith.constant dense<0.000000e+00> : vector<8x192xf32>
    %975 = tpu.matmul %974, %11, %cst_214 {dimension_numbers = #tpu.dot_dimension_numbers<[1], [0], [0], [1], [0, 0, 1, 1], [], []>} : vector<8x64xbf16>, vector<64x192xbf16>, vector<8x192xf32> -> vector<8x192xf32>
    %976 = vector.broadcast %13 : vector<1x192xf32> to vector<8x192xf32>
    %977 = arith.addf %975, %976 : vector<8x192xf32>
    %978 = vector.extract_strided_slice %973 {offsets = [0, 0], sizes = [8, 64], strides = [1, 1]} : vector<8x192xf32> to vector<8x64xf32>
    %979 = vector.extract_strided_slice %977 {offsets = [0, 0], sizes = [8, 64], strides = [1, 1]} : vector<8x192xf32> to vector<8x64xf32>
    %980 = arith.addf %978, %979 : vector<8x64xf32>
    %981 = arith.negf %980 : vector<8x64xf32>
    %982 = math.exp %981 : vector<8x64xf32>
    %cst_215 = arith.constant 1.000000e+00 : f32
    %983 = vector.broadcast %cst_215 : f32 to vector<8x64xf32>
    %984 = arith.addf %983, %982 : vector<8x64xf32>
    %985 = arith.divf %983, %984 : vector<8x64xf32>
    %986 = vector.extract_strided_slice %973 {offsets = [0, 64], sizes = [8, 64], strides = [1, 1]} : vector<8x192xf32> to vector<8x64xf32>
    %987 = vector.extract_strided_slice %977 {offsets = [0, 64], sizes = [8, 64], strides = [1, 1]} : vector<8x192xf32> to vector<8x64xf32>
    %988 = arith.addf %986, %987 : vector<8x64xf32>
    %989 = arith.negf %988 : vector<8x64xf32>
    %990 = math.exp %989 : vector<8x64xf32>
    %cst_216 = arith.constant 1.000000e+00 : f32
    %991 = vector.broadcast %cst_216 : f32 to vector<8x64xf32>
    %992 = arith.addf %991, %990 : vector<8x64xf32>
    %993 = arith.divf %991, %992 : vector<8x64xf32>
    %994 = vector.extract_strided_slice %973 {offsets = [0, 128], sizes = [8, 64], strides = [1, 1]} : vector<8x192xf32> to vector<8x64xf32>
    %995 = vector.extract_strided_slice %977 {offsets = [0, 128], sizes = [8, 64], strides = [1, 1]} : vector<8x192xf32> to vector<8x64xf32>
    %996 = arith.mulf %985, %995 : vector<8x64xf32>
    %997 = arith.addf %994, %996 : vector<8x64xf32>
    %998 = math.tanh %997 : vector<8x64xf32>
    %cst_217 = arith.constant 1.000000e+00 : f32
    %999 = vector.broadcast %cst_217 : f32 to vector<8x64xf32>
    %1000 = arith.subf %999, %993 : vector<8x64xf32>
    %1001 = arith.mulf %1000, %998 : vector<8x64xf32>
    %1002 = arith.mulf %993, %946 : vector<8x64xf32>
    %1003 = arith.addf %1001, %1002 : vector<8x64xf32>
    %1004 = vector.extract_strided_slice %972 {offsets = [0, 192], sizes = [8, 192], strides = [1, 1]} : vector<8x384xf32> to vector<8x192xf32>
    %1005 = arith.truncf %949 : vector<8x64xf32> to vector<8x64xbf16>
    %cst_218 = arith.constant dense<0.000000e+00> : vector<8x192xf32>
    %1006 = tpu.matmul %1005, %12, %cst_218 {dimension_numbers = #tpu.dot_dimension_numbers<[1], [0], [0], [1], [0, 0, 1, 1], [], []>} : vector<8x64xbf16>, vector<64x192xbf16>, vector<8x192xf32> -> vector<8x192xf32>
    %1007 = vector.broadcast %14 : vector<1x192xf32> to vector<8x192xf32>
    %1008 = arith.addf %1006, %1007 : vector<8x192xf32>
    %1009 = vector.extract_strided_slice %1004 {offsets = [0, 0], sizes = [8, 64], strides = [1, 1]} : vector<8x192xf32> to vector<8x64xf32>
    %1010 = vector.extract_strided_slice %1008 {offsets = [0, 0], sizes = [8, 64], strides = [1, 1]} : vector<8x192xf32> to vector<8x64xf32>
    %1011 = arith.addf %1009, %1010 : vector<8x64xf32>
    %1012 = arith.negf %1011 : vector<8x64xf32>
    %1013 = math.exp %1012 : vector<8x64xf32>
    %cst_219 = arith.constant 1.000000e+00 : f32
    %1014 = vector.broadcast %cst_219 : f32 to vector<8x64xf32>
    %1015 = arith.addf %1014, %1013 : vector<8x64xf32>
    %1016 = arith.divf %1014, %1015 : vector<8x64xf32>
    %1017 = vector.extract_strided_slice %1004 {offsets = [0, 64], sizes = [8, 64], strides = [1, 1]} : vector<8x192xf32> to vector<8x64xf32>
    %1018 = vector.extract_strided_slice %1008 {offsets = [0, 64], sizes = [8, 64], strides = [1, 1]} : vector<8x192xf32> to vector<8x64xf32>
    %1019 = arith.addf %1017, %1018 : vector<8x64xf32>
    %1020 = arith.negf %1019 : vector<8x64xf32>
    %1021 = math.exp %1020 : vector<8x64xf32>
    %cst_220 = arith.constant 1.000000e+00 : f32
    %1022 = vector.broadcast %cst_220 : f32 to vector<8x64xf32>
    %1023 = arith.addf %1022, %1021 : vector<8x64xf32>
    %1024 = arith.divf %1022, %1023 : vector<8x64xf32>
    %1025 = vector.extract_strided_slice %1004 {offsets = [0, 128], sizes = [8, 64], strides = [1, 1]} : vector<8x192xf32> to vector<8x64xf32>
    %1026 = vector.extract_strided_slice %1008 {offsets = [0, 128], sizes = [8, 64], strides = [1, 1]} : vector<8x192xf32> to vector<8x64xf32>
    %1027 = arith.mulf %1016, %1026 : vector<8x64xf32>
    %1028 = arith.addf %1025, %1027 : vector<8x64xf32>
    %1029 = math.tanh %1028 : vector<8x64xf32>
    %cst_221 = arith.constant 1.000000e+00 : f32
    %1030 = vector.broadcast %cst_221 : f32 to vector<8x64xf32>
    %1031 = arith.subf %1030, %1024 : vector<8x64xf32>
    %1032 = arith.mulf %1031, %1029 : vector<8x64xf32>
    %1033 = arith.mulf %1024, %949 : vector<8x64xf32>
    %1034 = arith.addf %1032, %1033 : vector<8x64xf32>
    %1035 = vector.broadcast %c10_i32 : i32 to vector<8x1xi32>
    %1036 = arith.cmpi slt, %1035, %10 : vector<8x1xi32>
    %1037 = vector.broadcast %966 : i32 to vector<8x1xi32>
    %1038 = arith.cmpi slt, %1037, %10 : vector<8x1xi32>
    %1039 = vector.shape_cast %1036 : vector<8x1xi1> to vector<8x1xi1>
    %1040 = vector.broadcast %1039 : vector<8x1xi1> to vector<8x64xi1>
    %1041 = arith.select %1040, %1003, %946 : vector<8x64xi1>, vector<8x64xf32>
    %1042 = vector.shape_cast %1038 : vector<8x1xi1> to vector<8x1xi1>
    %1043 = vector.broadcast %1042 : vector<8x1xi1> to vector<8x64xi1>
    %1044 = arith.select %1043, %1034, %949 : vector<8x64xi1>, vector<8x64xf32>
    %cst_222 = arith.constant 0.000000e+00 : f32
    %1045 = vector.shape_cast %1036 : vector<8x1xi1> to vector<8x1xi1>
    %1046 = vector.broadcast %1045 : vector<8x1xi1> to vector<8x64xi1>
    %1047 = vector.broadcast %cst_222 : f32 to vector<8x64xf32>
    %1048 = arith.select %1046, %1041, %1047 : vector<8x64xi1>, vector<8x64xf32>
    %1049 = arith.index_cast %c10_i32 : i32 to index
    %c0_223 = arith.constant 0 : index
    %c0_224 = arith.constant 0 : index
    %1050 = vector.load %arg11[%1049, %c0_223, %c0_224] : memref<16x8x64xf32, #tpu.memory_space<vmem>>, vector<1x8x64xf32>
    %1051 = vector.shape_cast %1050 : vector<1x8x64xf32> to vector<8x64xf32>
    %1052 = vector.shape_cast %1048 : vector<8x64xf32> to vector<1x8x64xf32>
    tpu.vector_store %arg11[%1049, %c0_223, %c0_224], %1052 {strides = array<i32>} : memref<16x8x64xf32, #tpu.memory_space<vmem>>, vector<1x8x64xf32>,
    %cst_225 = arith.constant 0.000000e+00 : f32
    %1053 = vector.shape_cast %1038 : vector<8x1xi1> to vector<8x1xi1>
    %1054 = vector.broadcast %1053 : vector<8x1xi1> to vector<8x64xi1>
    %1055 = vector.broadcast %cst_225 : f32 to vector<8x64xf32>
    %1056 = arith.select %1054, %1044, %1055 : vector<8x64xi1>, vector<8x64xf32>
    %1057 = arith.index_cast %966 : i32 to index
    %c0_226 = arith.constant 0 : index
    %c0_227 = arith.constant 0 : index
    %1058 = vector.load %arg12[%1057, %c0_226, %c0_227] : memref<16x8x64xf32, #tpu.memory_space<vmem>>, vector<1x8x64xf32>
    %1059 = vector.shape_cast %1058 : vector<1x8x64xf32> to vector<8x64xf32>
    %1060 = vector.shape_cast %1056 : vector<8x64xf32> to vector<1x8x64xf32>
    tpu.vector_store %arg12[%1057, %c0_226, %c0_227], %1060 {strides = array<i32>} : memref<16x8x64xf32, #tpu.memory_space<vmem>>, vector<1x8x64xf32>,
    %c11_i32 = arith.constant 11 : i32
    %c15_i32_228 = arith.constant 15 : i32
    %1061 = arith.subi %c15_i32_228, %c11_i32 : i32
    %1062 = arith.index_cast %c11_i32 : i32 to index
    %c0_229 = arith.constant 0 : index
    %c0_230 = arith.constant 0 : index
    %1063 = vector.load %arg10[%1062, %c0_229, %c0_230] : memref<16x8x384xf32, #tpu.memory_space<vmem>>, vector<1x8x384xf32>
    %1064 = vector.shape_cast %1063 : vector<1x8x384xf32> to vector<8x384xf32>
    %1065 = arith.index_cast %1061 : i32 to index
    %c0_231 = arith.constant 0 : index
    %c0_232 = arith.constant 0 : index
    %1066 = vector.load %arg10[%1065, %c0_231, %c0_232] : memref<16x8x384xf32, #tpu.memory_space<vmem>>, vector<1x8x384xf32>
    %1067 = vector.shape_cast %1066 : vector<1x8x384xf32> to vector<8x384xf32>
    %1068 = vector.extract_strided_slice %1064 {offsets = [0, 0], sizes = [8, 192], strides = [1, 1]} : vector<8x384xf32> to vector<8x192xf32>
    %1069 = arith.truncf %1041 : vector<8x64xf32> to vector<8x64xbf16>
    %cst_233 = arith.constant dense<0.000000e+00> : vector<8x192xf32>
    %1070 = tpu.matmul %1069, %11, %cst_233 {dimension_numbers = #tpu.dot_dimension_numbers<[1], [0], [0], [1], [0, 0, 1, 1], [], []>} : vector<8x64xbf16>, vector<64x192xbf16>, vector<8x192xf32> -> vector<8x192xf32>
    %1071 = vector.broadcast %13 : vector<1x192xf32> to vector<8x192xf32>
    %1072 = arith.addf %1070, %1071 : vector<8x192xf32>
    %1073 = vector.extract_strided_slice %1068 {offsets = [0, 0], sizes = [8, 64], strides = [1, 1]} : vector<8x192xf32> to vector<8x64xf32>
    %1074 = vector.extract_strided_slice %1072 {offsets = [0, 0], sizes = [8, 64], strides = [1, 1]} : vector<8x192xf32> to vector<8x64xf32>
    %1075 = arith.addf %1073, %1074 : vector<8x64xf32>
    %1076 = arith.negf %1075 : vector<8x64xf32>
    %1077 = math.exp %1076 : vector<8x64xf32>
    %cst_234 = arith.constant 1.000000e+00 : f32
    %1078 = vector.broadcast %cst_234 : f32 to vector<8x64xf32>
    %1079 = arith.addf %1078, %1077 : vector<8x64xf32>
    %1080 = arith.divf %1078, %1079 : vector<8x64xf32>
    %1081 = vector.extract_strided_slice %1068 {offsets = [0, 64], sizes = [8, 64], strides = [1, 1]} : vector<8x192xf32> to vector<8x64xf32>
    %1082 = vector.extract_strided_slice %1072 {offsets = [0, 64], sizes = [8, 64], strides = [1, 1]} : vector<8x192xf32> to vector<8x64xf32>
    %1083 = arith.addf %1081, %1082 : vector<8x64xf32>
    %1084 = arith.negf %1083 : vector<8x64xf32>
    %1085 = math.exp %1084 : vector<8x64xf32>
    %cst_235 = arith.constant 1.000000e+00 : f32
    %1086 = vector.broadcast %cst_235 : f32 to vector<8x64xf32>
    %1087 = arith.addf %1086, %1085 : vector<8x64xf32>
    %1088 = arith.divf %1086, %1087 : vector<8x64xf32>
    %1089 = vector.extract_strided_slice %1068 {offsets = [0, 128], sizes = [8, 64], strides = [1, 1]} : vector<8x192xf32> to vector<8x64xf32>
    %1090 = vector.extract_strided_slice %1072 {offsets = [0, 128], sizes = [8, 64], strides = [1, 1]} : vector<8x192xf32> to vector<8x64xf32>
    %1091 = arith.mulf %1080, %1090 : vector<8x64xf32>
    %1092 = arith.addf %1089, %1091 : vector<8x64xf32>
    %1093 = math.tanh %1092 : vector<8x64xf32>
    %cst_236 = arith.constant 1.000000e+00 : f32
    %1094 = vector.broadcast %cst_236 : f32 to vector<8x64xf32>
    %1095 = arith.subf %1094, %1088 : vector<8x64xf32>
    %1096 = arith.mulf %1095, %1093 : vector<8x64xf32>
    %1097 = arith.mulf %1088, %1041 : vector<8x64xf32>
    %1098 = arith.addf %1096, %1097 : vector<8x64xf32>
    %1099 = vector.extract_strided_slice %1067 {offsets = [0, 192], sizes = [8, 192], strides = [1, 1]} : vector<8x384xf32> to vector<8x192xf32>
    %1100 = arith.truncf %1044 : vector<8x64xf32> to vector<8x64xbf16>
    %cst_237 = arith.constant dense<0.000000e+00> : vector<8x192xf32>
    %1101 = tpu.matmul %1100, %12, %cst_237 {dimension_numbers = #tpu.dot_dimension_numbers<[1], [0], [0], [1], [0, 0, 1, 1], [], []>} : vector<8x64xbf16>, vector<64x192xbf16>, vector<8x192xf32> -> vector<8x192xf32>
    %1102 = vector.broadcast %14 : vector<1x192xf32> to vector<8x192xf32>
    %1103 = arith.addf %1101, %1102 : vector<8x192xf32>
    %1104 = vector.extract_strided_slice %1099 {offsets = [0, 0], sizes = [8, 64], strides = [1, 1]} : vector<8x192xf32> to vector<8x64xf32>
    %1105 = vector.extract_strided_slice %1103 {offsets = [0, 0], sizes = [8, 64], strides = [1, 1]} : vector<8x192xf32> to vector<8x64xf32>
    %1106 = arith.addf %1104, %1105 : vector<8x64xf32>
    %1107 = arith.negf %1106 : vector<8x64xf32>
    %1108 = math.exp %1107 : vector<8x64xf32>
    %cst_238 = arith.constant 1.000000e+00 : f32
    %1109 = vector.broadcast %cst_238 : f32 to vector<8x64xf32>
    %1110 = arith.addf %1109, %1108 : vector<8x64xf32>
    %1111 = arith.divf %1109, %1110 : vector<8x64xf32>
    %1112 = vector.extract_strided_slice %1099 {offsets = [0, 64], sizes = [8, 64], strides = [1, 1]} : vector<8x192xf32> to vector<8x64xf32>
    %1113 = vector.extract_strided_slice %1103 {offsets = [0, 64], sizes = [8, 64], strides = [1, 1]} : vector<8x192xf32> to vector<8x64xf32>
    %1114 = arith.addf %1112, %1113 : vector<8x64xf32>
    %1115 = arith.negf %1114 : vector<8x64xf32>
    %1116 = math.exp %1115 : vector<8x64xf32>
    %cst_239 = arith.constant 1.000000e+00 : f32
    %1117 = vector.broadcast %cst_239 : f32 to vector<8x64xf32>
    %1118 = arith.addf %1117, %1116 : vector<8x64xf32>
    %1119 = arith.divf %1117, %1118 : vector<8x64xf32>
    %1120 = vector.extract_strided_slice %1099 {offsets = [0, 128], sizes = [8, 64], strides = [1, 1]} : vector<8x192xf32> to vector<8x64xf32>
    %1121 = vector.extract_strided_slice %1103 {offsets = [0, 128], sizes = [8, 64], strides = [1, 1]} : vector<8x192xf32> to vector<8x64xf32>
    %1122 = arith.mulf %1111, %1121 : vector<8x64xf32>
    %1123 = arith.addf %1120, %1122 : vector<8x64xf32>
    %1124 = math.tanh %1123 : vector<8x64xf32>
    %cst_240 = arith.constant 1.000000e+00 : f32
    %1125 = vector.broadcast %cst_240 : f32 to vector<8x64xf32>
    %1126 = arith.subf %1125, %1119 : vector<8x64xf32>
    %1127 = arith.mulf %1126, %1124 : vector<8x64xf32>
    %1128 = arith.mulf %1119, %1044 : vector<8x64xf32>
    %1129 = arith.addf %1127, %1128 : vector<8x64xf32>
    %1130 = vector.broadcast %c11_i32 : i32 to vector<8x1xi32>
    %1131 = arith.cmpi slt, %1130, %10 : vector<8x1xi32>
    %1132 = vector.broadcast %1061 : i32 to vector<8x1xi32>
    %1133 = arith.cmpi slt, %1132, %10 : vector<8x1xi32>
    %1134 = vector.shape_cast %1131 : vector<8x1xi1> to vector<8x1xi1>
    %1135 = vector.broadcast %1134 : vector<8x1xi1> to vector<8x64xi1>
    %1136 = arith.select %1135, %1098, %1041 : vector<8x64xi1>, vector<8x64xf32>
    %1137 = vector.shape_cast %1133 : vector<8x1xi1> to vector<8x1xi1>
    %1138 = vector.broadcast %1137 : vector<8x1xi1> to vector<8x64xi1>
    %1139 = arith.select %1138, %1129, %1044 : vector<8x64xi1>, vector<8x64xf32>
    %cst_241 = arith.constant 0.000000e+00 : f32
    %1140 = vector.shape_cast %1131 : vector<8x1xi1> to vector<8x1xi1>
    %1141 = vector.broadcast %1140 : vector<8x1xi1> to vector<8x64xi1>
    %1142 = vector.broadcast %cst_241 : f32 to vector<8x64xf32>
    %1143 = arith.select %1141, %1136, %1142 : vector<8x64xi1>, vector<8x64xf32>
    %1144 = arith.index_cast %c11_i32 : i32 to index
    %c0_242 = arith.constant 0 : index
    %c0_243 = arith.constant 0 : index
    %1145 = vector.load %arg11[%1144, %c0_242, %c0_243] : memref<16x8x64xf32, #tpu.memory_space<vmem>>, vector<1x8x64xf32>
    %1146 = vector.shape_cast %1145 : vector<1x8x64xf32> to vector<8x64xf32>
    %1147 = vector.shape_cast %1143 : vector<8x64xf32> to vector<1x8x64xf32>
    tpu.vector_store %arg11[%1144, %c0_242, %c0_243], %1147 {strides = array<i32>} : memref<16x8x64xf32, #tpu.memory_space<vmem>>, vector<1x8x64xf32>,
    %cst_244 = arith.constant 0.000000e+00 : f32
    %1148 = vector.shape_cast %1133 : vector<8x1xi1> to vector<8x1xi1>
    %1149 = vector.broadcast %1148 : vector<8x1xi1> to vector<8x64xi1>
    %1150 = vector.broadcast %cst_244 : f32 to vector<8x64xf32>
    %1151 = arith.select %1149, %1139, %1150 : vector<8x64xi1>, vector<8x64xf32>
    %1152 = arith.index_cast %1061 : i32 to index
    %c0_245 = arith.constant 0 : index
    %c0_246 = arith.constant 0 : index
    %1153 = vector.load %arg12[%1152, %c0_245, %c0_246] : memref<16x8x64xf32, #tpu.memory_space<vmem>>, vector<1x8x64xf32>
    %1154 = vector.shape_cast %1153 : vector<1x8x64xf32> to vector<8x64xf32>
    %1155 = vector.shape_cast %1151 : vector<8x64xf32> to vector<1x8x64xf32>
    tpu.vector_store %arg12[%1152, %c0_245, %c0_246], %1155 {strides = array<i32>} : memref<16x8x64xf32, #tpu.memory_space<vmem>>, vector<1x8x64xf32>,
    %c12_i32 = arith.constant 12 : i32
    %c15_i32_247 = arith.constant 15 : i32
    %1156 = arith.subi %c15_i32_247, %c12_i32 : i32
    %1157 = arith.index_cast %c12_i32 : i32 to index
    %c0_248 = arith.constant 0 : index
    %c0_249 = arith.constant 0 : index
    %1158 = vector.load %arg10[%1157, %c0_248, %c0_249] : memref<16x8x384xf32, #tpu.memory_space<vmem>>, vector<1x8x384xf32>
    %1159 = vector.shape_cast %1158 : vector<1x8x384xf32> to vector<8x384xf32>
    %1160 = arith.index_cast %1156 : i32 to index
    %c0_250 = arith.constant 0 : index
    %c0_251 = arith.constant 0 : index
    %1161 = vector.load %arg10[%1160, %c0_250, %c0_251] : memref<16x8x384xf32, #tpu.memory_space<vmem>>, vector<1x8x384xf32>
    %1162 = vector.shape_cast %1161 : vector<1x8x384xf32> to vector<8x384xf32>
    %1163 = vector.extract_strided_slice %1159 {offsets = [0, 0], sizes = [8, 192], strides = [1, 1]} : vector<8x384xf32> to vector<8x192xf32>
    %1164 = arith.truncf %1136 : vector<8x64xf32> to vector<8x64xbf16>
    %cst_252 = arith.constant dense<0.000000e+00> : vector<8x192xf32>
    %1165 = tpu.matmul %1164, %11, %cst_252 {dimension_numbers = #tpu.dot_dimension_numbers<[1], [0], [0], [1], [0, 0, 1, 1], [], []>} : vector<8x64xbf16>, vector<64x192xbf16>, vector<8x192xf32> -> vector<8x192xf32>
    %1166 = vector.broadcast %13 : vector<1x192xf32> to vector<8x192xf32>
    %1167 = arith.addf %1165, %1166 : vector<8x192xf32>
    %1168 = vector.extract_strided_slice %1163 {offsets = [0, 0], sizes = [8, 64], strides = [1, 1]} : vector<8x192xf32> to vector<8x64xf32>
    %1169 = vector.extract_strided_slice %1167 {offsets = [0, 0], sizes = [8, 64], strides = [1, 1]} : vector<8x192xf32> to vector<8x64xf32>
    %1170 = arith.addf %1168, %1169 : vector<8x64xf32>
    %1171 = arith.negf %1170 : vector<8x64xf32>
    %1172 = math.exp %1171 : vector<8x64xf32>
    %cst_253 = arith.constant 1.000000e+00 : f32
    %1173 = vector.broadcast %cst_253 : f32 to vector<8x64xf32>
    %1174 = arith.addf %1173, %1172 : vector<8x64xf32>
    %1175 = arith.divf %1173, %1174 : vector<8x64xf32>
    %1176 = vector.extract_strided_slice %1163 {offsets = [0, 64], sizes = [8, 64], strides = [1, 1]} : vector<8x192xf32> to vector<8x64xf32>
    %1177 = vector.extract_strided_slice %1167 {offsets = [0, 64], sizes = [8, 64], strides = [1, 1]} : vector<8x192xf32> to vector<8x64xf32>
    %1178 = arith.addf %1176, %1177 : vector<8x64xf32>
    %1179 = arith.negf %1178 : vector<8x64xf32>
    %1180 = math.exp %1179 : vector<8x64xf32>
    %cst_254 = arith.constant 1.000000e+00 : f32
    %1181 = vector.broadcast %cst_254 : f32 to vector<8x64xf32>
    %1182 = arith.addf %1181, %1180 : vector<8x64xf32>
    %1183 = arith.divf %1181, %1182 : vector<8x64xf32>
    %1184 = vector.extract_strided_slice %1163 {offsets = [0, 128], sizes = [8, 64], strides = [1, 1]} : vector<8x192xf32> to vector<8x64xf32>
    %1185 = vector.extract_strided_slice %1167 {offsets = [0, 128], sizes = [8, 64], strides = [1, 1]} : vector<8x192xf32> to vector<8x64xf32>
    %1186 = arith.mulf %1175, %1185 : vector<8x64xf32>
    %1187 = arith.addf %1184, %1186 : vector<8x64xf32>
    %1188 = math.tanh %1187 : vector<8x64xf32>
    %cst_255 = arith.constant 1.000000e+00 : f32
    %1189 = vector.broadcast %cst_255 : f32 to vector<8x64xf32>
    %1190 = arith.subf %1189, %1183 : vector<8x64xf32>
    %1191 = arith.mulf %1190, %1188 : vector<8x64xf32>
    %1192 = arith.mulf %1183, %1136 : vector<8x64xf32>
    %1193 = arith.addf %1191, %1192 : vector<8x64xf32>
    %1194 = vector.extract_strided_slice %1162 {offsets = [0, 192], sizes = [8, 192], strides = [1, 1]} : vector<8x384xf32> to vector<8x192xf32>
    %1195 = arith.truncf %1139 : vector<8x64xf32> to vector<8x64xbf16>
    %cst_256 = arith.constant dense<0.000000e+00> : vector<8x192xf32>
    %1196 = tpu.matmul %1195, %12, %cst_256 {dimension_numbers = #tpu.dot_dimension_numbers<[1], [0], [0], [1], [0, 0, 1, 1], [], []>} : vector<8x64xbf16>, vector<64x192xbf16>, vector<8x192xf32> -> vector<8x192xf32>
    %1197 = vector.broadcast %14 : vector<1x192xf32> to vector<8x192xf32>
    %1198 = arith.addf %1196, %1197 : vector<8x192xf32>
    %1199 = vector.extract_strided_slice %1194 {offsets = [0, 0], sizes = [8, 64], strides = [1, 1]} : vector<8x192xf32> to vector<8x64xf32>
    %1200 = vector.extract_strided_slice %1198 {offsets = [0, 0], sizes = [8, 64], strides = [1, 1]} : vector<8x192xf32> to vector<8x64xf32>
    %1201 = arith.addf %1199, %1200 : vector<8x64xf32>
    %1202 = arith.negf %1201 : vector<8x64xf32>
    %1203 = math.exp %1202 : vector<8x64xf32>
    %cst_257 = arith.constant 1.000000e+00 : f32
    %1204 = vector.broadcast %cst_257 : f32 to vector<8x64xf32>
    %1205 = arith.addf %1204, %1203 : vector<8x64xf32>
    %1206 = arith.divf %1204, %1205 : vector<8x64xf32>
    %1207 = vector.extract_strided_slice %1194 {offsets = [0, 64], sizes = [8, 64], strides = [1, 1]} : vector<8x192xf32> to vector<8x64xf32>
    %1208 = vector.extract_strided_slice %1198 {offsets = [0, 64], sizes = [8, 64], strides = [1, 1]} : vector<8x192xf32> to vector<8x64xf32>
    %1209 = arith.addf %1207, %1208 : vector<8x64xf32>
    %1210 = arith.negf %1209 : vector<8x64xf32>
    %1211 = math.exp %1210 : vector<8x64xf32>
    %cst_258 = arith.constant 1.000000e+00 : f32
    %1212 = vector.broadcast %cst_258 : f32 to vector<8x64xf32>
    %1213 = arith.addf %1212, %1211 : vector<8x64xf32>
    %1214 = arith.divf %1212, %1213 : vector<8x64xf32>
    %1215 = vector.extract_strided_slice %1194 {offsets = [0, 128], sizes = [8, 64], strides = [1, 1]} : vector<8x192xf32> to vector<8x64xf32>
    %1216 = vector.extract_strided_slice %1198 {offsets = [0, 128], sizes = [8, 64], strides = [1, 1]} : vector<8x192xf32> to vector<8x64xf32>
    %1217 = arith.mulf %1206, %1216 : vector<8x64xf32>
    %1218 = arith.addf %1215, %1217 : vector<8x64xf32>
    %1219 = math.tanh %1218 : vector<8x64xf32>
    %cst_259 = arith.constant 1.000000e+00 : f32
    %1220 = vector.broadcast %cst_259 : f32 to vector<8x64xf32>
    %1221 = arith.subf %1220, %1214 : vector<8x64xf32>
    %1222 = arith.mulf %1221, %1219 : vector<8x64xf32>
    %1223 = arith.mulf %1214, %1139 : vector<8x64xf32>
    %1224 = arith.addf %1222, %1223 : vector<8x64xf32>
    %1225 = vector.broadcast %c12_i32 : i32 to vector<8x1xi32>
    %1226 = arith.cmpi slt, %1225, %10 : vector<8x1xi32>
    %1227 = vector.broadcast %1156 : i32 to vector<8x1xi32>
    %1228 = arith.cmpi slt, %1227, %10 : vector<8x1xi32>
    %1229 = vector.shape_cast %1226 : vector<8x1xi1> to vector<8x1xi1>
    %1230 = vector.broadcast %1229 : vector<8x1xi1> to vector<8x64xi1>
    %1231 = arith.select %1230, %1193, %1136 : vector<8x64xi1>, vector<8x64xf32>
    %1232 = vector.shape_cast %1228 : vector<8x1xi1> to vector<8x1xi1>
    %1233 = vector.broadcast %1232 : vector<8x1xi1> to vector<8x64xi1>
    %1234 = arith.select %1233, %1224, %1139 : vector<8x64xi1>, vector<8x64xf32>
    %cst_260 = arith.constant 0.000000e+00 : f32
    %1235 = vector.shape_cast %1226 : vector<8x1xi1> to vector<8x1xi1>
    %1236 = vector.broadcast %1235 : vector<8x1xi1> to vector<8x64xi1>
    %1237 = vector.broadcast %cst_260 : f32 to vector<8x64xf32>
    %1238 = arith.select %1236, %1231, %1237 : vector<8x64xi1>, vector<8x64xf32>
    %1239 = arith.index_cast %c12_i32 : i32 to index
    %c0_261 = arith.constant 0 : index
    %c0_262 = arith.constant 0 : index
    %1240 = vector.load %arg11[%1239, %c0_261, %c0_262] : memref<16x8x64xf32, #tpu.memory_space<vmem>>, vector<1x8x64xf32>
    %1241 = vector.shape_cast %1240 : vector<1x8x64xf32> to vector<8x64xf32>
    %1242 = vector.shape_cast %1238 : vector<8x64xf32> to vector<1x8x64xf32>
    tpu.vector_store %arg11[%1239, %c0_261, %c0_262], %1242 {strides = array<i32>} : memref<16x8x64xf32, #tpu.memory_space<vmem>>, vector<1x8x64xf32>,
    %cst_263 = arith.constant 0.000000e+00 : f32
    %1243 = vector.shape_cast %1228 : vector<8x1xi1> to vector<8x1xi1>
    %1244 = vector.broadcast %1243 : vector<8x1xi1> to vector<8x64xi1>
    %1245 = vector.broadcast %cst_263 : f32 to vector<8x64xf32>
    %1246 = arith.select %1244, %1234, %1245 : vector<8x64xi1>, vector<8x64xf32>
    %1247 = arith.index_cast %1156 : i32 to index
    %c0_264 = arith.constant 0 : index
    %c0_265 = arith.constant 0 : index
    %1248 = vector.load %arg12[%1247, %c0_264, %c0_265] : memref<16x8x64xf32, #tpu.memory_space<vmem>>, vector<1x8x64xf32>
    %1249 = vector.shape_cast %1248 : vector<1x8x64xf32> to vector<8x64xf32>
    %1250 = vector.shape_cast %1246 : vector<8x64xf32> to vector<1x8x64xf32>
    tpu.vector_store %arg12[%1247, %c0_264, %c0_265], %1250 {strides = array<i32>} : memref<16x8x64xf32, #tpu.memory_space<vmem>>, vector<1x8x64xf32>,
    %c13_i32 = arith.constant 13 : i32
    %c15_i32_266 = arith.constant 15 : i32
    %1251 = arith.subi %c15_i32_266, %c13_i32 : i32
    %1252 = arith.index_cast %c13_i32 : i32 to index
    %c0_267 = arith.constant 0 : index
    %c0_268 = arith.constant 0 : index
    %1253 = vector.load %arg10[%1252, %c0_267, %c0_268] : memref<16x8x384xf32, #tpu.memory_space<vmem>>, vector<1x8x384xf32>
    %1254 = vector.shape_cast %1253 : vector<1x8x384xf32> to vector<8x384xf32>
    %1255 = arith.index_cast %1251 : i32 to index
    %c0_269 = arith.constant 0 : index
    %c0_270 = arith.constant 0 : index
    %1256 = vector.load %arg10[%1255, %c0_269, %c0_270] : memref<16x8x384xf32, #tpu.memory_space<vmem>>, vector<1x8x384xf32>
    %1257 = vector.shape_cast %1256 : vector<1x8x384xf32> to vector<8x384xf32>
    %1258 = vector.extract_strided_slice %1254 {offsets = [0, 0], sizes = [8, 192], strides = [1, 1]} : vector<8x384xf32> to vector<8x192xf32>
    %1259 = arith.truncf %1231 : vector<8x64xf32> to vector<8x64xbf16>
    %cst_271 = arith.constant dense<0.000000e+00> : vector<8x192xf32>
    %1260 = tpu.matmul %1259, %11, %cst_271 {dimension_numbers = #tpu.dot_dimension_numbers<[1], [0], [0], [1], [0, 0, 1, 1], [], []>} : vector<8x64xbf16>, vector<64x192xbf16>, vector<8x192xf32> -> vector<8x192xf32>
    %1261 = vector.broadcast %13 : vector<1x192xf32> to vector<8x192xf32>
    %1262 = arith.addf %1260, %1261 : vector<8x192xf32>
    %1263 = vector.extract_strided_slice %1258 {offsets = [0, 0], sizes = [8, 64], strides = [1, 1]} : vector<8x192xf32> to vector<8x64xf32>
    %1264 = vector.extract_strided_slice %1262 {offsets = [0, 0], sizes = [8, 64], strides = [1, 1]} : vector<8x192xf32> to vector<8x64xf32>
    %1265 = arith.addf %1263, %1264 : vector<8x64xf32>
    %1266 = arith.negf %1265 : vector<8x64xf32>
    %1267 = math.exp %1266 : vector<8x64xf32>
    %cst_272 = arith.constant 1.000000e+00 : f32
    %1268 = vector.broadcast %cst_272 : f32 to vector<8x64xf32>
    %1269 = arith.addf %1268, %1267 : vector<8x64xf32>
    %1270 = arith.divf %1268, %1269 : vector<8x64xf32>
    %1271 = vector.extract_strided_slice %1258 {offsets = [0, 64], sizes = [8, 64], strides = [1, 1]} : vector<8x192xf32> to vector<8x64xf32>
    %1272 = vector.extract_strided_slice %1262 {offsets = [0, 64], sizes = [8, 64], strides = [1, 1]} : vector<8x192xf32> to vector<8x64xf32>
    %1273 = arith.addf %1271, %1272 : vector<8x64xf32>
    %1274 = arith.negf %1273 : vector<8x64xf32>
    %1275 = math.exp %1274 : vector<8x64xf32>
    %cst_273 = arith.constant 1.000000e+00 : f32
    %1276 = vector.broadcast %cst_273 : f32 to vector<8x64xf32>
    %1277 = arith.addf %1276, %1275 : vector<8x64xf32>
    %1278 = arith.divf %1276, %1277 : vector<8x64xf32>
    %1279 = vector.extract_strided_slice %1258 {offsets = [0, 128], sizes = [8, 64], strides = [1, 1]} : vector<8x192xf32> to vector<8x64xf32>
    %1280 = vector.extract_strided_slice %1262 {offsets = [0, 128], sizes = [8, 64], strides = [1, 1]} : vector<8x192xf32> to vector<8x64xf32>
    %1281 = arith.mulf %1270, %1280 : vector<8x64xf32>
    %1282 = arith.addf %1279, %1281 : vector<8x64xf32>
    %1283 = math.tanh %1282 : vector<8x64xf32>
    %cst_274 = arith.constant 1.000000e+00 : f32
    %1284 = vector.broadcast %cst_274 : f32 to vector<8x64xf32>
    %1285 = arith.subf %1284, %1278 : vector<8x64xf32>
    %1286 = arith.mulf %1285, %1283 : vector<8x64xf32>
    %1287 = arith.mulf %1278, %1231 : vector<8x64xf32>
    %1288 = arith.addf %1286, %1287 : vector<8x64xf32>
    %1289 = vector.extract_strided_slice %1257 {offsets = [0, 192], sizes = [8, 192], strides = [1, 1]} : vector<8x384xf32> to vector<8x192xf32>
    %1290 = arith.truncf %1234 : vector<8x64xf32> to vector<8x64xbf16>
    %cst_275 = arith.constant dense<0.000000e+00> : vector<8x192xf32>
    %1291 = tpu.matmul %1290, %12, %cst_275 {dimension_numbers = #tpu.dot_dimension_numbers<[1], [0], [0], [1], [0, 0, 1, 1], [], []>} : vector<8x64xbf16>, vector<64x192xbf16>, vector<8x192xf32> -> vector<8x192xf32>
    %1292 = vector.broadcast %14 : vector<1x192xf32> to vector<8x192xf32>
    %1293 = arith.addf %1291, %1292 : vector<8x192xf32>
    %1294 = vector.extract_strided_slice %1289 {offsets = [0, 0], sizes = [8, 64], strides = [1, 1]} : vector<8x192xf32> to vector<8x64xf32>
    %1295 = vector.extract_strided_slice %1293 {offsets = [0, 0], sizes = [8, 64], strides = [1, 1]} : vector<8x192xf32> to vector<8x64xf32>
    %1296 = arith.addf %1294, %1295 : vector<8x64xf32>
    %1297 = arith.negf %1296 : vector<8x64xf32>
    %1298 = math.exp %1297 : vector<8x64xf32>
    %cst_276 = arith.constant 1.000000e+00 : f32
    %1299 = vector.broadcast %cst_276 : f32 to vector<8x64xf32>
    %1300 = arith.addf %1299, %1298 : vector<8x64xf32>
    %1301 = arith.divf %1299, %1300 : vector<8x64xf32>
    %1302 = vector.extract_strided_slice %1289 {offsets = [0, 64], sizes = [8, 64], strides = [1, 1]} : vector<8x192xf32> to vector<8x64xf32>
    %1303 = vector.extract_strided_slice %1293 {offsets = [0, 64], sizes = [8, 64], strides = [1, 1]} : vector<8x192xf32> to vector<8x64xf32>
    %1304 = arith.addf %1302, %1303 : vector<8x64xf32>
    %1305 = arith.negf %1304 : vector<8x64xf32>
    %1306 = math.exp %1305 : vector<8x64xf32>
    %cst_277 = arith.constant 1.000000e+00 : f32
    %1307 = vector.broadcast %cst_277 : f32 to vector<8x64xf32>
    %1308 = arith.addf %1307, %1306 : vector<8x64xf32>
    %1309 = arith.divf %1307, %1308 : vector<8x64xf32>
    %1310 = vector.extract_strided_slice %1289 {offsets = [0, 128], sizes = [8, 64], strides = [1, 1]} : vector<8x192xf32> to vector<8x64xf32>
    %1311 = vector.extract_strided_slice %1293 {offsets = [0, 128], sizes = [8, 64], strides = [1, 1]} : vector<8x192xf32> to vector<8x64xf32>
    %1312 = arith.mulf %1301, %1311 : vector<8x64xf32>
    %1313 = arith.addf %1310, %1312 : vector<8x64xf32>
    %1314 = math.tanh %1313 : vector<8x64xf32>
    %cst_278 = arith.constant 1.000000e+00 : f32
    %1315 = vector.broadcast %cst_278 : f32 to vector<8x64xf32>
    %1316 = arith.subf %1315, %1309 : vector<8x64xf32>
    %1317 = arith.mulf %1316, %1314 : vector<8x64xf32>
    %1318 = arith.mulf %1309, %1234 : vector<8x64xf32>
    %1319 = arith.addf %1317, %1318 : vector<8x64xf32>
    %1320 = vector.broadcast %c13_i32 : i32 to vector<8x1xi32>
    %1321 = arith.cmpi slt, %1320, %10 : vector<8x1xi32>
    %1322 = vector.broadcast %1251 : i32 to vector<8x1xi32>
    %1323 = arith.cmpi slt, %1322, %10 : vector<8x1xi32>
    %1324 = vector.shape_cast %1321 : vector<8x1xi1> to vector<8x1xi1>
    %1325 = vector.broadcast %1324 : vector<8x1xi1> to vector<8x64xi1>
    %1326 = arith.select %1325, %1288, %1231 : vector<8x64xi1>, vector<8x64xf32>
    %1327 = vector.shape_cast %1323 : vector<8x1xi1> to vector<8x1xi1>
    %1328 = vector.broadcast %1327 : vector<8x1xi1> to vector<8x64xi1>
    %1329 = arith.select %1328, %1319, %1234 : vector<8x64xi1>, vector<8x64xf32>
    %cst_279 = arith.constant 0.000000e+00 : f32
    %1330 = vector.shape_cast %1321 : vector<8x1xi1> to vector<8x1xi1>
    %1331 = vector.broadcast %1330 : vector<8x1xi1> to vector<8x64xi1>
    %1332 = vector.broadcast %cst_279 : f32 to vector<8x64xf32>
    %1333 = arith.select %1331, %1326, %1332 : vector<8x64xi1>, vector<8x64xf32>
    %1334 = arith.index_cast %c13_i32 : i32 to index
    %c0_280 = arith.constant 0 : index
    %c0_281 = arith.constant 0 : index
    %1335 = vector.load %arg11[%1334, %c0_280, %c0_281] : memref<16x8x64xf32, #tpu.memory_space<vmem>>, vector<1x8x64xf32>
    %1336 = vector.shape_cast %1335 : vector<1x8x64xf32> to vector<8x64xf32>
    %1337 = vector.shape_cast %1333 : vector<8x64xf32> to vector<1x8x64xf32>
    tpu.vector_store %arg11[%1334, %c0_280, %c0_281], %1337 {strides = array<i32>} : memref<16x8x64xf32, #tpu.memory_space<vmem>>, vector<1x8x64xf32>,
    %cst_282 = arith.constant 0.000000e+00 : f32
    %1338 = vector.shape_cast %1323 : vector<8x1xi1> to vector<8x1xi1>
    %1339 = vector.broadcast %1338 : vector<8x1xi1> to vector<8x64xi1>
    %1340 = vector.broadcast %cst_282 : f32 to vector<8x64xf32>
    %1341 = arith.select %1339, %1329, %1340 : vector<8x64xi1>, vector<8x64xf32>
    %1342 = arith.index_cast %1251 : i32 to index
    %c0_283 = arith.constant 0 : index
    %c0_284 = arith.constant 0 : index
    %1343 = vector.load %arg12[%1342, %c0_283, %c0_284] : memref<16x8x64xf32, #tpu.memory_space<vmem>>, vector<1x8x64xf32>
    %1344 = vector.shape_cast %1343 : vector<1x8x64xf32> to vector<8x64xf32>
    %1345 = vector.shape_cast %1341 : vector<8x64xf32> to vector<1x8x64xf32>
    tpu.vector_store %arg12[%1342, %c0_283, %c0_284], %1345 {strides = array<i32>} : memref<16x8x64xf32, #tpu.memory_space<vmem>>, vector<1x8x64xf32>,
    %c14_i32 = arith.constant 14 : i32
    %c15_i32_285 = arith.constant 15 : i32
    %1346 = arith.subi %c15_i32_285, %c14_i32 : i32
    %1347 = arith.index_cast %c14_i32 : i32 to index
    %c0_286 = arith.constant 0 : index
    %c0_287 = arith.constant 0 : index
    %1348 = vector.load %arg10[%1347, %c0_286, %c0_287] : memref<16x8x384xf32, #tpu.memory_space<vmem>>, vector<1x8x384xf32>
    %1349 = vector.shape_cast %1348 : vector<1x8x384xf32> to vector<8x384xf32>
    %1350 = arith.index_cast %1346 : i32 to index
    %c0_288 = arith.constant 0 : index
    %c0_289 = arith.constant 0 : index
    %1351 = vector.load %arg10[%1350, %c0_288, %c0_289] : memref<16x8x384xf32, #tpu.memory_space<vmem>>, vector<1x8x384xf32>
    %1352 = vector.shape_cast %1351 : vector<1x8x384xf32> to vector<8x384xf32>
    %1353 = vector.extract_strided_slice %1349 {offsets = [0, 0], sizes = [8, 192], strides = [1, 1]} : vector<8x384xf32> to vector<8x192xf32>
    %1354 = arith.truncf %1326 : vector<8x64xf32> to vector<8x64xbf16>
    %cst_290 = arith.constant dense<0.000000e+00> : vector<8x192xf32>
    %1355 = tpu.matmul %1354, %11, %cst_290 {dimension_numbers = #tpu.dot_dimension_numbers<[1], [0], [0], [1], [0, 0, 1, 1], [], []>} : vector<8x64xbf16>, vector<64x192xbf16>, vector<8x192xf32> -> vector<8x192xf32>
    %1356 = vector.broadcast %13 : vector<1x192xf32> to vector<8x192xf32>
    %1357 = arith.addf %1355, %1356 : vector<8x192xf32>
    %1358 = vector.extract_strided_slice %1353 {offsets = [0, 0], sizes = [8, 64], strides = [1, 1]} : vector<8x192xf32> to vector<8x64xf32>
    %1359 = vector.extract_strided_slice %1357 {offsets = [0, 0], sizes = [8, 64], strides = [1, 1]} : vector<8x192xf32> to vector<8x64xf32>
    %1360 = arith.addf %1358, %1359 : vector<8x64xf32>
    %1361 = arith.negf %1360 : vector<8x64xf32>
    %1362 = math.exp %1361 : vector<8x64xf32>
    %cst_291 = arith.constant 1.000000e+00 : f32
    %1363 = vector.broadcast %cst_291 : f32 to vector<8x64xf32>
    %1364 = arith.addf %1363, %1362 : vector<8x64xf32>
    %1365 = arith.divf %1363, %1364 : vector<8x64xf32>
    %1366 = vector.extract_strided_slice %1353 {offsets = [0, 64], sizes = [8, 64], strides = [1, 1]} : vector<8x192xf32> to vector<8x64xf32>
    %1367 = vector.extract_strided_slice %1357 {offsets = [0, 64], sizes = [8, 64], strides = [1, 1]} : vector<8x192xf32> to vector<8x64xf32>
    %1368 = arith.addf %1366, %1367 : vector<8x64xf32>
    %1369 = arith.negf %1368 : vector<8x64xf32>
    %1370 = math.exp %1369 : vector<8x64xf32>
    %cst_292 = arith.constant 1.000000e+00 : f32
    %1371 = vector.broadcast %cst_292 : f32 to vector<8x64xf32>
    %1372 = arith.addf %1371, %1370 : vector<8x64xf32>
    %1373 = arith.divf %1371, %1372 : vector<8x64xf32>
    %1374 = vector.extract_strided_slice %1353 {offsets = [0, 128], sizes = [8, 64], strides = [1, 1]} : vector<8x192xf32> to vector<8x64xf32>
    %1375 = vector.extract_strided_slice %1357 {offsets = [0, 128], sizes = [8, 64], strides = [1, 1]} : vector<8x192xf32> to vector<8x64xf32>
    %1376 = arith.mulf %1365, %1375 : vector<8x64xf32>
    %1377 = arith.addf %1374, %1376 : vector<8x64xf32>
    %1378 = math.tanh %1377 : vector<8x64xf32>
    %cst_293 = arith.constant 1.000000e+00 : f32
    %1379 = vector.broadcast %cst_293 : f32 to vector<8x64xf32>
    %1380 = arith.subf %1379, %1373 : vector<8x64xf32>
    %1381 = arith.mulf %1380, %1378 : vector<8x64xf32>
    %1382 = arith.mulf %1373, %1326 : vector<8x64xf32>
    %1383 = arith.addf %1381, %1382 : vector<8x64xf32>
    %1384 = vector.extract_strided_slice %1352 {offsets = [0, 192], sizes = [8, 192], strides = [1, 1]} : vector<8x384xf32> to vector<8x192xf32>
    %1385 = arith.truncf %1329 : vector<8x64xf32> to vector<8x64xbf16>
    %cst_294 = arith.constant dense<0.000000e+00> : vector<8x192xf32>
    %1386 = tpu.matmul %1385, %12, %cst_294 {dimension_numbers = #tpu.dot_dimension_numbers<[1], [0], [0], [1], [0, 0, 1, 1], [], []>} : vector<8x64xbf16>, vector<64x192xbf16>, vector<8x192xf32> -> vector<8x192xf32>
    %1387 = vector.broadcast %14 : vector<1x192xf32> to vector<8x192xf32>
    %1388 = arith.addf %1386, %1387 : vector<8x192xf32>
    %1389 = vector.extract_strided_slice %1384 {offsets = [0, 0], sizes = [8, 64], strides = [1, 1]} : vector<8x192xf32> to vector<8x64xf32>
    %1390 = vector.extract_strided_slice %1388 {offsets = [0, 0], sizes = [8, 64], strides = [1, 1]} : vector<8x192xf32> to vector<8x64xf32>
    %1391 = arith.addf %1389, %1390 : vector<8x64xf32>
    %1392 = arith.negf %1391 : vector<8x64xf32>
    %1393 = math.exp %1392 : vector<8x64xf32>
    %cst_295 = arith.constant 1.000000e+00 : f32
    %1394 = vector.broadcast %cst_295 : f32 to vector<8x64xf32>
    %1395 = arith.addf %1394, %1393 : vector<8x64xf32>
    %1396 = arith.divf %1394, %1395 : vector<8x64xf32>
    %1397 = vector.extract_strided_slice %1384 {offsets = [0, 64], sizes = [8, 64], strides = [1, 1]} : vector<8x192xf32> to vector<8x64xf32>
    %1398 = vector.extract_strided_slice %1388 {offsets = [0, 64], sizes = [8, 64], strides = [1, 1]} : vector<8x192xf32> to vector<8x64xf32>
    %1399 = arith.addf %1397, %1398 : vector<8x64xf32>
    %1400 = arith.negf %1399 : vector<8x64xf32>
    %1401 = math.exp %1400 : vector<8x64xf32>
    %cst_296 = arith.constant 1.000000e+00 : f32
    %1402 = vector.broadcast %cst_296 : f32 to vector<8x64xf32>
    %1403 = arith.addf %1402, %1401 : vector<8x64xf32>
    %1404 = arith.divf %1402, %1403 : vector<8x64xf32>
    %1405 = vector.extract_strided_slice %1384 {offsets = [0, 128], sizes = [8, 64], strides = [1, 1]} : vector<8x192xf32> to vector<8x64xf32>
    %1406 = vector.extract_strided_slice %1388 {offsets = [0, 128], sizes = [8, 64], strides = [1, 1]} : vector<8x192xf32> to vector<8x64xf32>
    %1407 = arith.mulf %1396, %1406 : vector<8x64xf32>
    %1408 = arith.addf %1405, %1407 : vector<8x64xf32>
    %1409 = math.tanh %1408 : vector<8x64xf32>
    %cst_297 = arith.constant 1.000000e+00 : f32
    %1410 = vector.broadcast %cst_297 : f32 to vector<8x64xf32>
    %1411 = arith.subf %1410, %1404 : vector<8x64xf32>
    %1412 = arith.mulf %1411, %1409 : vector<8x64xf32>
    %1413 = arith.mulf %1404, %1329 : vector<8x64xf32>
    %1414 = arith.addf %1412, %1413 : vector<8x64xf32>
    %1415 = vector.broadcast %c14_i32 : i32 to vector<8x1xi32>
    %1416 = arith.cmpi slt, %1415, %10 : vector<8x1xi32>
    %1417 = vector.broadcast %1346 : i32 to vector<8x1xi32>
    %1418 = arith.cmpi slt, %1417, %10 : vector<8x1xi32>
    %1419 = vector.shape_cast %1416 : vector<8x1xi1> to vector<8x1xi1>
    %1420 = vector.broadcast %1419 : vector<8x1xi1> to vector<8x64xi1>
    %1421 = arith.select %1420, %1383, %1326 : vector<8x64xi1>, vector<8x64xf32>
    %1422 = vector.shape_cast %1418 : vector<8x1xi1> to vector<8x1xi1>
    %1423 = vector.broadcast %1422 : vector<8x1xi1> to vector<8x64xi1>
    %1424 = arith.select %1423, %1414, %1329 : vector<8x64xi1>, vector<8x64xf32>
    %cst_298 = arith.constant 0.000000e+00 : f32
    %1425 = vector.shape_cast %1416 : vector<8x1xi1> to vector<8x1xi1>
    %1426 = vector.broadcast %1425 : vector<8x1xi1> to vector<8x64xi1>
    %1427 = vector.broadcast %cst_298 : f32 to vector<8x64xf32>
    %1428 = arith.select %1426, %1421, %1427 : vector<8x64xi1>, vector<8x64xf32>
    %1429 = arith.index_cast %c14_i32 : i32 to index
    %c0_299 = arith.constant 0 : index
    %c0_300 = arith.constant 0 : index
    %1430 = vector.load %arg11[%1429, %c0_299, %c0_300] : memref<16x8x64xf32, #tpu.memory_space<vmem>>, vector<1x8x64xf32>
    %1431 = vector.shape_cast %1430 : vector<1x8x64xf32> to vector<8x64xf32>
    %1432 = vector.shape_cast %1428 : vector<8x64xf32> to vector<1x8x64xf32>
    tpu.vector_store %arg11[%1429, %c0_299, %c0_300], %1432 {strides = array<i32>} : memref<16x8x64xf32, #tpu.memory_space<vmem>>, vector<1x8x64xf32>,
    %cst_301 = arith.constant 0.000000e+00 : f32
    %1433 = vector.shape_cast %1418 : vector<8x1xi1> to vector<8x1xi1>
    %1434 = vector.broadcast %1433 : vector<8x1xi1> to vector<8x64xi1>
    %1435 = vector.broadcast %cst_301 : f32 to vector<8x64xf32>
    %1436 = arith.select %1434, %1424, %1435 : vector<8x64xi1>, vector<8x64xf32>
    %1437 = arith.index_cast %1346 : i32 to index
    %c0_302 = arith.constant 0 : index
    %c0_303 = arith.constant 0 : index
    %1438 = vector.load %arg12[%1437, %c0_302, %c0_303] : memref<16x8x64xf32, #tpu.memory_space<vmem>>, vector<1x8x64xf32>
    %1439 = vector.shape_cast %1438 : vector<1x8x64xf32> to vector<8x64xf32>
    %1440 = vector.shape_cast %1436 : vector<8x64xf32> to vector<1x8x64xf32>
    tpu.vector_store %arg12[%1437, %c0_302, %c0_303], %1440 {strides = array<i32>} : memref<16x8x64xf32, #tpu.memory_space<vmem>>, vector<1x8x64xf32>,
    %c15_i32_304 = arith.constant 15 : i32
    %c15_i32_305 = arith.constant 15 : i32
    %1441 = arith.subi %c15_i32_305, %c15_i32_304 : i32
    %1442 = arith.index_cast %c15_i32_304 : i32 to index
    %c0_306 = arith.constant 0 : index
    %c0_307 = arith.constant 0 : index
    %1443 = vector.load %arg10[%1442, %c0_306, %c0_307] : memref<16x8x384xf32, #tpu.memory_space<vmem>>, vector<1x8x384xf32>
    %1444 = vector.shape_cast %1443 : vector<1x8x384xf32> to vector<8x384xf32>
    %1445 = arith.index_cast %1441 : i32 to index
    %c0_308 = arith.constant 0 : index
    %c0_309 = arith.constant 0 : index
    %1446 = vector.load %arg10[%1445, %c0_308, %c0_309] : memref<16x8x384xf32, #tpu.memory_space<vmem>>, vector<1x8x384xf32>
    %1447 = vector.shape_cast %1446 : vector<1x8x384xf32> to vector<8x384xf32>
    %1448 = vector.extract_strided_slice %1444 {offsets = [0, 0], sizes = [8, 192], strides = [1, 1]} : vector<8x384xf32> to vector<8x192xf32>
    %1449 = arith.truncf %1421 : vector<8x64xf32> to vector<8x64xbf16>
    %cst_310 = arith.constant dense<0.000000e+00> : vector<8x192xf32>
    %1450 = tpu.matmul %1449, %11, %cst_310 {dimension_numbers = #tpu.dot_dimension_numbers<[1], [0], [0], [1], [0, 0, 1, 1], [], []>} : vector<8x64xbf16>, vector<64x192xbf16>, vector<8x192xf32> -> vector<8x192xf32>
    %1451 = vector.broadcast %13 : vector<1x192xf32> to vector<8x192xf32>
    %1452 = arith.addf %1450, %1451 : vector<8x192xf32>
    %1453 = vector.extract_strided_slice %1448 {offsets = [0, 0], sizes = [8, 64], strides = [1, 1]} : vector<8x192xf32> to vector<8x64xf32>
    %1454 = vector.extract_strided_slice %1452 {offsets = [0, 0], sizes = [8, 64], strides = [1, 1]} : vector<8x192xf32> to vector<8x64xf32>
    %1455 = arith.addf %1453, %1454 : vector<8x64xf32>
    %1456 = arith.negf %1455 : vector<8x64xf32>
    %1457 = math.exp %1456 : vector<8x64xf32>
    %cst_311 = arith.constant 1.000000e+00 : f32
    %1458 = vector.broadcast %cst_311 : f32 to vector<8x64xf32>
    %1459 = arith.addf %1458, %1457 : vector<8x64xf32>
    %1460 = arith.divf %1458, %1459 : vector<8x64xf32>
    %1461 = vector.extract_strided_slice %1448 {offsets = [0, 64], sizes = [8, 64], strides = [1, 1]} : vector<8x192xf32> to vector<8x64xf32>
    %1462 = vector.extract_strided_slice %1452 {offsets = [0, 64], sizes = [8, 64], strides = [1, 1]} : vector<8x192xf32> to vector<8x64xf32>
    %1463 = arith.addf %1461, %1462 : vector<8x64xf32>
    %1464 = arith.negf %1463 : vector<8x64xf32>
    %1465 = math.exp %1464 : vector<8x64xf32>
    %cst_312 = arith.constant 1.000000e+00 : f32
    %1466 = vector.broadcast %cst_312 : f32 to vector<8x64xf32>
    %1467 = arith.addf %1466, %1465 : vector<8x64xf32>
    %1468 = arith.divf %1466, %1467 : vector<8x64xf32>
    %1469 = vector.extract_strided_slice %1448 {offsets = [0, 128], sizes = [8, 64], strides = [1, 1]} : vector<8x192xf32> to vector<8x64xf32>
    %1470 = vector.extract_strided_slice %1452 {offsets = [0, 128], sizes = [8, 64], strides = [1, 1]} : vector<8x192xf32> to vector<8x64xf32>
    %1471 = arith.mulf %1460, %1470 : vector<8x64xf32>
    %1472 = arith.addf %1469, %1471 : vector<8x64xf32>
    %1473 = math.tanh %1472 : vector<8x64xf32>
    %cst_313 = arith.constant 1.000000e+00 : f32
    %1474 = vector.broadcast %cst_313 : f32 to vector<8x64xf32>
    %1475 = arith.subf %1474, %1468 : vector<8x64xf32>
    %1476 = arith.mulf %1475, %1473 : vector<8x64xf32>
    %1477 = arith.mulf %1468, %1421 : vector<8x64xf32>
    %1478 = arith.addf %1476, %1477 : vector<8x64xf32>
    %1479 = vector.extract_strided_slice %1447 {offsets = [0, 192], sizes = [8, 192], strides = [1, 1]} : vector<8x384xf32> to vector<8x192xf32>
    %1480 = arith.truncf %1424 : vector<8x64xf32> to vector<8x64xbf16>
    %cst_314 = arith.constant dense<0.000000e+00> : vector<8x192xf32>
    %1481 = tpu.matmul %1480, %12, %cst_314 {dimension_numbers = #tpu.dot_dimension_numbers<[1], [0], [0], [1], [0, 0, 1, 1], [], []>} : vector<8x64xbf16>, vector<64x192xbf16>, vector<8x192xf32> -> vector<8x192xf32>
    %1482 = vector.broadcast %14 : vector<1x192xf32> to vector<8x192xf32>
    %1483 = arith.addf %1481, %1482 : vector<8x192xf32>
    %1484 = vector.extract_strided_slice %1479 {offsets = [0, 0], sizes = [8, 64], strides = [1, 1]} : vector<8x192xf32> to vector<8x64xf32>
    %1485 = vector.extract_strided_slice %1483 {offsets = [0, 0], sizes = [8, 64], strides = [1, 1]} : vector<8x192xf32> to vector<8x64xf32>
    %1486 = arith.addf %1484, %1485 : vector<8x64xf32>
    %1487 = arith.negf %1486 : vector<8x64xf32>
    %1488 = math.exp %1487 : vector<8x64xf32>
    %cst_315 = arith.constant 1.000000e+00 : f32
    %1489 = vector.broadcast %cst_315 : f32 to vector<8x64xf32>
    %1490 = arith.addf %1489, %1488 : vector<8x64xf32>
    %1491 = arith.divf %1489, %1490 : vector<8x64xf32>
    %1492 = vector.extract_strided_slice %1479 {offsets = [0, 64], sizes = [8, 64], strides = [1, 1]} : vector<8x192xf32> to vector<8x64xf32>
    %1493 = vector.extract_strided_slice %1483 {offsets = [0, 64], sizes = [8, 64], strides = [1, 1]} : vector<8x192xf32> to vector<8x64xf32>
    %1494 = arith.addf %1492, %1493 : vector<8x64xf32>
    %1495 = arith.negf %1494 : vector<8x64xf32>
    %1496 = math.exp %1495 : vector<8x64xf32>
    %cst_316 = arith.constant 1.000000e+00 : f32
    %1497 = vector.broadcast %cst_316 : f32 to vector<8x64xf32>
    %1498 = arith.addf %1497, %1496 : vector<8x64xf32>
    %1499 = arith.divf %1497, %1498 : vector<8x64xf32>
    %1500 = vector.extract_strided_slice %1479 {offsets = [0, 128], sizes = [8, 64], strides = [1, 1]} : vector<8x192xf32> to vector<8x64xf32>
    %1501 = vector.extract_strided_slice %1483 {offsets = [0, 128], sizes = [8, 64], strides = [1, 1]} : vector<8x192xf32> to vector<8x64xf32>
    %1502 = arith.mulf %1491, %1501 : vector<8x64xf32>
    %1503 = arith.addf %1500, %1502 : vector<8x64xf32>
    %1504 = math.tanh %1503 : vector<8x64xf32>
    %cst_317 = arith.constant 1.000000e+00 : f32
    %1505 = vector.broadcast %cst_317 : f32 to vector<8x64xf32>
    %1506 = arith.subf %1505, %1499 : vector<8x64xf32>
    %1507 = arith.mulf %1506, %1504 : vector<8x64xf32>
    %1508 = arith.mulf %1499, %1424 : vector<8x64xf32>
    %1509 = arith.addf %1507, %1508 : vector<8x64xf32>
    %1510 = vector.broadcast %c15_i32_304 : i32 to vector<8x1xi32>
    %1511 = arith.cmpi slt, %1510, %10 : vector<8x1xi32>
    %1512 = vector.broadcast %1441 : i32 to vector<8x1xi32>
    %1513 = arith.cmpi slt, %1512, %10 : vector<8x1xi32>
    %1514 = vector.shape_cast %1511 : vector<8x1xi1> to vector<8x1xi1>
    %1515 = vector.broadcast %1514 : vector<8x1xi1> to vector<8x64xi1>
    %1516 = arith.select %1515, %1478, %1421 : vector<8x64xi1>, vector<8x64xf32>
    %1517 = vector.shape_cast %1513 : vector<8x1xi1> to vector<8x1xi1>
    %1518 = vector.broadcast %1517 : vector<8x1xi1> to vector<8x64xi1>
    %1519 = arith.select %1518, %1509, %1424 : vector<8x64xi1>, vector<8x64xf32>
    %cst_318 = arith.constant 0.000000e+00 : f32
    %1520 = vector.shape_cast %1511 : vector<8x1xi1> to vector<8x1xi1>
    %1521 = vector.broadcast %1520 : vector<8x1xi1> to vector<8x64xi1>
    %1522 = vector.broadcast %cst_318 : f32 to vector<8x64xf32>
    %1523 = arith.select %1521, %1516, %1522 : vector<8x64xi1>, vector<8x64xf32>
    %1524 = arith.index_cast %c15_i32_304 : i32 to index
    %c0_319 = arith.constant 0 : index
    %c0_320 = arith.constant 0 : index
    %1525 = vector.load %arg11[%1524, %c0_319, %c0_320] : memref<16x8x64xf32, #tpu.memory_space<vmem>>, vector<1x8x64xf32>
    %1526 = vector.shape_cast %1525 : vector<1x8x64xf32> to vector<8x64xf32>
    %1527 = vector.shape_cast %1523 : vector<8x64xf32> to vector<1x8x64xf32>
    tpu.vector_store %arg11[%1524, %c0_319, %c0_320], %1527 {strides = array<i32>} : memref<16x8x64xf32, #tpu.memory_space<vmem>>, vector<1x8x64xf32>,
    %cst_321 = arith.constant 0.000000e+00 : f32
    %1528 = vector.shape_cast %1513 : vector<8x1xi1> to vector<8x1xi1>
    %1529 = vector.broadcast %1528 : vector<8x1xi1> to vector<8x64xi1>
    %1530 = vector.broadcast %cst_321 : f32 to vector<8x64xf32>
    %1531 = arith.select %1529, %1519, %1530 : vector<8x64xi1>, vector<8x64xf32>
    %1532 = arith.index_cast %1441 : i32 to index
    %c0_322 = arith.constant 0 : index
    %c0_323 = arith.constant 0 : index
    %1533 = vector.load %arg12[%1532, %c0_322, %c0_323] : memref<16x8x64xf32, #tpu.memory_space<vmem>>, vector<1x8x64xf32>
    %1534 = vector.shape_cast %1533 : vector<1x8x64xf32> to vector<8x64xf32>
    %1535 = vector.shape_cast %1531 : vector<8x64xf32> to vector<1x8x64xf32>
    tpu.vector_store %arg12[%1532, %c0_322, %c0_323], %1535 {strides = array<i32>} : memref<16x8x64xf32, #tpu.memory_space<vmem>>, vector<1x8x64xf32>,
    %c16_i32 = arith.constant 16 : i32
    %c0_324 = arith.constant 0 : index
    %c0_325 = arith.constant 0 : index
    %c0_326 = arith.constant 0 : index
    %1536 = vector.load %arg11[%c0_324, %c0_325, %c0_326] : memref<16x8x64xf32, #tpu.memory_space<vmem>>, vector<16x8x64xf32>
    %c0_327 = arith.constant 0 : index
    %c0_328 = arith.constant 0 : index
    %c0_329 = arith.constant 0 : index
    %1537 = vector.load %arg12[%c0_327, %c0_328, %c0_329] : memref<16x8x64xf32, #tpu.memory_space<vmem>>, vector<16x8x64xf32>
    %1538 = tpu.concatenate %1536, %1537 in 2 : vector<16x8x64xf32>, vector<16x8x64xf32> -> vector<16x8x128xf32>
    %c0_330 = arith.constant 0 : index
    %c0_331 = arith.constant 0 : index
    %c0_332 = arith.constant 0 : index
    %1539 = vector.load %arg9[%c0_330, %c0_331, %c0_332] : memref<16x8x128xf32, #tpu.memory_space<vmem>>, vector<16x8x128xf32>
    tpu.vector_store %arg9[%c0_330, %c0_331, %c0_332], %1538 {strides = array<i32>} : memref<16x8x128xf32, #tpu.memory_space<vmem>>, vector<16x8x128xf32>,
    return
  }
  func.func @transform_0(%arg0: i32) -> (i32, i32, i32) {
    %c0_i32 = arith.constant 0 : i32
    %c0_i32_0 = arith.constant 0 : i32
    %c0_i32_1 = arith.constant 0 : i32
    return %c0_i32, %arg0, %c0_i32_0 : i32, i32, i32
  }
  func.func @transform_1(%arg0: i32) -> (i32, i32) {
    %c0_i32 = arith.constant 0 : i32
    %c0_i32_0 = arith.constant 0 : i32
    return %arg0, %c0_i32 : i32, i32
  }
  func.func @transform_2(%arg0: i32) -> (i32, i32) {
    %c0_i32 = arith.constant 0 : i32
    %c0_i32_0 = arith.constant 0 : i32
    %c0_i32_1 = arith.constant 0 : i32
    return %c0_i32, %c0_i32_0 : i32, i32
  }
  func.func @transform_3(%arg0: i32) -> (i32, i32) {
    %c0_i32 = arith.constant 0 : i32
    %c0_i32_0 = arith.constant 0 : i32
    %c0_i32_1 = arith.constant 0 : i32
    return %c0_i32, %c0_i32_0 : i32, i32
  }
  func.func @transform_4(%arg0: i32) -> (i32, i32) {
    %c0_i32 = arith.constant 0 : i32
    %c0_i32_0 = arith.constant 0 : i32
    %c0_i32_1 = arith.constant 0 : i32
    return %c0_i32, %c0_i32_0 : i32, i32
  }
  func.func @transform_5(%arg0: i32) -> (i32, i32) {
    %c0_i32 = arith.constant 0 : i32
    %c0_i32_0 = arith.constant 0 : i32
    %c0_i32_1 = arith.constant 0 : i32
    return %c0_i32, %c0_i32_0 : i32, i32
  }
  func.func @transform_6(%arg0: i32) -> (i32, i32) {
    %c0_i32 = arith.constant 0 : i32
    %c0_i32_0 = arith.constant 0 : i32
    %c0_i32_1 = arith.constant 0 : i32
    return %c0_i32, %c0_i32_0 : i32, i32
  }
  func.func @transform_7(%arg0: i32) -> (i32, i32) {
    %c0_i32 = arith.constant 0 : i32
    %c0_i32_0 = arith.constant 0 : i32
    %c0_i32_1 = arith.constant 0 : i32
    return %c0_i32, %c0_i32_0 : i32, i32
  }
  func.func @transform_8(%arg0: i32) -> (i32, i32, i32) {
    %c0_i32 = arith.constant 0 : i32
    %c0_i32_0 = arith.constant 0 : i32
    %c0_i32_1 = arith.constant 0 : i32
    return %c0_i32, %arg0, %c0_i32_0 : i32, i32, i32
  }
}

module attributes {stable_mosaic.version = 11 : i64} {
  func.func @self_attn_kernel(%arg0: i32, %arg1: memref<16xi32, #tpu.memory_space<smem>>, %arg2: memref<1x16x128xf32, #tpu.memory_space<vmem>>, %arg3: memref<128x64xbf16, #tpu.memory_space<vmem>>, %arg4: memref<1x64xf32, #tpu.memory_space<vmem>>, %arg5: memref<128x64xbf16, #tpu.memory_space<vmem>>, %arg6: memref<1x64xf32, #tpu.memory_space<vmem>>, %arg7: memref<1x1x128xf32, #tpu.memory_space<vmem>>) attributes {dimension_semantics = [#tpu.dimension_semantics<parallel>], iteration_bounds = array<i64: 16>, scalar_prefetch = 1 : i64, scratch_operands = 0 : i64, tpu.core_type = #tpu.core_type<tc>, window_params = [{transform_indices = @transform_0, window_bounds = array<i64: 1, 16, 128>}, {pipeline_mode = #tpu.pipeline_mode<synchronous>, transform_indices = @transform_1, window_bounds = array<i64: 128, 64>}, {pipeline_mode = #tpu.pipeline_mode<synchronous>, transform_indices = @transform_2, window_bounds = array<i64: 1, 64>}, {pipeline_mode = #tpu.pipeline_mode<synchronous>, transform_indices = @transform_3, window_bounds = array<i64: 128, 64>}, {pipeline_mode = #tpu.pipeline_mode<synchronous>, transform_indices = @transform_4, window_bounds = array<i64: 1, 64>}, {transform_indices = @transform_5, window_bounds = array<i64: 1, 1, 128>}]} {
    %c0 = arith.constant 0 : index
    %c0_0 = arith.constant 0 : index
    %c0_1 = arith.constant 0 : index
    %0 = vector.load %arg2[%c0, %c0_0, %c0_1] : memref<1x16x128xf32, #tpu.memory_space<vmem>>, vector<1x16x128xf32>
    %1 = vector.shape_cast %0 : vector<1x16x128xf32> to vector<16x128xf32>
    %2 = arith.truncf %1 : vector<16x128xf32> to vector<16x128xbf16>
    %c0_2 = arith.constant 0 : index
    %c0_3 = arith.constant 0 : index
    %3 = vector.load %arg3[%c0_2, %c0_3] : memref<128x64xbf16, #tpu.memory_space<vmem>>, vector<128x64xbf16>
    %cst = arith.constant dense<0.000000e+00> : vector<16x64xf32>
    %4 = tpu.matmul %2, %3, %cst {dimension_numbers = #tpu.dot_dimension_numbers<[1], [0], [0], [1], [0, 0, 1, 1], [], []>} : vector<16x128xbf16>, vector<128x64xbf16>, vector<16x64xf32> -> vector<16x64xf32>
    %c0_4 = arith.constant 0 : index
    %c0_5 = arith.constant 0 : index
    %5 = vector.load %arg4[%c0_4, %c0_5] : memref<1x64xf32, #tpu.memory_space<vmem>>, vector<1x64xf32>
    %6 = vector.broadcast %5 : vector<1x64xf32> to vector<16x64xf32>
    %7 = arith.addf %4, %6 : vector<16x64xf32>
    %8 = math.tanh %7 : vector<16x64xf32>
    %c0_6 = arith.constant 0 : index
    %c0_7 = arith.constant 0 : index
    %9 = vector.load %arg5[%c0_6, %c0_7] : memref<128x64xbf16, #tpu.memory_space<vmem>>, vector<128x64xbf16>
    %cst_8 = arith.constant dense<0.000000e+00> : vector<16x64xf32>
    %10 = tpu.matmul %2, %9, %cst_8 {dimension_numbers = #tpu.dot_dimension_numbers<[1], [0], [0], [1], [0, 0, 1, 1], [], []>} : vector<16x128xbf16>, vector<128x64xbf16>, vector<16x64xf32> -> vector<16x64xf32>
    %c0_9 = arith.constant 0 : index
    %c0_10 = arith.constant 0 : index
    %11 = vector.load %arg6[%c0_9, %c0_10] : memref<1x64xf32, #tpu.memory_space<vmem>>, vector<1x64xf32>
    %12 = vector.broadcast %11 : vector<1x64xf32> to vector<16x64xf32>
    %13 = arith.addf %10, %12 : vector<16x64xf32>
    %14 = math.tanh %13 : vector<16x64xf32>
    %15 = arith.truncf %8 : vector<16x64xf32> to vector<16x64xbf16>
    %16 = arith.truncf %14 : vector<16x64xf32> to vector<16x64xbf16>
    "tpu.trace_start"() <{level = 10 : i32, message = "td,sd->ts"}> : () -> ()
    %cst_11 = arith.constant dense<0.000000e+00> : vector<16x16xf32>
    %17 = tpu.matmul %15, %16, %cst_11 {dimension_numbers = #tpu.dot_dimension_numbers<[1], [1], [0], [0], [0, 0, 1, 0], [], []>} : vector<16x64xbf16>, vector<16x64xbf16>, vector<16x16xf32> -> vector<16x16xf32>
    "tpu.trace_stop"() : () -> ()
    %cst_12 = arith.constant 0.176776692 : f32
    %18 = vector.broadcast %cst_12 : f32 to vector<16x16xf32>
    %19 = arith.mulf %17, %18 : vector<16x16xf32>
    %20 = arith.index_cast %arg0 : i32 to index
    %21 = memref.load %arg1[%20] : memref<16xi32, #tpu.memory_space<smem>>
    %22 = tpu.iota {dimensions = array<i32: 0>} : vector<16x16xi32>
    %23 = tpu.iota {dimensions = array<i32: 1>} : vector<16x16xi32>
    %24 = vector.broadcast %21 : i32 to vector<16x16xi32>
    %25 = arith.cmpi slt, %22, %24 : vector<16x16xi32>
    %26 = vector.broadcast %21 : i32 to vector<16x16xi32>
    %27 = arith.cmpi slt, %23, %26 : vector<16x16xi32>
    %28 = arith.andi %25, %27 : vector<16x16xi1>
    %cst_13 = arith.constant -1.000000e+10 : f32
    %29 = vector.broadcast %cst_13 : f32 to vector<16x16xf32>
    %30 = arith.select %28, %19, %29 : vector<16x16xi1>, vector<16x16xf32>
    %cst_14 = arith.constant dense<0xFF800000> : vector<16xf32>
    %31 = vector.multi_reduction <maximumf>, %30, %cst_14 [1] : vector<16x16xf32> to vector<16xf32>
    %32 = vector.shape_cast %31 : vector<16xf32> to vector<16x1xf32>
    %33 = vector.broadcast %32 : vector<16x1xf32> to vector<16x16xf32>
    %34 = arith.subf %30, %33 : vector<16x16xf32>
    %35 = math.exp %34 : vector<16x16xf32>
    %cst_15 = arith.constant dense<0.000000e+00> : vector<16xf32>
    %36 = vector.multi_reduction <add>, %35, %cst_15 [1] : vector<16x16xf32> to vector<16xf32>
    %37 = vector.shape_cast %36 : vector<16xf32> to vector<16x1xf32>
    %38 = tpu.reciprocal %37 {approx = true} : vector<16x1xf32> -> vector<16x1xf32>
    %39 = vector.broadcast %38 : vector<16x1xf32> to vector<16x16xf32>
    %40 = arith.mulf %35, %39 : vector<16x16xf32>
    %41 = arith.truncf %40 : vector<16x16xf32> to vector<16x16xbf16>
    %cst_16 = arith.constant dense<0.000000e+00> : vector<16x128xf32>
    %42 = tpu.matmul %41, %2, %cst_16 {dimension_numbers = #tpu.dot_dimension_numbers<[1], [0], [0], [1], [0, 0, 1, 1], [], []>} : vector<16x16xbf16>, vector<16x128xbf16>, vector<16x128xf32> -> vector<16x128xf32>
    %cst_17 = arith.constant dense<0.000000e+00> : vector<128xf32>
    %43 = vector.multi_reduction <add>, %42, %cst_17 [0] : vector<16x128xf32> to vector<128xf32>
    %44 = vector.shape_cast %43 : vector<128xf32> to vector<1x128xf32>
    %c0_18 = arith.constant 0 : index
    %c0_19 = arith.constant 0 : index
    %c0_20 = arith.constant 0 : index
    %45 = vector.load %arg7[%c0_18, %c0_19, %c0_20] : memref<1x1x128xf32, #tpu.memory_space<vmem>>, vector<1x1x128xf32>
    %46 = vector.shape_cast %45 : vector<1x1x128xf32> to vector<1x128xf32>
    %47 = vector.shape_cast %44 : vector<1x128xf32> to vector<1x1x128xf32>
    tpu.vector_store %arg7[%c0_18, %c0_19, %c0_20], %47 {strides = array<i32>} : memref<1x1x128xf32, #tpu.memory_space<vmem>>, vector<1x1x128xf32>,
    return
  }
  func.func @transform_0(%arg0: i32, %arg1: memref<16xi32, #tpu.memory_space<smem>>) -> (i32, i32, i32) {
    %c0_i32 = arith.constant 0 : i32
    %c0_i32_0 = arith.constant 0 : i32
    %c0_i32_1 = arith.constant 0 : i32
    return %arg0, %c0_i32, %c0_i32_0 : i32, i32, i32
  }
  func.func @transform_1(%arg0: i32, %arg1: memref<16xi32, #tpu.memory_space<smem>>) -> (i32, i32) {
    %c0_i32 = arith.constant 0 : i32
    %c0_i32_0 = arith.constant 0 : i32
    %c0_i32_1 = arith.constant 0 : i32
    return %c0_i32, %c0_i32_0 : i32, i32
  }
  func.func @transform_2(%arg0: i32, %arg1: memref<16xi32, #tpu.memory_space<smem>>) -> (i32, i32) {
    %c0_i32 = arith.constant 0 : i32
    %c0_i32_0 = arith.constant 0 : i32
    %c0_i32_1 = arith.constant 0 : i32
    return %c0_i32, %c0_i32_0 : i32, i32
  }
  func.func @transform_3(%arg0: i32, %arg1: memref<16xi32, #tpu.memory_space<smem>>) -> (i32, i32) {
    %c0_i32 = arith.constant 0 : i32
    %c0_i32_0 = arith.constant 0 : i32
    %c0_i32_1 = arith.constant 0 : i32
    return %c0_i32, %c0_i32_0 : i32, i32
  }
  func.func @transform_4(%arg0: i32, %arg1: memref<16xi32, #tpu.memory_space<smem>>) -> (i32, i32) {
    %c0_i32 = arith.constant 0 : i32
    %c0_i32_0 = arith.constant 0 : i32
    %c0_i32_1 = arith.constant 0 : i32
    return %c0_i32, %c0_i32_0 : i32, i32
  }
  func.func @transform_5(%arg0: i32, %arg1: memref<16xi32, #tpu.memory_space<smem>>) -> (i32, i32, i32) {
    %c0_i32 = arith.constant 0 : i32
    %c0_i32_0 = arith.constant 0 : i32
    %c0_i32_1 = arith.constant 0 : i32
    return %arg0, %c0_i32, %c0_i32_0 : i32, i32, i32
  }
}

</mosaic_0001>

<bundles_post_ra>
// kernel: word_self_attention_forward.3
= control target key start
LH: loop header
LB: loop body
LE: loop exit
PB: predicated region body
PF: predicated region fallthrough
CT: control target
= control target key end

     0   :  { %s786_s24 = smov [#allocation3]   ;;  %s970_s0 = inlined_call_operand.vmem [shape: s32[16], index: 0, kind: input, shape index: {}]   ;;  %s971_s1 = inlined_call_operand.vmem [shape: f32[16,16,128], index: 1, kind: input, shape index: {}]   ;;  %s972_s2 = inlined_call_operand.vmem [shape: bf16[128,64], index: 2, kind: input, shape index: {}]   ;;  %s973_s3 = inlined_call_operand.vmem [shape: f32[1,64], index: 3, kind: input, shape index: {}]   ;;  %s974_s4 = inlined_call_operand.vmem [shape: bf16[128,64], index: 4, kind: input, shape index: {}]   ;;  %s975_s5 = inlined_call_operand.vmem [shape: f32[1,64], index: 5, kind: input, shape index: {}]   ;;  %s976_s6 = inlined_call_operand.hbm [shape: f32[16,1,128], index: 6, kind: output, shape index: {}]  }
   0x1   :  { %s12_s23 = sshll.u32 %s970_s0, 4  ;;  %s13_s23 = int_to_ptr.vmem [resolvable:$true] %s12_s23 }
   0x2   :  { %15 = dma.vmem_to_smem %s13_s23, 16, %s786_s24, [#allocation2] }
   0x3   :  { %764 = dma.done.wait [#allocation2], 16 }
   0x4   :  { %765 = vsyncadd [#allocation2], 4294967280 }
   0x5   :  { %18 = sfence }
   0x6   :  { %19 = vsyncpa [#allocation5], 0 }
   0x7   :  { %21 = vsyncpa [#allocation5 + $0x1], 0  ;;  %s825_s25 = smov 0   ;;  %s827_s26 = smov 0  }
   0x8   :  { %s829_s27 = smov 0   ;;  %s831_s28 = smov 0  }
   0x9 LB: > { %s846_s0 = sadd.s32 4294967295, %s784_s28   ;;  %s559_s29 = sadd.s32 4294967294, %s784_s28   ;;  %s784_s28 = sphi %s831_s28, %s982_s28   ;;  %s780_s27 = sphi %s829_s27, %s981_s27   ;;  %s776_s26 = sphi %s827_s26, %s980_s26   ;;  %s772_s25 = sphi %s825_s25, %s979_s25  }
   0xa   : > { %s850_s30 = sadd.s32 1, %s784_s28   ;;  %s144_s7 = sadd.s32 1, %s780_s27 }
   0xb   : > { %s141_s8 = ssub.s32 %s784_s28, %s850_s30  ;;  %p154_p0 = scmp.ne.s32.totalorder %s780_s27, %s776_s26 }
   0xc   : > { %p142_p1 = scmp.eq.s32.totalorder %s141_s8, 0  ;;  %p155_p2 = scmp.eq.s32.totalorder %s846_s0, 15 }
   0xd   : > { %p160_p3 = scmp.ne.s32.totalorder %s776_s26, %s772_s25  ;;  %p161_p4 = scmp.eq.s32.totalorder %s559_s29, 15 }
   0xe   : > { %s861_s9 = scalar_select %p142_p1, %s780_s27, %s144_s7  }
   0xf   : > { %p863_p5 = por %p155_p2, %p154_p0  ;;  %p867_p6 = por %p161_p4, %p160_p3 }
  0x10   : > { %p562_p7 = scmp.ge.s32.totalorder %s784_s28, 1  ;;  %p199_p8 = scmp.lt.s32.totalorder %s784_s28, 17 }
  0x12   : > { %p200_p9 = pnand %p562_p7, %p199_p8 }
  0x13   : > { %p226_p10 = scmp.lt.s32.totalorder (!%p200_p9), %s846_s0, 15  ;;  %s224_s22 = sand.u32 (!%p200_p9), 1, %s776_s26  }
  0x14   : > { %203 = sbr.rel (%p200_p9) target bundleno = 767 (0x2ff), region = 40  ;;  %s500_s29 = scalar_lea.hbm (!%p200_p9), %s976_s6, %s846_s0 }
  0x15   : > { %s225_s7 = scalar_lea.vmem (!%p200_p9), [#allocation4], %s224_s22  ;;  %s492_s13 = scalar_lea.sflag (!%p200_p9), [#allocation5], %s224_s22 }
  0x16   : > { %s502_s8 = sshll.u32 (!%p200_p9), %s225_s7, 4  ;;  %s503_s8 = int_to_ptr.vmem [resolvable:$true] %s502_s8 }
  0x19   : > { %v641_v0 = vld [vmem:[%s972_s2 + $0x38] sm:$0xff]  ;;  %v640_v2 = vld [vmem:[%s972_s2 + $0x30] sm:$0xff]  ;;  %s227_s20 = scalar_select %p226_p10, %s846_s0, 15  ;;  %v639_v4 = vld [vmem:[%s972_s2 + $0x28] sm:$0xff]  ;;  %vm405_vm0 = vcmask 523264   ;;  %v429_v36 = vlaneseq  ;;  %vm442_vm4 = vcmask 130048  }
  0x1a   : > { %v649_v1 = vld [vmem:[%s974_s4 + $0x38] sm:$0xff]  ;;  %303 = vmatpush.bf16.msra.mxu0 %v641_v0  ;;  %v648_v3 = vld [vmem:[%s974_s4 + $0x30] sm:$0xff]  ;;  %v647_v5 = vld [vmem:[%s974_s4 + $0x28] sm:$0xff] }
  0x1b   : > { %387 = vmatpush.bf16.msra.mxu1 %v649_v1  ;;  %s633_s21 = sshll.u32 %s227_s20, 4  ;;  %v638_v9 = vld [vmem:[%s972_s2 + $0x20] sm:$0xff]  ;;  %v637_v11 = vld [vmem:[%s972_s2 + $0x18] sm:$0xff]  ;;  %v636_v13 = vld [vmem:[%s972_s2 + $0x10] sm:$0xff]  ;;  %v430_v37 = vshrl.u32 %v429_v36, 7  ;;  %v433_v38 = vand.u32 127, %v429_v36 }
  0x1c   : > { %s230_s12 = scalar_lea.vmem %s971_s1, %s633_s21  ;;  %v646_v10 = vld [vmem:[%s974_s4 + $0x20] sm:$0xff]  ;;  %v645_v12 = vld [vmem:[%s974_s4 + $0x18] sm:$0xff]  ;;  %v644_v14 = vld [vmem:[%s974_s4 + $0x10] sm:$0xff]  ;;  %s428_s21 = sld [smem:[#allocation3 + %s846_s0]] }
  0x1d   : > { %v232_v6 = vld [vmem:[%s230_s12] sm:$0xff]  ;;  %v233_v7 = vld [vmem:[%s230_s12 + $0x8] sm:$0xff]  ;;  %v431_v42 = vadd.s32 8, %v430_v37  ;;  %s504_s12 = sshll.u32 %s500_s29, 4  ;;  %s740_s0 = scalar_lea.hbm %s976_s6, 16  ;;  %s505_s12 = int_to_ptr.hbm [resolvable:$true] %s504_s12 }
  0x1e   : > { %304 = vmatpush.bf16.msra.mxu0 %v640_v2  ;;  %v234_v8 = vpack.c.bf16 %v233_v7, %v232_v6  ;;  %v635_v15 = vld [vmem:[%s972_s2 + $0x8] sm:$0xff]  ;;  %v634_v17 = vld [vmem:[%s972_s2] sm:$0xff]  ;;  %s734_s14 = sshra.s32 %s505_s12, 4  ;;  %s735_s14 = int_to_ptr.hbm [resolvable:$true] %s734_s14 }
  0x1f   : > { %388 = vmatpush.bf16.msra.mxu1 %v648_v3  ;;  %v643_v16 = vld [vmem:[%s974_s4 + $0x8] sm:$0xff]  ;;  %v642_v18 = vld [vmem:[%s974_s4] sm:$0xff]  ;;  %s736_s15 = scalar_lea.hbm %s735_s14, 1  ;;  %p741_p0 = scmp.lt.s32.totalorder %s735_s14, %s976_s6 }
  0x20   : > { %476 = vmatpush.bf16.msra.mxu3 %v234_v8  ;;  %v691_v21 = vld [vmem:[%s975_s5] ss:$0 sm:$0xff]  ;;  %p737_p11 = scmp.ne.s32.totalorder %s735_s14, %s736_s15  ;;  %p742_p1 = scmp.lt.s32.totalorder %s740_s0, %s736_s15 }
  0x21   : > { %v690_v24 = vld [vmem:[%s973_s3] ss:$0 sm:$0xff] }
  0x22   : > { %305 = vmatpush.bf16.msra.mxu0 %v639_v4  ;;  %v434_v39 = vstv %s428_s21  ;;  %p738_p12 = pnand %p737_p11, %p863_p5  ;;  %p743_p2 = por %p742_p1, %p741_p0 }
  0x23   : > { %389 = vmatpush.bf16.msra.mxu1 %v647_v5  ;;  %vm435_vm1 = vcmp.lt.s32.totalorder %v430_v37, %v434_v39  ;;  %vm437_vm2 = vcmp.lt.s32.totalorder %v433_v38, %v434_v39  ;;  %vm436_vm5 = vcmp.lt.s32.totalorder %v431_v42, %v434_v39 }
  0x24   : > { %vm438_vm3 = vmand %vm435_vm1, %vm437_vm2  ;;  %p739_p13 = pneg %p738_p12 }
  0x25   : > { %vm439_vm6 = vmand %vm436_vm5, %vm437_vm2 }
  0x26   : > { %306 = vmatpush.bf16.msra.mxu0 %v638_v9  ;;  %p744_p3 = pnand %p743_p2, %p739_p13 }
  0x27   : > { %390 = vmatpush.bf16.msra.mxu1 %v646_v10 }
  0x2a   : > { %307 = vmatpush.bf16.msra.mxu0 %v637_v11 }
  0x2b   : > { %391 = vmatpush.bf16.msra.mxu1 %v645_v12 }
  0x2e   : > { %308 = vmatpush.bf16.msra.mxu0 %v636_v13 }
  0x2f   : > { %392 = vmatpush.bf16.msra.mxu1 %v644_v14 }
  0x32   : > { %309 = vmatpush.bf16.msra.mxu0 %v635_v15 }
  0x33   : > { %393 = vmatpush.bf16.msra.mxu1 %v643_v16 }
  0x36   : > { %310 = vmatpush.bf16.msra.mxu0 %v634_v17 }
  0x37   : > { %394 = vmatpush.bf16.msra.mxu1 %v642_v18 }
  0x39   : > { %311 = vmatmul.bf16.vlgmr.msra.gmra.mxu0 %v234_v8 }
  0x3a   : > { %395 = vmatmul.bf16.vlgmr.msra.gmra.mxu1 %v234_v8 }
  0xb6   : > { %v312_v20 = vpop.f32.mrf.mxu0 }
  0xb7   : > { %v396_v19 = vpop.f32.mrf.mxu1  ;;  %v313_v27 = vadd.f32 %v690_v24, %v312_v20 }
  0xb8   : > { %v397_v22 = vadd.f32 %v691_v21, %v396_v19 }
  0xba   : > { %692 = vtanh.f32 %v397_v22 }
  0xbe   : > { %v314_v26 = vpop.f32.mrf.mxu0 }
  0xbf   : > { %v398_v23 = vpop.f32.mrf.mxu1  ;;  %v315_v28 = vadd.f32 %v690_v24, %v314_v26 }
  0xc0   : > { %v399_v25 = vadd.f32 %v691_v21, %v398_v23  ;;  %v693_v29 = vpop.eup %692 }
  0xc2   : > { %694 = vtanh.f32 %v399_v25 }
  0xc3   : > { %696 = vtanh.f32 %v313_v27 }
  0xc4   : > { %698 = vtanh.f32 %v315_v28 }
  0xc8   : > { %v695_v30 = vpop.eup %694 }
  0xc9   : > { %v404_v31 = vpack.c.bf16 %v695_v30, %v693_v29  ;;  %v697_v33 = vpop.eup %696 }
  0xca   : > { %v699_v34 = vpop.eup %698 }
  0xcb   : > { %v410_v32 = vsel %vm405_vm0, %v404_v31, 0  ;;  %v403_v35 = vpack.c.bf16 %v699_v34, %v697_v33 }
  0xcc   : > { %419 = vmatpush.bf16.xpose.msra.mxu2 %v410_v32 }
  0xd3   : > { %629 = vmatmul.msk.bf16.vlgmr.msra.gmra.mxu2 %vm405_vm0, %v403_v35 }
 0x156   : > { %v421_v40 = vpop.f32.mrf.mxu2 }
 0x157   : > { %v426_v41 = vmul.f32 0.17677669, %v421_v40 }
 0x159   : > { %v440_v43 = vsel %vm438_vm3, %v426_v41, -1e+10 }
 0x15a   : > { %v443_v44 = vsel %vm442_vm4, %v440_v43, -inf }
 0x15b   : > { %444 = vmax.xlane.f32.xlu0 %v443_v44 }
 0x15e   : > { %v423_v45 = vpop.f32.mrf.mxu2 }
 0x15f   : > { %v427_v46 = vmul.f32 0.17677669, %v423_v45 }
 0x161   : > { %v441_v47 = vsel %vm439_vm6, %v427_v46, -1e+10 }
 0x162   : > { %v446_v48 = vsel %vm442_vm4, %v441_v47, -inf }
 0x163   : > { %447 = vmax.xlane.f32.xlu0 %v446_v48 }
 0x1ce   : > { %v445_v49 = vpop.xlane.xlu0 %444 }
 0x1cf   : > { %v449_v50 = vsub.f32 %v440_v43, %v445_v49 }
 0x1d1   : > { %v451_v51 = vmul.f32 1.442695, %v449_v50 }
 0x1d3   : > { %700 = vpow2.f32 %v451_v51 }
 0x1d6   : > { %v448_v52 = vpop.xlane.xlu0 %447 }
 0x1d7   : > { %v450_v53 = vsub.f32 %v441_v47, %v448_v52 }
 0x1d9   : > { %v701_v54 = vpop.eup %700  ;;  %v453_v55 = vmul.f32 1.442695, %v450_v53 }
 0x1da   : > { %v455_v56 = vsel %vm442_vm4, %v701_v54, 0.0 }
 0x1db   : > { %702 = vpow2.f32 %v453_v55  ;;  %456 = vadd.xlane.f32.xlu1 %v455_v56 }
 0x1e1   : > { %v703_v57 = vpop.eup %702 }
 0x1e2   : > { %v458_v58 = vsel %vm442_vm4, %v703_v57, 0.0 }
 0x1e3   : > { %459 = vadd.xlane.f32.xlu1 %v458_v58 }
 0x24e   : > { %v457_v59 = vpop.xlane.xlu1 %456 }
 0x24f   : > { %704 = vrcp.f32 %v457_v59 }
 0x255   : > { %v705_v61 = vpop.eup %704 }
 0x256   : > { %v460_v60 = vpop.xlane.xlu1 %459  ;;  %v463_v63 = vmul.f32 %v705_v61, %v701_v54 }
 0x257   : > { %706 = vrcp.f32 %v460_v60 }
 0x25d   : > { %v707_v62 = vpop.eup %706 }
 0x25e   : > { %v464_v0 = vmul.f32 %v707_v62, %v703_v57 }
 0x260   : > { %v465_v1 = vpack.c.bf16 %v464_v0, %v463_v63 }
 0x262   : > { %630 = vmatmul.msk.bf16.vlgmr.msra.gmra.mxu3 %vm442_vm4, %v465_v1 }
 0x2e5   : > { %v478_v2 = vpop.f32.mrf.mxu3 }
 0x2ed   : > { %v480_v3 = vpop.f32.mrf.mxu3 }
 0x2ee   : > { %v483_v4 = vadd.f32 %v480_v3, %v478_v2 }
 0x2f0   : > { %v484_v5 = vrot.slane %v483_v4, 4 }
 0x2f2   : > { %v485_v6 = vadd.f32 %v484_v5, %v483_v4 }
 0x2f4   : > { %v486_v7 = vrot.slane %v485_v6, 2 }
 0x2f6   : > { %v487_v8 = vadd.f32 %v486_v7, %v485_v6 }
 0x2f8   : > { %v488_v9 = vrot.slane %v487_v8, 1 }
 0x2fa   : > { %v489_v10 = vadd.f32 %v488_v9, %v487_v8 }
 0x2fc   : > { %490 = vst [vmem:[%s225_s7] sm:$0x1] %v489_v10 }
 0x2fd   : > { %747 = shalt.err (!%p744_p3)
}
 0x2fe   : > { %650 = dma.vmem_to_hbm [thread:$0]  (%p863_p5), %s503_s8, 16, %s505_s12, %s492_s13  }
 0x2ff PF: > { %p656_p4 = scmp.ge.s32.totalorder %s784_s28, 2  ;;  %s516_s20 = sand.u32 1, %s772_s25  }
 0x300   : > { %s517_s21 = scalar_lea.sflag [#allocation5], %s516_s20 }
 0x301   : > { %p653_p7 = pnand %p656_p4, %p867_p6 }
 0x303   : > { %p654_p8 = pneg %p653_p7 }
 0x305   : > { %767 = dma.done.wait (%p654_p8), %s517_s21, 16  }
 0x306   : > { %769 = vsyncadd (%p654_p8), %s517_s21, 4294967280  ;;  %p24_p9 = scmp.ge.s32.totalorder %s850_s30, 18   ;;  %s979_s25 = smov %s776_s26 }
 0x307   : > { %s980_s26 = smov %s780_s27  ;;  %s981_s27 = smov %s861_s9 }
 0x308   : > { %s982_s28 = smov %s850_s30  ;;  %26 = sbr.rel (!%p24_p9) target bundleno = 9 (0x9), region = 75 }
 0x30d   :  { %522 = vsyncpa [#allocation5], 1 }
 0x30e   :  { %524 = vsyncpa [#allocation5 + $0x1], 1 }

// kernel: word_self_attention_forward.2
= control target key start
LH: loop header
LB: loop body
LE: loop exit
PB: predicated region body
PF: predicated region fallthrough
CT: control target
= control target key end

     0   :  { %s4576_s27 = smov 0   ;;  %s4578_s28 = smov 0   ;;  %s6182_s0 = inlined_call_operand.vmem [shape: f32[16,16,32], index: 0, kind: input, shape index: {}]   ;;  %s6183_s1 = inlined_call_operand.vmem [shape: s32[16,1], index: 1, kind: input, shape index: {}]   ;;  %s6184_s2 = inlined_call_operand.vmem [shape: bf16[32,384], index: 2, kind: input, shape index: {}]   ;;  %s6185_s3 = inlined_call_operand.vmem [shape: bf16[64,192], index: 3, kind: input, shape index: {}]   ;;  %s6186_s4 = inlined_call_operand.vmem [shape: bf16[64,192], index: 4, kind: input, shape index: {}]   ;;  %s6187_s5 = inlined_call_operand.vmem [shape: f32[1,384], index: 5, kind: input, shape index: {}]   ;;  %s6188_s6 = inlined_call_operand.vmem [shape: f32[1,192], index: 6, kind: input, shape index: {}]   ;;  %s6189_s7 = inlined_call_operand.vmem [shape: f32[1,192], index: 7, kind: input, shape index: {}]   ;;  %s6190_s8 = inlined_call_operand.vmem [shape: f32[16,16,128], index: 8, kind: output, shape index: {}]  }
   0x1   :  { %s4580_s29 = smov 0  }
   0x2 LB: > { %s4592_s30 = sadd.s32 4294967295, %s4527_s29   ;;  %s4595_s9 = sadd.s32 1, %s4527_s29   ;;  %s4527_s29 = sphi %s4580_s29, %s6324_s29   ;;  %s4523_s28 = sphi %s4578_s28, %s6323_s28   ;;  %s4519_s27 = sphi %s4576_s27, %s6322_s27  }
   0x3   : > { %s22_s10 = ssub.s32 %s4527_s29, %s4595_s9  ;;  %s25_s11 = sadd.s32 1, %s4523_s28 }
   0x4   : > { %p23_p0 = scmp.eq.s32.totalorder %s22_s10, 0  ;;  %p32_p1 = scmp.ne.s32.totalorder %s4523_s28, %s4519_s27 }
   0x5   : > { %p33_p2 = scmp.eq.s32.totalorder %s4527_s29, 0  ;;  %p214_p3 = scmp.eq.s32.totalorder %s4592_s30, 1 }
   0x6   : > { %s4605_s12 = scalar_select %p23_p0, %s4523_s28, %s25_s11  }
   0x7   : > { %p34_p4 = por %p33_p2, %p32_p1  ;;  %p4607_p5 = por %p214_p3, %p32_p1 }
   0x8   : > { %p3965_p6 = scmp.ge.s32.totalorder %s4527_s29, 2 }
   0xa   : > { %254 = sbr.rel (%p3965_p6) target bundleno = 35 (0x23), region = 40 }
   0xf   : > { %257 = sbr.rel (!%p34_p4) target bundleno = 35 (0x23), region = 44  ;;  %s259_s14 = sand.u32 (%p34_p4), 1, %s4523_s28  }
  0x10   : > { %s3967_s15 = sshll.u32 (%p34_p4), %s4527_s29, 3  ;;  %s3966_s16 = sshll.u32 (%p34_p4), %s259_s14, 7 }
  0x11   : > { %s4617_s19 = scalar_lea.vmem (%p34_p4), %s6182_s0, %s3967_s15  ;;  %s261_s20 = scalar_lea.vmem (%p34_p4), [#allocation5], %s3966_s16 }
  0x12   : > { %v322_v0 = vld [vmem:[%s4617_s19] sm:$0xff] (%p34_p4)  ;;  %v324_v1 = vld [vmem:[%s4617_s19 + $0x10] sm:$0xff] (%p34_p4) }
  0x13   : > { %v326_v2 = vld [vmem:[%s4617_s19 + $0x20] sm:$0xff] (%p34_p4)  ;;  %323 = vst [vmem:[%s261_s20] sm:$0xff] (%p34_p4), %v322_v0  ;;  %v328_v3 = vld [vmem:[%s4617_s19 + $0x30] sm:$0xff] (%p34_p4) }
  0x14   : > { %325 = vst [vmem:[%s261_s20 + $0x8] sm:$0xff] %v324_v1  ;;  %v330_v4 = vld [vmem:[%s4617_s19 + $0x40] sm:$0xff]  ;;  %v332_v5 = vld [vmem:[%s4617_s19 + $0x50] sm:$0xff] }
  0x15   : > { %327 = vst [vmem:[%s261_s20 + $0x10] sm:$0xff] %v326_v2  ;;  %v334_v6 = vld [vmem:[%s4617_s19 + $0x60] sm:$0xff]  ;;  %v336_v7 = vld [vmem:[%s4617_s19 + $0x70] sm:$0xff] }
  0x16   : > { %329 = vst [vmem:[%s261_s20 + $0x18] sm:$0xff] %v328_v3  ;;  %v338_v8 = vld [vmem:[%s4617_s19 + $0x80] sm:$0xff]  ;;  %v340_v9 = vld [vmem:[%s4617_s19 + $0x90] sm:$0xff] }
  0x17   : > { %331 = vst [vmem:[%s261_s20 + $0x20] sm:$0xff] %v330_v4  ;;  %v342_v10 = vld [vmem:[%s4617_s19 + $0xa0] sm:$0xff]  ;;  %v344_v11 = vld [vmem:[%s4617_s19 + $0xb0] sm:$0xff] }
  0x18   : > { %333 = vst [vmem:[%s261_s20 + $0x28] sm:$0xff] %v332_v5  ;;  %v346_v12 = vld [vmem:[%s4617_s19 + $0xc0] sm:$0xff]  ;;  %v348_v13 = vld [vmem:[%s4617_s19 + $0xd0] sm:$0xff] }
  0x19   : > { %335 = vst [vmem:[%s261_s20 + $0x30] sm:$0xff] %v334_v6  ;;  %v350_v14 = vld [vmem:[%s4617_s19 + $0xe0] sm:$0xff]  ;;  %v352_v15 = vld [vmem:[%s4617_s19 + $0xf0] sm:$0xff] }
  0x1a   : > { %337 = vst [vmem:[%s261_s20 + $0x38] sm:$0xff] %v336_v7 }
  0x1b   : > { %339 = vst [vmem:[%s261_s20 + $0x40] sm:$0xff] %v338_v8 }
  0x1c   : > { %341 = vst [vmem:[%s261_s20 + $0x48] sm:$0xff] %v340_v9 }
  0x1d   : > { %343 = vst [vmem:[%s261_s20 + $0x50] sm:$0xff] %v342_v10 }
  0x1e   : > { %345 = vst [vmem:[%s261_s20 + $0x58] sm:$0xff] %v344_v11 }
  0x1f   : > { %347 = vst [vmem:[%s261_s20 + $0x60] sm:$0xff] %v346_v12 }
  0x20   : > { %349 = vst [vmem:[%s261_s20 + $0x68] sm:$0xff] %v348_v13 }
  0x21   : > { %351 = vst [vmem:[%s261_s20 + $0x70] sm:$0xff] %v350_v14 }
  0x22   : > { %353 = vst [vmem:[%s261_s20 + $0x78] sm:$0xff] %v352_v15 }
  0x23 PF: > { %p3968_p7 = scmp.ge.s32.totalorder %s4527_s29, 1  ;;  %p365_p8 = scmp.lt.s32.totalorder %s4527_s29, 3 }
  0x25   : > { %p366_p9 = pnand %p3968_p7, %p365_p8 }
  0x27   : > { %369 = sbr.rel (%p366_p9) target bundleno = 6562 (0x19a2), region = 86 }
  0x2c   : > { %v4046_v16 = vld [vmem:[%s6185_s3 + $0x30] sm:$0xf]  ;;  %v4209_v17 = vld [vmem:[%s6185_s3 + $0x34] sm:$0xf0]  ;;  %v4038_v18 = vld [vmem:[%s6185_s3 + $0x20] sm:$0xf] }
  0x2d   : > { %v4646_v19 = vor.u32 %v4209_v17, %v4046_v16  ;;  %v4207_v20 = vld [vmem:[%s6185_s3 + $0x24] sm:$0xf0]  ;;  %v3986_v21 = vld [vmem:[%s6184_s2 + $0x18] sm:$0xf]  ;;  %v4200_v22 = vld [vmem:[%s6184_s2 + $0x20] sm:$0xf0] }
  0x2e   : > { %v3987_v23 = vor.u32 %v4200_v22, %v3986_v21  ;;  %v3974_v24 = vld [vmem:[%s6184_s2] sm:$0xf]  ;;  %v4661_v25 = vor.u32 %v4207_v20, %v4038_v18  ;;  %v4197_v26 = vld [vmem:[%s6184_s2 + $0x8] sm:$0xf0]  ;;  %v4030_v27 = vld [vmem:[%s6185_s3 + $0x10] sm:$0xf] }
  0x2f   : > { %830 = vmatpush.bf16.msra.mxu3 %v4646_v19  ;;  %v4205_v28 = vld [vmem:[%s6185_s3 + $0x14] sm:$0xf0]  ;;  %v3975_v29 = vor.u32 %v4197_v26, %v3974_v24  ;;  %s372_s25 = sand.u32 1, %s4519_s27   ;;  %v6192_v30 = vmov 0   ;;  %v4022_v34 = vld [vmem:[%s6185_s3] sm:$0xf] }
  0x30   : > { %564 = vmatpush.bf16.msra.mxu0 %v3987_v23  ;;  %s4673_s26 = sshll.u32 %s372_s25, 7  ;;  %4244 = vset.pattern.permute.xlu1 %v6192_v30  ;;  %v4679_v31 = vor.u32 %v4205_v28, %v4030_v27  ;;  %v4203_v35 = vld [vmem:[%s6185_s3 + $0x4] sm:$0xf0]  ;;  %v4208_v38 = vld [vmem:[%s6185_s3 + $0x34] sm:$0xf]  ;;  %vm533_vm0 = vcmask 261120  }
  0x31   : > { %4245 = vset.pattern.permute.xlu0 %v6192_v30  ;;  %4246 = vset.pattern.permute.xlu2 %v6192_v30  ;;  %s4682_s10 = scalar_lea.vmem [#allocation5], %s4673_s26  ;;  %v4048_v39 = vld [vmem:[%s6185_s3 + $0x38] sm:$0xf0]  ;;  %v3988_v41 = vld [vmem:[%s6184_s2 + $0x24] sm:$0xf0]  ;;  %v4712_v47 = vor.u32 %v4203_v35, %v4022_v34  ;;  %p408_p10 = scmp.lt.s32.totalorder %s4592_s30, 1 }
  0x32   : > { %v413_v32 = vld [vmem:[%s4682_s10] sm:$0xff]  ;;  %v414_v33 = vld [vmem:[%s4682_s10 + $0x8] sm:$0xff]  ;;  %v4199_v40 = vld [vmem:[%s6184_s2 + $0x1c] sm:$0xf]  ;;  %v4720_v52 = vor.u32 %v4208_v38, %v4048_v39  ;;  %s4530_s14 = smov 64   ;;  %vm822_vm12 = vcmask 523264  }
  0x33   : > { %831 = vmatpush.bf16.msra.mxu3 %v4661_v25  ;;  %v429_v36 = vpack.c.bf16 %v413_v32, %v413_v32  ;;  %v430_v37 = vpack.c.bf16 %v414_v33, %v414_v33  ;;  %v3991_v44 = vor.u32 %v4199_v40, %v3988_v41  ;;  %v3994_v45 = vld [vmem:[%s6184_s2 + $0x20] sm:$0xf]  ;;  %v4201_v46 = vld [vmem:[%s6184_s2 + $0x28] sm:$0xf0]  ;;  %v4196_v49 = vld [vmem:[%s6184_s2 + $0x4] sm:$0xf] }
  0x34   : > { %565 = vmatpush.bf16.msra.mxu0 %v3975_v29  ;;  %v3995_v48 = vor.u32 %v4201_v46, %v3994_v45  ;;  %v3976_v50 = vld [vmem:[%s6184_s2 + $0xc] sm:$0xf0]  ;;  %v4206_v53 = vld [vmem:[%s6185_s3 + $0x24] sm:$0xf]  ;;  %v3982_v55 = vld [vmem:[%s6184_s2 + $0x8] sm:$0xf] }
  0x35   : > { %v477_v42 = vunpack.c.l.b16 %v429_v36  ;;  %v478_v43 = vunpack.c.l.b16 %v430_v37  ;;  %613 = vmatpush.bf16.msra.mxu1 %v3991_v44  ;;  %v3979_v54 = vor.u32 %v4196_v49, %v3976_v50  ;;  %v4198_v56 = vld [vmem:[%s6184_s2 + $0x10] sm:$0xf0]  ;;  %v4040_v57 = vld [vmem:[%s6185_s3 + $0x28] sm:$0xf0]  ;;  %v4079_v58 = vld [vmem:[%s6186_s4 + $0x30] sm:$0xf] }
  0x36   : > { %v4217_v59 = vld [vmem:[%s6186_s4 + $0x34] sm:$0xf0]  ;;  %662 = vmatpush.bf16.msra.mxu2 %v3995_v48  ;;  %v3983_v60 = vor.u32 %v4198_v56, %v3982_v55  ;;  %v4744_v61 = vor.u32 %v4206_v53, %v4040_v57  ;;  %v4204_v62 = vld [vmem:[%s6185_s3 + $0x14] sm:$0xf]  ;;  %v4032_v63 = vld [vmem:[%s6185_s3 + $0x18] sm:$0xf0] }
  0x37   : > { %832 = vmatpush.bf16.msra.mxu3 %v4679_v31  ;;  %v493_v51 = vpack.c.b16 %v478_v43, %v477_v42  ;;  %v4752_v0 = vor.u32 %v4217_v59, %v4079_v58  ;;  %v4071_v1 = vld [vmem:[%s6186_s4 + $0x20] sm:$0xf]  ;;  %v4215_v2 = vld [vmem:[%s6186_s4 + $0x24] sm:$0xf0]  ;;  %v415_v3 = vld [vmem:[%s4682_s10 + $0x10] sm:$0xff]  ;;  %v4764_v4 = vor.u32 %v4204_v62, %v4032_v63  ;;  %s6050_s15 = scalar_lea.vmem [#allocation6], %s4673_s26 }
  0x38   : > { %1234 = vmatpush.bf16.msrb.mxu0 %v4646_v19  ;;  %v416_v5 = vld [vmem:[%s4682_s10 + $0x18] sm:$0xff]  ;;  %v4202_v6 = vld [vmem:[%s6185_s3 + $0x4] sm:$0xf]  ;;  %v4773_v7 = vor.u32 %v4215_v2, %v4071_v1  ;;  %v431_v8 = vpack.c.bf16 %v415_v3, %v415_v3  ;;  %v4024_v10 = vld [vmem:[%s6185_s3 + $0x8] sm:$0xf0]  ;;  %s4193_s26 = sshll.u32 (%p4607_p5), %s4592_s30, 3 }
  0x39   : > { %3996 = vmatmul.msk.bf16.vlgmr.msra.gmra.mxu0 %vm533_vm0, %v493_v51  ;;  %614 = vmatpush.bf16.msra.mxu1 %v3979_v54  ;;  %v432_v9 = vpack.c.bf16 %v416_v5, %v416_v5  ;;  %v4063_v11 = vld [vmem:[%s6186_s4 + $0x10] sm:$0xf]  ;;  %v4213_v12 = vld [vmem:[%s6186_s4 + $0x14] sm:$0xf0]  ;;  %v4789_v13 = vor.u32 %v4202_v6, %v4024_v10  ;;  %v4055_v17 = vld [vmem:[%s6186_s4] sm:$0xf]  ;;  %s3800_s18 = scalar_lea.vmem (%p4607_p5), %s6190_s8, %s4193_s26 }
  0x3a   : > { %663 = vmatpush.bf16.msra.mxu2 %v3983_v60  ;;  %v4791_v14 = vor.u32 %v4213_v12, %v4063_v11  ;;  %v479_v15 = vunpack.c.l.b16 %v431_v8  ;;  %v4211_v18 = vld [vmem:[%s6186_s4 + $0x4] sm:$0xf0]  ;;  %v417_v22 = vld [vmem:[%s4682_s10 + $0x20] sm:$0xff]  ;;  %v4216_v24 = vld [vmem:[%s6186_s4 + $0x34] sm:$0xf] }
  0x3b   : > { %833 = vmatpush.bf16.msra.mxu3 %v4712_v47  ;;  %v480_v16 = vunpack.c.l.b16 %v432_v9  ;;  %v4803_v20 = vor.u32 %v4211_v18, %v4055_v17  ;;  %v418_v23 = vld [vmem:[%s4682_s10 + $0x28] sm:$0xff]  ;;  %v4081_v26 = vld [vmem:[%s6186_s4 + $0x38] sm:$0xf0]  ;;  %v433_v27 = vpack.c.bf16 %v417_v22, %v417_v22  ;;  %v4214_v32 = vld [vmem:[%s6186_s4 + $0x24] sm:$0xf] }
  0x3c   : > { %1235 = vmatpush.bf16.msrb.mxu0 %v4661_v25  ;;  %4004 = vmatmul.msk.bf16.vlgmr.msra.gmra.mxu1 %vm533_vm0, %v493_v51  ;;  %v434_v28 = vpack.c.bf16 %v418_v23, %v418_v23  ;;  %v4829_v29 = vor.u32 %v4216_v24, %v4081_v26  ;;  %v4073_v33 = vld [vmem:[%s6186_s4 + $0x28] sm:$0xf0]  ;;  %v4212_v37 = vld [vmem:[%s6186_s4 + $0x14] sm:$0xf]  ;;  %v4065_v38 = vld [vmem:[%s6186_s4 + $0x18] sm:$0xf0] }
  0x3d   : > { %1247 = vmatpush.bf16.msrb.mxu1 %v4720_v52  ;;  %4012 = vmatmul.msk.bf16.vlgmr.msra.gmra.mxu2 %vm533_vm0, %v493_v51  ;;  %v494_v21 = vpack.c.b16 %v480_v16, %v479_v15  ;;  %v481_v34 = vunpack.c.l.b16 %v433_v27  ;;  %v4841_v36 = vor.u32 %v4214_v32, %v4073_v33  ;;  %v4853_v40 = vor.u32 %v4212_v37, %v4065_v38  ;;  %v4210_v41 = vld [vmem:[%s6186_s4 + $0x4] sm:$0xf]  ;;  %v4057_v42 = vld [vmem:[%s6186_s4 + $0x8] sm:$0xf0]  ;;  %v419_v43 = vld [vmem:[%s4682_s10 + $0x30] sm:$0xff] }
  0x3e   : > { %834 = vmatmul.bf16.vlgmr.msra.gmra.mxu3 %v6192_v30  ;;  %1295 = vmatpush.bf16.msrb.mxu2 %v4752_v0  ;;  %v482_v35 = vunpack.c.l.b16 %v434_v28  ;;  %v420_v44 = vld [vmem:[%s4682_s10 + $0x38] sm:$0xff]  ;;  %v4865_v45 = vor.u32 %v4210_v41, %v4057_v42  ;;  %v435_v46 = vpack.c.bf16 %v419_v43, %v419_v43  ;;  %v421_v53 = vld [vmem:[%s4682_s10 + $0x40] sm:$0xff]  ;;  %v422_v54 = vld [vmem:[%s4682_s10 + $0x48] sm:$0xff] }
  0x3f   : > { %843 = vmatpush.bf16.msrb.mxu3 %v4720_v52  ;;  %v436_v48 = vpack.c.bf16 %v420_v44, %v420_v44  ;;  %v437_v55 = vpack.c.bf16 %v421_v53, %v421_v53  ;;  %v438_v56 = vpack.c.bf16 %v422_v54, %v422_v54  ;;  %v423_v60 = vld [vmem:[%s4682_s10 + $0x50] sm:$0xff]  ;;  %v424_v62 = vld [vmem:[%s4682_s10 + $0x58] sm:$0xff]  ;;  %v425_v6 = vld [vmem:[%s4682_s10 + $0x60] sm:$0xff] }
  0x40   : > { %1236 = vmatpush.bf16.msrb.mxu0 %v4679_v31  ;;  %v495_v39 = vpack.c.b16 %v482_v35, %v481_v34  ;;  %v483_v49 = vunpack.c.l.b16 %v435_v46  ;;  %v439_v63 = vpack.c.bf16 %v423_v60, %v423_v60  ;;  %v440_v1 = vpack.c.bf16 %v424_v62, %v424_v62  ;;  %v426_v8 = vld [vmem:[%s4682_s10 + $0x68] sm:$0xff]  ;;  %v427_v16 = vld [vmem:[%s4682_s10 + $0x70] sm:$0xff]  ;;  %v428_v17 = vld [vmem:[%s4682_s10 + $0x78] sm:$0xff]  ;;  %s409_s10 = scalar_select %p408_p10, %s4592_s30, 1 }
  0x41   : > { %1248 = vmatpush.bf16.msrb.mxu1 %v4744_v61  ;;  %v484_v50 = vunpack.c.l.b16 %v436_v48  ;;  %v485_v57 = vunpack.c.l.b16 %v437_v55  ;;  %v486_v58 = vunpack.c.l.b16 %v438_v56  ;;  %v441_v9 = vpack.c.bf16 %v425_v6, %v425_v6  ;;  %v4905_v26 = vld [vmem:[%s6187_s5] sm:$0x7] }
  0x42   : > { %1296 = vmatpush.bf16.msrb.mxu2 %v4773_v7  ;;  %v487_v2 = vunpack.c.l.b16 %v439_v63  ;;  %v488_v3 = vunpack.c.l.b16 %v440_v1  ;;  %v442_v10 = vpack.c.bf16 %v426_v8, %v426_v8  ;;  %v443_v18 = vpack.c.bf16 %v427_v16, %v427_v16  ;;  %v770_v27 = vld [vmem:[%s6188_s6] sm:$0x3]  ;;  %s3971_s23 = sshll.u32 %s409_s10, 3 }
  0x43   : > { %844 = vmatpush.bf16.msrb.mxu3 %v4744_v61  ;;  %v496_v51 = vpack.c.b16 %v484_v50, %v483_v49  ;;  %v497_v59 = vpack.c.b16 %v486_v58, %v485_v57  ;;  %v489_v11 = vunpack.c.l.b16 %v441_v9  ;;  %v4911_v28 = vperm.slane %v4905_v26, 0  ;;  %s4926_s27 = scalar_lea.vmem %s6183_s1, %s3971_s23  ;;  %v771_v63 = vld [vmem:[%s6189_s7] sm:$0x3] }
  0x44   : > { %1237 = vmatpush.bf16.msrb.mxu0 %v4712_v47  ;;  %v498_v5 = vpack.c.b16 %v488_v3, %v487_v2  ;;  %v490_v12 = vunpack.c.l.b16 %v442_v10  ;;  %v491_v22 = vunpack.c.l.b16 %v443_v18  ;;  %v4913_v33 = vperm.slane %v770_v27, 0  ;;  %v4931_v48 = vld [vmem:[%s4926_s27] sm:$0xff] }
  0x45   : > { %1249 = vmatpush.bf16.msrb.mxu1 %v4764_v4  ;;  %vm1013_vm1 = vcmp.gt.s32.totalorder %v4931_v48, 0  ;;  %v4946_v2 = vperm.slane %v770_v27, 1  ;;  %v4949_v8 = vperm.slane %v4905_v26, 1  ;;  %v4951_v9 = vperm.slane %v771_v63, 0 }
  0x46   : > { %1297 = vmatpush.bf16.msrb.mxu2 %v4791_v14  ;;  %v499_v15 = vpack.c.b16 %v490_v12, %v489_v11  ;;  %vm1014_vm6 = vcmp.gt.s32.totalorder %v4931_v48, 15 }
  0x47   : > { %845 = vmatpush.bf16.msrb.mxu3 %v4764_v4 }
  0x48   : > { %1417 = vmatpush.bf16.msra.mxu0 %v4646_v19 }
  0x49   : > { %1250 = vmatpush.bf16.msrb.mxu1 %v4789_v13  ;;  %3997 = vmatmul.msk.bf16.gmra.mxu0 %vm533_vm0, %v494_v21 }
  0x4a   : > { %1298 = vmatpush.bf16.msrb.mxu2 %v4803_v20 }
  0x4b   : > { %846 = vmatpush.bf16.msrb.mxu3 %v4789_v13 }
  0x4c   : > { %1418 = vmatpush.bf16.msra.mxu0 %v4661_v25  ;;  %4005 = vmatmul.msk.bf16.gmra.mxu1 %vm533_vm0, %v494_v21 }
  0x4d   : > { %1430 = vmatpush.bf16.msra.mxu1 %v4720_v52  ;;  %4013 = vmatmul.msk.bf16.gmra.mxu2 %vm533_vm0, %v494_v21  ;;  %v444_v21 = vpack.c.bf16 %v428_v17, %v428_v17 }
  0x4e   : > { %1478 = vmatpush.bf16.msra.mxu2 %v4752_v0  ;;  %847 = vmatmul.bf16.vlgmr.msrb.gmra.mxu3 %v6192_v30 }
  0x4f   : > { %932 = vmatpush.bf16.msra.mxu3 %v4752_v0  ;;  %v492_v23 = vunpack.c.l.b16 %v444_v21 }
  0x50   : > { %1419 = vmatpush.bf16.msra.mxu0 %v4679_v31 }
  0x51   : > { %1431 = vmatpush.bf16.msra.mxu1 %v4744_v61  ;;  %v500_v24 = vpack.c.b16 %v492_v23, %v491_v22 }
  0x52   : > { %1479 = vmatpush.bf16.msra.mxu2 %v4773_v7 }
  0x53   : > { %933 = vmatpush.bf16.msra.mxu3 %v4773_v7 }
  0x54   : > { %1420 = vmatpush.bf16.msra.mxu0 %v4712_v47 }
  0x55   : > { %1432 = vmatpush.bf16.msra.mxu1 %v4764_v4 }
  0x56   : > { %1480 = vmatpush.bf16.msra.mxu2 %v4791_v14 }
  0x57   : > { %934 = vmatpush.bf16.msra.mxu3 %v4791_v14 }
  0x59   : > { %1433 = vmatpush.bf16.msra.mxu1 %v4789_v13  ;;  %3998 = vmatmul.msk.bf16.gmra.mxu0 %vm533_vm0, %v495_v39 }
  0x5a   : > { %1481 = vmatpush.bf16.msra.mxu2 %v4803_v20 }
  0x5b   : > { %935 = vmatpush.bf16.msra.mxu3 %v4803_v20 }
  0x5c   : > { %4006 = vmatmul.msk.bf16.gmra.mxu1 %vm533_vm0, %v495_v39 }
  0x5d   : > { %4014 = vmatmul.msk.bf16.gmra.mxu2 %vm533_vm0, %v495_v39 }
  0x5e   : > { %936 = vmatmul.bf16.vlgmr.msra.gmra.mxu3 %v6192_v30 }
  0x5f   : > { %945 = vmatpush.bf16.msrb.mxu3 %v4829_v29 }
  0x63   : > { %946 = vmatpush.bf16.msrb.mxu3 %v4841_v36 }
  0x67   : > { %947 = vmatpush.bf16.msrb.mxu3 %v4853_v40 }
  0x69   : > { %3999 = vmatmul.msk.bf16.gmra.mxu0 %vm533_vm0, %v496_v51 }
  0x6b   : > { %948 = vmatpush.bf16.msrb.mxu3 %v4865_v45 }
  0x6c   : > { %4007 = vmatmul.msk.bf16.gmra.mxu1 %vm533_vm0, %v496_v51 }
  0x6d   : > { %4015 = vmatmul.msk.bf16.gmra.mxu2 %vm533_vm0, %v496_v51  ;;  %v1015_v51 = vsel %vm1013_vm1, 1, %v6192_v30 }
  0x6e   : > { %949 = vmatmul.bf16.vlgmr.msrb.gmra.mxu3 %v6192_v30  ;;  %1017 = vperm.xlu1 %4244, %v1015_v51  }
  0x6f   : > { %1051 = vmatpush.bf16.msra.mxu3 %v4646_v19 }
  0x73   : > { %1052 = vmatpush.bf16.msra.mxu3 %v4661_v25 }
  0x77   : > { %1053 = vmatpush.bf16.msra.mxu3 %v4679_v31 }
  0x79   : > { %4000 = vmatmul.msk.bf16.gmra.mxu0 %vm533_vm0, %v497_v59 }
  0x7b   : > { %1054 = vmatpush.bf16.msra.mxu3 %v4712_v47 }
  0x7c   : > { %4008 = vmatmul.msk.bf16.gmra.mxu1 %vm533_vm0, %v497_v59 }
  0x7d   : > { %4016 = vmatmul.msk.bf16.gmra.mxu2 %vm533_vm0, %v497_v59 }
  0x7f   : > { %1064 = vmatpush.bf16.msrb.mxu3 %v4720_v52 }
  0x83   : > { %1065 = vmatpush.bf16.msrb.mxu3 %v4744_v61 }
  0x87   : > { %1066 = vmatpush.bf16.msrb.mxu3 %v4764_v4 }
  0x89   : > { %4001 = vmatmul.msk.bf16.gmra.mxu0 %vm533_vm0, %v498_v5 }
  0x8b   : > { %1067 = vmatpush.bf16.msrb.mxu3 %v4789_v13 }
  0x8c   : > { %4009 = vmatmul.msk.bf16.gmra.mxu1 %vm533_vm0, %v498_v5 }
  0x8d   : > { %4017 = vmatmul.msk.bf16.gmra.mxu2 %vm533_vm0, %v498_v5 }
  0x99   : > { %4002 = vmatmul.msk.bf16.gmra.mxu0 %vm533_vm0, %v499_v15 }
  0x9c   : > { %4010 = vmatmul.msk.bf16.gmra.mxu1 %vm533_vm0, %v499_v15 }
  0x9d   : > { %4018 = vmatmul.msk.bf16.gmra.mxu2 %vm533_vm0, %v499_v15 }
  0xa9   : > { %4003 = vmatmul.msk.bf16.gmra.mxu0 %vm533_vm0, %v500_v24 }
  0xac   : > { %4011 = vmatmul.msk.bf16.gmra.mxu1 %vm533_vm0, %v500_v24 }
  0xad   : > { %4019 = vmatmul.msk.bf16.gmra.mxu2 %vm533_vm0, %v500_v24 }
  0xb6   : > { %v567_v34 = vpop.f32.mrf.mxu0 }
  0xb7   : > { %v568_v35 = vadd.f32 %v567_v34, %v4911_v28 }
  0xb9   : > { %v616_v32 = vpop.f32.mrf.mxu1 }
  0xba   : > { %v4955_v18 = vadd.f32 %v616_v32, %v4949_v8  ;;  %v4967_v32 = vperm.slane %v771_v63, 1 }
  0xbc   : > { %6231 = vst [vmem:[#allocation11_spill] sm:$0xff] %v4955_v18 }
  0xc0   : > { %v4918_v39 = vpop.f32.mrf.mxu2 }
  0xc1   : > { %v835_v37 = vpop.f32.mrf.mxu3  ;;  %6227 = vst [vmem:[#allocation7_spill] sm:$0xff] %v4918_v39  ;;  %v4921_v43 = vpop.f32.mrf.mxu1 }
  0xc2   : > { %v836_v38 = vadd.f32 %v835_v37, %v4913_v33 }
  0xc4   : > { %v852_v41 = vadd.f32 %v836_v38, %v568_v35 }
  0xc6   : > { %v4052_v42 = vmul.f32 -1.442695, %v852_v41 }
  0xc8   : > { %4247 = vpow2.f32 %v4052_v42  ;;  %v4928_v46 = vpop.f32.mrf.mxu2 }
  0xc9   : > { %v837_v44 = vpop.f32.mrf.mxu3  ;;  %6228 = vst [vmem:[#allocation8_spill] sm:$0xff] %v4928_v46  ;;  %v4935_v53 = vpop.f32.mrf.mxu1 }
  0xce   : > { %v4248_v49 = vpop.eup %4247 }
  0xcf   : > { %v856_v50 = vadd.f32 1.0, %v4248_v49 }
  0xd0   : > { %v4937_v55 = vpop.f32.mrf.mxu2 }
  0xd1   : > { %4249 = vrcp.f32 %v856_v50  ;;  %v848_v54 = vpop.f32.mrf.mxu3  ;;  %6229 = vst [vmem:[#allocation9_spill] sm:$0xff] %v4937_v55  ;;  %v4939_v60 = vpop.f32.mrf.mxu1  ;;  %v868_v62 = vand.u32 2147483648, %v856_v50  ;;  %v866_v5 = vand.u32 2147483647, %v856_v50  ;;  %vm862_vm3 = vweird.f32 %v856_v50 }
  0xd2   : > { %v849_v11 = vadd.f32 %v848_v54, %v4946_v2 }
  0xd3   : > { %v869_v10 = vor.u32 1.1754944e-38, %v868_v62  ;;  %vm867_vm5 = vcmp.eq.f32.partialorder %v866_v5, 8.507059e+37 }
  0xd7   : > { %v4250_v56 = vpop.eup %4249 }
  0xd8   : > { %v858_v57 = vmul.f32 %v4250_v56, %v856_v50  ;;  %v4944_v1 = vpop.f32.mrf.mxu2  ;;  %vm863_vm2 = vweird.f32 %v4250_v56 }
  0xd9   : > { %v850_v58 = vpop.f32.mrf.mxu3  ;;  %6230 = vst [vmem:[#allocation10_spill] sm:$0xff] %v4944_v1  ;;  %vm864_vm4 = vmor %vm862_vm3, %vm863_vm2  ;;  %v4962_v24 = vpop.f32.mrf.mxu1 }
  0xda   : > { %v859_v59 = vsub.f32 1.0, %v858_v57 }
  0xdc   : > { %v860_v3 = vmul.f32 %v4250_v56, %v859_v59 }
  0xde   : > { %v861_v6 = vadd.f32 %v4250_v56, %v860_v3 }
  0xe0   : > { %v865_v12 = vsel %vm864_vm4, %v4250_v56, %v861_v6  ;;  %v4958_v22 = vpop.f32.mrf.mxu2  ;;  %v5019_v55 = vpop.permute.xlu1 %1017 }
  0xe1   : > { %v870_v15 = vsel %vm867_vm5, %v869_v10, %v865_v12  ;;  %v937_v16 = vpop.f32.mrf.mxu3  ;;  %6232 = vst [vmem:[#allocation12_spill] sm:$0xff] %v4958_v22  ;;  %v4969_v37 = vpop.f32.mrf.mxu1  ;;  %vm6215_vm7 = vcmp.eq.s32.totalorder %v5019_v55, 1 }
  0xe2   : > { %v872_v17 = vmul.f32 %v870_v15, %v849_v11  ;;  %v938_v21 = vadd.f32 %v937_v16, %v4951_v9  ;;  %v875_v46 = vsub.f32 1.0, %v870_v15  ;;  %6239 = vst [vmem:[#allocation19_spill] sm:$0xff] %v5019_v55 }
  0xe4   : > { %v873_v23 = vadd.f32 %v872_v17, %v4955_v18  ;;  %955 = vrot.lane.b32.xlu0 %v938_v21, %s4530_s14  ;;  %v1021_v17 = vsel %vm1014_vm6, 1, %v6192_v30  ;;  %v881_v30 = vmul.f32 0.0, %v870_v15  ;;  %vm1194_vm6 = vcmp.gt.s32.totalorder %v4931_v48, 14 }
  0xe6   : > { %4251 = vtanh.f32 %v873_v23  ;;  %v5012_v23 = vperm.slane %v4905_v26, 2 }
  0xe8   : > { %v4964_v35 = vpop.f32.mrf.mxu2 }
  0xe9   : > { %v939_v27 = vpop.f32.mrf.mxu3  ;;  %6233 = vst [vmem:[#allocation13_spill] sm:$0xff] %v4964_v35  ;;  %v4975_v44 = vpop.f32.mrf.mxu1 }
  0xec   : > { %v4252_v34 = vpop.eup %4251 }
  0xed   : > { %877 = vrot.lane.b32.xlu0 %v4252_v34, %s4530_s14 }
  0xf0   : > { %v4973_v42 = vpop.f32.mrf.mxu2 }
  0xf1   : > { %v950_v38 = vpop.f32.mrf.mxu3  ;;  %6234 = vst [vmem:[#allocation14_spill] sm:$0xff] %v4973_v42  ;;  %v4979_v51 = vpop.f32.mrf.mxu1 }
  0xf2   : > { %v951_v41 = vadd.f32 %v950_v38, %v4967_v32  ;;  %6236 = vst [vmem:[#allocation16_spill] sm:$0xff] %v4979_v51 }
  0xf4   : > { %999 = vrot.lane.b32.xlu1 %v951_v41, %s4530_s14 }
  0xf5   : > { %1023 = vperm.xlu0 %4245, %v1021_v17  }
  0xf8   : > { %v4977_v50 = vpop.f32.mrf.mxu2 }
  0xf9   : > { %v952_v49 = vpop.f32.mrf.mxu3  ;;  %6235 = vst [vmem:[#allocation15_spill] sm:$0xff] %v4977_v50  ;;  %v4983_v56 = vpop.f32.mrf.mxu1 }
 0x100   : > { %v4981_v54 = vpop.f32.mrf.mxu2 }
 0x101   : > { %6237 = vst [vmem:[#allocation17_spill] sm:$0xff] %v4981_v54  ;;  %v4987_v58 = vpop.f32.mrf.mxu1 }
 0x108   : > { %v4985_v57 = vpop.f32.mrf.mxu2 }
 0x109   : > { %v4991_v62 = vpop.f32.mrf.mxu1 }
 0x110   : > { %v4989_v59 = vpop.f32.mrf.mxu2 }
 0x111   : > { %v4995_v3 = vpop.f32.mrf.mxu1 }
 0x118   : > { %v4993_v63 = vpop.f32.mrf.mxu2 }
 0x119   : > { %v4999_v6 = vpop.f32.mrf.mxu1 }
 0x120   : > { %v4997_v5 = vpop.f32.mrf.mxu2 }
 0x121   : > { %v5003_v11 = vpop.f32.mrf.mxu1 }
 0x128   : > { %v5001_v10 = vpop.f32.mrf.mxu2 }
 0x129   : > { %v5008_v16 = vpop.f32.mrf.mxu1 }
 0x130   : > { %v5005_v12 = vpop.f32.mrf.mxu2 }
 0x131   : > { %v653_v27 = vpop.f32.mrf.mxu1 }
 0x132   : > { %v5016_v38 = vadd.f32 %v653_v27, %v4949_v8 }
 0x134   : > { %6238 = vst [vmem:[#allocation18_spill] sm:$0xff] %v5016_v38 }
 0x138   : > { %v702_v21 = vpop.f32.mrf.mxu2 }
 0x139   : > { %v703_v34 = vadd.f32 %v702_v21, %v5012_v23 }
 0x156   : > { %v956_v41 = vpop.permute.xlu0 %955 }
 0x157   : > { %v958_v49 = vadd.f32 %v956_v41, %v5016_v38  ;;  %v978_v18 = vadd.f32 %v956_v41, %v703_v34 }
 0x159   : > { %v4085_v39 = vmul.f32 -1.442695, %v958_v49 }
 0x15b   : > { %4253 = vpow2.f32 %v4085_v39 }
 0x15f   : > { %v878_v17 = vpop.permute.xlu0 %877 }
 0x160   : > { %v880_v1 = vmul.f32 %v878_v17, %v875_v46 }
 0x161   : > { %v4254_v26 = vpop.eup %4253 }
 0x162   : > { %v962_v22 = vadd.f32 1.0, %v4254_v26  ;;  %v882_v21 = vadd.f32 %v881_v30, %v880_v1 }
 0x164   : > { %4255 = vrcp.f32 %v962_v22  ;;  %v5024_v27 = vsel %vm6215_vm7, %v882_v21, 0.0  ;;  %v974_v15 = vand.u32 2147483648, %v962_v22  ;;  %v972_v17 = vand.u32 2147483647, %v962_v22 }
 0x165   : > { %6240 = vst [vmem:[#allocation20_spill] sm:$0xff] %v5024_v27  ;;  %v1040_v41 = vpack.c.bf16 %v5024_v27, %v5024_v27  ;;  %vm968_vm9 = vweird.f32 %v962_v22 }
 0x166   : > { %v1000_v30 = vpop.permute.xlu1 %999  ;;  %v975_v1 = vor.u32 1.1754944e-38, %v974_v15  ;;  %vm973_vm11 = vcmp.eq.f32.partialorder %v972_v17, 8.507059e+37 }
 0x167   : > { %1042 = vrot.lane.b32.xlu2 %v1040_v41, %s4530_s14  ;;  %v4086_v41 = vmul.f32 -1.442695, %v978_v18 }
 0x16a   : > { %v4256_v39 = vpop.eup %4255 }
 0x16b   : > { %v964_v49 = vmul.f32 %v4256_v39, %v962_v22  ;;  %vm969_vm8 = vweird.f32 %v4256_v39 }
 0x16c   : > { %vm970_vm10 = vmor %vm968_vm9, %vm969_vm8 }
 0x16d   : > { %v965_v38 = vsub.f32 1.0, %v964_v49 }
 0x16f   : > { %v966_v46 = vmul.f32 %v4256_v39, %v965_v38 }
 0x171   : > { %v967_v35 = vadd.f32 %v4256_v39, %v966_v46 }
 0x173   : > { %v971_v26 = vsel %vm970_vm10, %v4256_v39, %v967_v35 }
 0x174   : > { %v976_v21 = vsel %vm973_vm11, %v975_v1, %v971_v26  ;;  %v5038_v1 = vpop.permute.xlu0 %1023 }
 0x175   : > { %v1002_v55 = vmul.f32 %v1000_v30, %v976_v21  ;;  %6241 = vst [vmem:[#allocation21_spill] sm:$0xff] %v5038_v1  ;;  %vm6217_vm1 = vcmp.eq.s32.totalorder %v5038_v1, 1 }
 0x177   : > { %v1003_v42 = vadd.f32 %v1002_v55, %v703_v34 }
 0x179   : > { %4257 = vtanh.f32 %v1003_v42 }
 0x17a   : > { %4259 = vpow2.f32 %v4086_v41 }
 0x17f   : > { %v4258_v50 = vpop.eup %4257 }
 0x180   : > { %1007 = vrot.lane.b32.xlu2 %v4258_v50, %s4530_s14  ;;  %v4260_v49 = vpop.eup %4259 }
 0x181   : > { %v982_v38 = vadd.f32 1.0, %v4260_v49 }
 0x183   : > { %4261 = vrcp.f32 %v982_v38  ;;  %v994_v18 = vand.u32 2147483648, %v982_v38  ;;  %vm988_vm14 = vweird.f32 %v982_v38  ;;  %v992_v34 = vand.u32 2147483647, %v982_v38 }
 0x185   : > { %v995_v15 = vor.u32 1.1754944e-38, %v994_v18  ;;  %vm993_vm0 = vcmp.eq.f32.partialorder %v992_v34, 8.507059e+37 }
 0x189   : > { %v4262_v46 = vpop.eup %4261 }
 0x18a   : > { %v984_v35 = vmul.f32 %v4262_v46, %v982_v38  ;;  %vm989_vm13 = vweird.f32 %v4262_v46 }
 0x18b   : > { %vm990_vm15 = vmor %vm988_vm14, %vm989_vm13  ;;  %vm1193_vm13 = vcmp.gt.s32.totalorder %v4931_v48, 1 }
 0x18c   : > { %v985_v55 = vsub.f32 1.0, %v984_v35 }
 0x18e   : > { %v986_v42 = vmul.f32 %v4262_v46, %v985_v55 }
 0x190   : > { %v987_v50 = vadd.f32 %v4262_v46, %v986_v42 }
 0x192   : > { %v991_v39 = vsel %vm990_vm15, %v4262_v46, %v987_v50 }
 0x193   : > { %v996_v17 = vsel %vm993_vm0, %v995_v15, %v991_v39 }
 0x194   : > { %v1005_v30 = vsub.f32 1.0, %v996_v17  ;;  %v1011_v21 = vmul.f32 0.0, %v996_v17 }
 0x1c1   : > { %v1043_v22 = vpop.permute.xlu2 %1042 }
 0x1c2   : > { %4087 = vmatmul.msk.bf16.vlgmr.msra.gmra.mxu3 %vm822_vm12, %v1043_v22 }
 0x1c3   : > { %1112 = vmatpush.bf16.msra.mxu3 %v4752_v0 }
 0x1c7   : > { %1113 = vmatpush.bf16.msra.mxu3 %v4773_v7 }
 0x1cb   : > { %1114 = vmatpush.bf16.msra.mxu3 %v4791_v14 }
 0x1cf   : > { %1115 = vmatpush.bf16.msra.mxu3 %v4803_v20 }
 0x1d2   : > { %4088 = vmatmul.msk.bf16.vlgmr.msrb.gmra.mxu3 %vm822_vm12, %v1043_v22  ;;  %v569_v22 = vpop.f32.mrf.mxu0 }
 0x1d3   : > { %1125 = vmatpush.bf16.msrb.mxu3 %v4829_v29  ;;  %v570_v55 = vadd.f32 %v569_v22, %v4911_v28 }
 0x1d7   : > { %1126 = vmatpush.bf16.msrb.mxu3 %v4841_v36 }
 0x1da   : > { %v1008_v26 = vpop.permute.xlu2 %1007 }
 0x1db   : > { %v1010_v41 = vmul.f32 %v1008_v26, %v1005_v30  ;;  %1127 = vmatpush.bf16.msrb.mxu3 %v4853_v40 }
 0x1dd   : > { %v1012_v49 = vadd.f32 %v1011_v21, %v1010_v41 }
 0x1df   : > { %v5044_v38 = vsel %vm6217_vm1, %v1012_v49, 0.0  ;;  %1128 = vmatpush.bf16.msrb.mxu3 %v4865_v45 }
 0x1e0   : > { %1033 = vst.msk [vmem:[#allocation4 + $0x78] sm:$0xff] %vm822_vm12, %v5044_v38  ;;  %v1104_v46 = vpack.c.bf16 %v5044_v38, %v5044_v38 }
 0x1e2   : > { %4090 = vmatmul.msk.bf16.vlgmr.msra.gmra.mxu3 %vm822_vm12, %v1104_v46 }
 0x1e3   : > { %1308 = vmatpush.bf16.msra.mxu3 %v4829_v29 }
 0x1e7   : > { %1309 = vmatpush.bf16.msra.mxu3 %v4841_v36 }
 0x1eb   : > { %1310 = vmatpush.bf16.msra.mxu3 %v4853_v40 }
 0x1ef   : > { %1311 = vmatpush.bf16.msra.mxu3 %v4865_v45 }
 0x1f2   : > { %4091 = vmatmul.msk.bf16.vlgmr.msrb.gmra.mxu3 %vm822_vm12, %v1104_v46 }
 0x1f3   : > { %1491 = vmatpush.bf16.msrb.mxu3 %v4829_v29 }
 0x1f7   : > { %1492 = vmatpush.bf16.msrb.mxu3 %v4841_v36 }
 0x1fb   : > { %1493 = vmatpush.bf16.msrb.mxu3 %v4853_v40 }
 0x1ff   : > { %1494 = vmatpush.bf16.msrb.mxu3 %v4865_v45 }
 0x245   : > { %v1056_v35 = vpop.f32.mrf.mxu3 }
 0x246   : > { %v1057_v42 = vadd.f32 %v1056_v35, %v4913_v33 }
 0x248   : > { %v1073_v50 = vadd.f32 %v1057_v42, %v570_v55 }
 0x24a   : > { %v4089_v18 = vmul.f32 -1.442695, %v1073_v50 }
 0x24c   : > { %4263 = vpow2.f32 %v4089_v18  ;;  %v5068_v18 = vadd.f32 %v4921_v43, %v4949_v8 }
 0x24d   : > { %v1058_v34 = vpop.f32.mrf.mxu3 }
 0x24e   : > { %6242 = vst [vmem:[#allocation22_spill] sm:$0xff] %v5068_v18 }
 0x252   : > { %v4264_v39 = vpop.eup %4263 }
 0x253   : > { %v1077_v15 = vadd.f32 1.0, %v4264_v39 }
 0x255   : > { %4265 = vrcp.f32 %v1077_v15  ;;  %v1069_v17 = vpop.f32.mrf.mxu3  ;;  %v1089_v49 = vand.u32 2147483648, %v1077_v15  ;;  %v1087_v1 = vand.u32 2147483647, %v1077_v15  ;;  %vm1083_vm3 = vweird.f32 %v1077_v15 }
 0x256   : > { %v1070_v35 = vadd.f32 %v1069_v17, %v4946_v2 }
 0x257   : > { %v1090_v22 = vor.u32 1.1754944e-38, %v1089_v49  ;;  %vm1088_vm5 = vcmp.eq.f32.partialorder %v1087_v1, 8.507059e+37 }
 0x25b   : > { %v4266_v30 = vpop.eup %4265 }
 0x25c   : > { %v1079_v26 = vmul.f32 %v4266_v30, %v1077_v15  ;;  %vm1084_vm2 = vweird.f32 %v4266_v30 }
 0x25d   : > { %v1071_v21 = vpop.f32.mrf.mxu3  ;;  %vm1085_vm4 = vmor %vm1083_vm3, %vm1084_vm2 }
 0x25e   : > { %v1080_v41 = vsub.f32 1.0, %v1079_v26 }
 0x260   : > { %v1081_v46 = vmul.f32 %v4266_v30, %v1080_v41 }
 0x262   : > { %v1082_v51 = vadd.f32 %v4266_v30, %v1081_v46 }
 0x264   : > { %v1086_v55 = vsel %vm1085_vm4, %v4266_v30, %v1082_v51  ;;  %v5079_v30 = vadd.f32 %v5008_v16, %v4949_v8 }
 0x265   : > { %v5064_v42 = vsel %vm1088_vm5, %v1090_v22, %v1086_v55  ;;  %v1117_v50 = vpop.f32.mrf.mxu3  ;;  %vm1377_vm5 = vcmp.gt.s32.totalorder %v4931_v48, 13 }
 0x266   : > { %v1093_v34 = vmul.f32 %v5064_v42, %v1070_v35  ;;  %v1118_v39 = vadd.f32 %v1117_v50, %v4951_v9  ;;  %6243 = vst [vmem:[#allocation23_spill] sm:$0xff] %v5079_v30  ;;  %v6244_v35 = vmov 0  }
 0x267   : > { %v1201_v55 = vsel %vm1194_vm6, 1, %v6244_v35 }
 0x268   : > { %v1094_v26 = vadd.f32 %v1093_v34, %v5068_v18  ;;  %1135 = vrot.lane.b32.xlu1 %v1118_v39, %s4530_s14 }
 0x26a   : > { %4267 = vtanh.f32 %v1094_v26 }
 0x26d   : > { %v1119_v15 = vpop.f32.mrf.mxu3 }
 0x270   : > { %v4268_v17 = vpop.eup %4267 }
 0x271   : > { %1098 = vrot.lane.b32.xlu0 %v4268_v17, %s4530_s14 }
 0x275   : > { %v1130_v51 = vpop.f32.mrf.mxu3 }
 0x276   : > { %v1131_v1 = vadd.f32 %v1130_v51, %v4967_v32 }
 0x278   : > { %1179 = vrot.lane.b32.xlu2 %v1131_v1, %s4530_s14 }
 0x27d   : > { %v1132_v43 = vpop.f32.mrf.mxu3 }
 0x280   : > { %1203 = vperm.xlu2 %4246, %v1201_v55  }
 0x2d2   : > { %v1180_v43 = vpop.permute.xlu2 %1179 }
 0x2da   : > { %v1136_v21 = vpop.permute.xlu1 %1135 }
 0x2db   : > { %v1138_v41 = vadd.f32 %v1136_v21, %v5079_v30 }
 0x2dd   : > { %v4092_v49 = vmul.f32 -1.442695, %v1138_v41 }
 0x2df   : > { %4269 = vpow2.f32 %v4092_v49  ;;  %v701_v49 = vadd.f32 %v5005_v12, %v5012_v23 }
 0x2e5   : > { %v4270_v46 = vpop.eup %4269 }
 0x2e6   : > { %v1142_v22 = vadd.f32 1.0, %v4270_v46 }
 0x2e8   : > { %4271 = vrcp.f32 %v1142_v22  ;;  %v1154_v26 = vand.u32 2147483648, %v1142_v22  ;;  %v1152_v16 = vand.u32 2147483647, %v1142_v22  ;;  %vm1148_vm9 = vweird.f32 %v1142_v22 }
 0x2ea   : > { %v1155_v51 = vor.u32 1.1754944e-38, %v1154_v26  ;;  %vm1153_vm11 = vcmp.eq.f32.partialorder %v1152_v16, 8.507059e+37 }
 0x2ee   : > { %v4272_v50 = vpop.eup %4271 }
 0x2ef   : > { %v1144_v34 = vmul.f32 %v4272_v50, %v1142_v22  ;;  %vm1149_vm8 = vweird.f32 %v4272_v50  ;;  %v1158_v22 = vadd.f32 %v1136_v21, %v701_v49 }
 0x2f0   : > { %vm1150_vm10 = vmor %vm1148_vm9, %vm1149_vm8 }
 0x2f1   : > { %v1145_v39 = vsub.f32 1.0, %v1144_v34  ;;  %v1195_v34 = vsel %vm1193_vm13, 1, %v6244_v35 }
 0x2f3   : > { %v1146_v15 = vmul.f32 %v4272_v50, %v1145_v39  ;;  %v4093_v39 = vmul.f32 -1.442695, %v1158_v22 }
 0x2f5   : > { %v1147_v17 = vadd.f32 %v4272_v50, %v1146_v15 }
 0x2f7   : > { %v1151_v1 = vsel %vm1150_vm10, %v4272_v50, %v1147_v17 }
 0x2f8   : > { %v1156_v41 = vsel %vm1153_vm11, %v1155_v51, %v1151_v1 }
 0x2f9   : > { %v1182_v46 = vmul.f32 %v1180_v43, %v1156_v41 }
 0x2fb   : > { %v1183_v18 = vadd.f32 %v1182_v46, %v701_v49  ;;  %v5089_v49 = vpop.permute.xlu2 %1203 }
 0x2fc   : > { %6245 = vst [vmem:[#allocation24_spill] sm:$0xff] %v5089_v49  ;;  %vm6220_vm3 = vcmp.eq.s32.totalorder %v5089_v49, 1 }
 0x2fd   : > { %4273 = vtanh.f32 %v1183_v18 }
 0x2fe   : > { %4275 = vpow2.f32 %v4093_v39 }
 0x303   : > { %v4274_v55 = vpop.eup %4273 }
 0x304   : > { %1187 = vrot.lane.b32.xlu1 %v4274_v55, %s4530_s14  ;;  %v4276_v50 = vpop.eup %4275 }
 0x305   : > { %v1162_v26 = vadd.f32 1.0, %v4276_v50  ;;  %v1096_v50 = vsub.f32 1.0, %v5064_v42 }
 0x307   : > { %4277 = vrcp.f32 %v1162_v26  ;;  %v1174_v18 = vand.u32 2147483648, %v1162_v26  ;;  %vm1168_vm15 = vweird.f32 %v1162_v26  ;;  %v1172_v1 = vand.u32 2147483647, %v1162_v26 }
 0x309   : > { %v1175_v41 = vor.u32 1.1754944e-38, %v1174_v18  ;;  %vm1173_vm2 = vcmp.eq.f32.partialorder %v1172_v1, 8.507059e+37 }
 0x30c   : > { %1197 = vperm.xlu1 %4244, %v1195_v34   ;;  %v1099_v34 = vpop.permute.xlu0 %1098 }
 0x30d   : > { %v4278_v15 = vpop.eup %4277 }
 0x30e   : > { %v1164_v16 = vmul.f32 %v4278_v15, %v1162_v26  ;;  %vm1169_vm14 = vweird.f32 %v4278_v15 }
 0x30f   : > { %vm1170_vm0 = vmor %vm1168_vm15, %vm1169_vm14 }
 0x310   : > { %v1165_v12 = vsub.f32 1.0, %v1164_v16 }
 0x312   : > { %v1166_v17 = vmul.f32 %v4278_v15, %v1165_v12  ;;  %v1101_v12 = vmul.f32 %v1099_v34, %v1096_v50 }
 0x314   : > { %v1167_v51 = vadd.f32 %v4278_v15, %v1166_v17  ;;  %v1102_v17 = vmul.f32 %v5064_v42, %v5024_v27 }
 0x316   : > { %v1171_v43 = vsel %vm1170_vm0, %v4278_v15, %v1167_v51  ;;  %v5106_v18 = vadd.f32 %v1102_v17, %v1101_v12  ;;  %vm1376_vm0 = vcmp.gt.s32.totalorder %v4931_v48, 2 }
 0x317   : > { %v1176_v46 = vsel %vm1173_vm2, %v1175_v41, %v1171_v43  ;;  %v572_v43 = vpop.f32.mrf.mxu0 }
 0x318   : > { %v1185_v21 = vsub.f32 1.0, %v1176_v46  ;;  %v1191_v22 = vmul.f32 %v1176_v46, %v5044_v38  ;;  %6246 = vst [vmem:[#allocation25_spill] sm:$0xff] %v5106_v18 }
 0x31f   : > { %v5130_v41 = vpop.f32.mrf.mxu0 }
 0x376   : > { %v1188_v55 = vpop.permute.xlu1 %1187 }
 0x377   : > { %v1190_v39 = vmul.f32 %v1188_v55, %v1185_v21  ;;  %v5136_v21 = vpop.f32.mrf.mxu0 }
 0x379   : > { %v1192_v16 = vadd.f32 %v1191_v22, %v1190_v39 }
 0x37b   : > { %v5097_v26 = vsel %vm6220_vm3, %v1192_v16, %v5044_v38  ;;  %v1214_v15 = vsel %vm6220_vm3, %v1192_v16, 0.0 }
 0x37c   : > { %1216 = vst.msk [vmem:[#allocation4 + $0x70] sm:$0xff] %vm822_vm12, %v1214_v15  ;;  %v1287_v51 = vpack.c.bf16 %v5097_v26, %v5097_v26 }
 0x37e   : > { %4097 = vmatmul.msk.bf16.vlgmr.msrb.gmra.mxu2 %vm822_vm12, %v1287_v51  ;;  %4098 = vmatmul.msk.bf16.vlgmr.msra.gmra.mxu3 %vm822_vm12, %v1287_v51  ;;  %v5110_v1 = vpop.permute.xlu1 %1197  ;;  %v1384_v51 = vsel %vm1377_vm5, 1, %v6244_v35 }
 0x37f   : > { %6247 = vst [vmem:[#allocation26_spill] sm:$0xff] %v5110_v1  ;;  %vm6219_vm4 = vcmp.eq.s32.totalorder %v5110_v1, 1  ;;  %1661 = vmatpush.bf16.msrb.mxu2 %v4752_v0  ;;  %1674 = vmatpush.bf16.msra.mxu3 %v4829_v29  ;;  %v5144_v55 = vpop.f32.mrf.mxu0 }
 0x380   : > { %v5119_v38 = vsel %vm6219_vm4, %v5106_v18, %v5024_v27  ;;  %v573_v27 = vadd.f32 %v572_v43, %v4911_v28  ;;  %v698_v43 = vadd.f32 %v5001_v10, %v5012_v23  ;;  %v5186_v10 = vadd.f32 %v4935_v53, %v4949_v8 }
 0x381   : > { %v1223_v42 = vpack.c.bf16 %v5119_v38, %v5119_v38 }
 0x382   : > { %6258 = vst [vmem:[#allocation37_spill] sm:$0xff] %v5186_v10 }
 0x383   : > { %1225 = vrot.lane.b32.xlu2 %v1223_v42, %s4530_s14  ;;  %1662 = vmatpush.bf16.msrb.mxu2 %v4773_v7 }
 0x384   : > { %1675 = vmatpush.bf16.msra.mxu3 %v4841_v36 }
 0x387   : > { %1663 = vmatpush.bf16.msrb.mxu2 %v4791_v14  ;;  %v5146_v34 = vpop.f32.mrf.mxu0 }
 0x388   : > { %1676 = vmatpush.bf16.msra.mxu3 %v4853_v40 }
 0x38b   : > { %1664 = vmatpush.bf16.msrb.mxu2 %v4803_v20 }
 0x38c   : > { %1677 = vmatpush.bf16.msra.mxu3 %v4865_v45 }
 0x38f   : > { %v5148_v22 = vpop.f32.mrf.mxu0 }
 0x390   : > { %6248 = vst [vmem:[#allocation27_spill] sm:$0xff] %v5148_v22 }
 0x397   : > { %v5156_v42 = vpop.f32.mrf.mxu0 }
 0x398   : > { %6249 = vst [vmem:[#allocation28_spill] sm:$0xff] %v5156_v42 }
 0x3dd   : > { %v1226_v46 = vpop.permute.xlu2 %1225 }
 0x3de   : > { %4094 = vmatmul.msk.bf16.vlgmr.msrb.gmra.mxu0 %vm822_vm12, %v1226_v46  ;;  %4095 = vmatmul.msk.bf16.vlgmr.msrb.gmra.mxu1 %vm822_vm12, %v1226_v46  ;;  %v5158_v46 = vpop.f32.mrf.mxu0 }
 0x3df   : > { %1600 = vmatpush.bf16.msrb.mxu0 %v4646_v19  ;;  %1613 = vmatpush.bf16.msrb.mxu1 %v4720_v52  ;;  %6250 = vst [vmem:[#allocation29_spill] sm:$0xff] %v5158_v46 }
 0x3e3   : > { %1601 = vmatpush.bf16.msrb.mxu0 %v4661_v25  ;;  %1614 = vmatpush.bf16.msrb.mxu1 %v4744_v61 }
 0x3e6   : > { %v5160_v18 = vpop.f32.mrf.mxu0 }
 0x3e7   : > { %1602 = vmatpush.bf16.msrb.mxu0 %v4679_v31  ;;  %1615 = vmatpush.bf16.msrb.mxu1 %v4764_v4  ;;  %6251 = vst [vmem:[#allocation30_spill] sm:$0xff] %v5160_v18 }
 0x3eb   : > { %1603 = vmatpush.bf16.msrb.mxu0 %v4712_v47  ;;  %1616 = vmatpush.bf16.msrb.mxu1 %v4789_v13 }
 0x401   : > { %v1300_v39 = vpop.f32.mrf.mxu2  ;;  %v1313_v50 = vpop.f32.mrf.mxu3 }
 0x402   : > { %v1301_v16 = vadd.f32 %v1300_v39, %v4951_v9  ;;  %v1314_v12 = vadd.f32 %v1313_v50, %v4967_v32  ;;  %v5162_v39 = vpop.f32.mrf.mxu0 }
 0x403   : > { %6252 = vst [vmem:[#allocation31_spill] sm:$0xff] %v5162_v39 }
 0x404   : > { %1362 = vrot.lane.b32.xlu1 %v1314_v12, %s4530_s14  ;;  %1318 = vrot.lane.b32.xlu0 %v1301_v16, %s4530_s14 }
 0x409   : > { %v1302_v15 = vpop.f32.mrf.mxu2  ;;  %v1315_v17 = vpop.f32.mrf.mxu3 }
 0x40a   : > { %v5164_v50 = vpop.f32.mrf.mxu0 }
 0x40b   : > { %6253 = vst [vmem:[#allocation32_spill] sm:$0xff] %v5164_v50 }
 0x40c   : > { %1386 = vperm.xlu0 %4245, %v1384_v51  }
 0x412   : > { %v5166_v12 = vpop.f32.mrf.mxu0 }
 0x413   : > { %6254 = vst [vmem:[#allocation33_spill] sm:$0xff] %v5166_v12 }
 0x41a   : > { %v5168_v16 = vpop.f32.mrf.mxu0 }
 0x41b   : > { %6255 = vst [vmem:[#allocation34_spill] sm:$0xff] %v5168_v16 }
 0x422   : > { %v5170_v1 = vpop.f32.mrf.mxu0 }
 0x423   : > { %6256 = vst [vmem:[#allocation35_spill] sm:$0xff] %v5170_v1  ;;  %v5176_v1 = vadd.f32 %v5003_v11, %v4949_v8 }
 0x425   : > { %6257 = vst [vmem:[#allocation36_spill] sm:$0xff] %v5176_v1 }
 0x45b   : > { %v1239_v15 = vpop.f32.mrf.mxu0  ;;  %v1252_v17 = vpop.f32.mrf.mxu1 }
 0x45c   : > { %v1240_v51 = vadd.f32 %v1239_v15, %v4913_v33 }
 0x45e   : > { %v1256_v49 = vadd.f32 %v1240_v51, %v573_v27  ;;  %v1253_v51 = vadd.f32 %v1252_v17, %v4946_v2 }
 0x460   : > { %v4096_v30 = vmul.f32 -1.442695, %v1256_v49 }
 0x462   : > { %4279 = vpow2.f32 %v4096_v30 }
 0x463   : > { %v1241_v18 = vpop.f32.mrf.mxu0  ;;  %v1254_v46 = vpop.f32.mrf.mxu1 }
 0x468   : > { %v4280_v39 = vpop.eup %4279 }
 0x469   : > { %v1260_v42 = vadd.f32 1.0, %v4280_v39 }
 0x46b   : > { %4281 = vrcp.f32 %v1260_v42  ;;  %v1272_v16 = vand.u32 2147483648, %v1260_v42  ;;  %v1270_v27 = vand.u32 2147483647, %v1260_v42  ;;  %vm1266_vm8 = vweird.f32 %v1260_v42 }
 0x46d   : > { %v1273_v39 = vor.u32 1.1754944e-38, %v1272_v16  ;;  %vm1271_vm10 = vcmp.eq.f32.partialorder %v1270_v27, 8.507059e+37 }
 0x471   : > { %v4282_v50 = vpop.eup %4281 }
 0x472   : > { %v1262_v12 = vmul.f32 %v4282_v50, %v1260_v42  ;;  %vm1267_vm6 = vweird.f32 %v4282_v50 }
 0x473   : > { %vm1268_vm9 = vmor %vm1266_vm8, %vm1267_vm6 }
 0x474   : > { %v1263_v22 = vsub.f32 1.0, %v1262_v12 }
 0x476   : > { %v1264_v15 = vmul.f32 %v4282_v50, %v1263_v22  ;;  %v1319_v30 = vpop.permute.xlu0 %1318 }
 0x477   : > { %v1321_v49 = vadd.f32 %v1319_v30, %v5176_v1  ;;  %v1341_v18 = vadd.f32 %v1319_v30, %v698_v43 }
 0x478   : > { %v1265_v46 = vadd.f32 %v4282_v50, %v1264_v15 }
 0x479   : > { %v4099_v12 = vmul.f32 -1.442695, %v1321_v49 }
 0x47a   : > { %v1269_v11 = vsel %vm1268_vm9, %v4282_v50, %v1265_v46 }
 0x47b   : > { %v5182_v54 = vsel %vm1271_vm10, %v1273_v39, %v1269_v11  ;;  %4283 = vpow2.f32 %v4099_v12  ;;  %v1363_v11 = vpop.permute.xlu1 %1362 }
 0x47c   : > { %v1276_v22 = vmul.f32 %v5182_v54, %v1253_v51 }
 0x47e   : > { %v1277_v30 = vadd.f32 %v1276_v22, %v5186_v10 }
 0x480   : > { %4285 = vtanh.f32 %v1277_v30 }
 0x481   : > { %v4284_v42 = vpop.eup %4283 }
 0x482   : > { %v1325_v15 = vadd.f32 1.0, %v4284_v42 }
 0x484   : > { %4287 = vrcp.f32 %v1325_v15  ;;  %v1337_v49 = vand.u32 2147483648, %v1325_v15  ;;  %v1335_v39 = vand.u32 2147483647, %v1325_v15  ;;  %vm1331_vm13 = vweird.f32 %v1325_v15 }
 0x486   : > { %v4286_v16 = vpop.eup %4285  ;;  %v1338_v12 = vor.u32 1.1754944e-38, %v1337_v49  ;;  %vm1336_vm15 = vcmp.eq.f32.partialorder %v1335_v39, 8.507059e+37 }
 0x487   : > { %1281 = vrot.lane.b32.xlu1 %v4286_v16, %s4530_s14  ;;  %v1378_v16 = vsel %vm1376_vm0, 1, %v6244_v35 }
 0x48a   : > { %v4288_v50 = vpop.eup %4287 }
 0x48b   : > { %v1327_v17 = vmul.f32 %v4288_v50, %v1325_v15  ;;  %vm1332_vm11 = vweird.f32 %v4288_v50 }
 0x48c   : > { %vm1333_vm14 = vmor %vm1331_vm13, %vm1332_vm11  ;;  %vm1560_vm11 = vcmp.gt.s32.totalorder %v4931_v48, 12 }
 0x48d   : > { %v1328_v27 = vsub.f32 1.0, %v1327_v17  ;;  %v4100_v17 = vmul.f32 -1.442695, %v1341_v18 }
 0x48f   : > { %v1329_v46 = vmul.f32 %v4288_v50, %v1328_v27 }
 0x491   : > { %v1330_v53 = vadd.f32 %v4288_v50, %v1329_v46 }
 0x493   : > { %v1334_v51 = vsel %vm1333_vm14, %v4288_v50, %v1330_v53 }
 0x494   : > { %v1339_v22 = vsel %vm1336_vm15, %v1338_v12, %v1334_v51 }
 0x495   : > { %v1365_v30 = vmul.f32 %v1363_v11, %v1339_v22 }
 0x497   : > { %v1366_v42 = vadd.f32 %v1365_v30, %v698_v43  ;;  %v5194_v30 = vpop.permute.xlu0 %1386 }
 0x498   : > { %6259 = vst [vmem:[#allocation38_spill] sm:$0xff] %v5194_v30  ;;  %vm6223_vm9 = vcmp.eq.s32.totalorder %v5194_v30, 1 }
 0x499   : > { %4289 = vtanh.f32 %v1366_v42 }
 0x49a   : > { %4291 = vpow2.f32 %v4100_v17 }
 0x49f   : > { %v4290_v1 = vpop.eup %4289 }
 0x4a0   : > { %1370 = vrot.lane.b32.xlu2 %v4290_v1, %s4530_s14  ;;  %v4292_v15 = vpop.eup %4291 }
 0x4a1   : > { %v1345_v27 = vadd.f32 1.0, %v4292_v15  ;;  %v1279_v15 = vsub.f32 1.0, %v5182_v54 }
 0x4a3   : > { %4293 = vrcp.f32 %v1345_v27  ;;  %v1357_v43 = vand.u32 2147483648, %v1345_v27  ;;  %vm1351_vm5 = vweird.f32 %v1345_v27  ;;  %v1355_v12 = vand.u32 2147483647, %v1345_v27 }
 0x4a5   : > { %v1358_v51 = vor.u32 1.1754944e-38, %v1357_v43  ;;  %vm1356_vm8 = vcmp.eq.f32.partialorder %v1355_v12, 8.507059e+37 }
 0x4a8   : > { %1380 = vperm.xlu2 %4246, %v1378_v16  }
 0x4a9   : > { %v4294_v50 = vpop.eup %4293 }
 0x4aa   : > { %v1347_v49 = vmul.f32 %v4294_v50, %v1345_v27  ;;  %vm1352_vm2 = vweird.f32 %v4294_v50 }
 0x4ab   : > { %vm1353_vm6 = vmor %vm1351_vm5, %vm1352_vm2 }
 0x4ac   : > { %v1348_v46 = vsub.f32 1.0, %v1347_v49 }
 0x4ae   : > { %v1349_v39 = vmul.f32 %v4294_v50, %v1348_v46 }
 0x4b0   : > { %v1350_v53 = vadd.f32 %v4294_v50, %v1349_v39  ;;  %v1285_v39 = vmul.f32 %v5182_v54, %v5119_v38 }
 0x4b2   : > { %v1354_v1 = vsel %vm1353_vm6, %v4294_v50, %v1350_v53 }
 0x4b3   : > { %v1359_v11 = vsel %vm1356_vm8, %v1358_v51, %v1354_v1 }
 0x4b4   : > { %v1368_v22 = vsub.f32 1.0, %v1359_v11  ;;  %v1374_v16 = vmul.f32 %v1359_v11, %v5097_v26 }
 0x4f9   : > { %v1282_v42 = vpop.permute.xlu1 %1281 }
 0x4fa   : > { %v1371_v18 = vpop.permute.xlu2 %1370  ;;  %v1284_v46 = vmul.f32 %v1282_v42, %v1279_v15 }
 0x4fb   : > { %v1373_v17 = vmul.f32 %v1371_v18, %v1368_v22 }
 0x4fc   : > { %v5211_v43 = vadd.f32 %v1285_v39, %v1284_v46  ;;  %v696_v39 = vadd.f32 %v4997_v5, %v5012_v23 }
 0x4fd   : > { %v1375_v49 = vadd.f32 %v1374_v16, %v1373_v17  ;;  %v1567_v16 = vsel %vm1560_vm11, 1, %v6244_v35 }
 0x4fe   : > { %6260 = vst [vmem:[#allocation39_spill] sm:$0xff] %v5211_v43 }
 0x4ff   : > { %v5202_v27 = vsel %vm6223_vm9, %v1375_v49, %v5097_v26  ;;  %v1397_v50 = vsel %vm6223_vm9, %v1375_v49, 0.0  ;;  %v575_v49 = vadd.f32 %v5130_v41, %v4911_v28 }
 0x500   : > { %1399 = vst.msk [vmem:[#allocation4 + $0x68] sm:$0xff] %vm822_vm12, %v1397_v50  ;;  %v1470_v53 = vpack.c.bf16 %v5202_v27, %v5202_v27  ;;  %v5256_v50 = vadd.f32 %v4999_v6, %v4949_v8 }
 0x502   : > { %v5213_v12 = vpop.permute.xlu2 %1380  ;;  %4104 = vmatmul.msk.bf16.vlgmr.msra.gmra.mxu2 %vm822_vm12, %v1470_v53  ;;  %4105 = vmatmul.msk.bf16.vlgmr.msrb.gmra.mxu3 %vm822_vm12, %v1470_v53 }
 0x503   : > { %6261 = vst [vmem:[#allocation40_spill] sm:$0xff] %v5213_v12  ;;  %vm6222_vm10 = vcmp.eq.s32.totalorder %v5213_v12, 1  ;;  %1844 = vmatpush.bf16.msra.mxu2 %v4752_v0  ;;  %1857 = vmatpush.bf16.msrb.mxu3 %v4829_v29 }
 0x504   : > { %v5224_v54 = vsel %vm6222_vm10, %v5211_v43, %v5119_v38 }
 0x505   : > { %v1406_v26 = vpack.c.bf16 %v5224_v54, %v5224_v54 }
 0x507   : > { %1408 = vrot.lane.b32.xlu0 %v1406_v26, %s4530_s14  ;;  %1845 = vmatpush.bf16.msra.mxu2 %v4773_v7 }
 0x508   : > { %1858 = vmatpush.bf16.msrb.mxu3 %v4841_v36 }
 0x50b   : > { %1846 = vmatpush.bf16.msra.mxu2 %v4791_v14 }
 0x50c   : > { %1859 = vmatpush.bf16.msrb.mxu3 %v4853_v40 }
 0x50f   : > { %1847 = vmatpush.bf16.msra.mxu2 %v4803_v20 }
 0x510   : > { %1860 = vmatpush.bf16.msrb.mxu3 %v4865_v45 }
 0x579   : > { %v1409_v1 = vpop.permute.xlu0 %1408 }
 0x57a   : > { %4101 = vmatmul.msk.bf16.vlgmr.msra.gmra.mxu0 %vm822_vm12, %v1409_v1  ;;  %4102 = vmatmul.msk.bf16.vlgmr.msra.gmra.mxu1 %vm822_vm12, %v1409_v1 }
 0x57b   : > { %1783 = vmatpush.bf16.msra.mxu0 %v4646_v19  ;;  %1796 = vmatpush.bf16.msra.mxu1 %v4720_v52 }
 0x57f   : > { %1784 = vmatpush.bf16.msra.mxu0 %v4661_v25  ;;  %1797 = vmatpush.bf16.msra.mxu1 %v4744_v61 }
 0x583   : > { %1785 = vmatpush.bf16.msra.mxu0 %v4679_v31  ;;  %1798 = vmatpush.bf16.msra.mxu1 %v4764_v4 }
 0x585   : > { %v1483_v38 = vpop.f32.mrf.mxu2  ;;  %v1496_v51 = vpop.f32.mrf.mxu3 }
 0x586   : > { %v1484_v11 = vadd.f32 %v1483_v38, %v4951_v9  ;;  %v1497_v22 = vadd.f32 %v1496_v51, %v4967_v32 }
 0x587   : > { %1786 = vmatpush.bf16.msra.mxu0 %v4712_v47  ;;  %1799 = vmatpush.bf16.msra.mxu1 %v4789_v13 }
 0x588   : > { %1545 = vrot.lane.b32.xlu2 %v1497_v22, %s4530_s14  ;;  %1501 = vrot.lane.b32.xlu1 %v1484_v11, %s4530_s14 }
 0x58d   : > { %v1485_v18 = vpop.f32.mrf.mxu2  ;;  %v1498_v42 = vpop.f32.mrf.mxu3 }
 0x590   : > { %1569 = vperm.xlu1 %4244, %v1567_v16  }
 0x5f7   : > { %v1422_v17 = vpop.f32.mrf.mxu0  ;;  %v1435_v15 = vpop.f32.mrf.mxu1 }
 0x5f8   : > { %v1423_v46 = vadd.f32 %v1422_v17, %v4913_v33 }
 0x5fa   : > { %v1439_v48 = vadd.f32 %v1423_v46, %v575_v49  ;;  %v1502_v53 = vpop.permute.xlu1 %1501 }
 0x5fb   : > { %v1504_v26 = vadd.f32 %v1502_v53, %v5256_v50  ;;  %v1524_v1 = vadd.f32 %v1502_v53, %v696_v39 }
 0x5fc   : > { %v4103_v38 = vmul.f32 -1.442695, %v1439_v48 }
 0x5fd   : > { %v4106_v51 = vmul.f32 -1.442695, %v1504_v26 }
 0x5fe   : > { %4295 = vpow2.f32 %v4103_v38 }
 0x5ff   : > { %4297 = vpow2.f32 %v4106_v51  ;;  %v1424_v11 = vpop.f32.mrf.mxu0  ;;  %v1437_v41 = vpop.f32.mrf.mxu1 }
 0x604   : > { %v4296_v22 = vpop.eup %4295 }
 0x605   : > { %v4298_v18 = vpop.eup %4297  ;;  %v1443_v42 = vadd.f32 1.0, %v4296_v22 }
 0x606   : > { %v1508_v16 = vadd.f32 1.0, %v4298_v18  ;;  %v1436_v18 = vadd.f32 %v1435_v15, %v4946_v2 }
 0x607   : > { %4299 = vrcp.f32 %v1443_v42  ;;  %v1455_v43 = vand.u32 2147483648, %v1443_v42  ;;  %v1453_v48 = vand.u32 2147483647, %v1443_v42  ;;  %vm1449_vm15 = vweird.f32 %v1443_v42 }
 0x608   : > { %4301 = vrcp.f32 %v1508_v16  ;;  %v1520_v26 = vand.u32 2147483648, %v1508_v16  ;;  %v1518_v51 = vand.u32 2147483647, %v1508_v16  ;;  %vm1514_vm2 = vweird.f32 %v1508_v16 }
 0x609   : > { %v1456_v41 = vor.u32 1.1754944e-38, %v1455_v43  ;;  %vm1454_vm5 = vcmp.eq.f32.partialorder %v1453_v48, 8.507059e+37 }
 0x60a   : > { %vm1519_vm8 = vcmp.eq.f32.partialorder %v1518_v51, 8.507059e+37 }
 0x60d   : > { %v4300_v6 = vpop.eup %4299 }
 0x60e   : > { %v4302_v17 = vpop.eup %4301  ;;  %v1445_v5 = vmul.f32 %v4300_v6, %v1443_v42  ;;  %vm1450_vm13 = vweird.f32 %v4300_v6 }
 0x60f   : > { %v1510_v49 = vmul.f32 %v4302_v17, %v1508_v16  ;;  %vm1515_vm14 = vweird.f32 %v4302_v17  ;;  %vm1451_vm0 = vmor %vm1449_vm15, %vm1450_vm13 }
 0x610   : > { %v1446_v46 = vsub.f32 1.0, %v1445_v5  ;;  %vm1516_vm6 = vmor %vm1514_vm2, %vm1515_vm14  ;;  %v1521_v5 = vor.u32 1.1754944e-38, %v1520_v26 }
 0x611   : > { %v1511_v12 = vsub.f32 1.0, %v1510_v49 }
 0x612   : > { %v1447_v53 = vmul.f32 %v4300_v6, %v1446_v46 }
 0x613   : > { %v1512_v38 = vmul.f32 %v4302_v17, %v1511_v12  ;;  %v5264_v12 = vadd.f32 %v4939_v60, %v4949_v8 }
 0x614   : > { %v1448_v11 = vadd.f32 %v4300_v6, %v1447_v53  ;;  %v1546_v53 = vpop.permute.xlu2 %1545 }
 0x615   : > { %v1513_v22 = vadd.f32 %v4302_v17, %v1512_v38 }
 0x616   : > { %v1452_v30 = vsel %vm1451_vm0, %v4300_v6, %v1448_v11 }
 0x617   : > { %v1457_v49 = vsel %vm1454_vm5, %v1456_v41, %v1452_v30  ;;  %v1517_v46 = vsel %vm1516_vm6, %v4302_v17, %v1513_v22  ;;  %v5270_v30 = vld [vmem:[%s4926_s27] sm:$0xff]  ;;  %v4107_v17 = vmul.f32 -1.442695, %v1524_v1 }
 0x618   : > { %v1459_v42 = vmul.f32 %v1457_v49, %v1436_v18  ;;  %v1522_v10 = vsel %vm1519_vm8, %v1521_v5, %v1517_v46  ;;  %vm1559_vm11 = vcmp.gt.s32.totalorder %v5270_v30, 3  ;;  %vm1743_vm6 = vcmp.gt.s32.totalorder %v5270_v30, 11 }
 0x619   : > { %v1548_v43 = vmul.f32 %v1546_v53, %v1522_v10  ;;  %v1561_v60 = vsel %vm1559_vm11, 1, %v6244_v35 }
 0x61a   : > { %v1460_v16 = vadd.f32 %v1459_v42, %v5264_v12 }
 0x61b   : > { %v1549_v38 = vadd.f32 %v1548_v43, %v696_v39  ;;  %v5274_v43 = vpop.permute.xlu1 %1569 }
 0x61c   : > { %4303 = vtanh.f32 %v1460_v16  ;;  %vm1571_vm2 = vcmp.eq.s32.totalorder %v5274_v43, 1 }
 0x61d   : > { %4305 = vtanh.f32 %v1549_v38 }
 0x61e   : > { %4307 = vpow2.f32 %v4107_v17 }
 0x622   : > { %v4304_v15 = vpop.eup %4303 }
 0x623   : > { %v4306_v6 = vpop.eup %4305  ;;  %1464 = vrot.lane.b32.xlu2 %v4304_v15, %s4530_s14 }
 0x624   : > { %1553 = vrot.lane.b32.xlu0 %v4306_v6, %s4530_s14  ;;  %v4308_v10 = vpop.eup %4307  ;;  %v1462_v6 = vsub.f32 1.0, %v1457_v49 }
 0x625   : > { %v1528_v48 = vadd.f32 1.0, %v4308_v10 }
 0x627   : > { %4309 = vrcp.f32 %v1528_v48  ;;  %v1540_v22 = vand.u32 2147483648, %v1528_v48  ;;  %vm1534_vm14 = vweird.f32 %v1528_v48  ;;  %v1538_v18 = vand.u32 2147483647, %v1528_v48 }
 0x629   : > { %v1541_v46 = vor.u32 1.1754944e-38, %v1540_v22  ;;  %vm1539_vm0 = vcmp.eq.f32.partialorder %v1538_v18, 8.507059e+37 }
 0x62c   : > { %1563 = vperm.xlu0 %4245, %v1561_v60  }
 0x62d   : > { %v4310_v39 = vpop.eup %4309 }
 0x62e   : > { %v1530_v26 = vmul.f32 %v4310_v39, %v1528_v48  ;;  %vm1535_vm13 = vweird.f32 %v4310_v39 }
 0x62f   : > { %vm1536_vm15 = vmor %vm1534_vm14, %vm1535_vm13 }
 0x630   : > { %v1531_v51 = vsub.f32 1.0, %v1530_v26 }
 0x632   : > { %v1532_v11 = vmul.f32 %v4310_v39, %v1531_v51 }
 0x634   : > { %v1533_v41 = vadd.f32 %v4310_v39, %v1532_v11 }
 0x636   : > { %v1537_v5 = vsel %vm1536_vm15, %v4310_v39, %v1533_v41  ;;  %v1468_v39 = vmul.f32 %v1457_v49, %v5224_v54  ;;  %vm1742_vm15 = vcmp.gt.s32.totalorder %v5270_v30, 4 }
 0x637   : > { %v1542_v53 = vsel %vm1539_vm0, %v1541_v46, %v1537_v5 }
 0x638   : > { %v1551_v42 = vsub.f32 1.0, %v1542_v53  ;;  %v1557_v38 = vmul.f32 %v1542_v53, %v5202_v27 }
 0x67d   : > { %v1465_v16 = vpop.permute.xlu2 %1464 }
 0x67e   : > { %v1467_v17 = vmul.f32 %v1465_v16, %v1462_v6  ;;  %v693_v16 = vadd.f32 %v4993_v63, %v5012_v23 }
 0x680   : > { %v5289_v51 = vadd.f32 %v1468_v39, %v1467_v17 }
 0x682   : > { %6262 = vst [vmem:[#allocation41_spill] sm:$0xff] %v5289_v51 }
 0x696   : > { %v1554_v1 = vpop.permute.xlu0 %1553 }
 0x697   : > { %v1556_v15 = vmul.f32 %v1554_v1, %v1551_v42  ;;  %v1750_v42 = vsel %vm1743_vm6, 1, %v6244_v35  ;;  %v5331_v1 = vadd.f32 %v4995_v3, %v4949_v8  ;;  %v578_v3 = vadd.f32 %v5136_v21, %v4911_v28 }
 0x699   : > { %v1558_v60 = vadd.f32 %v1557_v38, %v1556_v15 }
 0x69b   : > { %v5281_v10 = vsel %vm1571_vm2, %v1558_v60, %v5202_v27  ;;  %v1580_v48 = vsel %vm1571_vm2, %v1558_v60, 0.0 }
 0x69c   : > { %1582 = vst.msk [vmem:[#allocation4 + $0x60] sm:$0xff] %vm822_vm12, %v1580_v48  ;;  %v1653_v26 = vpack.c.bf16 %v5281_v10, %v5281_v10 }
 0x69e   : > { %4111 = vmatmul.msk.bf16.vlgmr.msrb.gmra.mxu2 %vm822_vm12, %v1653_v26  ;;  %4112 = vmatmul.msk.bf16.vlgmr.msra.gmra.mxu3 %vm822_vm12, %v1653_v26  ;;  %v5293_v11 = vpop.permute.xlu0 %1563 }
 0x69f   : > { %6263 = vst [vmem:[#allocation42_spill] sm:$0xff] %v5293_v11  ;;  %vm6224_vm5 = vcmp.eq.s32.totalorder %v5293_v11, 1  ;;  %2027 = vmatpush.bf16.msrb.mxu2 %v4752_v0  ;;  %2040 = vmatpush.bf16.msra.mxu3 %v4829_v29 }
 0x6a0   : > { %v5302_v27 = vsel %vm6224_vm5, %v5289_v51, %v5224_v54 }
 0x6a1   : > { %v1589_v49 = vpack.c.bf16 %v5302_v27, %v5302_v27 }
 0x6a3   : > { %1591 = vrot.lane.b32.xlu1 %v1589_v49, %s4530_s14  ;;  %2028 = vmatpush.bf16.msrb.mxu2 %v4773_v7 }
 0x6a4   : > { %2041 = vmatpush.bf16.msra.mxu3 %v4841_v36 }
 0x6a7   : > { %2029 = vmatpush.bf16.msrb.mxu2 %v4791_v14 }
 0x6a8   : > { %2042 = vmatpush.bf16.msra.mxu3 %v4853_v40 }
 0x6ab   : > { %2030 = vmatpush.bf16.msrb.mxu2 %v4803_v20 }
 0x6ac   : > { %2043 = vmatpush.bf16.msra.mxu3 %v4865_v45 }
 0x715   : > { %v1592_v41 = vpop.permute.xlu1 %1591 }
 0x716   : > { %4108 = vmatmul.msk.bf16.vlgmr.msrb.gmra.mxu0 %vm822_vm12, %v1592_v41  ;;  %4109 = vmatmul.msk.bf16.vlgmr.msrb.gmra.mxu1 %vm822_vm12, %v1592_v41 }
 0x717   : > { %1966 = vmatpush.bf16.msrb.mxu0 %v4646_v19  ;;  %1979 = vmatpush.bf16.msrb.mxu1 %v4720_v52 }
 0x71b   : > { %1967 = vmatpush.bf16.msrb.mxu0 %v4661_v25  ;;  %1980 = vmatpush.bf16.msrb.mxu1 %v4744_v61 }
 0x71f   : > { %1968 = vmatpush.bf16.msrb.mxu0 %v4679_v31  ;;  %1981 = vmatpush.bf16.msrb.mxu1 %v4764_v4 }
 0x721   : > { %v1666_v54 = vpop.f32.mrf.mxu2  ;;  %v1679_v22 = vpop.f32.mrf.mxu3 }
 0x722   : > { %v1667_v18 = vadd.f32 %v1666_v54, %v4951_v9  ;;  %v1680_v5 = vadd.f32 %v1679_v22, %v4967_v32 }
 0x723   : > { %1969 = vmatpush.bf16.msrb.mxu0 %v4712_v47  ;;  %1982 = vmatpush.bf16.msrb.mxu1 %v4789_v13 }
 0x724   : > { %1728 = vrot.lane.b32.xlu0 %v1680_v5, %s4530_s14  ;;  %1684 = vrot.lane.b32.xlu2 %v1667_v18, %s4530_s14 }
 0x729   : > { %v1668_v46 = vpop.f32.mrf.mxu2  ;;  %v1681_v53 = vpop.f32.mrf.mxu3 }
 0x72c   : > { %1752 = vperm.xlu2 %4246, %v1750_v42  }
 0x77e   : > { %v1685_v38 = vpop.permute.xlu2 %1684 }
 0x77f   : > { %v1687_v15 = vadd.f32 %v1685_v38, %v5331_v1  ;;  %v1707_v6 = vadd.f32 %v1685_v38, %v693_v16 }
 0x781   : > { %v4113_v60 = vmul.f32 -1.442695, %v1687_v15 }
 0x783   : > { %4311 = vpow2.f32 %v4113_v60 }
 0x789   : > { %v4312_v17 = vpop.eup %4311 }
 0x78a   : > { %v1691_v48 = vadd.f32 1.0, %v4312_v17 }
 0x78c   : > { %4313 = vrcp.f32 %v1691_v48  ;;  %v1703_v18 = vand.u32 2147483648, %v1691_v48  ;;  %v1701_v46 = vand.u32 2147483647, %v1691_v48  ;;  %vm1697_vm11 = vweird.f32 %v1691_v48 }
 0x78e   : > { %v1704_v38 = vor.u32 1.1754944e-38, %v1703_v18  ;;  %vm1702_vm14 = vcmp.eq.f32.partialorder %v1701_v46, 8.507059e+37  ;;  %v1744_v18 = vsel %vm1742_vm15, 1, %v6244_v35 }
 0x792   : > { %v4314_v39 = vpop.eup %4313 }
 0x793   : > { %v1605_v26 = vpop.f32.mrf.mxu0  ;;  %v1618_v49 = vpop.f32.mrf.mxu1  ;;  %v1693_v41 = vmul.f32 %v4314_v39, %v1691_v48  ;;  %vm1698_vm8 = vweird.f32 %v4314_v39 }
 0x794   : > { %v1606_v54 = vadd.f32 %v1605_v26, %v4913_v33  ;;  %vm1699_vm13 = vmor %vm1697_vm11, %vm1698_vm8 }
 0x795   : > { %v1694_v22 = vsub.f32 1.0, %v1693_v41 }
 0x796   : > { %v1622_v63 = vadd.f32 %v1606_v54, %v578_v3  ;;  %v1729_v21 = vpop.permute.xlu0 %1728 }
 0x797   : > { %v1695_v5 = vmul.f32 %v4314_v39, %v1694_v22 }
 0x798   : > { %v4110_v53 = vmul.f32 -1.442695, %v1622_v63 }
 0x799   : > { %v1696_v42 = vadd.f32 %v4314_v39, %v1695_v5 }
 0x79a   : > { %4315 = vpow2.f32 %v4110_v53 }
 0x79b   : > { %v1700_v15 = vsel %vm1699_vm13, %v4314_v39, %v1696_v42  ;;  %v1607_v60 = vpop.f32.mrf.mxu0  ;;  %v1620_v17 = vpop.f32.mrf.mxu1 }
 0x79c   : > { %v1705_v51 = vsel %vm1702_vm14, %v1704_v38, %v1700_v15  ;;  %v5345_v38 = vadd.f32 %v4962_v24, %v4949_v8 }
 0x79d   : > { %v1731_v11 = vmul.f32 %v1729_v21, %v1705_v51  ;;  %v4114_v21 = vmul.f32 -1.442695, %v1707_v6 }
 0x79f   : > { %v1732_v26 = vadd.f32 %v1731_v11, %v693_v16  ;;  %v1619_v16 = vadd.f32 %v1618_v49, %v4946_v2 }
 0x7a0   : > { %v4316_v41 = vpop.eup %4315 }
 0x7a1   : > { %v1626_v3 = vadd.f32 1.0, %v4316_v41  ;;  %4317 = vtanh.f32 %v1732_v26 }
 0x7a3   : > { %4319 = vrcp.f32 %v1626_v3  ;;  %v1638_v39 = vand.u32 2147483648, %v1626_v3  ;;  %v1636_v46 = vand.u32 2147483647, %v1626_v3  ;;  %vm1632_vm6 = vweird.f32 %v1626_v3 }
 0x7a5   : > { %v1639_v11 = vor.u32 1.1754944e-38, %v1638_v39  ;;  %vm1637_vm11 = vcmp.eq.f32.partialorder %v1636_v46, 8.507059e+37 }
 0x7a7   : > { %v4318_v54 = vpop.eup %4317 }
 0x7a8   : > { %1736 = vrot.lane.b32.xlu1 %v4318_v54, %s4530_s14 }
 0x7a9   : > { %v4320_v22 = vpop.eup %4319 }
 0x7aa   : > { %v1628_v48 = vmul.f32 %v4320_v22, %v1626_v3  ;;  %vm1633_vm0 = vweird.f32 %v4320_v22 }
 0x7ab   : > { %vm1634_vm8 = vmor %vm1632_vm6, %vm1633_vm0 }
 0x7ac   : > { %v1629_v63 = vsub.f32 1.0, %v1628_v48 }
 0x7ae   : > { %v1630_v5 = vmul.f32 %v4320_v22, %v1629_v63 }
 0x7b0   : > { %v1631_v51 = vadd.f32 %v4320_v22, %v1630_v5  ;;  %1746 = vperm.xlu1 %4244, %v1744_v18  }
 0x7b2   : > { %v1635_v53 = vsel %vm1634_vm8, %v4320_v22, %v1631_v51  ;;  %v5349_v51 = vpop.permute.xlu2 %1752 }
 0x7b3   : > { %v1640_v42 = vsel %vm1637_vm11, %v1639_v11, %v1635_v53  ;;  %vm1754_vm6 = vcmp.eq.s32.totalorder %v5349_v51, 1  ;;  %vm1926_vm11 = vcmp.gt.s32.totalorder %v5270_v30, 10 }
 0x7b4   : > { %v1642_v15 = vmul.f32 %v1640_v42, %v1619_v16 }
 0x7b6   : > { %v1643_v60 = vadd.f32 %v1642_v15, %v5345_v38 }
 0x7b8   : > { %4321 = vtanh.f32 %v1643_v60 }
 0x7b9   : > { %4323 = vpow2.f32 %v4114_v21 }
 0x7be   : > { %v4322_v17 = vpop.eup %4321 }
 0x7bf   : > { %1647 = vrot.lane.b32.xlu0 %v4322_v17, %s4530_s14  ;;  %v4324_v26 = vpop.eup %4323 }
 0x7c0   : > { %v1711_v41 = vadd.f32 1.0, %v4324_v26 }
 0x7c2   : > { %4325 = vrcp.f32 %v1711_v41  ;;  %v1723_v24 = vand.u32 2147483648, %v1711_v41  ;;  %vm1717_vm14 = vweird.f32 %v1711_v41  ;;  %v1721_v63 = vand.u32 2147483647, %v1711_v41 }
 0x7c4   : > { %v1724_v18 = vor.u32 1.1754944e-38, %v1723_v24  ;;  %vm1722_vm0 = vcmp.eq.f32.partialorder %v1721_v63, 8.507059e+37 }
 0x7c8   : > { %v4326_v49 = vpop.eup %4325 }
 0x7c9   : > { %v1713_v3 = vmul.f32 %v4326_v49, %v1711_v41  ;;  %vm1718_vm13 = vweird.f32 %v4326_v49  ;;  %v1651_v41 = vmul.f32 %v1640_v42, %v5302_v27 }
 0x7ca   : > { %vm1719_vm15 = vmor %vm1717_vm14, %vm1718_vm13 }
 0x7cb   : > { %v1714_v54 = vsub.f32 1.0, %v1713_v3 }
 0x7cd   : > { %v1715_v22 = vmul.f32 %v4326_v49, %v1714_v54 }
 0x7cf   : > { %v1716_v48 = vadd.f32 %v4326_v49, %v1715_v22 }
 0x7d1   : > { %v1720_v39 = vsel %vm1719_vm15, %v4326_v49, %v1716_v48 }
 0x7d2   : > { %v1725_v5 = vsel %vm1722_vm0, %v1724_v18, %v1720_v39 }
 0x7d3   : > { %v1734_v46 = vsub.f32 1.0, %v1725_v5  ;;  %v1740_v11 = vmul.f32 %v1725_v5, %v5281_v10  ;;  %v1933_v5 = vsel %vm1926_vm11, 1, %v6244_v35 }
 0x81a   : > { %v1737_v6 = vpop.permute.xlu1 %1736 }
 0x81b   : > { %v1739_v16 = vmul.f32 %v1737_v6, %v1734_v46 }
 0x81d   : > { %v1741_v53 = vadd.f32 %v1740_v11, %v1739_v16  ;;  %v580_v11 = vadd.f32 %v5144_v55, %v4911_v28 }
 0x81f   : > { %v5356_v15 = vsel %vm1754_vm6, %v1741_v53, %v5281_v10  ;;  %v1763_v60 = vsel %vm1754_vm6, %v1741_v53, 0.0  ;;  %v1645_v10 = vsub.f32 1.0, %v1640_v42 }
 0x820   : > { %1765 = vst.msk [vmem:[#allocation4 + $0x58] sm:$0xff] %vm822_vm12, %v1763_v60  ;;  %v1836_v17 = vpack.c.bf16 %v5356_v15, %v5356_v15 }
 0x822   : > { %4118 = vmatmul.msk.bf16.vlgmr.msra.gmra.mxu2 %vm822_vm12, %v1836_v17  ;;  %4119 = vmatmul.msk.bf16.vlgmr.msrb.gmra.mxu3 %vm822_vm12, %v1836_v17  ;;  %v5373_v26 = vpop.permute.xlu1 %1746  ;;  %v5409_v17 = vadd.f32 %v4991_v62, %v4949_v8 }
 0x823   : > { %2210 = vmatpush.bf16.msra.mxu2 %v4752_v0  ;;  %2223 = vmatpush.bf16.msrb.mxu3 %v4829_v29  ;;  %vm1748_vm8 = vcmp.eq.s32.totalorder %v5373_v26, 1 }
 0x827   : > { %2211 = vmatpush.bf16.msra.mxu2 %v4773_v7  ;;  %2224 = vmatpush.bf16.msrb.mxu3 %v4841_v36 }
 0x82b   : > { %2212 = vmatpush.bf16.msra.mxu2 %v4791_v14  ;;  %2225 = vmatpush.bf16.msrb.mxu3 %v4853_v40 }
 0x82f   : > { %2213 = vmatpush.bf16.msra.mxu2 %v4803_v20  ;;  %2226 = vmatpush.bf16.msrb.mxu3 %v4865_v45 }
 0x831   : > { %v1648_v21 = vpop.permute.xlu0 %1647 }
 0x832   : > { %v1650_v49 = vmul.f32 %v1648_v21, %v1645_v10  ;;  %v691_v10 = vadd.f32 %v4989_v59, %v5012_v23 }
 0x834   : > { %v5376_v3 = vadd.f32 %v1651_v41, %v1650_v49 }
 0x836   : > { %6264 = vst [vmem:[#allocation43_spill] sm:$0xff] %v5376_v3  ;;  %v5383_v54 = vsel %vm1748_vm8, %v5376_v3, %v5302_v27 }
 0x837   : > { %v1772_v22 = vpack.c.bf16 %v5383_v54, %v5383_v54 }
 0x839   : > { %1774 = vrot.lane.b32.xlu2 %v1772_v22, %s4530_s14 }
 0x893   : > { %v1775_v48 = vpop.permute.xlu2 %1774 }
 0x894   : > { %4115 = vmatmul.msk.bf16.vlgmr.msra.gmra.mxu0 %vm822_vm12, %v1775_v48  ;;  %4116 = vmatmul.msk.bf16.vlgmr.msra.gmra.mxu1 %vm822_vm12, %v1775_v48 }
 0x895   : > { %2149 = vmatpush.bf16.msra.mxu0 %v4646_v19  ;;  %2162 = vmatpush.bf16.msra.mxu1 %v4720_v52 }
 0x899   : > { %2150 = vmatpush.bf16.msra.mxu0 %v4661_v25  ;;  %2163 = vmatpush.bf16.msra.mxu1 %v4744_v61 }
 0x89d   : > { %2151 = vmatpush.bf16.msra.mxu0 %v4679_v31  ;;  %2164 = vmatpush.bf16.msra.mxu1 %v4764_v4 }
 0x8a1   : > { %2152 = vmatpush.bf16.msra.mxu0 %v4712_v47  ;;  %2165 = vmatpush.bf16.msra.mxu1 %v4789_v13 }
 0x8a5   : > { %v1849_v27 = vpop.f32.mrf.mxu2  ;;  %v1862_v42 = vpop.f32.mrf.mxu3 }
 0x8a6   : > { %v1850_v24 = vadd.f32 %v1849_v27, %v4951_v9  ;;  %v1863_v63 = vadd.f32 %v1862_v42, %v4967_v32 }
 0x8a8   : > { %1911 = vrot.lane.b32.xlu1 %v1863_v63, %s4530_s14  ;;  %1867 = vrot.lane.b32.xlu0 %v1850_v24, %s4530_s14 }
 0x8ad   : > { %v1851_v39 = vpop.f32.mrf.mxu2  ;;  %v1864_v18 = vpop.f32.mrf.mxu3 }
 0x8b0   : > { %1935 = vperm.xlu0 %4245, %v1933_v5  }
 0x911   : > { %v1788_v46 = vpop.f32.mrf.mxu0  ;;  %v1801_v6 = vpop.f32.mrf.mxu1 }
 0x912   : > { %v1789_v16 = vadd.f32 %v1788_v46, %v4913_v33 }
 0x914   : > { %v1805_v53 = vadd.f32 %v1789_v16, %v580_v11 }
 0x916   : > { %v4117_v60 = vmul.f32 -1.442695, %v1805_v53 }
 0x918   : > { %4327 = vpow2.f32 %v4117_v60 }
 0x919   : > { %v1790_v21 = vpop.f32.mrf.mxu0  ;;  %v1803_v41 = vpop.f32.mrf.mxu1 }
 0x91a   : > { %v1868_v49 = vpop.permute.xlu0 %1867  ;;  %v1802_v21 = vadd.f32 %v1801_v6, %v4946_v2 }
 0x91b   : > { %v1870_v22 = vadd.f32 %v1868_v49, %v5409_v17  ;;  %v1890_v48 = vadd.f32 %v1868_v49, %v691_v10 }
 0x91d   : > { %v4120_v27 = vmul.f32 -1.442695, %v1870_v22 }
 0x91e   : > { %v4328_v55 = vpop.eup %4327 }
 0x91f   : > { %v1809_v42 = vadd.f32 1.0, %v4328_v55  ;;  %4329 = vpow2.f32 %v4120_v27  ;;  %v5419_v27 = vadd.f32 %v4969_v37, %v4949_v8 }
 0x921   : > { %4331 = vrcp.f32 %v1809_v42  ;;  %v1821_v5 = vand.u32 2147483648, %v1809_v42  ;;  %v1819_v59 = vand.u32 2147483647, %v1809_v42  ;;  %vm1815_vm14 = vweird.f32 %v1809_v42 }
 0x923   : > { %v1822_v53 = vor.u32 1.1754944e-38, %v1821_v5  ;;  %vm1820_vm0 = vcmp.eq.f32.partialorder %v1819_v59, 8.507059e+37 }
 0x925   : > { %v4330_v24 = vpop.eup %4329 }
 0x926   : > { %v1874_v63 = vadd.f32 1.0, %v4330_v24 }
 0x927   : > { %v4332_v39 = vpop.eup %4331 }
 0x928   : > { %v1811_v18 = vmul.f32 %v4332_v39, %v1809_v42  ;;  %4333 = vrcp.f32 %v1874_v63  ;;  %vm1816_vm13 = vweird.f32 %v4332_v39  ;;  %v1886_v24 = vand.u32 2147483648, %v1874_v63 }
 0x929   : > { %vm1817_vm15 = vmor %vm1815_vm14, %vm1816_vm13  ;;  %v1884_v42 = vand.u32 2147483647, %v1874_v63  ;;  %vm1880_vm13 = vweird.f32 %v1874_v63 }
 0x92a   : > { %v1812_v62 = vsub.f32 1.0, %v1811_v18  ;;  %v1887_v6 = vor.u32 1.1754944e-38, %v1886_v24 }
 0x92c   : > { %v1813_v46 = vmul.f32 %v4332_v39, %v1812_v62 }
 0x92e   : > { %v4334_v11 = vpop.eup %4333  ;;  %v1814_v16 = vadd.f32 %v4332_v39, %v1813_v46  ;;  %v1912_v46 = vpop.permute.xlu1 %1911 }
 0x92f   : > { %v1876_v60 = vmul.f32 %v4334_v11, %v1874_v63  ;;  %vm1881_vm11 = vweird.f32 %v4334_v11 }
 0x930   : > { %v1818_v41 = vsel %vm1817_vm15, %v4332_v39, %v1814_v16  ;;  %vm1882_vm14 = vmor %vm1880_vm13, %vm1881_vm11  ;;  %vm1885_vm15 = vcmp.eq.f32.partialorder %v1884_v42, 8.507059e+37 }
 0x931   : > { %v5415_v49 = vsel %vm1820_vm0, %v1822_v53, %v1818_v41  ;;  %v1877_v22 = vsub.f32 1.0, %v1876_v60  ;;  %vm1925_vm0 = vcmp.gt.s32.totalorder %v5270_v30, 5 }
 0x932   : > { %v1825_v55 = vmul.f32 %v5415_v49, %v1802_v21  ;;  %v1927_v63 = vsel %vm1925_vm0, 1, %v6244_v35  ;;  %v4121_v21 = vmul.f32 -1.442695, %v1890_v48 }
 0x933   : > { %v1878_v18 = vmul.f32 %v4334_v11, %v1877_v22 }
 0x934   : > { %v1826_v62 = vadd.f32 %v1825_v55, %v5419_v27 }
 0x935   : > { %v1879_v5 = vadd.f32 %v4334_v11, %v1878_v18 }
 0x936   : > { %4335 = vtanh.f32 %v1826_v62 }
 0x937   : > { %v1883_v39 = vsel %vm1882_vm14, %v4334_v11, %v1879_v5 }
 0x938   : > { %v1888_v59 = vsel %vm1885_vm15, %v1887_v6, %v1883_v39 }
 0x939   : > { %v1914_v16 = vmul.f32 %v1912_v46, %v1888_v59  ;;  %v5427_v59 = vpop.permute.xlu0 %1935 }
 0x93a   : > { %vm1937_vm0 = vcmp.eq.s32.totalorder %v5427_v59, 1 }
 0x93b   : > { %v1915_v37 = vadd.f32 %v1914_v16, %v691_v10 }
 0x93c   : > { %v4336_v53 = vpop.eup %4335 }
 0x93d   : > { %1830 = vrot.lane.b32.xlu1 %v4336_v53, %s4530_s14  ;;  %4337 = vtanh.f32 %v1915_v37 }
 0x93e   : > { %4339 = vpow2.f32 %v4121_v21 }
 0x943   : > { %v4338_v60 = vpop.eup %4337 }
 0x944   : > { %1919 = vrot.lane.b32.xlu2 %v4338_v60, %s4530_s14  ;;  %v4340_v11 = vpop.eup %4339 }
 0x945   : > { %v1894_v41 = vadd.f32 1.0, %v4340_v11 }
 0x947   : > { %4341 = vrcp.f32 %v1894_v41  ;;  %v1906_v42 = vand.u32 2147483648, %v1894_v41  ;;  %vm1900_vm13 = vweird.f32 %v1894_v41  ;;  %v1904_v62 = vand.u32 2147483647, %v1894_v41 }
 0x949   : > { %v1907_v6 = vor.u32 1.1754944e-38, %v1906_v42  ;;  %vm1905_vm15 = vcmp.eq.f32.partialorder %v1904_v62, 8.507059e+37 }
 0x94c   : > { %1929 = vperm.xlu2 %4246, %v1927_v63  }
 0x94d   : > { %v4342_v22 = vpop.eup %4341 }
 0x94e   : > { %v1896_v55 = vmul.f32 %v4342_v22, %v1894_v41  ;;  %vm1901_vm11 = vweird.f32 %v4342_v22 }
 0x94f   : > { %vm1902_vm14 = vmor %vm1900_vm13, %vm1901_vm11  ;;  %vm2109_vm13 = vcmp.gt.s32.totalorder %v5270_v30, 9 }
 0x950   : > { %v1897_v10 = vsub.f32 1.0, %v1896_v55 }
 0x952   : > { %v1898_v24 = vmul.f32 %v4342_v22, %v1897_v10 }
 0x954   : > { %v1899_v18 = vadd.f32 %v4342_v22, %v1898_v24 }
 0x956   : > { %v1903_v5 = vsel %vm1902_vm14, %v4342_v22, %v1899_v18  ;;  %v1834_v22 = vmul.f32 %v5415_v49, %v5383_v54 }
 0x957   : > { %v1908_v39 = vsel %vm1905_vm15, %v1907_v6, %v1903_v5 }
 0x958   : > { %v1917_v46 = vsub.f32 1.0, %v1908_v39  ;;  %v1923_v16 = vmul.f32 %v1908_v39, %v5356_v15 }
 0x99e   : > { %v1920_v48 = vpop.permute.xlu2 %1919 }
 0x99f   : > { %v1922_v37 = vmul.f32 %v1920_v48, %v1917_v46  ;;  %v2116_v46 = vsel %vm2109_vm13, 1, %v6244_v35  ;;  %v5486_v48 = vadd.f32 %v4987_v58, %v4949_v8 }
 0x9a1   : > { %v1924_v53 = vadd.f32 %v1923_v16, %v1922_v37  ;;  %v688_v16 = vadd.f32 %v4985_v57, %v5012_v23 }
 0x9a3   : > { %v5434_v60 = vsel %vm1937_vm0, %v1924_v53, %v5356_v15  ;;  %v1946_v63 = vsel %vm1937_vm0, %v1924_v53, 0.0  ;;  %v1828_v15 = vsub.f32 1.0, %v5415_v49 }
 0x9a4   : > { %1948 = vst.msk [vmem:[#allocation4 + $0x50] sm:$0xff] %vm822_vm12, %v1946_v63  ;;  %v2019_v21 = vpack.c.bf16 %v5434_v60, %v5434_v60 }
 0x9a6   : > { %4125 = vmatmul.msk.bf16.vlgmr.msrb.gmra.mxu2 %vm822_vm12, %v2019_v21  ;;  %4126 = vmatmul.msk.bf16.vlgmr.msra.gmra.mxu3 %vm822_vm12, %v2019_v21  ;;  %v5450_v41 = vpop.permute.xlu2 %1929 }
 0x9a7   : > { %2391 = vmatpush.bf16.msrb.mxu2 %v4752_v0  ;;  %2404 = vmatpush.bf16.msra.mxu3 %v4829_v29  ;;  %vm1931_vm11 = vcmp.eq.s32.totalorder %v5450_v41, 1 }
 0x9ab   : > { %2392 = vmatpush.bf16.msrb.mxu2 %v4773_v7  ;;  %2405 = vmatpush.bf16.msra.mxu3 %v4841_v36 }
 0x9af   : > { %v1831_v11 = vpop.permute.xlu1 %1830  ;;  %2393 = vmatpush.bf16.msrb.mxu2 %v4791_v14  ;;  %2406 = vmatpush.bf16.msra.mxu3 %v4853_v40 }
 0x9b0   : > { %v1833_v55 = vmul.f32 %v1831_v11, %v1828_v15 }
 0x9b2   : > { %v5454_v10 = vadd.f32 %v1834_v22, %v1833_v55  ;;  %v583_v55 = vadd.f32 %v5146_v34, %v4911_v28 }
 0x9b3   : > { %2394 = vmatpush.bf16.msrb.mxu2 %v4803_v20  ;;  %2407 = vmatpush.bf16.msra.mxu3 %v4865_v45 }
 0x9b4   : > { %6265 = vst [vmem:[#allocation44_spill] sm:$0xff] %v5454_v10  ;;  %v5463_v24 = vsel %vm1931_vm11, %v5454_v10, %v5383_v54 }
 0x9b5   : > { %v1955_v18 = vpack.c.bf16 %v5463_v24, %v5463_v24 }
 0x9b7   : > { %1957 = vrot.lane.b32.xlu0 %v1955_v18, %s4530_s14 }
 0xa29   : > { %v2032_v49 = vpop.f32.mrf.mxu2  ;;  %v2045_v42 = vpop.f32.mrf.mxu3 }
 0xa2a   : > { %v2033_v62 = vadd.f32 %v2032_v49, %v4951_v9  ;;  %v2046_v5 = vadd.f32 %v2045_v42, %v4967_v32  ;;  %v1958_v6 = vpop.permute.xlu0 %1957 }
 0xa2b   : > { %4122 = vmatmul.msk.bf16.vlgmr.msrb.gmra.mxu0 %vm822_vm12, %v1958_v6  ;;  %4123 = vmatmul.msk.bf16.vlgmr.msrb.gmra.mxu1 %vm822_vm12, %v1958_v6 }
 0xa2c   : > { %2094 = vrot.lane.b32.xlu2 %v2046_v5, %s4530_s14  ;;  %2050 = vrot.lane.b32.xlu1 %v2033_v62, %s4530_s14 }
 0xa2d   : > { %2330 = vmatpush.bf16.msrb.mxu0 %v4646_v19  ;;  %2343 = vmatpush.bf16.msrb.mxu1 %v4720_v52 }
 0xa31   : > { %v2034_v54 = vpop.f32.mrf.mxu2  ;;  %v2047_v39 = vpop.f32.mrf.mxu3  ;;  %2331 = vmatpush.bf16.msrb.mxu0 %v4661_v25  ;;  %2344 = vmatpush.bf16.msrb.mxu1 %v4744_v61 }
 0xa34   : > { %2118 = vperm.xlu1 %4244, %v2116_v46  }
 0xa35   : > { %2332 = vmatpush.bf16.msrb.mxu0 %v4679_v31  ;;  %2345 = vmatpush.bf16.msrb.mxu1 %v4764_v4 }
 0xa39   : > { %2333 = vmatpush.bf16.msrb.mxu0 %v4712_v47  ;;  %2346 = vmatpush.bf16.msrb.mxu1 %v4789_v13 }
 0xa9e   : > { %v2051_v37 = vpop.permute.xlu1 %2050 }
 0xa9f   : > { %v2053_v53 = vadd.f32 %v2051_v37, %v5486_v48  ;;  %v2073_v63 = vadd.f32 %v2051_v37, %v688_v16 }
 0xaa1   : > { %v4127_v21 = vmul.f32 -1.442695, %v2053_v53 }
 0xaa3   : > { %4343 = vpow2.f32 %v4127_v21 }
 0xaa8   : > { %v1971_v15 = vpop.f32.mrf.mxu0  ;;  %v1984_v11 = vpop.f32.mrf.mxu1 }
 0xaa9   : > { %v4344_v22 = vpop.eup %4343  ;;  %v1972_v18 = vadd.f32 %v1971_v15, %v4913_v33 }
 0xaaa   : > { %v2057_v49 = vadd.f32 1.0, %v4344_v22 }
 0xaab   : > { %v1988_v58 = vadd.f32 %v1972_v18, %v583_v55  ;;  %v2095_v55 = vpop.permute.xlu2 %2094 }
 0xaac   : > { %4345 = vrcp.f32 %v2057_v49  ;;  %v2069_v46 = vand.u32 2147483648, %v2057_v49  ;;  %v2067_v21 = vand.u32 2147483647, %v2057_v49  ;;  %vm2063_vm15 = vweird.f32 %v2057_v49 }
 0xaad   : > { %v4124_v42 = vmul.f32 -1.442695, %v1988_v58 }
 0xaae   : > { %v2070_v15 = vor.u32 1.1754944e-38, %v2069_v46  ;;  %vm2068_vm7 = vcmp.eq.f32.partialorder %v2067_v21, 8.507059e+37 }
 0xaaf   : > { %4347 = vpow2.f32 %v4124_v42 }
 0xab0   : > { %v1973_v57 = vpop.f32.mrf.mxu0  ;;  %v1986_v62 = vpop.f32.mrf.mxu1 }
 0xab2   : > { %v4346_v5 = vpop.eup %4345 }
 0xab3   : > { %v2059_v6 = vmul.f32 %v4346_v5, %v2057_v49  ;;  %vm2064_vm14 = vweird.f32 %v4346_v5 }
 0xab4   : > { %vm2065_vm13 = vmor %vm2063_vm15, %vm2064_vm14 }
 0xab5   : > { %v4348_v54 = vpop.eup %4347  ;;  %v2060_v39 = vsub.f32 1.0, %v2059_v6 }
 0xab6   : > { %v1992_v37 = vadd.f32 1.0, %v4348_v54 }
 0xab7   : > { %v2061_v53 = vmul.f32 %v4346_v5, %v2060_v39 }
 0xab8   : > { %4349 = vrcp.f32 %v1992_v37  ;;  %v2004_v6 = vand.u32 2147483648, %v1992_v37  ;;  %v2002_v39 = vand.u32 2147483647, %v1992_v37  ;;  %vm1998_vm4 = vweird.f32 %v1992_v37 }
 0xab9   : > { %v2062_v34 = vadd.f32 %v4346_v5, %v2061_v53 }
 0xaba   : > { %v2005_v49 = vor.u32 1.1754944e-38, %v2004_v6  ;;  %vm2003_vm14 = vcmp.eq.f32.partialorder %v2002_v39, 8.507059e+37 }
 0xabb   : > { %v2066_v22 = vsel %vm2065_vm13, %v4346_v5, %v2062_v34  ;;  %v1985_v5 = vadd.f32 %v1984_v11, %v4946_v2 }
 0xabc   : > { %v2071_v18 = vsel %vm2068_vm7, %v2070_v15, %v2066_v22  ;;  %vm2108_vm7 = vcmp.gt.s32.totalorder %v5270_v30, 6 }
 0xabd   : > { %v2097_v58 = vmul.f32 %v2095_v55, %v2071_v18 }
 0xabe   : > { %v4350_v42 = vpop.eup %4349 }
 0xabf   : > { %v1994_v57 = vmul.f32 %v4350_v42, %v1992_v37  ;;  %v2098_v62 = vadd.f32 %v2097_v58, %v688_v16  ;;  %vm1999_vm1 = vweird.f32 %v4350_v42  ;;  %v5498_v16 = vadd.f32 %v4975_v44, %v4949_v8 }
 0xac0   : > { %vm2000_vm3 = vmor %vm1998_vm4, %vm1999_vm1  ;;  %v2110_v37 = vsel %vm2108_vm7, 1, %v6244_v35  ;;  %vm2292_vm7 = vcmp.gt.s32.totalorder %v5270_v30, 8 }
 0xac1   : > { %v1995_v10 = vsub.f32 1.0, %v1994_v57  ;;  %4351 = vtanh.f32 %v2098_v62 }
 0xac3   : > { %v1996_v54 = vmul.f32 %v4350_v42, %v1995_v10 }
 0xac5   : > { %v1997_v3 = vadd.f32 %v4350_v42, %v1996_v54 }
 0xac7   : > { %v4352_v53 = vpop.eup %4351  ;;  %v2001_v46 = vsel %vm2000_vm3, %v4350_v42, %v1997_v3  ;;  %v4128_v3 = vmul.f32 -1.442695, %v2073_v63 }
 0xac8   : > { %v2006_v21 = vsel %vm2003_vm14, %v2005_v49, %v2001_v46  ;;  %2102 = vrot.lane.b32.xlu0 %v4352_v53, %s4530_s14  ;;  %v5504_v53 = vpop.permute.xlu1 %2118 }
 0xac9   : > { %v2008_v34 = vmul.f32 %v2006_v21, %v1985_v5  ;;  %vm2120_vm13 = vcmp.eq.s32.totalorder %v5504_v53, 1 }
 0xacb   : > { %v2009_v10 = vadd.f32 %v2008_v34, %v5498_v16 }
 0xacd   : > { %4353 = vtanh.f32 %v2009_v10  ;;  %v2011_v10 = vsub.f32 1.0, %v2006_v21 }
 0xace   : > { %4355 = vpow2.f32 %v4128_v3 }
 0xad0   : > { %2112 = vperm.xlu0 %4245, %v2110_v37  }
 0xad3   : > { %v4354_v15 = vpop.eup %4353 }
 0xad4   : > { %2013 = vrot.lane.b32.xlu2 %v4354_v15, %s4530_s14  ;;  %v4356_v11 = vpop.eup %4355 }
 0xad5   : > { %v2077_v22 = vadd.f32 1.0, %v4356_v11 }
 0xad7   : > { %4357 = vrcp.f32 %v2077_v22  ;;  %v2089_v57 = vand.u32 2147483648, %v2077_v22  ;;  %vm2083_vm3 = vweird.f32 %v2077_v22  ;;  %v2087_v62 = vand.u32 2147483647, %v2077_v22 }
 0xad9   : > { %v2090_v54 = vor.u32 1.1754944e-38, %v2089_v57  ;;  %vm2088_vm15 = vcmp.eq.f32.partialorder %v2087_v62, 8.507059e+37 }
 0xadd   : > { %v4358_v55 = vpop.eup %4357 }
 0xade   : > { %v2079_v44 = vmul.f32 %v4358_v55, %v2077_v22  ;;  %vm2084_vm1 = vweird.f32 %v4358_v55  ;;  %v2017_v22 = vmul.f32 %v2006_v21, %v5463_v24 }
 0xadf   : > { %vm2085_vm4 = vmor %vm2083_vm3, %vm2084_vm1 }
 0xae0   : > { %v2080_v18 = vsub.f32 1.0, %v2079_v44 }
 0xae2   : > { %v2081_v58 = vmul.f32 %v4358_v55, %v2080_v18 }
 0xae4   : > { %v2082_v42 = vadd.f32 %v4358_v55, %v2081_v58 }
 0xae6   : > { %v2086_v6 = vsel %vm2085_vm4, %v4358_v55, %v2082_v42 }
 0xae7   : > { %v2091_v39 = vsel %vm2088_vm15, %v2090_v54, %v2086_v6 }
 0xae8   : > { %v2100_v49 = vsub.f32 1.0, %v2091_v39  ;;  %v2106_v46 = vmul.f32 %v2091_v39, %v5434_v60  ;;  %v2299_v39 = vsel %vm2292_vm7, 1, %v6244_v35 }
 0xb2e   : > { %v2014_v5 = vpop.permute.xlu2 %2013 }
 0xb2f   : > { %v2016_v15 = vmul.f32 %v2014_v5, %v2011_v10 }
 0xb31   : > { %v5519_v44 = vadd.f32 %v2017_v22, %v2016_v15 }
 0xb33   : > { %6266 = vst [vmem:[#allocation45_spill] sm:$0xff] %v5519_v44 }
 0xb3a   : > { %v2103_v63 = vpop.permute.xlu0 %2102 }
 0xb3b   : > { %v2105_v34 = vmul.f32 %v2103_v63, %v2100_v49  ;;  %v5561_v49 = vadd.f32 %v4983_v56, %v4949_v8  ;;  %v6267_v63 = vld [vmem:[#allocation17_spill] sm:$0xff] }
 0xb3c   : > { %v686_v5 = vadd.f32 %v6267_v63, %v5012_v23 }
 0xb3d   : > { %v2107_v37 = vadd.f32 %v2106_v46, %v2105_v34 }
 0xb3f   : > { %v5511_v3 = vsel %vm2120_vm13, %v2107_v37, %v5434_v60  ;;  %v2129_v11 = vsel %vm2120_vm13, %v2107_v37, 0.0 }
 0xb40   : > { %2131 = vst.msk [vmem:[#allocation4 + $0x48] sm:$0xff] %vm822_vm12, %v2129_v11  ;;  %v2202_v55 = vpack.c.bf16 %v5511_v3, %v5511_v3 }
 0xb42   : > { %4132 = vmatmul.msk.bf16.vlgmr.msra.gmra.mxu2 %vm822_vm12, %v2202_v55  ;;  %4133 = vmatmul.msk.bf16.vlgmr.msrb.gmra.mxu3 %vm822_vm12, %v2202_v55  ;;  %v5523_v18 = vpop.permute.xlu0 %2112 }
 0xb43   : > { %vm2114_vm14 = vcmp.eq.s32.totalorder %v5523_v18, 1  ;;  %2560 = vmatpush.bf16.msra.mxu2 %v4752_v0  ;;  %2573 = vmatpush.bf16.msrb.mxu3 %v4829_v29  ;;  %v6311_v18 = vld [vmem:[#allocation7_spill] sm:$0xff] }
 0xb44   : > { %v5532_v60 = vsel %vm2114_vm14, %v5519_v44, %v5463_v24 }
 0xb45   : > { %v2138_v21 = vpack.c.bf16 %v5532_v60, %v5532_v60 }
 0xb47   : > { %2140 = vrot.lane.b32.xlu1 %v2138_v21, %s4530_s14  ;;  %2561 = vmatpush.bf16.msra.mxu2 %v4773_v7 }
 0xb48   : > { %2574 = vmatpush.bf16.msrb.mxu3 %v4841_v36 }
 0xb4b   : > { %2562 = vmatpush.bf16.msra.mxu2 %v4791_v14 }
 0xb4c   : > { %2575 = vmatpush.bf16.msrb.mxu3 %v4853_v40 }
 0xb4f   : > { %2563 = vmatpush.bf16.msra.mxu2 %v4803_v20 }
 0xb50   : > { %2576 = vmatpush.bf16.msrb.mxu3 %v4865_v45 }
 0xbb9   : > { %v2141_v58 = vpop.permute.xlu1 %2140 }
 0xbba   : > { %4129 = vmatmul.msk.bf16.vlgmr.msra.gmra.mxu0 %vm822_vm12, %v2141_v58  ;;  %4130 = vmatmul.msk.bf16.vlgmr.msra.gmra.mxu1 %vm822_vm12, %v2141_v58  ;;  %v6268_v58 = vld [vmem:[#allocation27_spill] sm:$0xff] }
 0xbbb   : > { %2499 = vmatpush.bf16.msra.mxu0 %v4646_v19  ;;  %2512 = vmatpush.bf16.msra.mxu1 %v4720_v52  ;;  %v585_v56 = vadd.f32 %v6268_v58, %v4911_v28 }
 0xbbf   : > { %2500 = vmatpush.bf16.msra.mxu0 %v4661_v25  ;;  %2513 = vmatpush.bf16.msra.mxu1 %v4744_v61 }
 0xbc3   : > { %2501 = vmatpush.bf16.msra.mxu0 %v4679_v31  ;;  %2514 = vmatpush.bf16.msra.mxu1 %v4764_v4 }
 0xbc5   : > { %v2215_v24 = vpop.f32.mrf.mxu2  ;;  %v2228_v42 = vpop.f32.mrf.mxu3 }
 0xbc6   : > { %v2216_v57 = vadd.f32 %v2215_v24, %v4951_v9  ;;  %v2229_v62 = vadd.f32 %v2228_v42, %v4967_v32 }
 0xbc7   : > { %2502 = vmatpush.bf16.msra.mxu0 %v4712_v47  ;;  %2515 = vmatpush.bf16.msra.mxu1 %v4789_v13 }
 0xbc8   : > { %2277 = vrot.lane.b32.xlu0 %v2229_v62, %s4530_s14  ;;  %2233 = vrot.lane.b32.xlu2 %v2216_v57, %s4530_s14 }
 0xbcd   : > { %v2217_v6 = vpop.f32.mrf.mxu2  ;;  %v2230_v54 = vpop.f32.mrf.mxu3 }
 0xbd0   : > { %2301 = vperm.xlu2 %4246, %v2299_v39  }
 0xc22   : > { %v2234_v46 = vpop.permute.xlu2 %2233 }
 0xc23   : > { %v2236_v34 = vadd.f32 %v2234_v46, %v5561_v49  ;;  %v2256_v10 = vadd.f32 %v2234_v46, %v686_v5 }
 0xc25   : > { %v4134_v37 = vmul.f32 -1.442695, %v2236_v34 }
 0xc27   : > { %4359 = vpow2.f32 %v4134_v37 }
 0xc2d   : > { %v4360_v15 = vpop.eup %4359 }
 0xc2e   : > { %v2240_v30 = vadd.f32 1.0, %v4360_v15 }
 0xc30   : > { %4361 = vrcp.f32 %v2240_v30  ;;  %v2252_v62 = vand.u32 2147483648, %v2240_v30  ;;  %v2250_v54 = vand.u32 2147483647, %v2240_v30  ;;  %vm2246_vm3 = vweird.f32 %v2240_v30 }
 0xc32   : > { %v2253_v46 = vor.u32 1.1754944e-38, %v2252_v62  ;;  %vm2251_vm15 = vcmp.eq.f32.partialorder %v2250_v54, 8.507059e+37 }
 0xc36   : > { %v4362_v11 = vpop.eup %4361 }
 0xc37   : > { %v2154_v22 = vpop.f32.mrf.mxu0  ;;  %v2167_v55 = vpop.f32.mrf.mxu1  ;;  %v2242_v21 = vmul.f32 %v4362_v11, %v2240_v30  ;;  %vm2247_vm1 = vweird.f32 %v4362_v11 }
 0xc38   : > { %v2155_v24 = vadd.f32 %v2154_v22, %v4913_v33  ;;  %vm2248_vm4 = vmor %vm2246_vm3, %vm2247_vm1 }
 0xc39   : > { %v2243_v42 = vsub.f32 1.0, %v2242_v21 }
 0xc3a   : > { %v2171_v57 = vadd.f32 %v2155_v24, %v585_v56  ;;  %v2278_v44 = vpop.permute.xlu0 %2277 }
 0xc3b   : > { %v2244_v6 = vmul.f32 %v4362_v11, %v2243_v42 }
 0xc3c   : > { %v4131_v39 = vmul.f32 -1.442695, %v2171_v57 }
 0xc3d   : > { %v2245_v63 = vadd.f32 %v4362_v11, %v2244_v6  ;;  %v4504_v6 = vld [vmem:[%s4926_s27] sm:$0xff] }
 0xc3e   : > { %4363 = vpow2.f32 %v4131_v39  ;;  %vm2291_vm7 = vcmp.gt.s32.totalorder %v4504_v6, 7 }
 0xc3f   : > { %v2249_v34 = vsel %vm2248_vm4, %v4362_v11, %v2245_v63  ;;  %v2156_v37 = vpop.f32.mrf.mxu0  ;;  %v2169_v15 = vpop.f32.mrf.mxu1  ;;  %v2293_v54 = vsel %vm2291_vm7, 1, %v6244_v35 }
 0xc40   : > { %v2254_v58 = vsel %vm2251_vm15, %v2253_v46, %v2249_v34  ;;  %v2168_v46 = vadd.f32 %v2167_v55, %v4946_v2  ;;  %v6269_v15 = vld [vmem:[#allocation16_spill] sm:$0xff] }
 0xc41   : > { %v2280_v22 = vmul.f32 %v2278_v44, %v2254_v58  ;;  %v5575_v58 = vadd.f32 %v6269_v15, %v4949_v8 }
 0xc43   : > { %v2281_v21 = vadd.f32 %v2280_v22, %v686_v5 }
 0xc44   : > { %v4364_v56 = vpop.eup %4363 }
 0xc45   : > { %v2175_v24 = vadd.f32 1.0, %v4364_v56  ;;  %4365 = vtanh.f32 %v2281_v21  ;;  %v4135_v56 = vmul.f32 -1.442695, %v2256_v10 }
 0xc47   : > { %4367 = vrcp.f32 %v2175_v24  ;;  %v2187_v62 = vand.u32 2147483648, %v2175_v24  ;;  %v2185_v63 = vand.u32 2147483647, %v2175_v24  ;;  %vm2181_vm3 = vweird.f32 %v2175_v24 }
 0xc49   : > { %v2188_v5 = vor.u32 1.1754944e-38, %v2187_v62  ;;  %vm2186_vm15 = vcmp.eq.f32.partialorder %v2185_v63, 8.507059e+37 }
 0xc4b   : > { %v4366_v42 = vpop.eup %4365 }
 0xc4c   : > { %2285 = vrot.lane.b32.xlu1 %v4366_v42, %s4530_s14 }
 0xc4d   : > { %v4368_v30 = vpop.eup %4367 }
 0xc4e   : > { %v2177_v57 = vmul.f32 %v4368_v30, %v2175_v24  ;;  %vm2182_vm1 = vweird.f32 %v4368_v30 }
 0xc4f   : > { %vm2183_vm4 = vmor %vm2181_vm3, %vm2182_vm1 }
 0xc50   : > { %v2178_v11 = vsub.f32 1.0, %v2177_v57 }
 0xc52   : > { %v2179_v39 = vmul.f32 %v4368_v30, %v2178_v11 }
 0xc54   : > { %v2180_v44 = vadd.f32 %v4368_v30, %v2179_v39  ;;  %2295 = vperm.xlu1 %4244, %v2293_v54  }
 0xc56   : > { %v2184_v34 = vsel %vm2183_vm4, %v4368_v30, %v2180_v44 }
 0xc57   : > { %v2189_v37 = vsel %vm2186_vm15, %v2188_v5, %v2184_v34  ;;  %v5579_v5 = vpop.permute.xlu2 %2301 }
 0xc58   : > { %v2191_v22 = vmul.f32 %v2189_v37, %v2168_v46  ;;  %vm6225_vm15 = vcmp.eq.s32.totalorder %v5579_v5, 1 }
 0xc5a   : > { %v2192_v35 = vadd.f32 %v2191_v22, %v5575_v58 }
 0xc5c   : > { %4369 = vtanh.f32 %v2192_v35 }
 0xc5d   : > { %4371 = vpow2.f32 %v4135_v56 }
 0xc62   : > { %v4370_v21 = vpop.eup %4369 }
 0xc63   : > { %2196 = vrot.lane.b32.xlu0 %v4370_v21, %s4530_s14  ;;  %v4372_v24 = vpop.eup %4371 }
 0xc64   : > { %v2260_v42 = vadd.f32 1.0, %v4372_v24 }
 0xc66   : > { %4373 = vrcp.f32 %v2260_v42  ;;  %v2272_v8 = vand.u32 2147483648, %v2260_v42  ;;  %vm2266_vm1 = vweird.f32 %v2260_v42  ;;  %v2270_v62 = vand.u32 2147483647, %v2260_v42 }
 0xc68   : > { %v2273_v39 = vor.u32 1.1754944e-38, %v2272_v8  ;;  %vm2271_vm4 = vcmp.eq.f32.partialorder %v2270_v62, 8.507059e+37 }
 0xc6c   : > { %v4374_v55 = vpop.eup %4373 }
 0xc6d   : > { %v2262_v30 = vmul.f32 %v4374_v55, %v2260_v42  ;;  %vm2267_vm7 = vweird.f32 %v4374_v55  ;;  %v2200_v42 = vmul.f32 %v2189_v37, %v5532_v60 }
 0xc6e   : > { %vm2268_vm3 = vmor %vm2266_vm1, %vm2267_vm7 }
 0xc6f   : > { %v2263_v57 = vsub.f32 1.0, %v2262_v30 }
 0xc71   : > { %v2264_v6 = vmul.f32 %v4374_v55, %v2263_v57 }
 0xc73   : > { %v2265_v11 = vadd.f32 %v4374_v55, %v2264_v6 }
 0xc75   : > { %v2269_v54 = vsel %vm2268_vm3, %v4374_v55, %v2265_v11 }
 0xc76   : > { %v2274_v63 = vsel %vm2271_vm4, %v2273_v39, %v2269_v54 }
 0xc77   : > { %v2283_v44 = vsub.f32 1.0, %v2274_v63  ;;  %v2289_v46 = vmul.f32 %v2274_v63, %v5511_v3 }
 0xcbe   : > { %v2286_v10 = vpop.permute.xlu1 %2285 }
 0xcbf   : > { %v2288_v34 = vmul.f32 %v2286_v10, %v2283_v44  ;;  %v6270_v10 = vld [vmem:[#allocation28_spill] sm:$0xff] }
 0xcc1   : > { %v2290_v15 = vadd.f32 %v2289_v46, %v2288_v34  ;;  %v588_v46 = vadd.f32 %v6270_v10, %v4911_v28 }
 0xcc3   : > { %v5586_v22 = vsel %vm6225_vm15, %v2290_v15, %v5511_v3  ;;  %v2312_v35 = vsel %vm6225_vm15, %v2290_v15, 0.0  ;;  %v2194_v3 = vsub.f32 1.0, %v2189_v37 }
 0xcc4   : > { %2314 = vst.msk [vmem:[#allocation4 + $0x40] sm:$0xff] %vm822_vm12, %v2312_v35  ;;  %v2383_v21 = vpack.c.bf16 %v5586_v22, %v5586_v22 }
 0xcc6   : > { %4139 = vmatmul.msk.bf16.vlgmr.msrb.gmra.mxu2 %vm822_vm12, %v2383_v21  ;;  %4140 = vmatmul.msk.bf16.vlgmr.msra.gmra.mxu3 %vm822_vm12, %v2383_v21  ;;  %v5603_v24 = vpop.permute.xlu1 %2295 }
 0xcc7   : > { %2729 = vmatpush.bf16.msrb.mxu2 %v4752_v0  ;;  %2742 = vmatpush.bf16.msra.mxu3 %v4829_v29  ;;  %vm2297_vm7 = vcmp.eq.s32.totalorder %v5603_v24, 1  ;;  %v3689_v24 = vld [vmem:[#allocation4 + $0x48] sm:$0xff] }
 0xccb   : > { %2730 = vmatpush.bf16.msrb.mxu2 %v4773_v7  ;;  %2743 = vmatpush.bf16.msra.mxu3 %v4841_v36 }
 0xccf   : > { %2731 = vmatpush.bf16.msrb.mxu2 %v4791_v14  ;;  %2744 = vmatpush.bf16.msra.mxu3 %v4853_v40 }
 0xcd3   : > { %2732 = vmatpush.bf16.msrb.mxu2 %v4803_v20  ;;  %2745 = vmatpush.bf16.msra.mxu3 %v4865_v45 }
 0xcd5   : > { %v2197_v56 = vpop.permute.xlu0 %2196 }
 0xcd6   : > { %v2199_v55 = vmul.f32 %v2197_v56, %v2194_v3 }
 0xcd8   : > { %v5606_v30 = vadd.f32 %v2200_v42, %v2199_v55 }
 0xcda   : > { %v5613_v57 = vsel %vm2297_vm7, %v5606_v30, %v5532_v60 }
 0xcdb   : > { %v2319_v6 = vpack.c.bf16 %v5613_v57, %v5613_v57 }
 0xcdd   : > { %2321 = vrot.lane.b32.xlu2 %v2319_v6, %s4530_s14 }
 0xd37   : > { %v2322_v11 = vpop.permute.xlu2 %2321 }
 0xd38   : > { %4136 = vmatmul.msk.bf16.vlgmr.msrb.gmra.mxu0 %vm822_vm12, %v2322_v11  ;;  %4137 = vmatmul.msk.bf16.vlgmr.msrb.gmra.mxu1 %vm822_vm12, %v2322_v11 }
 0xd39   : > { %2668 = vmatpush.bf16.msrb.mxu0 %v4646_v19  ;;  %2681 = vmatpush.bf16.msrb.mxu1 %v4720_v52 }
 0xd3d   : > { %2669 = vmatpush.bf16.msrb.mxu0 %v4661_v25  ;;  %2682 = vmatpush.bf16.msrb.mxu1 %v4744_v61 }
 0xd41   : > { %2670 = vmatpush.bf16.msrb.mxu0 %v4679_v31  ;;  %2683 = vmatpush.bf16.msrb.mxu1 %v4764_v4 }
 0xd45   : > { %2671 = vmatpush.bf16.msrb.mxu0 %v4712_v47  ;;  %2684 = vmatpush.bf16.msrb.mxu1 %v4789_v13 }
 0xd49   : > { %v2396_v60 = vpop.f32.mrf.mxu2  ;;  %v2409_v37 = vpop.f32.mrf.mxu3 }
 0xd4a   : > { %v2397_v8 = vadd.f32 %v2396_v60, %v4951_v9  ;;  %v2410_v62 = vadd.f32 %v2409_v37, %v4967_v32 }
 0xd4c   : > { %2458 = vrot.lane.b32.xlu1 %v2410_v62, %s4530_s14  ;;  %2414 = vrot.lane.b32.xlu0 %v2397_v8, %s4530_s14 }
 0xd51   : > { %v2398_v54 = vpop.f32.mrf.mxu2  ;;  %v2411_v39 = vpop.f32.mrf.mxu3 }
 0xdb5   : > { %v2335_v63 = vpop.f32.mrf.mxu0  ;;  %v2348_v44 = vpop.f32.mrf.mxu1 }
 0xdb6   : > { %v2336_v34 = vadd.f32 %v2335_v63, %v4913_v33 }
 0xdb8   : > { %v2352_v15 = vadd.f32 %v2336_v34, %v588_v46 }
 0xdba   : > { %v4138_v35 = vmul.f32 -1.442695, %v2352_v15 }
 0xdbc   : > { %4375 = vpow2.f32 %v4138_v35  ;;  %v2349_v35 = vadd.f32 %v2348_v44, %v4946_v2 }
 0xdbd   : > { %v2337_v21 = vpop.f32.mrf.mxu0  ;;  %v2350_v3 = vpop.f32.mrf.mxu1 }
 0xdbe   : > { %v2415_v56 = vpop.permute.xlu0 %2414  ;;  %v2459_v44 = vpop.permute.xlu1 %2458 }
 0xdbf   : > { %v2417_v42 = vadd.f32 %v2415_v56, %v5575_v58 }
 0xdc1   : > { %v4141_v55 = vmul.f32 -1.442695, %v2417_v42 }
 0xdc2   : > { %v4376_v6 = vpop.eup %4375 }
 0xdc3   : > { %v2356_v11 = vadd.f32 1.0, %v4376_v6  ;;  %4377 = vpow2.f32 %v4141_v55 }
 0xdc5   : > { %4379 = vrcp.f32 %v2356_v11  ;;  %v2368_v39 = vand.u32 2147483648, %v2356_v11  ;;  %v2366_v10 = vand.u32 2147483647, %v2356_v11  ;;  %vm2362_vm3 = vweird.f32 %v2356_v11 }
 0xdc7   : > { %v2369_v58 = vor.u32 1.1754944e-38, %v2368_v39  ;;  %vm2367_vm10 = vcmp.eq.f32.partialorder %v2366_v10, 8.507059e+37  ;;  %v6271_v10 = vld [vmem:[#allocation15_spill] sm:$0xff] }
 0xdc9   : > { %v4378_v60 = vpop.eup %4377 }
 0xdca   : > { %v2421_v37 = vadd.f32 1.0, %v4378_v60 }
 0xdcb   : > { %v4380_v8 = vpop.eup %4379 }
 0xdcc   : > { %v2358_v62 = vmul.f32 %v4380_v8, %v2356_v11  ;;  %4381 = vrcp.f32 %v2421_v37  ;;  %vm2363_vm1 = vweird.f32 %v4380_v8  ;;  %v2433_v6 = vand.u32 2147483648, %v2421_v37 }
 0xdcd   : > { %vm2364_vm4 = vmor %vm2362_vm3, %vm2363_vm1  ;;  %vm2427_vm5 = vweird.f32 %v2421_v37 }
 0xdce   : > { %v2359_v54 = vsub.f32 1.0, %v2358_v62  ;;  %v2431_v62 = vand.u32 2147483647, %v2421_v37  ;;  %v2434_v11 = vor.u32 1.1754944e-38, %v2433_v6 }
 0xdd0   : > { %v2360_v63 = vmul.f32 %v4380_v8, %v2359_v54  ;;  %vm2432_vm3 = vcmp.eq.f32.partialorder %v2431_v62, 8.507059e+37 }
 0xdd2   : > { %v4382_v46 = vpop.eup %4381  ;;  %v2361_v34 = vadd.f32 %v4380_v8, %v2360_v63 }
 0xdd3   : > { %v2423_v15 = vmul.f32 %v4382_v46, %v2421_v37  ;;  %vm2428_vm9 = vweird.f32 %v4382_v46 }
 0xdd4   : > { %v2365_v21 = vsel %vm2364_vm4, %v4380_v8, %v2361_v34  ;;  %vm2429_vm1 = vmor %vm2427_vm5, %vm2428_vm9  ;;  %v683_v34 = vadd.f32 %v6271_v10, %v5012_v23 }
 0xdd5   : > { %v5637_v3 = vsel %vm2367_vm10, %v2369_v58, %v2365_v21  ;;  %v2424_v42 = vsub.f32 1.0, %v2423_v15 }
 0xdd6   : > { %v2372_v55 = vmul.f32 %v5637_v3, %v2349_v35 }
 0xdd7   : > { %v2425_v60 = vmul.f32 %v4382_v46, %v2424_v42 }
 0xdd8   : > { %v2373_v54 = vadd.f32 %v2372_v55, %v5561_v49  ;;  %v2437_v49 = vadd.f32 %v2415_v56, %v683_v34 }
 0xdd9   : > { %v2426_v63 = vadd.f32 %v4382_v46, %v2425_v60 }
 0xdda   : > { %4383 = vtanh.f32 %v2373_v54  ;;  %v4142_v37 = vmul.f32 -1.442695, %v2437_v49 }
 0xddb   : > { %v2430_v39 = vsel %vm2429_vm1, %v4382_v46, %v2426_v63 }
 0xddc   : > { %v2435_v8 = vsel %vm2432_vm3, %v2434_v11, %v2430_v39 }
 0xddd   : > { %v2461_v58 = vmul.f32 %v2459_v44, %v2435_v8 }
 0xddf   : > { %v2462_v15 = vadd.f32 %v2461_v58, %v683_v34 }
 0xde0   : > { %v4384_v35 = vpop.eup %4383 }
 0xde1   : > { %2377 = vrot.lane.b32.xlu0 %v4384_v35, %s4530_s14  ;;  %4385 = vtanh.f32 %v2462_v15 }
 0xde2   : > { %4387 = vpow2.f32 %v4142_v37 }
 0xde7   : > { %v4386_v21 = vpop.eup %4385 }
 0xde8   : > { %2466 = vrot.lane.b32.xlu2 %v4386_v21, %s4530_s14  ;;  %v4388_v42 = vpop.eup %4387 }
 0xde9   : > { %v2441_v46 = vadd.f32 1.0, %v4388_v42  ;;  %v2381_v42 = vmul.f32 %v5637_v3, %v5613_v57 }
 0xdeb   : > { %4389 = vrcp.f32 %v2441_v46  ;;  %v2453_v63 = vand.u32 2147483648, %v2441_v46  ;;  %vm2447_vm10 = vweird.f32 %v2441_v46  ;;  %v2451_v11 = vand.u32 2147483647, %v2441_v46 }
 0xded   : > { %v2454_v44 = vor.u32 1.1754944e-38, %v2453_v63  ;;  %vm2452_vm4 = vcmp.eq.f32.partialorder %v2451_v11, 8.507059e+37 }
 0xdf1   : > { %v4390_v55 = vpop.eup %4389 }
 0xdf2   : > { %v2443_v6 = vmul.f32 %v4390_v55, %v2441_v46  ;;  %vm2448_vm9 = vweird.f32 %v4390_v55 }
 0xdf3   : > { %vm2449_vm5 = vmor %vm2447_vm10, %vm2448_vm9 }
 0xdf4   : > { %v2444_v60 = vsub.f32 1.0, %v2443_v6 }
 0xdf6   : > { %v2445_v62 = vmul.f32 %v4390_v55, %v2444_v60 }
 0xdf8   : > { %v2446_v54 = vadd.f32 %v4390_v55, %v2445_v62 }
 0xdfa   : > { %v2450_v39 = vsel %vm2449_vm5, %v4390_v55, %v2446_v54 }
 0xdfb   : > { %v2455_v8 = vsel %vm2452_vm4, %v2454_v44, %v2450_v39 }
 0xdfc   : > { %v2464_v56 = vsub.f32 1.0, %v2455_v8  ;;  %v2470_v34 = vmul.f32 %v2455_v8, %v5586_v22 }
 0xe42   : > { %v2467_v10 = vpop.permute.xlu2 %2466 }
 0xe43   : > { %v2469_v58 = vmul.f32 %v2467_v10, %v2464_v56 }
 0xe45   : > { %v2471_v15 = vadd.f32 %v2470_v34, %v2469_v58 }
 0xe47   : > { %v5649_v35 = vsel %vm2297_vm7, %v2471_v15, %v5586_v22  ;;  %v2481_v21 = vsel %vm2297_vm7, %v2471_v15, 0.0  ;;  %v2375_v22 = vsub.f32 1.0, %v5637_v3 }
 0xe48   : > { %2483 = vst.msk [vmem:[#allocation4 + $0x38] sm:$0xff] %vm822_vm12, %v2481_v21  ;;  %v2552_v49 = vpack.c.bf16 %v5649_v35, %v5649_v35 }
 0xe4a   : > { %4146 = vmatmul.msk.bf16.vlgmr.msra.gmra.mxu2 %vm822_vm12, %v2552_v49  ;;  %4147 = vmatmul.msk.bf16.vlgmr.msrb.gmra.mxu3 %vm822_vm12, %v2552_v49 }
 0xe4b   : > { %2898 = vmatpush.bf16.msra.mxu2 %v4752_v0  ;;  %2911 = vmatpush.bf16.msrb.mxu3 %v4829_v29 }
 0xe4f   : > { %2899 = vmatpush.bf16.msra.mxu2 %v4773_v7  ;;  %2912 = vmatpush.bf16.msrb.mxu3 %v4841_v36 }
 0xe53   : > { %v2378_v37 = vpop.permute.xlu0 %2377  ;;  %2900 = vmatpush.bf16.msra.mxu2 %v4791_v14  ;;  %2913 = vmatpush.bf16.msrb.mxu3 %v4853_v40 }
 0xe54   : > { %v2380_v46 = vmul.f32 %v2378_v37, %v2375_v22 }
 0xe56   : > { %v5667_v55 = vadd.f32 %v2381_v42, %v2380_v46 }
 0xe57   : > { %2901 = vmatpush.bf16.msra.mxu2 %v4803_v20  ;;  %2914 = vmatpush.bf16.msrb.mxu3 %v4865_v45 }
 0xe58   : > { %v5675_v6 = vsel %vm6225_vm15, %v5667_v55, %v5613_v57 }
 0xe59   : > { %v2488_v60 = vpack.c.bf16 %v5675_v6, %v5675_v6 }
 0xe5b   : > { %2490 = vrot.lane.b32.xlu1 %v2488_v60, %s4530_s14 }
 0xecd   : > { %v2565_v62 = vpop.f32.mrf.mxu2  ;;  %v2578_v3 = vpop.f32.mrf.mxu3 }
 0xece   : > { %v2566_v54 = vadd.f32 %v2565_v62, %v4951_v9  ;;  %v2579_v63 = vadd.f32 %v2578_v3, %v4967_v32  ;;  %v2491_v11 = vpop.permute.xlu1 %2490  ;;  %v6272_v3 = vld [vmem:[#allocation14_spill] sm:$0xff] }
 0xecf   : > { %4143 = vmatmul.msk.bf16.vlgmr.msra.gmra.mxu0 %vm822_vm12, %v2491_v11  ;;  %4144 = vmatmul.msk.bf16.vlgmr.msra.gmra.mxu1 %vm822_vm12, %v2491_v11 }
 0xed0   : > { %2627 = vrot.lane.b32.xlu0 %v2579_v63, %s4530_s14  ;;  %2583 = vrot.lane.b32.xlu2 %v2566_v54, %s4530_s14  ;;  %v681_v54 = vadd.f32 %v6272_v3, %v5012_v23 }
 0xed1   : > { %2837 = vmatpush.bf16.msra.mxu0 %v4646_v19  ;;  %2850 = vmatpush.bf16.msra.mxu1 %v4720_v52 }
 0xed5   : > { %v2567_v57 = vpop.f32.mrf.mxu2  ;;  %v2580_v39 = vpop.f32.mrf.mxu3  ;;  %2838 = vmatpush.bf16.msra.mxu0 %v4661_v25  ;;  %2851 = vmatpush.bf16.msra.mxu1 %v4744_v61 }
 0xed9   : > { %2839 = vmatpush.bf16.msra.mxu0 %v4679_v31  ;;  %2852 = vmatpush.bf16.msra.mxu1 %v4764_v4 }
 0xedd   : > { %2840 = vmatpush.bf16.msra.mxu0 %v4712_v47  ;;  %2853 = vmatpush.bf16.msra.mxu1 %v4789_v13 }
 0xf2a   : > { %v2584_v44 = vpop.permute.xlu2 %2583 }
 0xf2b   : > { %v2586_v8 = vadd.f32 %v2584_v44, %v5498_v16 }
 0xf2d   : > { %v4148_v56 = vmul.f32 -1.442695, %v2586_v8  ;;  %v6273_v8 = vld [vmem:[#allocation29_spill] sm:$0xff] }
 0xf2f   : > { %4391 = vpow2.f32 %v4148_v56  ;;  %v590_v56 = vadd.f32 %v6273_v8, %v4911_v28 }
 0xf35   : > { %v4392_v10 = vpop.eup %4391 }
 0xf36   : > { %v2590_v34 = vadd.f32 1.0, %v4392_v10 }
 0xf38   : > { %4393 = vrcp.f32 %v2590_v34  ;;  %v2602_v49 = vand.u32 2147483648, %v2590_v34  ;;  %v2600_v37 = vand.u32 2147483647, %v2590_v34  ;;  %vm2596_vm3 = vweird.f32 %v2590_v34 }
 0xf3a   : > { %v2603_v46 = vor.u32 1.1754944e-38, %v2602_v49  ;;  %vm2601_vm10 = vcmp.eq.f32.partialorder %v2600_v37, 8.507059e+37 }
 0xf3e   : > { %v4394_v58 = vpop.eup %4393 }
 0xf3f   : > { %v2592_v15 = vmul.f32 %v4394_v58, %v2590_v34  ;;  %vm2597_vm1 = vweird.f32 %v4394_v58 }
 0xf40   : > { %vm2598_vm9 = vmor %vm2596_vm3, %vm2597_vm1 }
 0xf41   : > { %v2593_v21 = vsub.f32 1.0, %v2592_v15 }
 0xf42   : > { %v2628_v16 = vpop.permute.xlu0 %2627 }
 0xf43   : > { %v2594_v22 = vmul.f32 %v4394_v58, %v2593_v21 }
 0xf45   : > { %v2595_v42 = vadd.f32 %v4394_v58, %v2594_v22 }
 0xf47   : > { %v2599_v60 = vsel %vm2598_vm9, %v4394_v58, %v2595_v42 }
 0xf48   : > { %v2604_v62 = vsel %vm2601_vm10, %v2603_v46, %v2599_v60 }
 0xf49   : > { %v2630_v63 = vmul.f32 %v2628_v16, %v2604_v62 }
 0xf4b   : > { %v2631_v11 = vadd.f32 %v2630_v63, %v681_v54 }
 0xf4c   : > { %v2504_v57 = vpop.f32.mrf.mxu0  ;;  %v2517_v39 = vpop.f32.mrf.mxu1 }
 0xf4d   : > { %4395 = vtanh.f32 %v2631_v11  ;;  %v2505_v10 = vadd.f32 %v2504_v57, %v4913_v33  ;;  %v2518_v57 = vadd.f32 %v2517_v39, %v4946_v2 }
 0xf4f   : > { %v2521_v34 = vadd.f32 %v2505_v10, %v590_v56 }
 0xf51   : > { %v4145_v15 = vmul.f32 -1.442695, %v2521_v34 }
 0xf53   : > { %v4396_v21 = vpop.eup %4395  ;;  %4397 = vpow2.f32 %v4145_v15 }
 0xf54   : > { %v2506_v58 = vpop.f32.mrf.mxu0  ;;  %v2519_v49 = vpop.f32.mrf.mxu1  ;;  %2635 = vrot.lane.b32.xlu1 %v4396_v21, %s4530_s14  ;;  %v2606_v21 = vadd.f32 %v2584_v44, %v681_v54 }
 0xf56   : > { %v4149_v58 = vmul.f32 -1.442695, %v2606_v21 }
 0xf59   : > { %v4398_v22 = vpop.eup %4397 }
 0xf5a   : > { %v2525_v37 = vadd.f32 1.0, %v4398_v22 }
 0xf5c   : > { %4399 = vrcp.f32 %v2525_v37  ;;  %v2537_v62 = vand.u32 2147483648, %v2525_v37  ;;  %v2535_v3 = vand.u32 2147483647, %v2525_v37  ;;  %vm2531_vm4 = vweird.f32 %v2525_v37 }
 0xf5e   : > { %v2538_v11 = vor.u32 1.1754944e-38, %v2537_v62  ;;  %vm2536_vm3 = vcmp.eq.f32.partialorder %v2535_v3, 8.507059e+37 }
 0xf62   : > { %v4400_v42 = vpop.eup %4399 }
 0xf63   : > { %v2527_v46 = vmul.f32 %v4400_v42, %v2525_v37  ;;  %vm2532_vm5 = vweird.f32 %v4400_v42 }
 0xf64   : > { %vm2533_vm1 = vmor %vm2531_vm4, %vm2532_vm5 }
 0xf65   : > { %v2528_v60 = vsub.f32 1.0, %v2527_v46 }
 0xf67   : > { %v2529_v16 = vmul.f32 %v4400_v42, %v2528_v60 }
 0xf69   : > { %v2530_v63 = vadd.f32 %v4400_v42, %v2529_v16 }
 0xf6b   : > { %v2534_v8 = vsel %vm2533_vm1, %v4400_v42, %v2530_v63 }
 0xf6c   : > { %v2539_v56 = vsel %vm2536_vm3, %v2538_v11, %v2534_v8 }
 0xf6d   : > { %v2541_v10 = vmul.f32 %v2539_v56, %v2518_v57  ;;  %v2544_v21 = vsub.f32 1.0, %v2539_v56 }
 0xf6f   : > { %v2542_v34 = vadd.f32 %v2541_v10, %v5486_v48 }
 0xf71   : > { %4401 = vtanh.f32 %v2542_v34 }
 0xf72   : > { %4403 = vpow2.f32 %v4149_v58 }
 0xf77   : > { %v4402_v15 = vpop.eup %4401 }
 0xf78   : > { %2546 = vrot.lane.b32.xlu2 %v4402_v15, %s4530_s14  ;;  %v4404_v49 = vpop.eup %4403 }
 0xf79   : > { %v2610_v22 = vadd.f32 1.0, %v4404_v49 }
 0xf7b   : > { %4405 = vrcp.f32 %v2610_v22  ;;  %v2622_v62 = vand.u32 2147483648, %v2610_v22  ;;  %vm2616_vm10 = vweird.f32 %v2610_v22  ;;  %v2620_v16 = vand.u32 2147483647, %v2610_v22 }
 0xf7d   : > { %v2623_v3 = vor.u32 1.1754944e-38, %v2622_v62  ;;  %vm2621_vm4 = vcmp.eq.f32.partialorder %v2620_v16, 8.507059e+37 }
 0xf81   : > { %v4406_v37 = vpop.eup %4405 }
 0xf82   : > { %v2612_v46 = vmul.f32 %v4406_v37, %v2610_v22  ;;  %vm2617_vm9 = vweird.f32 %v4406_v37 }
 0xf83   : > { %vm2618_vm5 = vmor %vm2616_vm10, %vm2617_vm9 }
 0xf84   : > { %v2613_v60 = vsub.f32 1.0, %v2612_v46 }
 0xf86   : > { %v2614_v39 = vmul.f32 %v4406_v37, %v2613_v60 }
 0xf88   : > { %v2615_v42 = vadd.f32 %v4406_v37, %v2614_v39 }
 0xf8a   : > { %v2619_v48 = vsel %vm2618_vm5, %v4406_v37, %v2615_v42 }
 0xf8b   : > { %v2624_v63 = vsel %vm2621_vm4, %v2623_v3, %v2619_v48 }
 0xf8c   : > { %v2633_v44 = vsub.f32 1.0, %v2624_v63  ;;  %v2639_v11 = vmul.f32 %v2624_v63, %v5649_v35 }
 0xfc6   : > { %v2636_v54 = vpop.permute.xlu1 %2635 }
 0xfc7   : > { %v2638_v57 = vmul.f32 %v2636_v54, %v2633_v44 }
 0xfc9   : > { %v2640_v8 = vadd.f32 %v2639_v11, %v2638_v57  ;;  %v6274_v11 = vld [vmem:[#allocation30_spill] sm:$0xff] }
 0xfca   : > { %v593_v57 = vadd.f32 %v6274_v11, %v4911_v28 }
 0xfcb   : > { %v5708_v10 = vsel %vm2114_vm14, %v2640_v8, %v5649_v35  ;;  %v2650_v34 = vsel %vm2114_vm14, %v2640_v8, 0.0  ;;  %v2550_v35 = vmul.f32 %v2539_v56, %v5675_v6 }
 0xfcc   : > { %2652 = vst.msk [vmem:[#allocation4 + $0x30] sm:$0xff] %vm822_vm12, %v2650_v34  ;;  %v2721_v15 = vpack.c.bf16 %v5708_v10, %v5708_v10 }
 0xfce   : > { %4153 = vmatmul.msk.bf16.vlgmr.msrb.gmra.mxu2 %vm822_vm12, %v2721_v15  ;;  %4154 = vmatmul.msk.bf16.vlgmr.msra.gmra.mxu3 %vm822_vm12, %v2721_v15 }
 0xfcf   : > { %3067 = vmatpush.bf16.msrb.mxu2 %v4752_v0  ;;  %3080 = vmatpush.bf16.msra.mxu3 %v4829_v29 }
 0xfd2   : > { %v2547_v58 = vpop.permute.xlu2 %2546 }
 0xfd3   : > { %v2549_v49 = vmul.f32 %v2547_v58, %v2544_v21  ;;  %3068 = vmatpush.bf16.msrb.mxu2 %v4773_v7  ;;  %3081 = vmatpush.bf16.msra.mxu3 %v4841_v36 }
 0xfd5   : > { %v5722_v22 = vadd.f32 %v2550_v35, %v2549_v49 }
 0xfd7   : > { %v5728_v37 = vsel %vm2120_vm13, %v5722_v22, %v5675_v6  ;;  %3069 = vmatpush.bf16.msrb.mxu2 %v4791_v14  ;;  %3082 = vmatpush.bf16.msra.mxu3 %v4853_v40 }
 0xfd8   : > { %v2657_v56 = vpack.c.bf16 %v5728_v37, %v5728_v37 }
 0xfda   : > { %2659 = vrot.lane.b32.xlu0 %v2657_v56, %s4530_s14 }
 0xfdb   : > { %3070 = vmatpush.bf16.msrb.mxu2 %v4803_v20  ;;  %3083 = vmatpush.bf16.msra.mxu3 %v4865_v45 }
0x104c   : > { %v2660_v46 = vpop.permute.xlu0 %2659 }
0x104d   : > { %4150 = vmatmul.msk.bf16.vlgmr.msrb.gmra.mxu0 %vm822_vm12, %v2660_v46  ;;  %4151 = vmatmul.msk.bf16.vlgmr.msrb.gmra.mxu1 %vm822_vm12, %v2660_v46 }
0x104e   : > { %3006 = vmatpush.bf16.msrb.mxu0 %v4646_v19  ;;  %3019 = vmatpush.bf16.msrb.mxu1 %v4720_v52 }
0x1051   : > { %v2734_v6 = vpop.f32.mrf.mxu2  ;;  %v2747_v60 = vpop.f32.mrf.mxu3 }
0x1052   : > { %v2735_v39 = vadd.f32 %v2734_v6, %v4951_v9  ;;  %v2748_v42 = vadd.f32 %v2747_v60, %v4967_v32  ;;  %3007 = vmatpush.bf16.msrb.mxu0 %v4661_v25  ;;  %3020 = vmatpush.bf16.msrb.mxu1 %v4744_v61 }
0x1054   : > { %2796 = vrot.lane.b32.xlu2 %v2748_v42, %s4530_s14  ;;  %2752 = vrot.lane.b32.xlu1 %v2735_v39, %s4530_s14 }
0x1056   : > { %3008 = vmatpush.bf16.msrb.mxu0 %v4679_v31  ;;  %3021 = vmatpush.bf16.msrb.mxu1 %v4764_v4 }
0x1059   : > { %v2736_v62 = vpop.f32.mrf.mxu2  ;;  %v2749_v16 = vpop.f32.mrf.mxu3 }
0x105a   : > { %3009 = vmatpush.bf16.msrb.mxu0 %v4712_v47  ;;  %3022 = vmatpush.bf16.msrb.mxu1 %v4789_v13 }
0x10c6   : > { %v2753_v48 = vpop.permute.xlu1 %2752 }
0x10c7   : > { %v2755_v3 = vadd.f32 %v2753_v48, %v5419_v27 }
0x10c9   : > { %v4155_v63 = vmul.f32 -1.442695, %v2755_v3 }
0x10ca   : > { %v2673_v44 = vpop.f32.mrf.mxu0  ;;  %v2686_v54 = vpop.f32.mrf.mxu1 }
0x10cb   : > { %4407 = vpow2.f32 %v4155_v63  ;;  %v2674_v8 = vadd.f32 %v2673_v44, %v4913_v33 }
0x10cd   : > { %v2690_v34 = vadd.f32 %v2674_v8, %v593_v57  ;;  %v6275_v8 = vld [vmem:[#allocation13_spill] sm:$0xff] }
0x10cf   : > { %v4152_v15 = vmul.f32 -1.442695, %v2690_v34  ;;  %v678_v34 = vadd.f32 %v6275_v8, %v5012_v23 }
0x10d1   : > { %v4408_v21 = vpop.eup %4407  ;;  %4409 = vpow2.f32 %v4152_v15  ;;  %v2797_v15 = vpop.permute.xlu2 %2796 }
0x10d2   : > { %v2759_v58 = vadd.f32 1.0, %v4408_v21  ;;  %v2675_v35 = vpop.f32.mrf.mxu0  ;;  %v2688_v49 = vpop.f32.mrf.mxu1 }
0x10d4   : > { %4411 = vrcp.f32 %v2759_v58  ;;  %v2771_v39 = vand.u32 2147483648, %v2759_v58  ;;  %v2769_v62 = vand.u32 2147483647, %v2759_v58  ;;  %vm2765_vm3 = vweird.f32 %v2759_v58 }
0x10d6   : > { %v2772_v44 = vor.u32 1.1754944e-38, %v2771_v39  ;;  %vm2770_vm10 = vcmp.eq.f32.partialorder %v2769_v62, 8.507059e+37  ;;  %v2687_v39 = vadd.f32 %v2686_v54, %v4946_v2 }
0x10d7   : > { %v4410_v56 = vpop.eup %4409 }
0x10d8   : > { %v2694_v46 = vadd.f32 1.0, %v4410_v56 }
0x10da   : > { %v4412_v27 = vpop.eup %4411  ;;  %4413 = vrcp.f32 %v2694_v46  ;;  %v2706_v21 = vand.u32 2147483648, %v2694_v46  ;;  %v2704_v56 = vand.u32 2147483647, %v2694_v46  ;;  %vm2700_vm4 = vweird.f32 %v2694_v46 }
0x10db   : > { %v2761_v6 = vmul.f32 %v4412_v27, %v2759_v58  ;;  %vm2766_vm1 = vweird.f32 %v4412_v27 }
0x10dc   : > { %vm2767_vm9 = vmor %vm2765_vm3, %vm2766_vm1  ;;  %v2707_v58 = vor.u32 1.1754944e-38, %v2706_v21  ;;  %vm2705_vm1 = vcmp.eq.f32.partialorder %v2704_v56, 8.507059e+37 }
0x10dd   : > { %v2762_v60 = vsub.f32 1.0, %v2761_v6 }
0x10df   : > { %v2763_v42 = vmul.f32 %v4412_v27, %v2762_v60 }
0x10e0   : > { %v4414_v16 = vpop.eup %4413 }
0x10e1   : > { %v2764_v3 = vadd.f32 %v4412_v27, %v2763_v42  ;;  %v2696_v63 = vmul.f32 %v4414_v16, %v2694_v46  ;;  %vm2701_vm5 = vweird.f32 %v4414_v16  ;;  %v2775_v46 = vadd.f32 %v2753_v48, %v678_v34 }
0x10e2   : > { %vm2702_vm15 = vmor %vm2700_vm4, %vm2701_vm5 }
0x10e3   : > { %v2768_v11 = vsel %vm2767_vm9, %v4412_v27, %v2764_v3  ;;  %v2697_v57 = vsub.f32 1.0, %v2696_v63 }
0x10e4   : > { %v2773_v35 = vsel %vm2770_vm10, %v2772_v44, %v2768_v11  ;;  %v4156_v11 = vmul.f32 -1.442695, %v2775_v46 }
0x10e5   : > { %v2698_v49 = vmul.f32 %v4414_v16, %v2697_v57  ;;  %v2799_v6 = vmul.f32 %v2797_v15, %v2773_v35 }
0x10e7   : > { %v2699_v60 = vadd.f32 %v4414_v16, %v2698_v49  ;;  %v2800_v42 = vadd.f32 %v2799_v6, %v678_v34 }
0x10e9   : > { %v2703_v27 = vsel %vm2702_vm15, %v4414_v16, %v2699_v60  ;;  %4415 = vtanh.f32 %v2800_v42 }
0x10ea   : > { %v2708_v62 = vsel %vm2705_vm1, %v2707_v58, %v2703_v27 }
0x10eb   : > { %v2710_v3 = vmul.f32 %v2708_v62, %v2687_v39 }
0x10ed   : > { %v2711_v63 = vadd.f32 %v2710_v3, %v5409_v17 }
0x10ef   : > { %v4416_v8 = vpop.eup %4415  ;;  %4417 = vtanh.f32 %v2711_v63 }
0x10f0   : > { %2804 = vrot.lane.b32.xlu0 %v4416_v8, %s4530_s14  ;;  %4419 = vpow2.f32 %v4156_v11  ;;  %v2713_v8 = vsub.f32 1.0, %v2708_v62  ;;  %v2719_v11 = vmul.f32 %v2708_v62, %v5728_v37 }
0x10f5   : > { %v4418_v44 = vpop.eup %4417 }
0x10f6   : > { %2715 = vrot.lane.b32.xlu1 %v4418_v44, %s4530_s14  ;;  %v4420_v57 = vpop.eup %4419 }
0x10f7   : > { %v2779_v15 = vadd.f32 1.0, %v4420_v57 }
0x10f9   : > { %4421 = vrcp.f32 %v2779_v15  ;;  %v2791_v17 = vand.u32 2147483648, %v2779_v15  ;;  %vm2785_vm3 = vweird.f32 %v2779_v15  ;;  %v2789_v56 = vand.u32 2147483647, %v2779_v15 }
0x10fb   : > { %v2792_v60 = vor.u32 1.1754944e-38, %v2791_v17  ;;  %vm2790_vm10 = vcmp.eq.f32.partialorder %v2789_v56, 8.507059e+37 }
0x10ff   : > { %v4422_v54 = vpop.eup %4421 }
0x1100   : > { %v2781_v16 = vmul.f32 %v4422_v54, %v2779_v15  ;;  %vm2786_vm15 = vweird.f32 %v4422_v54 }
0x1101   : > { %vm2787_vm9 = vmor %vm2785_vm3, %vm2786_vm15 }
0x1102   : > { %v2782_v21 = vsub.f32 1.0, %v2781_v16 }
0x1104   : > { %v2783_v35 = vmul.f32 %v4422_v54, %v2782_v21 }
0x1106   : > { %v2784_v49 = vadd.f32 %v4422_v54, %v2783_v35 }
0x1108   : > { %v2788_v6 = vsel %vm2787_vm9, %v4422_v54, %v2784_v49 }
0x1109   : > { %v2793_v42 = vsel %vm2790_vm10, %v2792_v60, %v2788_v6  ;;  %v6276_v60 = vld [vmem:[#allocation31_spill] sm:$0xff] }
0x110a   : > { %v2802_v48 = vsub.f32 1.0, %v2793_v42  ;;  %v2808_v58 = vmul.f32 %v2793_v42, %v5708_v10  ;;  %v595_v42 = vadd.f32 %v6276_v60, %v4911_v28 }
0x1162   : > { %v2805_v34 = vpop.permute.xlu0 %2804 }
0x1163   : > { %v2807_v39 = vmul.f32 %v2805_v34, %v2802_v48 }
0x1165   : > { %v2809_v27 = vadd.f32 %v2808_v58, %v2807_v39 }
0x1167   : > { %v5765_v3 = vsel %vm1931_vm11, %v2809_v27, %v5708_v10  ;;  %v2819_v63 = vsel %vm1931_vm11, %v2809_v27, 0.0 }
0x1168   : > { %2821 = vst.msk [vmem:[#allocation4 + $0x28] sm:$0xff] %vm822_vm12, %v2819_v63  ;;  %v2890_v44 = vpack.c.bf16 %v5765_v3, %v5765_v3  ;;  %v2716_v46 = vpop.permute.xlu1 %2715 }
0x1169   : > { %v2718_v57 = vmul.f32 %v2716_v46, %v2713_v8 }
0x116a   : > { %4160 = vmatmul.msk.bf16.vlgmr.msra.gmra.mxu2 %vm822_vm12, %v2890_v44  ;;  %4161 = vmatmul.msk.bf16.vlgmr.msrb.gmra.mxu3 %vm822_vm12, %v2890_v44 }
0x116b   : > { %v5775_v15 = vadd.f32 %v2719_v11, %v2718_v57  ;;  %3236 = vmatpush.bf16.msra.mxu2 %v4752_v0  ;;  %3249 = vmatpush.bf16.msrb.mxu3 %v4829_v29 }
0x116d   : > { %v5783_v10 = vsel %vm1937_vm0, %v5775_v15, %v5728_v37 }
0x116e   : > { %v2826_v62 = vpack.c.bf16 %v5783_v10, %v5783_v10 }
0x116f   : > { %3237 = vmatpush.bf16.msra.mxu2 %v4773_v7  ;;  %3250 = vmatpush.bf16.msrb.mxu3 %v4841_v36 }
0x1170   : > { %2828 = vrot.lane.b32.xlu2 %v2826_v62, %s4530_s14 }
0x1173   : > { %3238 = vmatpush.bf16.msra.mxu2 %v4791_v14  ;;  %3251 = vmatpush.bf16.msrb.mxu3 %v4853_v40 }
0x1177   : > { %3239 = vmatpush.bf16.msra.mxu2 %v4803_v20  ;;  %3252 = vmatpush.bf16.msrb.mxu3 %v4865_v45 }
0x11ca   : > { %v2829_v54 = vpop.permute.xlu2 %2828 }
0x11cb   : > { %4157 = vmatmul.msk.bf16.vlgmr.msra.gmra.mxu0 %vm822_vm12, %v2829_v54  ;;  %4158 = vmatmul.msk.bf16.vlgmr.msra.gmra.mxu1 %vm822_vm12, %v2829_v54 }
0x11cc   : > { %3175 = vmatpush.bf16.msra.mxu0 %v4646_v19  ;;  %3188 = vmatpush.bf16.msra.mxu1 %v4720_v52 }
0x11d0   : > { %3176 = vmatpush.bf16.msra.mxu0 %v4661_v25  ;;  %3189 = vmatpush.bf16.msra.mxu1 %v4744_v61 }
0x11d4   : > { %3177 = vmatpush.bf16.msra.mxu0 %v4679_v31  ;;  %3190 = vmatpush.bf16.msra.mxu1 %v4764_v4 }
0x11d8   : > { %3178 = vmatpush.bf16.msra.mxu0 %v4712_v47  ;;  %3191 = vmatpush.bf16.msra.mxu1 %v4789_v13 }
0x11ed   : > { %v2903_v37 = vpop.f32.mrf.mxu2  ;;  %v2916_v16 = vpop.f32.mrf.mxu3 }
0x11ee   : > { %v2904_v21 = vadd.f32 %v2903_v37, %v4951_v9  ;;  %v2917_v35 = vadd.f32 %v2916_v16, %v4967_v32 }
0x11f0   : > { %2965 = vrot.lane.b32.xlu1 %v2917_v35, %s4530_s14  ;;  %2921 = vrot.lane.b32.xlu0 %v2904_v21, %s4530_s14 }
0x11f5   : > { %v2905_v49 = vpop.f32.mrf.mxu2  ;;  %v2918_v17 = vpop.f32.mrf.mxu3 }
0x1248   : > { %v2842_v56 = vpop.f32.mrf.mxu0  ;;  %v2855_v6 = vpop.f32.mrf.mxu1 }
0x1249   : > { %v2843_v48 = vadd.f32 %v2842_v56, %v4913_v33  ;;  %v2856_v17 = vadd.f32 %v2855_v6, %v4946_v2 }
0x124b   : > { %v2859_v34 = vadd.f32 %v2843_v48, %v595_v42 }
0x124d   : > { %v4159_v58 = vmul.f32 -1.442695, %v2859_v34 }
0x124f   : > { %4423 = vpow2.f32 %v4159_v58 }
0x1250   : > { %v2844_v39 = vpop.f32.mrf.mxu0  ;;  %v2857_v27 = vpop.f32.mrf.mxu1 }
0x1255   : > { %v4424_v63 = vpop.eup %4423 }
0x1256   : > { %v2863_v8 = vadd.f32 1.0, %v4424_v63 }
0x1258   : > { %4425 = vrcp.f32 %v2863_v8  ;;  %v2875_v57 = vand.u32 2147483648, %v2863_v8  ;;  %v2873_v37 = vand.u32 2147483647, %v2863_v8  ;;  %vm2869_vm4 = vweird.f32 %v2863_v8 }
0x125a   : > { %v2876_v49 = vor.u32 1.1754944e-38, %v2875_v57  ;;  %vm2874_vm15 = vcmp.eq.f32.partialorder %v2873_v37, 8.507059e+37  ;;  %v6277_v37 = vld [vmem:[#allocation12_spill] sm:$0xff] }
0x125e   : > { %v4426_v44 = vpop.eup %4425 }
0x125f   : > { %v2865_v46 = vmul.f32 %v4426_v44, %v2863_v8  ;;  %vm2870_vm5 = vweird.f32 %v4426_v44 }
0x1260   : > { %vm2871_vm1 = vmor %vm2869_vm4, %vm2870_vm5 }
0x1261   : > { %v2866_v11 = vsub.f32 1.0, %v2865_v46 }
0x1262   : > { %v2922_v62 = vpop.permute.xlu0 %2921 }
0x1263   : > { %v2867_v54 = vmul.f32 %v4426_v44, %v2866_v11  ;;  %v2924_v16 = vadd.f32 %v2922_v62, %v5345_v38 }
0x1265   : > { %v2868_v21 = vadd.f32 %v4426_v44, %v2867_v54  ;;  %v4162_v35 = vmul.f32 -1.442695, %v2924_v16  ;;  %v676_v16 = vadd.f32 %v6277_v37, %v5012_v23 }
0x1267   : > { %v2872_v56 = vsel %vm2871_vm1, %v4426_v44, %v2868_v21  ;;  %4427 = vpow2.f32 %v4162_v35 }
0x1268   : > { %v2877_v60 = vsel %vm2874_vm15, %v2876_v49, %v2872_v56 }
0x1269   : > { %v2879_v42 = vmul.f32 %v2877_v60, %v2856_v17  ;;  %v2944_v17 = vadd.f32 %v2922_v62, %v676_v16  ;;  %v2882_v62 = vsub.f32 1.0, %v2877_v60 }
0x126b   : > { %v2880_v48 = vadd.f32 %v2879_v42, %v5331_v1  ;;  %v2966_v1 = vpop.permute.xlu1 %2965  ;;  %v4163_v56 = vmul.f32 -1.442695, %v2944_v17 }
0x126d   : > { %v4428_v34 = vpop.eup %4427  ;;  %4429 = vtanh.f32 %v2880_v48 }
0x126e   : > { %v2928_v58 = vadd.f32 1.0, %v4428_v34 }
0x1270   : > { %4431 = vrcp.f32 %v2928_v58  ;;  %v2940_v8 = vand.u32 2147483648, %v2928_v58  ;;  %v2938_v6 = vand.u32 2147483647, %v2928_v58  ;;  %vm2934_vm9 = vweird.f32 %v2928_v58 }
0x1272   : > { %v2941_v11 = vor.u32 1.1754944e-38, %v2940_v8  ;;  %vm2939_vm5 = vcmp.eq.f32.partialorder %v2938_v6, 8.507059e+37 }
0x1273   : > { %v4430_v39 = vpop.eup %4429 }
0x1274   : > { %2884 = vrot.lane.b32.xlu0 %v4430_v39, %s4530_s14 }
0x1276   : > { %v4432_v38 = vpop.eup %4431 }
0x1277   : > { %v2930_v27 = vmul.f32 %v4432_v38, %v2928_v58  ;;  %vm2935_vm3 = vweird.f32 %v4432_v38 }
0x1278   : > { %vm2936_vm10 = vmor %vm2934_vm9, %vm2935_vm3 }
0x1279   : > { %v2931_v63 = vsub.f32 1.0, %v2930_v27 }
0x127b   : > { %v2932_v46 = vmul.f32 %v4432_v38, %v2931_v63 }
0x127d   : > { %v2933_v44 = vadd.f32 %v4432_v38, %v2932_v46 }
0x127f   : > { %v2937_v57 = vsel %vm2936_vm10, %v4432_v38, %v2933_v44 }
0x1280   : > { %v2942_v54 = vsel %vm2939_vm5, %v2941_v11, %v2937_v57 }
0x1281   : > { %v2968_v21 = vmul.f32 %v2966_v1, %v2942_v54  ;;  %v2888_v54 = vmul.f32 %v2877_v60, %v5783_v10 }
0x1283   : > { %v2969_v35 = vadd.f32 %v2968_v21, %v676_v16 }
0x1285   : > { %4433 = vtanh.f32 %v2969_v35 }
0x1286   : > { %4435 = vpow2.f32 %v4163_v56 }
0x128b   : > { %v4434_v49 = vpop.eup %4433 }
0x128c   : > { %2973 = vrot.lane.b32.xlu2 %v4434_v49, %s4530_s14  ;;  %v4436_v42 = vpop.eup %4435 }
0x128d   : > { %v2948_v48 = vadd.f32 1.0, %v4436_v42 }
0x128f   : > { %4437 = vrcp.f32 %v2948_v48  ;;  %v2960_v63 = vand.u32 2147483648, %v2948_v48  ;;  %vm2954_vm1 = vweird.f32 %v2948_v48  ;;  %v2958_v8 = vand.u32 2147483647, %v2948_v48 }
0x1291   : > { %v2961_v6 = vor.u32 1.1754944e-38, %v2960_v63  ;;  %vm2959_vm3 = vcmp.eq.f32.partialorder %v2958_v8, 8.507059e+37 }
0x1295   : > { %v4438_v34 = vpop.eup %4437 }
0x1296   : > { %v2950_v58 = vmul.f32 %v4438_v34, %v2948_v48  ;;  %vm2955_vm4 = vweird.f32 %v4438_v34 }
0x1297   : > { %vm2956_vm15 = vmor %vm2954_vm1, %vm2955_vm4 }
0x1298   : > { %v2951_v39 = vsub.f32 1.0, %v2950_v58 }
0x129a   : > { %v2952_v38 = vmul.f32 %v4438_v34, %v2951_v39 }
0x129c   : > { %v2953_v27 = vadd.f32 %v4438_v34, %v2952_v38 }
0x129e   : > { %v2957_v46 = vsel %vm2956_vm15, %v4438_v34, %v2953_v27 }
0x129f   : > { %v2962_v44 = vsel %vm2959_vm3, %v2961_v6, %v2957_v46 }
0x12a0   : > { %v2971_v11 = vsub.f32 1.0, %v2962_v44  ;;  %v2977_v16 = vmul.f32 %v2962_v44, %v5765_v3 }
0x12e6   : > { %v2885_v57 = vpop.permute.xlu0 %2884  ;;  %v2974_v1 = vpop.permute.xlu2 %2973 }
0x12e7   : > { %v2887_v37 = vmul.f32 %v2885_v57, %v2882_v62  ;;  %v2976_v21 = vmul.f32 %v2974_v1, %v2971_v11  ;;  %v6278_v57 = vld [vmem:[#allocation32_spill] sm:$0xff] }
0x12e8   : > { %v598_v1 = vadd.f32 %v6278_v57, %v4911_v28 }
0x12e9   : > { %v5820_v35 = vadd.f32 %v2888_v54, %v2887_v37  ;;  %v2978_v49 = vadd.f32 %v2977_v16, %v2976_v21 }
0x12eb   : > { %v5825_v17 = vsel %vm1748_vm8, %v2978_v49, %v5765_v3  ;;  %v2988_v56 = vsel %vm1748_vm8, %v2978_v49, 0.0  ;;  %v5833_v60 = vsel %vm1754_vm6, %v5820_v35, %v5783_v10  ;;  %v2981_v41 = vsel %vm1754_vm6, %v5820_v35, 0.0  ;;  %v3693_v35 = vld [vmem:[#allocation4 + $0x68] sm:$0xff] }
0x12ec   : > { %2990 = vst.msk [vmem:[#allocation4 + $0x20] sm:$0xff] %vm822_vm12, %v2988_v56  ;;  %v3059_v42 = vpack.c.bf16 %v5825_v17, %v5825_v17  ;;  %v2995_v48 = vpack.c.bf16 %v5833_v60, %v5833_v60 }
0x12ee   : > { %2997 = vrot.lane.b32.xlu1 %v2995_v48, %s4530_s14  ;;  %4167 = vmatmul.msk.bf16.vlgmr.msrb.gmra.mxu2 %vm822_vm12, %v3059_v42 }
0x12ef   : > { %4168 = vmatmul.msk.bf16.vlgmr.msra.gmra.mxu3 %vm822_vm12, %v3059_v42  ;;  %3405 = vmatpush.bf16.msrb.mxu2 %v4752_v0 }
0x12f0   : > { %3418 = vmatpush.bf16.msra.mxu3 %v4829_v29 }
0x12f3   : > { %3406 = vmatpush.bf16.msrb.mxu2 %v4773_v7 }
0x12f4   : > { %3419 = vmatpush.bf16.msra.mxu3 %v4841_v36 }
0x12f7   : > { %3407 = vmatpush.bf16.msrb.mxu2 %v4791_v14 }
0x12f8   : > { %3420 = vmatpush.bf16.msra.mxu3 %v4853_v40 }
0x12fb   : > { %3408 = vmatpush.bf16.msrb.mxu2 %v4803_v20 }
0x12fc   : > { %3421 = vmatpush.bf16.msra.mxu3 %v4865_v45 }
0x1360   : > { %v2998_v3 = vpop.permute.xlu1 %2997 }
0x1361   : > { %4164 = vmatmul.msk.bf16.vlgmr.msrb.gmra.mxu0 %vm822_vm12, %v2998_v3  ;;  %4165 = vmatmul.msk.bf16.vlgmr.msrb.gmra.mxu1 %vm822_vm12, %v2998_v3 }
0x1362   : > { %3344 = vmatpush.bf16.msrb.mxu0 %v4646_v19  ;;  %3357 = vmatpush.bf16.msrb.mxu1 %v4720_v52 }
0x1366   : > { %3345 = vmatpush.bf16.msrb.mxu0 %v4661_v25  ;;  %3358 = vmatpush.bf16.msrb.mxu1 %v4744_v61 }
0x136a   : > { %3346 = vmatpush.bf16.msrb.mxu0 %v4679_v31  ;;  %3359 = vmatpush.bf16.msrb.mxu1 %v4764_v4 }
0x136e   : > { %3347 = vmatpush.bf16.msrb.mxu0 %v4712_v47  ;;  %3360 = vmatpush.bf16.msrb.mxu1 %v4789_v13 }
0x1371   : > { %v3072_v10 = vpop.f32.mrf.mxu2 }
0x1372   : > { %v3073_v34 = vadd.f32 %v3072_v10, %v4951_v9  ;;  %v3085_v58 = vpop.f32.mrf.mxu3 }
0x1373   : > { %v3086_v39 = vadd.f32 %v3085_v58, %v4967_v32 }
0x1374   : > { %3090 = vrot.lane.b32.xlu2 %v3073_v34, %s4530_s14 }
0x1375   : > { %3134 = vrot.lane.b32.xlu0 %v3086_v39, %s4530_s14 }
0x1379   : > { %v3074_v38 = vpop.f32.mrf.mxu2 }
0x137a   : > { %v3087_v27 = vpop.f32.mrf.mxu3 }
0x13ce   : > { %v3091_v63 = vpop.permute.xlu2 %3090 }
0x13cf   : > { %v3093_v8 = vadd.f32 %v3091_v63, %v5264_v12 }
0x13d1   : > { %v4169_v46 = vmul.f32 -1.442695, %v3093_v8 }
0x13d3   : > { %4439 = vpow2.f32 %v4169_v46 }
0x13d9   : > { %v4440_v6 = vpop.eup %4439 }
0x13da   : > { %v3097_v44 = vadd.f32 1.0, %v4440_v6  ;;  %v6279_v6 = vld [vmem:[#allocation10_spill] sm:$0xff] }
0x13dc   : > { %4441 = vrcp.f32 %v3097_v44  ;;  %v3109_v48 = vand.u32 2147483648, %v3097_v44  ;;  %v3107_v10 = vand.u32 2147483647, %v3097_v44  ;;  %vm3103_vm10 = vweird.f32 %v3097_v44 }
0x13de   : > { %v3011_v62 = vpop.f32.mrf.mxu0  ;;  %v3024_v11 = vpop.f32.mrf.mxu1  ;;  %v3110_v58 = vor.u32 1.1754944e-38, %v3109_v48  ;;  %vm3108_vm4 = vcmp.eq.f32.partialorder %v3107_v10, 8.507059e+37 }
0x13df   : > { %v3012_v54 = vadd.f32 %v3011_v62, %v4913_v33  ;;  %v673_v62 = vadd.f32 %v6279_v6, %v5012_v23  ;;  %v3025_v48 = vadd.f32 %v3024_v11, %v4946_v2 }
0x13e1   : > { %v3028_v37 = vadd.f32 %v3012_v54, %v598_v1 }
0x13e2   : > { %v4442_v16 = vpop.eup %4441 }
0x13e3   : > { %v4166_v21 = vmul.f32 -1.442695, %v3028_v37  ;;  %v3099_v49 = vmul.f32 %v4442_v16, %v3097_v44  ;;  %vm3104_vm9 = vweird.f32 %v4442_v16 }
0x13e4   : > { %vm3105_vm5 = vmor %vm3103_vm10, %vm3104_vm9 }
0x13e5   : > { %4443 = vpow2.f32 %v4166_v21  ;;  %v3100_v56 = vsub.f32 1.0, %v3099_v49 }
0x13e6   : > { %v3013_v42 = vpop.f32.mrf.mxu0  ;;  %v3026_v12 = vpop.f32.mrf.mxu1 }
0x13e7   : > { %v3101_v3 = vmul.f32 %v4442_v16, %v3100_v56  ;;  %v3135_v46 = vpop.permute.xlu0 %3134 }
0x13e9   : > { %v3102_v34 = vadd.f32 %v4442_v16, %v3101_v3 }
0x13eb   : > { %v4444_v39 = vpop.eup %4443  ;;  %v3106_v38 = vsel %vm3105_vm5, %v4442_v16, %v3102_v34 }
0x13ec   : > { %v3032_v27 = vadd.f32 1.0, %v4444_v39  ;;  %v3111_v8 = vsel %vm3108_vm4, %v3110_v58, %v3106_v38  ;;  %v3113_v38 = vadd.f32 %v3091_v63, %v673_v62 }
0x13ed   : > { %v3137_v57 = vmul.f32 %v3135_v46, %v3111_v8 }
0x13ee   : > { %4445 = vrcp.f32 %v3032_v27  ;;  %v3044_v44 = vand.u32 2147483648, %v3032_v27  ;;  %v3042_v16 = vand.u32 2147483647, %v3032_v27  ;;  %vm3038_vm15 = vweird.f32 %v3032_v27 }
0x13ef   : > { %v3138_v1 = vadd.f32 %v3137_v57, %v673_v62  ;;  %v4170_v8 = vmul.f32 -1.442695, %v3113_v38  ;;  %v6280_v38 = vld [vmem:[#allocation42_spill] sm:$0xff] }
0x13f0   : > { %v3045_v12 = vor.u32 1.1754944e-38, %v3044_v44  ;;  %vm3043_vm9 = vcmp.eq.f32.partialorder %v3042_v16, 8.507059e+37 }
0x13f1   : > { %4447 = vtanh.f32 %v3138_v1 }
0x13f4   : > { %v4446_v54 = vpop.eup %4445 }
0x13f5   : > { %v3034_v37 = vmul.f32 %v4446_v54, %v3032_v27  ;;  %vm3039_vm1 = vweird.f32 %v4446_v54 }
0x13f6   : > { %vm3040_vm3 = vmor %vm3038_vm15, %vm3039_vm1  ;;  %vm6281_vm15 = vcmp.eq.s32.totalorder %v6280_v38, 1 }
0x13f7   : > { %v4448_v21 = vpop.eup %4447  ;;  %v3035_v49 = vsub.f32 1.0, %v3034_v37 }
0x13f8   : > { %3142 = vrot.lane.b32.xlu1 %v4448_v21, %s4530_s14 }
0x13f9   : > { %v3036_v56 = vmul.f32 %v4446_v54, %v3035_v49 }
0x13fb   : > { %v3037_v42 = vadd.f32 %v4446_v54, %v3036_v56 }
0x13fd   : > { %v3041_v3 = vsel %vm3040_vm3, %v4446_v54, %v3037_v42  ;;  %vm6282_vm3 = vmmov %vm6281_vm15 }
0x13fe   : > { %v3046_v10 = vsel %vm3043_vm9, %v3045_v12, %v3041_v3 }
0x13ff   : > { %v3048_v34 = vmul.f32 %v3046_v10, %v3025_v48  ;;  %v3057_v63 = vmul.f32 %v3046_v10, %v5833_v60 }
0x1401   : > { %v3049_v58 = vadd.f32 %v3048_v34, %v5256_v50  ;;  %v3051_v50 = vsub.f32 1.0, %v3046_v10 }
0x1403   : > { %4449 = vtanh.f32 %v3049_v58 }
0x1404   : > { %4451 = vpow2.f32 %v4170_v8 }
0x1409   : > { %v4450_v39 = vpop.eup %4449 }
0x140a   : > { %3053 = vrot.lane.b32.xlu2 %v4450_v39, %s4530_s14  ;;  %v4452_v46 = vpop.eup %4451 }
0x140b   : > { %v3117_v6 = vadd.f32 1.0, %v4452_v46 }
0x140d   : > { %4453 = vrcp.f32 %v3117_v6  ;;  %v3129_v37 = vand.u32 2147483648, %v3117_v6  ;;  %vm3123_vm5 = vweird.f32 %v3117_v6  ;;  %v3127_v21 = vand.u32 2147483647, %v3117_v6 }
0x140f   : > { %v3130_v56 = vor.u32 1.1754944e-38, %v3129_v37  ;;  %vm3128_vm1 = vcmp.eq.f32.partialorder %v3127_v21, 8.507059e+37 }
0x1413   : > { %v4454_v27 = vpop.eup %4453 }
0x1414   : > { %v3119_v57 = vmul.f32 %v4454_v27, %v3117_v6  ;;  %vm3124_vm10 = vweird.f32 %v4454_v27 }
0x1415   : > { %vm3125_vm4 = vmor %vm3123_vm5, %vm3124_vm10 }
0x1416   : > { %v3120_v1 = vsub.f32 1.0, %v3119_v57  ;;  %v6284_v57 = vld [vmem:[#allocation37_spill] sm:$0xff] }
0x1418   : > { %v3121_v11 = vmul.f32 %v4454_v27, %v3120_v1 }
0x141a   : > { %v3122_v54 = vadd.f32 %v4454_v27, %v3121_v11 }
0x141c   : > { %v3126_v49 = vsel %vm3125_vm4, %v4454_v27, %v3122_v54 }
0x141d   : > { %v3131_v16 = vsel %vm3128_vm1, %v3130_v56, %v3126_v49 }
0x141e   : > { %v3140_v12 = vsub.f32 1.0, %v3131_v16  ;;  %v3146_v58 = vmul.f32 %v3131_v16, %v5825_v17 }
0x1464   : > { %v3054_v44 = vpop.permute.xlu2 %3053 }
0x1465   : > { %v3056_v62 = vmul.f32 %v3054_v44, %v3051_v50 }
0x1467   : > { %v5876_v42 = vadd.f32 %v3057_v63, %v3056_v62 }
0x1469   : > { %v5882_v48 = vsel %vm1571_vm2, %v5876_v42, %v5833_v60 }
0x146a   : > { %v3143_v3 = vpop.permute.xlu1 %3142  ;;  %v3164_v34 = vpack.c.bf16 %v5882_v48, %v5882_v48 }
0x146b   : > { %v3145_v39 = vmul.f32 %v3143_v3, %v3140_v12 }
0x146c   : > { %3166 = vrot.lane.b32.xlu0 %v3164_v34, %s4530_s14 }
0x146d   : > { %v3147_v10 = vadd.f32 %v3146_v58, %v3145_v39 }
0x146f   : > { %v5891_v8 = vsel %vm6281_vm15, %v3147_v10, %v5825_v17  ;;  %v3157_v46 = vsel %vm6282_vm3, %v3147_v10, 0.0  ;;  %v6285_v10 = vld [vmem:[#allocation36_spill] sm:$0xff] }
0x1470   : > { %3159 = vst.msk [vmem:[#allocation4 + $0x18] sm:$0xff] %vm822_vm12, %v3157_v46  ;;  %v3228_v60 = vpack.c.bf16 %v5891_v8, %v5891_v8 }
0x1472   : > { %4174 = vmatmul.msk.bf16.vlgmr.msra.gmra.mxu2 %vm822_vm12, %v3228_v60  ;;  %4175 = vmatmul.msk.bf16.vlgmr.msrb.gmra.mxu3 %vm822_vm12, %v3228_v60 }
0x1473   : > { %3574 = vmatpush.bf16.msra.mxu2 %v4752_v0  ;;  %3587 = vmatpush.bf16.msrb.mxu3 %v4829_v29 }
0x1477   : > { %3575 = vmatpush.bf16.msra.mxu2 %v4773_v7  ;;  %3588 = vmatpush.bf16.msrb.mxu3 %v4841_v36  ;;  %v3683_v26 = vld [vmem:[#allocation4 + $0x18] sm:$0xff] }
0x147b   : > { %3576 = vmatpush.bf16.msra.mxu2 %v4791_v14  ;;  %3589 = vmatpush.bf16.msrb.mxu3 %v4853_v40 }
0x147f   : > { %3577 = vmatpush.bf16.msra.mxu2 %v4803_v20  ;;  %3590 = vmatpush.bf16.msrb.mxu3 %v4865_v45 }
0x14de   : > { %v3167_v17 = vpop.permute.xlu0 %3166 }
0x14df   : > { %4171 = vmatmul.msk.bf16.vlgmr.msra.gmra.mxu0 %vm822_vm12, %v3167_v17  ;;  %4172 = vmatmul.msk.bf16.vlgmr.msra.gmra.mxu1 %vm822_vm12, %v3167_v17 }
0x14e0   : > { %3513 = vmatpush.bf16.msra.mxu0 %v4646_v19  ;;  %3526 = vmatpush.bf16.msra.mxu1 %v4720_v52 }
0x14e4   : > { %3514 = vmatpush.bf16.msra.mxu0 %v4661_v25  ;;  %3527 = vmatpush.bf16.msra.mxu1 %v4744_v61 }
0x14e8   : > { %3515 = vmatpush.bf16.msra.mxu0 %v4679_v31  ;;  %3528 = vmatpush.bf16.msra.mxu1 %v4764_v4  ;;  %v6283_v4 = vld [vmem:[#allocation33_spill] sm:$0xff] }
0x14e9   : > { %v600_v20 = vadd.f32 %v6283_v4, %v4911_v28 }
0x14ec   : > { %3516 = vmatpush.bf16.msra.mxu0 %v4712_v47  ;;  %3529 = vmatpush.bf16.msra.mxu1 %v4789_v13 }
0x14f5   : > { %v3241_v0 = vpop.f32.mrf.mxu2  ;;  %v3254_v7 = vpop.f32.mrf.mxu3 }
0x14f6   : > { %v3242_v14 = vadd.f32 %v3241_v0, %v4951_v9  ;;  %v3255_v19 = vadd.f32 %v3254_v7, %v4967_v32 }
0x14f8   : > { %3303 = vrot.lane.b32.xlu2 %v3255_v19, %s4530_s14  ;;  %3259 = vrot.lane.b32.xlu1 %v3242_v14, %s4530_s14 }
0x14fd   : > { %v3243_v25 = vpop.f32.mrf.mxu2  ;;  %v3256_v52 = vpop.f32.mrf.mxu3 }
0x155c   : > { %v3180_v61 = vpop.f32.mrf.mxu0  ;;  %v3193_v31 = vpop.f32.mrf.mxu1 }
0x155d   : > { %v3181_v47 = vadd.f32 %v3180_v61, %v4913_v33  ;;  %v3194_v12 = vadd.f32 %v3193_v31, %v4946_v2  ;;  %v3304_v31 = vpop.permute.xlu2 %3303 }
0x155f   : > { %v3197_v13 = vadd.f32 %v3181_v47, %v600_v20  ;;  %v6286_v20 = vld [vmem:[#allocation9_spill] sm:$0xff] }
0x1560   : > { %v671_v47 = vadd.f32 %v6286_v20, %v5012_v23 }
0x1561   : > { %v4173_v29 = vmul.f32 -1.442695, %v3197_v13 }
0x1563   : > { %4455 = vpow2.f32 %v4173_v29 }
0x1564   : > { %v3182_v36 = vpop.f32.mrf.mxu0  ;;  %v3195_v40 = vpop.f32.mrf.mxu1 }
0x1569   : > { %v4456_v45 = vpop.eup %4455 }
0x156a   : > { %v3201_v6 = vadd.f32 1.0, %v4456_v45  ;;  %v3260_v27 = vpop.permute.xlu1 %3259 }
0x156b   : > { %v3262_v1 = vadd.f32 %v3260_v27, %v6284_v57  ;;  %v3282_v40 = vadd.f32 %v3260_v27, %v671_v47 }
0x156c   : > { %4457 = vrcp.f32 %v3201_v6  ;;  %v3213_v49 = vand.u32 2147483648, %v3201_v6  ;;  %v3211_v63 = vand.u32 2147483647, %v3201_v6  ;;  %vm3207_vm10 = vweird.f32 %v3201_v6 }
0x156d   : > { %v4176_v11 = vmul.f32 -1.442695, %v3262_v1  ;;  %v4177_v45 = vmul.f32 -1.442695, %v3282_v40 }
0x156e   : > { %v3214_v16 = vor.u32 1.1754944e-38, %v3213_v49  ;;  %vm3212_vm4 = vcmp.eq.f32.partialorder %v3211_v63, 8.507059e+37 }
0x156f   : > { %4459 = vpow2.f32 %v4176_v11 }
0x1572   : > { %v4458_v54 = vpop.eup %4457 }
0x1573   : > { %v3203_v37 = vmul.f32 %v4458_v54, %v3201_v6  ;;  %vm3208_vm9 = vweird.f32 %v4458_v54 }
0x1574   : > { %vm3209_vm5 = vmor %vm3207_vm10, %vm3208_vm9 }
0x1575   : > { %v4460_v21 = vpop.eup %4459  ;;  %v3204_v50 = vsub.f32 1.0, %v3203_v37 }
0x1576   : > { %v3266_v44 = vadd.f32 1.0, %v4460_v21 }
0x1577   : > { %v3205_v56 = vmul.f32 %v4458_v54, %v3204_v50 }
0x1578   : > { %4461 = vrcp.f32 %v3266_v44  ;;  %v3278_v0 = vand.u32 2147483648, %v3266_v44  ;;  %v3276_v14 = vand.u32 2147483647, %v3266_v44  ;;  %vm3272_vm15 = vweird.f32 %v3266_v44 }
0x1579   : > { %v3206_v62 = vadd.f32 %v4458_v54, %v3205_v56 }
0x157a   : > { %v3279_v25 = vor.u32 1.1754944e-38, %v3278_v0  ;;  %vm3277_vm9 = vcmp.eq.f32.partialorder %v3276_v14, 8.507059e+37 }
0x157b   : > { %v3210_v3 = vsel %vm3209_vm5, %v4458_v54, %v3206_v62 }
0x157c   : > { %v3215_v34 = vsel %vm3212_vm4, %v3214_v16, %v3210_v3  ;;  %v6287_v16 = vld [vmem:[#allocation38_spill] sm:$0xff] }
0x157d   : > { %v3217_v58 = vmul.f32 %v3215_v34, %v3194_v12  ;;  %v3220_v21 = vsub.f32 1.0, %v3215_v34  ;;  %v3226_v49 = vmul.f32 %v3215_v34, %v5882_v48 }
0x157e   : > { %v4462_v39 = vpop.eup %4461 }
0x157f   : > { %v3218_v46 = vadd.f32 %v3217_v58, %v6285_v10  ;;  %v3268_v60 = vmul.f32 %v4462_v39, %v3266_v44  ;;  %vm3273_vm1 = vweird.f32 %v4462_v39 }
0x1580   : > { %vm3274_vm3 = vmor %vm3272_vm15, %vm3273_vm1  ;;  %vm6288_vm1 = vcmp.eq.s32.totalorder %v6287_v16, 1 }
0x1581   : > { %4463 = vtanh.f32 %v3218_v46  ;;  %v3269_v17 = vsub.f32 1.0, %v3268_v60 }
0x1583   : > { %v3270_v7 = vmul.f32 %v4462_v39, %v3269_v17 }
0x1585   : > { %v3271_v19 = vadd.f32 %v4462_v39, %v3270_v7  ;;  %v6289_v7 = vld [vmem:[#allocation40_spill] sm:$0xff] }
0x1587   : > { %v4464_v52 = vpop.eup %4463  ;;  %v3275_v61 = vsel %vm3274_vm3, %v4462_v39, %v3271_v19  ;;  %vm6290_vm3 = vcmp.eq.s32.totalorder %v6289_v7, 1 }
0x1588   : > { %3222 = vrot.lane.b32.xlu1 %v4464_v52, %s4530_s14  ;;  %v3280_v4 = vsel %vm3277_vm9, %v3279_v25, %v3275_v61  ;;  %vm6291_vm9 = vmmov %vm6290_vm3 }
0x1589   : > { %v3306_v13 = vmul.f32 %v3304_v31, %v3280_v4 }
0x158b   : > { %v3307_v29 = vadd.f32 %v3306_v13, %v671_v47 }
0x158d   : > { %4465 = vtanh.f32 %v3307_v29  ;;  %v6292_v29 = vld [vmem:[#allocation34_spill] sm:$0xff] }
0x158e   : > { %4467 = vpow2.f32 %v4177_v45 }
0x1593   : > { %v4466_v36 = vpop.eup %4465 }
0x1594   : > { %3311 = vrot.lane.b32.xlu0 %v4466_v36, %s4530_s14  ;;  %v4468_v6 = vpop.eup %4467  ;;  %v603_v36 = vadd.f32 %v6292_v29, %v4911_v28 }
0x1595   : > { %v3286_v57 = vadd.f32 1.0, %v4468_v6 }
0x1597   : > { %4469 = vrcp.f32 %v3286_v57  ;;  %v3298_v63 = vand.u32 2147483648, %v3286_v57  ;;  %vm3292_vm5 = vweird.f32 %v3286_v57  ;;  %v3296_v27 = vand.u32 2147483647, %v3286_v57 }
0x1599   : > { %v3299_v34 = vor.u32 1.1754944e-38, %v3298_v63  ;;  %vm3297_vm15 = vcmp.eq.f32.partialorder %v3296_v27, 8.507059e+37 }
0x159d   : > { %v4470_v1 = vpop.eup %4469 }
0x159e   : > { %v3288_v11 = vmul.f32 %v4470_v1, %v3286_v57  ;;  %vm3293_vm10 = vweird.f32 %v4470_v1 }
0x159f   : > { %vm3294_vm4 = vmor %vm3292_vm5, %vm3293_vm10 }
0x15a0   : > { %v3289_v54 = vsub.f32 1.0, %v3288_v11 }
0x15a2   : > { %v3290_v37 = vmul.f32 %v4470_v1, %v3289_v54 }
0x15a4   : > { %v3291_v56 = vadd.f32 %v4470_v1, %v3290_v37 }
0x15a6   : > { %v3295_v3 = vsel %vm3294_vm4, %v4470_v1, %v3291_v56 }
0x15a7   : > { %v3300_v39 = vsel %vm3297_vm15, %v3299_v34, %v3295_v3 }
0x15a8   : > { %v3309_v10 = vsub.f32 1.0, %v3300_v39  ;;  %v3315_v60 = vmul.f32 %v3300_v39, %v5891_v8 }
0x15fa   : > { %v3223_v50 = vpop.permute.xlu1 %3222 }
0x15fb   : > { %v3225_v44 = vmul.f32 %v3223_v50, %v3220_v21 }
0x15fd   : > { %v5933_v62 = vadd.f32 %v3226_v49, %v3225_v44 }
0x15ff   : > { %v5939_v12 = vsel %vm6288_vm1, %v5933_v62, %v5882_v48 }
0x1600   : > { %v3333_v58 = vpack.c.bf16 %v5939_v12, %v5939_v12 }
0x1602   : > { %3335 = vrot.lane.b32.xlu2 %v3333_v58, %s4530_s14 }
0x1606   : > { %v3312_v46 = vpop.permute.xlu0 %3311 }
0x1607   : > { %v3314_v17 = vmul.f32 %v3312_v46, %v3309_v10  ;;  %v6293_v10 = vld [vmem:[#allocation23_spill] sm:$0xff] }
0x1609   : > { %v3316_v0 = vadd.f32 %v3315_v60, %v3314_v17 }
0x160b   : > { %v5948_v48 = vsel %vm6290_vm3, %v3316_v0, %v5891_v8  ;;  %v3326_v14 = vsel %vm6291_vm9, %v3316_v0, 0.0  ;;  %v6294_v0 = vld [vmem:[#allocation22_spill] sm:$0xff] }
0x160c   : > { %3328 = vst.msk [vmem:[#allocation4 + $0x10] sm:$0xff] %vm822_vm12, %v3326_v14  ;;  %v3397_v19 = vpack.c.bf16 %v5948_v48, %v5948_v48 }
0x160e   : > { %4181 = vmatmul.msk.bf16.vlgmr.msrb.gmra.mxu2 %vm822_vm12, %v3397_v19  ;;  %4182 = vmatmul.msk.bf16.vlgmr.msra.gmra.mxu3 %vm822_vm12, %v3397_v19 }
0x165c   : > { %v3336_v25 = vpop.permute.xlu2 %3335 }
0x165d   : > { %4178 = vmatmul.msk.bf16.vlgmr.msrb.gmra.mxu0 %vm822_vm12, %v3336_v25  ;;  %4179 = vmatmul.msk.bf16.vlgmr.msrb.gmra.mxu1 %vm822_vm12, %v3336_v25 }
0x1691   : > { %v3410_v52 = vpop.f32.mrf.mxu2  ;;  %v3423_v8 = vpop.f32.mrf.mxu3 }
0x1692   : > { %v3411_v61 = vadd.f32 %v3410_v52, %v4951_v9  ;;  %v3424_v31 = vadd.f32 %v3423_v8, %v4967_v32 }
0x1694   : > { %3472 = vrot.lane.b32.xlu1 %v3424_v31, %s4530_s14  ;;  %3428 = vrot.lane.b32.xlu0 %v3411_v61, %s4530_s14 }
0x1699   : > { %v3412_v4 = vpop.f32.mrf.mxu2  ;;  %v3425_v20 = vpop.f32.mrf.mxu3 }
0x16da   : > { %v3349_v47 = vpop.f32.mrf.mxu0  ;;  %v3362_v13 = vpop.f32.mrf.mxu1 }
0x16db   : > { %v3350_v40 = vadd.f32 %v3349_v47, %v4913_v33  ;;  %v3363_v3 = vadd.f32 %v3362_v13, %v4946_v2 }
0x16dd   : > { %v3366_v45 = vadd.f32 %v3350_v40, %v603_v36 }
0x16df   : > { %v4180_v6 = vmul.f32 -1.442695, %v3366_v45 }
0x16e1   : > { %4471 = vpow2.f32 %v4180_v6  ;;  %v6295_v6 = vld [vmem:[#allocation8_spill] sm:$0xff] }
0x16e2   : > { %v3351_v57 = vpop.f32.mrf.mxu0  ;;  %v3364_v1 = vpop.f32.mrf.mxu1 }
0x16e3   : > { %v668_v57 = vadd.f32 %v6295_v6, %v5012_v23 }
0x16e7   : > { %v4472_v11 = vpop.eup %4471 }
0x16e8   : > { %v3370_v54 = vadd.f32 1.0, %v4472_v11 }
0x16ea   : > { %4473 = vrcp.f32 %v3370_v54  ;;  %v3382_v49 = vand.u32 2147483648, %v3370_v54  ;;  %v3380_v56 = vand.u32 2147483647, %v3370_v54  ;;  %vm3376_vm5 = vweird.f32 %v3370_v54 }
0x16ec   : > { %v3383_v27 = vor.u32 1.1754944e-38, %v3382_v49  ;;  %vm3381_vm1 = vcmp.eq.f32.partialorder %v3380_v56, 8.507059e+37 }
0x16f0   : > { %v4474_v37 = vpop.eup %4473 }
0x16f1   : > { %v3372_v21 = vmul.f32 %v4474_v37, %v3370_v54  ;;  %vm3377_vm10 = vweird.f32 %v4474_v37 }
0x16f2   : > { %vm3378_vm4 = vmor %vm3376_vm5, %vm3377_vm10 }
0x16f3   : > { %v3373_v50 = vsub.f32 1.0, %v3372_v21 }
0x16f5   : > { %v3374_v44 = vmul.f32 %v4474_v37, %v3373_v50 }
0x16f7   : > { %v3375_v63 = vadd.f32 %v4474_v37, %v3374_v44 }
0x16f9   : > { %v3379_v58 = vsel %vm3378_vm4, %v4474_v37, %v3375_v63 }
0x16fa   : > { %v3384_v34 = vsel %vm3381_vm1, %v3383_v27, %v3379_v58 }
0x16fb   : > { %v3386_v39 = vmul.f32 %v3384_v34, %v3363_v3  ;;  %v3389_v63 = vsub.f32 1.0, %v3384_v34  ;;  %v3395_v58 = vmul.f32 %v3384_v34, %v5939_v12 }
0x16fd   : > { %v3387_v46 = vadd.f32 %v3386_v39, %v6293_v10 }
0x16ff   : > { %4475 = vtanh.f32 %v3387_v46 }
0x1705   : > { %v4476_v60 = vpop.eup %4475 }
0x1706   : > { %3391 = vrot.lane.b32.xlu0 %v4476_v60, %s4530_s14  ;;  %v3429_v17 = vpop.permute.xlu0 %3428  ;;  %v3473_v40 = vpop.permute.xlu1 %3472  ;;  %v6296_v60 = vld [vmem:[#allocation24_spill] sm:$0xff] }
0x1707   : > { %v3431_v14 = vadd.f32 %v3429_v17, %v6294_v0  ;;  %v3451_v37 = vadd.f32 %v3429_v17, %v668_v57  ;;  %vm6297_vm5 = vcmp.eq.s32.totalorder %v6296_v60, 1 }
0x1709   : > { %v4183_v19 = vmul.f32 -1.442695, %v3431_v14  ;;  %v4184_v21 = vmul.f32 -1.442695, %v3451_v37 }
0x170b   : > { %4477 = vpow2.f32 %v4183_v19 }
0x1711   : > { %v4478_v25 = vpop.eup %4477 }
0x1712   : > { %v3435_v52 = vadd.f32 1.0, %v4478_v25 }
0x1714   : > { %4479 = vrcp.f32 %v3435_v52  ;;  %v3447_v4 = vand.u32 2147483648, %v3435_v52  ;;  %v3445_v47 = vand.u32 2147483647, %v3435_v52  ;;  %vm3441_vm3 = vweird.f32 %v3435_v52 }
0x1716   : > { %v3448_v29 = vor.u32 1.1754944e-38, %v3447_v4  ;;  %vm3446_vm10 = vcmp.eq.f32.partialorder %v3445_v47, 8.507059e+37 }
0x171a   : > { %v4480_v8 = vpop.eup %4479 }
0x171b   : > { %v3437_v61 = vmul.f32 %v4480_v8, %v3435_v52  ;;  %vm3442_vm15 = vweird.f32 %v4480_v8 }
0x171c   : > { %vm3443_vm9 = vmor %vm3441_vm3, %vm3442_vm15 }
0x171d   : > { %v3438_v31 = vsub.f32 1.0, %v3437_v61  ;;  %v6298_v61 = vld [vmem:[#allocation20_spill] sm:$0xff] }
0x171f   : > { %v3439_v20 = vmul.f32 %v4480_v8, %v3438_v31 }
0x1721   : > { %v3440_v13 = vadd.f32 %v4480_v8, %v3439_v20 }
0x1723   : > { %v3444_v36 = vsel %vm3443_vm9, %v4480_v8, %v3440_v13  ;;  %v6299_v13 = vld [vmem:[#allocation26_spill] sm:$0xff] }
0x1724   : > { %v3449_v45 = vsel %vm3446_vm10, %v3448_v29, %v3444_v36  ;;  %vm6300_vm9 = vcmp.eq.s32.totalorder %v6299_v13, 1 }
0x1725   : > { %v3475_v1 = vmul.f32 %v3473_v40, %v3449_v45  ;;  %vm6301_vm10 = vmmov %vm6300_vm9  ;;  %v6302_v40 = vld [vmem:[#allocation41_spill] sm:$0xff] }
0x1727   : > { %v3476_v11 = vadd.f32 %v3475_v1, %v668_v57  ;;  %v2812_v1 = vsel %vm1937_vm0, %v5775_v15, 0.0  ;;  %vm6309_vm0 = vmmov %vm6300_vm9 }
0x1729   : > { %4481 = vtanh.f32 %v3476_v11 }
0x172a   : > { %4483 = vpow2.f32 %v4184_v21 }
0x172f   : > { %v4482_v54 = vpop.eup %4481 }
0x1730   : > { %3480 = vrot.lane.b32.xlu2 %v4482_v54, %s4530_s14  ;;  %v4484_v50 = vpop.eup %4483  ;;  %v3686_v54 = vld [vmem:[#allocation4 + $0x30] sm:$0xff] }
0x1731   : > { %v3455_v49 = vadd.f32 1.0, %v4484_v50 }
0x1733   : > { %4485 = vrcp.f32 %v3455_v49  ;;  %v3467_v19 = vand.u32 2147483648, %v3455_v49  ;;  %vm3461_vm1 = vweird.f32 %v3455_v49  ;;  %v3465_v34 = vand.u32 2147483647, %v3455_v49 }
0x1735   : > { %v3468_v52 = vor.u32 1.1754944e-38, %v3467_v19  ;;  %vm3466_vm3 = vcmp.eq.f32.partialorder %v3465_v34, 8.507059e+37  ;;  %v2643_v34 = vsel %vm2120_vm13, %v5722_v22, 0.0 }
0x1739   : > { %v4486_v44 = vpop.eup %4485 }
0x173a   : > { %v3457_v56 = vmul.f32 %v4486_v44, %v3455_v49  ;;  %vm3462_vm4 = vweird.f32 %v4486_v44 }
0x173b   : > { %vm3463_vm15 = vmor %vm3461_vm1, %vm3462_vm4  ;;  %vm6305_vm4 = vcmp.eq.s32.totalorder %v6287_v16, 1 }
0x173c   : > { %v3458_v27 = vsub.f32 1.0, %v3457_v56  ;;  %v3319_v11 = vsel %vm6305_vm4, %v5933_v62, 0.0 }
0x173e   : > { %v3459_v46 = vmul.f32 %v4486_v44, %v3458_v27 }
0x1740   : > { %v3460_v14 = vadd.f32 %v4486_v44, %v3459_v46  ;;  %v6310_v46 = vld [vmem:[#allocation45_spill] sm:$0xff] }
0x1742   : > { %v3464_v25 = vsel %vm3463_vm15, %v4486_v44, %v3460_v14 }
0x1743   : > { %v3469_v8 = vsel %vm3466_vm3, %v3468_v52, %v3464_v25 }
0x1744   : > { %v3484_v4 = vmul.f32 %v3469_v8, %v5948_v48 }
0x1778   : > { %v3392_v3 = vpop.permute.xlu0 %3391 }
0x1779   : > { %v3394_v39 = vmul.f32 %v3392_v3, %v3389_v63  ;;  %v6306_v3 = vld [vmem:[#allocation39_spill] sm:$0xff] }
0x177b   : > { %v5974_v10 = vadd.f32 %v3395_v58, %v3394_v39  ;;  %v6308_v39 = vld [vmem:[#allocation25_spill] sm:$0xff] }
0x177d   : > { %v5980_v17 = vsel %vm6297_vm5, %v5974_v10, %v5939_v12  ;;  %v3478_v12 = vsub.f32 1.0, %v3469_v8  ;;  %vm6303_vm5 = vcmp.eq.s32.totalorder %v6280_v38, 1  ;;  %v2305_v38 = vsel %vm2297_vm7, %v5606_v30, 0.0  ;;  %v3692_v30 = vld [vmem:[#allocation4 + $0x60] sm:$0xff] }
0x177e   : > { %v3502_v0 = vpack.c.bf16 %v5980_v17, %v5980_v17  ;;  %v1573_v45 = vsel %vm6303_vm5, %v6302_v40, 0.0  ;;  %v666_v8 = vadd.f32 %v6311_v18, %v5012_v23  ;;  %vm6316_vm5 = vcmp.eq.s32.totalorder %v5579_v5, 1  ;;  %v3684_v5 = vld [vmem:[#allocation4 + $0x20] sm:$0xff] }
0x1780   : > { %3504 = vrot.lane.b32.xlu1 %v3502_v0, %s4530_s14  ;;  %v2122_v0 = vsel %vm2114_vm14, %v6310_v46, 0.0  ;;  %v6314_v46 = vld [vmem:[#allocation18_spill] sm:$0xff] }
0x1788   : > { %1028 = vrot.lane.b32.xlu1 %v6298_v61, %s4530_s14  ;;  %v6312_v61 = vld [vmem:[#allocation35_spill] sm:$0xff] }
0x178a   : > { %v3481_v31 = vpop.permute.xlu2 %3480 }
0x178b   : > { %v3483_v20 = vmul.f32 %v3481_v31, %v3478_v12  ;;  %v605_v12 = vadd.f32 %v6312_v61, %v4911_v28 }
0x178d   : > { %v3485_v47 = vadd.f32 %v3484_v4, %v3483_v20 }
0x178f   : > { %v5991_v29 = vsel %vm6300_vm9, %v3485_v47, %v5948_v48  ;;  %v3495_v36 = vsel %vm6301_vm10, %v3485_v47, 0.0  ;;  %v6304_v48 = vld [vmem:[#allocation43_spill] sm:$0xff] }
0x1790   : > { %3497 = vst.msk [vmem:[#allocation4 + $0x8] sm:$0xff] %vm822_vm12, %v3495_v36  ;;  %v3566_v6 = vpack.c.bf16 %v5991_v29, %v5991_v29  ;;  %1575 = vrot.lane.b32.xlu1 %v1573_v45, %s4530_s14  ;;  %v1756_v57 = vsel %vm1748_vm8, %v6304_v48, 0.0  ;;  %vm6307_vm8 = vcmp.eq.s32.totalorder %v6289_v7, 1  ;;  %v6313_v47 = vld [vmem:[#allocation11_spill] sm:$0xff] }
0x1791   : > { %v1390_v58 = vsel %vm6307_vm8, %v6306_v3, 0.0 }
0x1792   : > { %4188 = vmatmul.msk.bf16.vlgmr.msra.gmra.mxu2 %vm822_vm12, %v3566_v6  ;;  %4189 = vmatmul.msk.bf16.vlgmr.msrb.gmra.mxu3 %vm822_vm12, %v3566_v6 }
0x1798   : > { %1758 = vrot.lane.b32.xlu1 %v1756_v57, %s4530_s14 }
0x17a0   : > { %2307 = vrot.lane.b32.xlu1 %v2305_v38, %s4530_s14 }
0x17a8   : > { %2814 = vrot.lane.b32.xlu1 %v2812_v1, %s4530_s14 }
0x17b0   : > { %3321 = vrot.lane.b32.xlu1 %v3319_v11, %s4530_s14 }
0x17b8   : > { %3718 = vrot.lane.b32.xlu1 %v3683_v26, %s4530_s14 }
0x17c0   : > { %3724 = vrot.lane.b32.xlu1 %v3686_v54, %s4530_s14 }
0x17c8   : > { %3730 = vrot.lane.b32.xlu1 %v3689_v24, %s4530_s14 }
0x17d0   : > { %3736 = vrot.lane.b32.xlu1 %v3692_v30, %s4530_s14 }
0x17f2   : > { %v3505_v59 = vpop.permute.xlu1 %3504 }
0x17f3   : > { %4185 = vmatmul.msk.bf16.vlgmr.msra.gmra.mxu0 %vm822_vm12, %v3505_v59  ;;  %4186 = vmatmul.msk.bf16.vlgmr.msra.gmra.mxu1 %vm822_vm12, %v3505_v59 }
0x17fa   : > { %v1029_v15 = vpop.permute.xlu1 %1028 }
0x17fb   : > { %1031 = vst.msk [vmem:[#allocation3] sm:$0xff] %vm822_vm12, %v1029_v15 }
0x1802   : > { %v1576_v62 = vpop.permute.xlu1 %1575 }
0x1803   : > { %1579 = vst.msk [vmem:[#allocation3 + $0x18] sm:$0xff] %vm822_vm12, %v1576_v62 }
0x180a   : > { %v1759_v16 = vpop.permute.xlu1 %1758  ;;  %v3667_v14 = vld [vmem:[#allocation3 + $0x18] sm:$0xff] }
0x180b   : > { %1762 = vst.msk [vmem:[#allocation3 + $0x20] sm:$0xff] %vm822_vm12, %v1759_v16 }
0x1812   : > { %v2308_v37 = vpop.permute.xlu1 %2307 }
0x1813   : > { %2311 = vst.msk [vmem:[#allocation3 + $0x38] sm:$0xff] %vm822_vm12, %v2308_v37 }
0x1815   : > { %v3579_v21 = vpop.f32.mrf.mxu2  ;;  %v3592_v50 = vpop.f32.mrf.mxu3 }
0x1816   : > { %v3580_v49 = vadd.f32 %v3579_v21, %v4951_v9  ;;  %v3593_v44 = vadd.f32 %v3592_v50, %v4967_v32  ;;  %v1207_v9 = vsel %vm6309_vm0, %v6308_v39, 0.0 }
0x1818   : > { %3641 = vrot.lane.b32.xlu0 %v3593_v44, %s4530_s14  ;;  %3597 = vrot.lane.b32.xlu2 %v3580_v49, %s4530_s14 }
0x181a   : > { %v2815_v56 = vpop.permute.xlu1 %2814 }
0x181b   : > { %2818 = vst.msk [vmem:[#allocation3 + $0x50] sm:$0xff] %vm822_vm12, %v2815_v56 }
0x181d   : > { %v3581_v63 = vpop.f32.mrf.mxu2  ;;  %v3594_v27 = vpop.f32.mrf.mxu3 }
0x1820   : > { %1392 = vrot.lane.b32.xlu0 %v1390_v58, %s4530_s14  ;;  %1209 = vrot.lane.b32.xlu2 %v1207_v9, %s4530_s14 }
0x1822   : > { %v3322_v32 = vpop.permute.xlu1 %3321 }
0x1823   : > { %3325 = vst.msk [vmem:[#allocation3 + $0x68] sm:$0xff] %vm822_vm12, %v3322_v32 }
0x1828   : > { %2124 = vrot.lane.b32.xlu0 %v2122_v0, %s4530_s14 }
0x182a   : > { %v3719_v7 = vpop.permute.xlu1 %3718 }
0x182b   : > { %v3763_v19 = vsel %vm822_vm12, %v3667_v14, %v3719_v7 }
0x182c   : > { %3779 = vst [vmem:[%s6050_s15 + $0x18] sm:$0xff] %v3763_v19 }
0x1830   : > { %2645 = vrot.lane.b32.xlu0 %v2643_v34, %s4530_s14 }
0x1832   : > { %v3725_v34 = vpop.permute.xlu1 %3724 }
0x1870   : > { %v3518_v25 = vpop.f32.mrf.mxu0  ;;  %v3531_v52 = vpop.f32.mrf.mxu1 }
0x1871   : > { %v3519_v31 = vadd.f32 %v3518_v25, %v4913_v33  ;;  %v3532_v44 = vadd.f32 %v3531_v52, %v4946_v2 }
0x1872   : > { %v3598_v4 = vpop.permute.xlu2 %3597 }
0x1873   : > { %v3535_v20 = vadd.f32 %v3519_v31, %v605_v12  ;;  %v3600_v13 = vadd.f32 %v3598_v4, %v6313_v47  ;;  %v6063_v36 = vadd.f32 %v3598_v4, %v666_v8  ;;  %v3150_v12 = vsel %vm1571_vm2, %v5876_v42, 0.0  ;;  %v3731_v31 = vpop.permute.xlu1 %3730  ;;  %v3681_v42 = vld [vmem:[#allocation4 + $0x8] sm:$0xff] }
0x1874   : > { %v2474_v47 = vsel %vm6316_vm5, %v5667_v55, 0.0  ;;  %vm6317_vm2 = vcmp.eq.s32.totalorder %v6296_v60, 1  ;;  %v3687_v55 = vld [vmem:[#allocation4 + $0x38] sm:$0xff] }
0x1875   : > { %v4187_v53 = vmul.f32 -1.442695, %v3535_v20  ;;  %v4190_v22 = vmul.f32 -1.442695, %v3600_v13  ;;  %v3488_v43 = vsel %vm6317_vm2, %v5974_v10, 0.0  ;;  %v3690_v13 = vld [vmem:[#allocation4 + $0x50] sm:$0xff] }
0x1876   : > { %v4191_v51 = vmul.f32 -1.442695, %v6063_v36 }
0x1877   : > { %4487 = vpow2.f32 %v4187_v53 }
0x1878   : > { %4489 = vpow2.f32 %v4190_v22  ;;  %v3520_v40 = vpop.f32.mrf.mxu0  ;;  %v3533_v45 = vpop.f32.mrf.mxu1 }
0x187a   : > { %v1210_v6 = vpop.permute.xlu2 %1209 }
0x187b   : > { %1213 = vst.msk [vmem:[#allocation3 + $0x8] sm:$0xff] %vm822_vm12, %v1210_v6 }
0x187d   : > { %v4488_v23 = vpop.eup %4487 }
0x187e   : > { %v4490_v48 = vpop.eup %4489  ;;  %v3539_v28 = vadd.f32 1.0, %v4488_v23 }
0x187f   : > { %v3604_v57 = vadd.f32 1.0, %v4490_v48 }
0x1880   : > { %4491 = vrcp.f32 %v3539_v28  ;;  %v3551_v54 = vand.u32 2147483648, %v3539_v28  ;;  %v3549_v15 = vand.u32 2147483647, %v3539_v28  ;;  %vm3545_vm7 = vweird.f32 %v3539_v28 }
0x1881   : > { %4493 = vrcp.f32 %v3604_v57  ;;  %v3616_v62 = vand.u32 2147483648, %v3604_v57  ;;  %v3614_v37 = vand.u32 2147483647, %v3604_v57  ;;  %vm3610_vm15 = vweird.f32 %v3604_v57 }
0x1882   : > { %v3552_v50 = vor.u32 1.1754944e-38, %v3551_v54  ;;  %vm3550_vm3 = vcmp.eq.f32.partialorder %v3549_v15, 8.507059e+37 }
0x1883   : > { %v3617_v63 = vor.u32 1.1754944e-38, %v3616_v62  ;;  %vm3615_vm10 = vcmp.eq.f32.partialorder %v3614_v37, 8.507059e+37 }
0x1886   : > { %v4492_v33 = vpop.eup %4491 }
0x1887   : > { %v4494_v38 = vpop.eup %4493  ;;  %v3541_v1 = vmul.f32 %v4492_v33, %v3539_v28  ;;  %vm3546_vm13 = vweird.f32 %v4492_v33  ;;  %v6318_v28 = vld [vmem:[#allocation21_spill] sm:$0xff] }
0x1888   : > { %v3606_v11 = vmul.f32 %v4494_v38, %v3604_v57  ;;  %vm3611_vm14 = vweird.f32 %v4494_v38  ;;  %vm3547_vm1 = vmor %vm3545_vm7, %vm3546_vm13  ;;  %vm6319_vm6 = vcmp.eq.s32.totalorder %v6318_v28, 1 }
0x1889   : > { %v3542_v26 = vsub.f32 1.0, %v3541_v1  ;;  %vm3612_vm9 = vmor %vm3610_vm15, %vm3611_vm14  ;;  %v3682_v1 = vld [vmem:[#allocation4 + $0x10] sm:$0xff] }
0x188a   : > { %v3607_v24 = vsub.f32 1.0, %v3606_v11  ;;  %v3642_v30 = vpop.permute.xlu0 %3641 }
0x188b   : > { %v3543_v59 = vmul.f32 %v4492_v33, %v3542_v26 }
0x188c   : > { %v3608_v16 = vmul.f32 %v4494_v38, %v3607_v24 }
0x188d   : > { %v3544_v21 = vadd.f32 %v4492_v33, %v3543_v59  ;;  %v3685_v59 = vld [vmem:[#allocation4 + $0x28] sm:$0xff] }
0x188e   : > { %v3609_v49 = vadd.f32 %v4494_v38, %v3608_v16 }
0x188f   : > { %v3548_v56 = vsel %vm3547_vm1, %v4492_v33, %v3544_v21 }
0x1890   : > { %v3553_v27 = vsel %vm3550_vm3, %v3552_v50, %v3548_v56  ;;  %v3613_v3 = vsel %vm3612_vm9, %v4494_v38, %v3609_v49  ;;  %v6320_v56 = vld [vmem:[#allocation19_spill] sm:$0xff] }
0x1891   : > { %v3555_v58 = vmul.f32 %v3553_v27, %v3532_v44  ;;  %v3618_v39 = vsel %vm3615_vm10, %v3617_v63, %v3613_v3  ;;  %v3558_v22 = vsub.f32 1.0, %v3553_v27  ;;  %v3564_v45 = vmul.f32 %v3553_v27, %v5980_v17  ;;  %v3688_v44 = vld [vmem:[#allocation4 + $0x40] sm:$0xff] }
0x1892   : > { %v3644_v9 = vmul.f32 %v3642_v30, %v3618_v39  ;;  %v1393_v32 = vpop.permute.xlu0 %1392  ;;  %vm6321_vm13 = vcmp.eq.s32.totalorder %v6320_v56, 1  ;;  %v3665_v39 = vld [vmem:[#allocation3 + $0x8] sm:$0xff] }
0x1893   : > { %v3556_v0 = vadd.f32 %v3555_v58, %v6314_v46  ;;  %1396 = vst.msk [vmem:[#allocation3 + $0x10] sm:$0xff] %vm822_vm12, %v1393_v32  ;;  %v3691_v58 = vld [vmem:[#allocation4 + $0x58] sm:$0xff]  ;;  %v3737_v32 = vpop.permute.xlu1 %3736 }
0x1894   : > { %v3645_v14 = vadd.f32 %v3644_v9, %v666_v8  ;;  %v6315_v8 = vld [vmem:[#allocation44_spill] sm:$0xff] }
0x1895   : > { %4495 = vtanh.f32 %v3556_v0  ;;  %v1939_v61 = vsel %vm1931_vm11, %v6315_v8, 0.0 }
0x1896   : > { %4497 = vtanh.f32 %v3645_v14 }
0x1897   : > { %4499 = vpow2.f32 %v4191_v51 }
0x189a   : > { %v2125_v2 = vpop.permute.xlu0 %2124 }
0x189b   : > { %v4496_v7 = vpop.eup %4495  ;;  %2128 = vst.msk [vmem:[#allocation3 + $0x30] sm:$0xff] %vm822_vm12, %v2125_v2  ;;  %v3694_v2 = vld [vmem:[#allocation4 + $0x70] sm:$0xff] }
0x189c   : > { %v4498_v19 = vpop.eup %4497  ;;  %3560 = vrot.lane.b32.xlu2 %v4496_v7, %s4530_s14  ;;  %v3695_v7 = vld [vmem:[#allocation4 + $0x78] sm:$0xff] }
0x189d   : > { %3649 = vrot.lane.b32.xlu0 %v4498_v19, %s4530_s14  ;;  %v4500_v10 = vpop.eup %4499 }
0x189e   : > { %v3624_v60 = vadd.f32 1.0, %v4500_v10 }
0x18a0   : > { %4501 = vrcp.f32 %v3624_v60  ;;  %v3636_v26 = vand.u32 2147483648, %v3624_v60  ;;  %vm3630_vm4 = vweird.f32 %v3624_v60  ;;  %v3634_v54 = vand.u32 2147483647, %v3624_v60 }
0x18a2   : > { %v3670_v25 = vld [vmem:[#allocation3 + $0x30] sm:$0xff]  ;;  %v2646_v52 = vpop.permute.xlu0 %2645  ;;  %v3637_v30 = vor.u32 1.1754944e-38, %v3636_v26  ;;  %vm3635_vm0 = vcmp.eq.f32.partialorder %v3634_v54, 8.507059e+37 }
0x18a3   : > { %v3766_v18 = vsel %vm822_vm12, %v3670_v25, %v3725_v34  ;;  %2649 = vst.msk [vmem:[#allocation3 + $0x48] sm:$0xff] %vm822_vm12, %v2646_v52  ;;  %v3668_v34 = vld [vmem:[#allocation3 + $0x20] sm:$0xff] }
0x18a4   : > { %3782 = vst [vmem:[%s6050_s15 + $0x30] sm:$0xff] %v3766_v18  ;;  %1941 = vrot.lane.b32.xlu2 %v1939_v61, %s4530_s14  ;;  %v3671_v18 = vld [vmem:[#allocation3 + $0x38] sm:$0xff] }
0x18a5   : > { %3152 = vrot.lane.b32.xlu0 %v3150_v12, %s4530_s14  ;;  %v3674_v12 = vld [vmem:[#allocation3 + $0x50] sm:$0xff] }
0x18a6   : > { %v4502_v53 = vpop.eup %4501 }
0x18a7   : > { %v3626_v23 = vmul.f32 %v4502_v53, %v3624_v60  ;;  %vm3631_vm11 = vweird.f32 %v4502_v53 }
0x18a8   : > { %vm3632_vm8 = vmor %vm3630_vm4, %vm3631_vm11 }
0x18a9   : > { %v3627_v36 = vsub.f32 1.0, %v3626_v23 }
0x18aa   : > { %v3673_v4 = vld [vmem:[#allocation3 + $0x48] sm:$0xff] }
0x18ab   : > { %v3769_v20 = vsel %vm822_vm12, %v3673_v4, %v3731_v31  ;;  %v3628_v38 = vmul.f32 %v4502_v53, %v3627_v36 }
0x18ac   : > { %3785 = vst [vmem:[%s6050_s15 + $0x48] sm:$0xff] %v3769_v20  ;;  %2476 = vrot.lane.b32.xlu2 %v2474_v47, %s4530_s14  ;;  %v3677_v20 = vld [vmem:[#allocation3 + $0x68] sm:$0xff] }
0x18ad   : > { %v3629_v11 = vadd.f32 %v4502_v53, %v3628_v38 }
0x18af   : > { %v3633_v24 = vsel %vm3632_vm8, %v4502_v53, %v3629_v11 }
0x18b0   : > { %v3638_v15 = vsel %vm3635_vm0, %v3637_v30, %v3633_v24  ;;  %v3871_v30 = vld [vmem:[%s6050_s15 + $0x30] sm:$0xff] (%p4607_p5) }
0x18b1   : > { %v3647_v16 = vsub.f32 1.0, %v3638_v15  ;;  %v3653_v21 = vmul.f32 %v3638_v15, %v5991_v29  ;;  %3872 = vst [vmem:[%s3800_s18 + $0x60] sm:$0xff] (%p4607_p5), %v3871_v30 }
0x18b4   : > { %2983 = vrot.lane.b32.xlu2 %v2981_v41, %s4530_s14 }
0x18bc   : > { %3490 = vrot.lane.b32.xlu2 %v3488_v43, %s4530_s14  ;;  %v3666_v43 = vld [vmem:[#allocation3 + $0x10] sm:$0xff] }
0x18c4   : > { %3714 = vrot.lane.b32.xlu2 %v3681_v42, %s4530_s14 }
0x18cc   : > { %3720 = vrot.lane.b32.xlu2 %v3684_v5, %s4530_s14 }
0x18d4   : > { %3726 = vrot.lane.b32.xlu2 %v3687_v55, %s4530_s14 }
0x18dc   : > { %3732 = vrot.lane.b32.xlu2 %v3690_v13, %s4530_s14 }
0x18e4   : > { %3738 = vrot.lane.b32.xlu2 %v3693_v35, %s4530_s14 }
0x18f6   : > { %v3561_v40 = vpop.permute.xlu2 %3560 }
0x18f7   : > { %v3563_v6 = vmul.f32 %v3561_v40, %v3558_v22 }
0x18f9   : > { %v3565_v48 = vadd.f32 %v3564_v45, %v3563_v6  ;;  %v3664_v45 = vld [vmem:[#allocation3] sm:$0xff] }
0x18fb   : > { %v3655_v57 = vsel %vm6319_vm6, %v3565_v48, 0.0 }
0x18fc   : > { %3657 = vrot.lane.b32.xlu0 %v3655_v57, %s4530_s14 }
0x18fe   : > { %v1942_v33 = vpop.permute.xlu2 %1941 }
0x18ff   : > { %1945 = vst.msk [vmem:[#allocation3 + $0x28] sm:$0xff] %vm822_vm12, %v1942_v33 }
0x1904   : > { %3716 = vrot.lane.b32.xlu0 %v3682_v1, %s4530_s14 }
0x1906   : > { %v2477_v17 = vpop.permute.xlu2 %2476  ;;  %v3669_v55 = vld [vmem:[#allocation3 + $0x28] sm:$0xff] }
0x1907   : > { %2480 = vst.msk [vmem:[#allocation3 + $0x40] sm:$0xff] %vm822_vm12, %v2477_v17  ;;  %v3865_v17 = vld [vmem:[%s6050_s15 + $0x18] sm:$0xff] (%p4607_p5) }
0x1908   : > { %3866 = vst [vmem:[%s3800_s18 + $0x30] sm:$0xff] (%p4607_p5), %v3865_v17 }
0x190c   : > { %3722 = vrot.lane.b32.xlu0 %v3685_v59, %s4530_s14 }
0x190e   : > { %v2984_v62 = vpop.permute.xlu2 %2983  ;;  %v3672_v35 = vld [vmem:[#allocation3 + $0x40] sm:$0xff] }
0x190f   : > { %2987 = vst.msk [vmem:[#allocation3 + $0x58] sm:$0xff] %vm822_vm12, %v2984_v62  ;;  %v3650_v37 = vpop.permute.xlu0 %3649  ;;  %v3877_v62 = vld [vmem:[%s6050_s15 + $0x48] sm:$0xff] (%p4607_p5) }
0x1910   : > { %v3652_v50 = vmul.f32 %v3650_v37, %v3647_v16  ;;  %3878 = vst [vmem:[%s3800_s18 + $0x90] sm:$0xff] (%p4607_p5), %v3877_v62 }
0x1912   : > { %v3654_v49 = vadd.f32 %v3653_v21, %v3652_v50 }
0x1914   : > { %v3662_v63 = vsel %vm6321_vm13, %v3654_v49, 0.0  ;;  %3728 = vrot.lane.b32.xlu0 %v3688_v44, %s4530_s14 }
0x1915   : > { %3663 = vst.msk [vmem:[#allocation4] sm:$0xff] %vm822_vm12, %v3662_v63 }
0x1916   : > { %v3491_v27 = vpop.permute.xlu2 %3490  ;;  %v3675_v53 = vld [vmem:[#allocation3 + $0x58] sm:$0xff] }
0x1917   : > { %3494 = vst.msk [vmem:[#allocation3 + $0x70] sm:$0xff] %vm822_vm12, %v3491_v27  ;;  %v3153_v3 = vpop.permute.xlu0 %3152 }
0x1918   : > { %3156 = vst.msk [vmem:[#allocation3 + $0x60] sm:$0xff] %vm822_vm12, %v3153_v3 }
0x191c   : > { %3734 = vrot.lane.b32.xlu0 %v3691_v58, %s4530_s14  ;;  %v3680_v29 = vld [vmem:[#allocation4] sm:$0xff] }
0x191d   : > { %3712 = vrot.lane.b32.xlu1 %v3680_v29, %s4530_s14 }
0x191e   : > { %v3715_v9 = vpop.permute.xlu2 %3714  ;;  %v3678_v48 = vld [vmem:[#allocation3 + $0x70] sm:$0xff] }
0x191f   : > { %v3676_v46 = vld [vmem:[#allocation3 + $0x60] sm:$0xff]  ;;  %v3761_v0 = vsel %vm822_vm12, %v3665_v39, %v3715_v9 }
0x1920   : > { %v3772_v14 = vsel %vm822_vm12, %v3676_v46, %v3737_v32  ;;  %3777 = vst [vmem:[%s6050_s15 + $0x8] sm:$0xff] %v3761_v0 }
0x1921   : > { %3788 = vst [vmem:[%s6050_s15 + $0x60] sm:$0xff] %v3772_v14 }
0x1924   : > { %3740 = vrot.lane.b32.xlu0 %v3694_v2, %s4530_s14 }
0x1925   : > { %3742 = vrot.lane.b32.xlu1 %v3695_v7, %s4530_s14 }
0x1926   : > { %v3721_v19 = vpop.permute.xlu2 %3720 }
0x1927   : > { %v3764_v25 = vsel %vm822_vm12, %v3668_v34, %v3721_v19  ;;  %v3861_v11 = vld [vmem:[%s6050_s15 + $0x8] sm:$0xff] (%p4607_p5) }
0x1928   : > { %3780 = vst [vmem:[%s6050_s15 + $0x20] sm:$0xff] %v3764_v25  ;;  %v3883_v21 = vld [vmem:[%s6050_s15 + $0x60] sm:$0xff] (%p4607_p5) }
0x1929   : > { %3862 = vst [vmem:[%s3800_s18 + $0x10] sm:$0xff] (%p4607_p5), %v3861_v11 }
0x192a   : > { %3884 = vst [vmem:[%s3800_s18 + $0xc0] sm:$0xff] (%p4607_p5), %v3883_v21 }
0x192e   : > { %v3727_v52 = vpop.permute.xlu2 %3726 }
0x192f   : > { %v3767_v8 = vsel %vm822_vm12, %v3671_v18, %v3727_v52  ;;  %v3867_v54 = vld [vmem:[%s6050_s15 + $0x20] sm:$0xff] (%p4607_p5) }
0x1930   : > { %3783 = vst [vmem:[%s6050_s15 + $0x38] sm:$0xff] %v3767_v8 }
0x1931   : > { %3868 = vst [vmem:[%s3800_s18 + $0x40] sm:$0xff] (%p4607_p5), %v3867_v54 }
0x1936   : > { %v3733_v61 = vpop.permute.xlu2 %3732 }
0x1937   : > { %v3770_v31 = vsel %vm822_vm12, %v3674_v12, %v3733_v61  ;;  %v3873_v59 = vld [vmem:[%s6050_s15 + $0x38] sm:$0xff] (%p4607_p5) }
0x1938   : > { %3786 = vst [vmem:[%s6050_s15 + $0x50] sm:$0xff] %v3770_v31 }
0x1939   : > { %3874 = vst [vmem:[%s3800_s18 + $0x70] sm:$0xff] (%p4607_p5), %v3873_v59 }
0x193e   : > { %v3739_v4 = vpop.permute.xlu2 %3738 }
0x193f   : > { %v3773_v47 = vsel %vm822_vm12, %v3677_v20, %v3739_v4  ;;  %v3879_v16 = vld [vmem:[%s6050_s15 + $0x50] sm:$0xff] (%p4607_p5) }
0x1940   : > { %3789 = vst [vmem:[%s6050_s15 + $0x68] sm:$0xff] %v3773_v47 }
0x1941   : > { %3880 = vst [vmem:[%s3800_s18 + $0xa0] sm:$0xff] (%p4607_p5), %v3879_v16 }
0x1947   : > { %v3885_v50 = vld [vmem:[%s6050_s15 + $0x68] sm:$0xff] (%p4607_p5) }
0x1948   : > { %3886 = vst [vmem:[%s3800_s18 + $0xd0] sm:$0xff] (%p4607_p5), %v3885_v50 }
0x196e   : > { %v3658_v41 = vpop.permute.xlu0 %3657 }
0x196f   : > { %3661 = vst.msk [vmem:[#allocation3 + $0x78] sm:$0xff] %vm822_vm12, %v3658_v41 }
0x1976   : > { %v3717_v42 = vpop.permute.xlu0 %3716  ;;  %v3679_v33 = vld [vmem:[#allocation3 + $0x78] sm:$0xff] }
0x1977   : > { %v3762_v5 = vsel %vm822_vm12, %v3666_v43, %v3717_v42 }
0x1978   : > { %3778 = vst [vmem:[%s6050_s15 + $0x10] sm:$0xff] %v3762_v5 }
0x197e   : > { %v3723_v13 = vpop.permute.xlu0 %3722 }
0x197f   : > { %v3765_v51 = vsel %vm822_vm12, %v3669_v55, %v3723_v13  ;;  %v3863_v26 = vld [vmem:[%s6050_s15 + $0x10] sm:$0xff] (%p4607_p5) }
0x1980   : > { %3781 = vst [vmem:[%s6050_s15 + $0x28] sm:$0xff] %v3765_v51 }
0x1981   : > { %3864 = vst [vmem:[%s3800_s18 + $0x20] sm:$0xff] (%p4607_p5), %v3863_v26 }
0x1986   : > { %v3729_v10 = vpop.permute.xlu0 %3728 }
0x1987   : > { %v3768_v60 = vsel %vm822_vm12, %v3672_v35, %v3729_v10  ;;  %v3869_v24 = vld [vmem:[%s6050_s15 + $0x28] sm:$0xff] (%p4607_p5) }
0x1988   : > { %3784 = vst [vmem:[%s6050_s15 + $0x40] sm:$0xff] %v3768_v60 }
0x1989   : > { %3870 = vst [vmem:[%s3800_s18 + $0x50] sm:$0xff] (%p4607_p5), %v3869_v24 }
0x198e   : > { %v3735_v22 = vpop.permute.xlu0 %3734 }
0x198f   : > { %v3771_v40 = vsel %vm822_vm12, %v3675_v53, %v3735_v22  ;;  %v3713_v6 = vpop.permute.xlu1 %3712  ;;  %v3875_v15 = vld [vmem:[%s6050_s15 + $0x40] sm:$0xff] (%p4607_p5) }
0x1990   : > { %3787 = vst [vmem:[%s6050_s15 + $0x58] sm:$0xff] %v3771_v40  ;;  %v3760_v23 = vsel %vm822_vm12, %v3664_v45, %v3713_v6 }
0x1991   : > { %3776 = vst [vmem:[%s6050_s15] sm:$0xff] %v3760_v23 }
0x1992   : > { %3876 = vst [vmem:[%s3800_s18 + $0x80] sm:$0xff] (%p4607_p5), %v3875_v15 }
0x1995   : > { %3798 = sbr.rel (!%p4607_p5) target bundleno = 6562 (0x19a2), region = 94 }
0x1996   : > { %v3741_v28 = vpop.permute.xlu0 %3740 }
0x1997   : > { %v3774_v57 = vsel %vm822_vm12, %v3678_v48, %v3741_v28  ;;  %v3743_v36 = vpop.permute.xlu1 %3742  ;;  %v3881_v37 = vld [vmem:[%s6050_s15 + $0x58] sm:$0xff] (%p4607_p5) }
0x1998   : > { %3790 = vst [vmem:[%s6050_s15 + $0x70] sm:$0xff] %v3774_v57  ;;  %v3775_v38 = vsel %vm822_vm12, %v3679_v33, %v3743_v36  ;;  %v3859_v1 = vld [vmem:[%s6050_s15] sm:$0xff] (%p4607_p5) }
0x1999   : > { %3791 = vst [vmem:[%s6050_s15 + $0x78] sm:$0xff] %v3775_v38 }
0x199a   : > { %3860 = vst [vmem:[%s3800_s18] sm:$0xff] %v3859_v1 }
0x199b   : > { %3882 = vst [vmem:[%s3800_s18 + $0xb0] sm:$0xff] %v3881_v37 }
0x199f   : > { %v3887_v49 = vld [vmem:[%s6050_s15 + $0x70] sm:$0xff] }
0x19a0   : > { %v3889_v44 = vld [vmem:[%s6050_s15 + $0x78] sm:$0xff]  ;;  %3888 = vst [vmem:[%s3800_s18 + $0xe0] sm:$0xff] %v3887_v49 }
0x19a1   : > { %3890 = vst [vmem:[%s3800_s18 + $0xf0] sm:$0xff] %v3889_v44 }
0x19a2 PF: > { %p15_p11 = scmp.ge.s32.totalorder %s4595_s9, 4   ;;  %s6322_s27 = smov %s4523_s28 }
0x19a3   : > { %s6323_s28 = smov %s4605_s12  ;;  %s6324_s29 = smov %s4595_s9 }
0x19a4   :  { %17 = sbr.rel (!%p15_p11) target bundleno = 2 (0x2), region = 211 }

</bundles_post_ra>
